<compile_context>
chip_gen: v7x
topology: tpu7x:2x2x1
jax: 0.10.0
libtpu: 0.0.40
codegen_flags: <defaults>
</compile_context>

<pallas_src>
import functools

import jax
import jax.numpy as jnp
from jax.experimental import pallas as pl
from jax.experimental.pallas import tpu as pltpu

KSIZE = 5                  # conv kernel size (hard-coded in the PyTorch module)
PAD = (KSIZE - 1) // 2     # "same" padding


def _round_up(x, m):
    return (x + m - 1) // m * m


# ----------------------------- Pallas kernel -----------------------------

def _conv1d_bn_act_kernel(x_ref, w_ref, scale_ref, shift_ref, o_ref, *, n_taps, act):
    """One (batch item, L-tile) block of same-padded Conv1d + folded BN + act.

    x_ref:     (1, 1, TL + K - 1, Cin)  f32 input window (includes K-1 halo)
    w_ref:     (K, Cin, Cout)           bf16 conv weights (resident across grid)
    scale_ref: (1, Cout)                f32 folded BN scale
    shift_ref: (1, Cout)                f32 folded BN shift (includes conv bias)
    o_ref:     (1, TL, Cout)            f32 output tile
    """
    tl = o_ref.shape[1]
    cout = o_ref.shape[2]
    x = x_ref[0, 0].astype(jnp.bfloat16)                      # (TL+K-1, Cin)
    acc = jnp.zeros((tl, cout), jnp.float32)
    for k in range(n_taps):                                   # static unroll over taps
        acc = acc + jnp.dot(x[k:k + tl, :], w_ref[k],
                            preferred_element_type=jnp.float32)
    y = acc * scale_ref[...] + shift_ref[...]                 # folded BN (+ conv bias)
    if act == "tanh":
        y = jnp.tanh(y)
    o_ref[0] = y.astype(o_ref.dtype)


def conv1d_bn_act(x, w_bf16, scale, shift, *, act="none", max_tile=256):
    """Same-padded Conv1d + folded eval-mode BatchNorm + activation.

    x: (B, L, Cin) f32 channels-last; w_bf16: (K, Cin, Cout) bf16.
    Returns (B, L, Cout) f32.
    """
    B, L, Cin = x.shape
    K, _, Cout = w_bf16.shape

    tl = min(max_tile, _round_up(L, 8))          # output tile along L (multiple of 8)
    Lm = _round_up(L, tl)                        # padded length, multiple of tl
    n_t = Lm // tl

    # zero-pad: K//2 halo on the left, K//2 halo + tile rounding on the right
    xp = jnp.pad(x, ((0, 0), (PAD, (Lm - L) + PAD), (0, 0)))
    # overlapping windows with a K-1 halo: (B, n_t, tl + K - 1, Cin)
    win_idx = (jnp.arange(n_t)[:, None] * tl
               + jnp.arange(tl + K - 1)[None, :]).reshape(-1)
    xw = jnp.take(xp, win_idx, axis=1).reshape(B, n_t, tl + K - 1, Cin)

    out = pl.pallas_call(
        functools.partial(_conv1d_bn_act_kernel, n_taps=K, act=act),
        out_shape=jax.ShapeDtypeStruct((B, Lm, Cout), jnp.float32),
        grid=(B, n_t),
        in_specs=[
            pl.BlockSpec((1, 1, tl + K - 1, Cin), lambda b, t: (b, t, 0, 0)),
            pl.BlockSpec((K, Cin, Cout), lambda b, t: (0, 0, 0)),   # weights resident
            pl.BlockSpec((1, Cout), lambda b, t: (0, 0)),
            pl.BlockSpec((1, Cout), lambda b, t: (0, 0)),
        ],
        out_specs=pl.BlockSpec((1, tl, Cout), lambda b, t: (b, t, 0)),
        compiler_params=pltpu.CompilerParams(
            dimension_semantics=("parallel", "parallel")),
    )(xw, w_bf16, scale.reshape(1, -1), shift.reshape(1, -1))
    return out[:, :L, :]


# ----------------------------- parameters -----------------------------

def init_postnet_params(key, n_mels):
    """Postnet parameters.  Conv weights are (K, Cin, Cout) bf16; eval-mode
    BatchNorm (running_mean=0, running_var=1) is folded with the conv bias into
    a per-channel f32 scale/shift."""
    channels = [n_mels, 512, 512, 512, 512, n_mels]
    keys = jax.random.split(key, 4 * (len(channels) - 1))
    eps = 1e-5
    params = []
    for i in range(len(channels) - 1):
        cin, cout = channels[i], channels[i + 1]
        k_w, k_b, k_g, k_be = keys[4 * i:4 * i + 4]
        fan_in = cin * KSIZE
        w = jax.random.normal(k_w, (KSIZE, cin, cout), jnp.float32) / jnp.sqrt(fan_in)
        bias = 0.05 * jax.random.normal(k_b, (cout,), jnp.float32)
        gamma = 1.0 + 0.01 * jax.random.normal(k_g, (cout,), jnp.float32)
        beta = 0.01 * jax.random.normal(k_be, (cout,), jnp.float32)
        scale = gamma / jnp.sqrt(1.0 + eps)          # running stats: mean=0, var=1
        shift = beta + scale * bias
        params.append({"w": w.astype(jnp.bfloat16),
                       "scale": scale.astype(jnp.float32),
                       "shift": shift.astype(jnp.float32)})
    return params


# ----------------------------- forward pass -----------------------------

@jax.jit
def postnet_forward(params, x):
    """x: (B, n_mels, T) -> (B, n_mels, T), matching Postnet.forward."""
    # TODO(synk): BatchNorm uses eval-mode running statistics (mean=0, var=1 of a
    # freshly constructed module) folded into scale/shift; training-mode batch
    # statistics are not reproduced.
    y = jnp.swapaxes(x, 1, 2)                        # (B, T, n_mels) channels-last
    n_layers = len(params)
    for i, layer in enumerate(params):
        act = "tanh" if i < n_layers - 1 else "none"
        y = conv1d_bn_act(y, layer["w"], layer["scale"], layer["shift"], act=act)
    return jnp.swapaxes(y, 1, 2)                     # back to (B, n_mels, T)


# ----------------------------- driver -----------------------------

if __name__ == "__main__":
    key = jax.random.PRNGKey(0)
    pkey, xkey = jax.random.split(key)

    B, n_mels, T = 2, 16, 32
    params = init_postnet_params(pkey, n_mels)
    x = jax.random.normal(xkey, (B, n_mels, T), jnp.float32)

    out = postnet_forward(params, x)
    out = jax.block_until_ready(out)

    assert out.shape == (B, n_mels, T), out.shape
    assert bool(jnp.isfinite(out).all())
    print("KERNEL_OK")
</pallas_src>

<mosaic_0001>
module attributes {stable_mosaic.version = 11 : i64} {
  func.func @_conv1d_bn_act_kernel(%arg0: i32, %arg1: i32, %arg2: memref<1x1x36x16xf32, #tpu.memory_space<vmem>>, %arg3: memref<5x16x512xbf16, #tpu.memory_space<vmem>>, %arg4: memref<1x512xf32, #tpu.memory_space<vmem>>, %arg5: memref<1x512xf32, #tpu.memory_space<vmem>>, %arg6: memref<1x32x512xf32, #tpu.memory_space<vmem>>) attributes {dimension_semantics = [#tpu.dimension_semantics<parallel>, #tpu.dimension_semantics<parallel>], iteration_bounds = array<i64: 2, 1>, scalar_prefetch = 0 : i64, scratch_operands = 0 : i64, tpu.core_type = #tpu.core_type<tc>, window_params = [{transform_indices = @transform_0, window_bounds = array<i64: 1, 1, 36, 16>}, {pipeline_mode = #tpu.pipeline_mode<synchronous>, transform_indices = @transform_1, window_bounds = array<i64: 5, 16, 512>}, {pipeline_mode = #tpu.pipeline_mode<synchronous>, transform_indices = @transform_2, window_bounds = array<i64: 1, 512>}, {pipeline_mode = #tpu.pipeline_mode<synchronous>, transform_indices = @transform_3, window_bounds = array<i64: 1, 512>}, {transform_indices = @transform_4, window_bounds = array<i64: 1, 32, 512>}]} {
    %c0 = arith.constant 0 : index
    %c0_0 = arith.constant 0 : index
    %c0_1 = arith.constant 0 : index
    %c0_2 = arith.constant 0 : index
    %0 = vector.load %arg2[%c0, %c0_0, %c0_1, %c0_2] : memref<1x1x36x16xf32, #tpu.memory_space<vmem>>, vector<1x1x36x16xf32>
    %1 = vector.shape_cast %0 : vector<1x1x36x16xf32> to vector<36x16xf32>
    %2 = arith.truncf %1 : vector<36x16xf32> to vector<36x16xbf16>
    %cst = arith.constant 0.000000e+00 : f32
    %3 = vector.broadcast %cst : f32 to vector<32x512xf32>
    %4 = vector.extract_strided_slice %2 {offsets = [0, 0], sizes = [32, 16], strides = [1, 1]} : vector<36x16xbf16> to vector<32x16xbf16>
    %c0_3 = arith.constant 0 : index
    %c0_4 = arith.constant 0 : index
    %c0_5 = arith.constant 0 : index
    %5 = vector.load %arg3[%c0_3, %c0_4, %c0_5] : memref<5x16x512xbf16, #tpu.memory_space<vmem>>, vector<1x16x512xbf16>
    %6 = vector.shape_cast %5 : vector<1x16x512xbf16> to vector<16x512xbf16>
    %cst_6 = arith.constant dense<0.000000e+00> : vector<32x512xf32>
    %7 = tpu.matmul %4, %6, %cst_6 {dimension_numbers = #tpu.dot_dimension_numbers<[1], [0], [0], [1], [0, 0, 1, 1], [], []>} : vector<32x16xbf16>, vector<16x512xbf16>, vector<32x512xf32> -> vector<32x512xf32>
    %8 = arith.addf %3, %7 : vector<32x512xf32>
    %9 = vector.extract_strided_slice %2 {offsets = [1, 0], sizes = [32, 16], strides = [1, 1]} : vector<36x16xbf16> to vector<32x16xbf16>
    %c1 = arith.constant 1 : index
    %c0_7 = arith.constant 0 : index
    %c0_8 = arith.constant 0 : index
    %10 = vector.load %arg3[%c1, %c0_7, %c0_8] : memref<5x16x512xbf16, #tpu.memory_space<vmem>>, vector<1x16x512xbf16>
    %11 = vector.shape_cast %10 : vector<1x16x512xbf16> to vector<16x512xbf16>
    %cst_9 = arith.constant dense<0.000000e+00> : vector<32x512xf32>
    %12 = tpu.matmul %9, %11, %cst_9 {dimension_numbers = #tpu.dot_dimension_numbers<[1], [0], [0], [1], [0, 0, 1, 1], [], []>} : vector<32x16xbf16>, vector<16x512xbf16>, vector<32x512xf32> -> vector<32x512xf32>
    %13 = arith.addf %8, %12 : vector<32x512xf32>
    %14 = vector.extract_strided_slice %2 {offsets = [2, 0], sizes = [32, 16], strides = [1, 1]} : vector<36x16xbf16> to vector<32x16xbf16>
    %c2 = arith.constant 2 : index
    %c0_10 = arith.constant 0 : index
    %c0_11 = arith.constant 0 : index
    %15 = vector.load %arg3[%c2, %c0_10, %c0_11] : memref<5x16x512xbf16, #tpu.memory_space<vmem>>, vector<1x16x512xbf16>
    %16 = vector.shape_cast %15 : vector<1x16x512xbf16> to vector<16x512xbf16>
    %cst_12 = arith.constant dense<0.000000e+00> : vector<32x512xf32>
    %17 = tpu.matmul %14, %16, %cst_12 {dimension_numbers = #tpu.dot_dimension_numbers<[1], [0], [0], [1], [0, 0, 1, 1], [], []>} : vector<32x16xbf16>, vector<16x512xbf16>, vector<32x512xf32> -> vector<32x512xf32>
    %18 = arith.addf %13, %17 : vector<32x512xf32>
    %19 = vector.extract_strided_slice %2 {offsets = [3, 0], sizes = [32, 16], strides = [1, 1]} : vector<36x16xbf16> to vector<32x16xbf16>
    %c3 = arith.constant 3 : index
    %c0_13 = arith.constant 0 : index
    %c0_14 = arith.constant 0 : index
    %20 = vector.load %arg3[%c3, %c0_13, %c0_14] : memref<5x16x512xbf16, #tpu.memory_space<vmem>>, vector<1x16x512xbf16>
    %21 = vector.shape_cast %20 : vector<1x16x512xbf16> to vector<16x512xbf16>
    %cst_15 = arith.constant dense<0.000000e+00> : vector<32x512xf32>
    %22 = tpu.matmul %19, %21, %cst_15 {dimension_numbers = #tpu.dot_dimension_numbers<[1], [0], [0], [1], [0, 0, 1, 1], [], []>} : vector<32x16xbf16>, vector<16x512xbf16>, vector<32x512xf32> -> vector<32x512xf32>
    %23 = arith.addf %18, %22 : vector<32x512xf32>
    %24 = vector.extract_strided_slice %2 {offsets = [4, 0], sizes = [32, 16], strides = [1, 1]} : vector<36x16xbf16> to vector<32x16xbf16>
    %c4 = arith.constant 4 : index
    %c0_16 = arith.constant 0 : index
    %c0_17 = arith.constant 0 : index
    %25 = vector.load %arg3[%c4, %c0_16, %c0_17] : memref<5x16x512xbf16, #tpu.memory_space<vmem>>, vector<1x16x512xbf16>
    %26 = vector.shape_cast %25 : vector<1x16x512xbf16> to vector<16x512xbf16>
    %cst_18 = arith.constant dense<0.000000e+00> : vector<32x512xf32>
    %27 = tpu.matmul %24, %26, %cst_18 {dimension_numbers = #tpu.dot_dimension_numbers<[1], [0], [0], [1], [0, 0, 1, 1], [], []>} : vector<32x16xbf16>, vector<16x512xbf16>, vector<32x512xf32> -> vector<32x512xf32>
    %28 = arith.addf %23, %27 : vector<32x512xf32>
    %c0_19 = arith.constant 0 : index
    %c0_20 = arith.constant 0 : index
    %29 = vector.load %arg4[%c0_19, %c0_20] : memref<1x512xf32, #tpu.memory_space<vmem>>, vector<1x512xf32>
    %30 = vector.broadcast %29 : vector<1x512xf32> to vector<32x512xf32>
    %31 = arith.mulf %28, %30 : vector<32x512xf32>
    %c0_21 = arith.constant 0 : index
    %c0_22 = arith.constant 0 : index
    %32 = vector.load %arg5[%c0_21, %c0_22] : memref<1x512xf32, #tpu.memory_space<vmem>>, vector<1x512xf32>
    %33 = vector.broadcast %32 : vector<1x512xf32> to vector<32x512xf32>
    %34 = arith.addf %31, %33 : vector<32x512xf32>
    %35 = math.tanh %34 : vector<32x512xf32>
    %c0_23 = arith.constant 0 : index
    %c0_24 = arith.constant 0 : index
    %c0_25 = arith.constant 0 : index
    %36 = vector.load %arg6[%c0_23, %c0_24, %c0_25] : memref<1x32x512xf32, #tpu.memory_space<vmem>>, vector<1x32x512xf32>
    %37 = vector.shape_cast %36 : vector<1x32x512xf32> to vector<32x512xf32>
    %38 = vector.shape_cast %35 : vector<32x512xf32> to vector<1x32x512xf32>
    tpu.vector_store %arg6[%c0_23, %c0_24, %c0_25], %38 {strides = array<i32>} : memref<1x32x512xf32, #tpu.memory_space<vmem>>, vector<1x32x512xf32>,
    return
  }
  func.func @transform_0(%arg0: i32, %arg1: i32) -> (i32, i32, i32, i32) {
    %c0_i32 = arith.constant 0 : i32
    %c0_i32_0 = arith.constant 0 : i32
    %c0_i32_1 = arith.constant 0 : i32
    return %arg0, %arg1, %c0_i32, %c0_i32_0 : i32, i32, i32, i32
  }
  func.func @transform_1(%arg0: i32, %arg1: i32) -> (i32, i32, i32) {
    %c0_i32 = arith.constant 0 : i32
    %c0_i32_0 = arith.constant 0 : i32
    %c0_i32_1 = arith.constant 0 : i32
    %c0_i32_2 = arith.constant 0 : i32
    return %c0_i32, %c0_i32_0, %c0_i32_1 : i32, i32, i32
  }
  func.func @transform_2(%arg0: i32, %arg1: i32) -> (i32, i32) {
    %c0_i32 = arith.constant 0 : i32
    %c0_i32_0 = arith.constant 0 : i32
    %c0_i32_1 = arith.constant 0 : i32
    return %c0_i32, %c0_i32_0 : i32, i32
  }
  func.func @transform_3(%arg0: i32, %arg1: i32) -> (i32, i32) {
    %c0_i32 = arith.constant 0 : i32
    %c0_i32_0 = arith.constant 0 : i32
    %c0_i32_1 = arith.constant 0 : i32
    return %c0_i32, %c0_i32_0 : i32, i32
  }
  func.func @transform_4(%arg0: i32, %arg1: i32) -> (i32, i32, i32) {
    %c0_i32 = arith.constant 0 : i32
    %c0_i32_0 = arith.constant 0 : i32
    return %arg0, %arg1, %c0_i32 : i32, i32, i32
  }
}

module attributes {stable_mosaic.version = 11 : i64} {
  func.func @_conv1d_bn_act_kernel(%arg0: i32, %arg1: i32, %arg2: memref<1x1x36x512xf32, #tpu.memory_space<vmem>>, %arg3: memref<5x512x512xbf16, #tpu.memory_space<vmem>>, %arg4: memref<1x512xf32, #tpu.memory_space<vmem>>, %arg5: memref<1x512xf32, #tpu.memory_space<vmem>>, %arg6: memref<1x32x512xf32, #tpu.memory_space<vmem>>) attributes {dimension_semantics = [#tpu.dimension_semantics<parallel>, #tpu.dimension_semantics<parallel>], iteration_bounds = array<i64: 2, 1>, scalar_prefetch = 0 : i64, scratch_operands = 0 : i64, tpu.core_type = #tpu.core_type<tc>, window_params = [{transform_indices = @transform_0, window_bounds = array<i64: 1, 1, 36, 512>}, {pipeline_mode = #tpu.pipeline_mode<synchronous>, transform_indices = @transform_1, window_bounds = array<i64: 5, 512, 512>}, {pipeline_mode = #tpu.pipeline_mode<synchronous>, transform_indices = @transform_2, window_bounds = array<i64: 1, 512>}, {pipeline_mode = #tpu.pipeline_mode<synchronous>, transform_indices = @transform_3, window_bounds = array<i64: 1, 512>}, {transform_indices = @transform_4, window_bounds = array<i64: 1, 32, 512>}]} {
    %c0 = arith.constant 0 : index
    %c0_0 = arith.constant 0 : index
    %c0_1 = arith.constant 0 : index
    %c0_2 = arith.constant 0 : index
    %0 = vector.load %arg2[%c0, %c0_0, %c0_1, %c0_2] : memref<1x1x36x512xf32, #tpu.memory_space<vmem>>, vector<1x1x36x512xf32>
    %1 = vector.shape_cast %0 : vector<1x1x36x512xf32> to vector<36x512xf32>
    %2 = arith.truncf %1 : vector<36x512xf32> to vector<36x512xbf16>
    %cst = arith.constant 0.000000e+00 : f32
    %3 = vector.broadcast %cst : f32 to vector<32x512xf32>
    %4 = vector.extract_strided_slice %2 {offsets = [0, 0], sizes = [32, 512], strides = [1, 1]} : vector<36x512xbf16> to vector<32x512xbf16>
    %c0_3 = arith.constant 0 : index
    %c0_4 = arith.constant 0 : index
    %c0_5 = arith.constant 0 : index
    %5 = vector.load %arg3[%c0_3, %c0_4, %c0_5] : memref<5x512x512xbf16, #tpu.memory_space<vmem>>, vector<1x512x512xbf16>
    %6 = vector.shape_cast %5 : vector<1x512x512xbf16> to vector<512x512xbf16>
    %cst_6 = arith.constant dense<0.000000e+00> : vector<32x512xf32>
    %7 = tpu.matmul %4, %6, %cst_6 {dimension_numbers = #tpu.dot_dimension_numbers<[1], [0], [0], [1], [0, 0, 1, 1], [], []>} : vector<32x512xbf16>, vector<512x512xbf16>, vector<32x512xf32> -> vector<32x512xf32>
    %8 = arith.addf %3, %7 : vector<32x512xf32>
    %9 = vector.extract_strided_slice %2 {offsets = [1, 0], sizes = [32, 512], strides = [1, 1]} : vector<36x512xbf16> to vector<32x512xbf16>
    %c1 = arith.constant 1 : index
    %c0_7 = arith.constant 0 : index
    %c0_8 = arith.constant 0 : index
    %10 = vector.load %arg3[%c1, %c0_7, %c0_8] : memref<5x512x512xbf16, #tpu.memory_space<vmem>>, vector<1x512x512xbf16>
    %11 = vector.shape_cast %10 : vector<1x512x512xbf16> to vector<512x512xbf16>
    %cst_9 = arith.constant dense<0.000000e+00> : vector<32x512xf32>
    %12 = tpu.matmul %9, %11, %cst_9 {dimension_numbers = #tpu.dot_dimension_numbers<[1], [0], [0], [1], [0, 0, 1, 1], [], []>} : vector<32x512xbf16>, vector<512x512xbf16>, vector<32x512xf32> -> vector<32x512xf32>
    %13 = arith.addf %8, %12 : vector<32x512xf32>
    %14 = vector.extract_strided_slice %2 {offsets = [2, 0], sizes = [32, 512], strides = [1, 1]} : vector<36x512xbf16> to vector<32x512xbf16>
    %c2 = arith.constant 2 : index
    %c0_10 = arith.constant 0 : index
    %c0_11 = arith.constant 0 : index
    %15 = vector.load %arg3[%c2, %c0_10, %c0_11] : memref<5x512x512xbf16, #tpu.memory_space<vmem>>, vector<1x512x512xbf16>
    %16 = vector.shape_cast %15 : vector<1x512x512xbf16> to vector<512x512xbf16>
    %cst_12 = arith.constant dense<0.000000e+00> : vector<32x512xf32>
    %17 = tpu.matmul %14, %16, %cst_12 {dimension_numbers = #tpu.dot_dimension_numbers<[1], [0], [0], [1], [0, 0, 1, 1], [], []>} : vector<32x512xbf16>, vector<512x512xbf16>, vector<32x512xf32> -> vector<32x512xf32>
    %18 = arith.addf %13, %17 : vector<32x512xf32>
    %19 = vector.extract_strided_slice %2 {offsets = [3, 0], sizes = [32, 512], strides = [1, 1]} : vector<36x512xbf16> to vector<32x512xbf16>
    %c3 = arith.constant 3 : index
    %c0_13 = arith.constant 0 : index
    %c0_14 = arith.constant 0 : index
    %20 = vector.load %arg3[%c3, %c0_13, %c0_14] : memref<5x512x512xbf16, #tpu.memory_space<vmem>>, vector<1x512x512xbf16>
    %21 = vector.shape_cast %20 : vector<1x512x512xbf16> to vector<512x512xbf16>
    %cst_15 = arith.constant dense<0.000000e+00> : vector<32x512xf32>
    %22 = tpu.matmul %19, %21, %cst_15 {dimension_numbers = #tpu.dot_dimension_numbers<[1], [0], [0], [1], [0, 0, 1, 1], [], []>} : vector<32x512xbf16>, vector<512x512xbf16>, vector<32x512xf32> -> vector<32x512xf32>
    %23 = arith.addf %18, %22 : vector<32x512xf32>
    %24 = vector.extract_strided_slice %2 {offsets = [4, 0], sizes = [32, 512], strides = [1, 1]} : vector<36x512xbf16> to vector<32x512xbf16>
    %c4 = arith.constant 4 : index
    %c0_16 = arith.constant 0 : index
    %c0_17 = arith.constant 0 : index
    %25 = vector.load %arg3[%c4, %c0_16, %c0_17] : memref<5x512x512xbf16, #tpu.memory_space<vmem>>, vector<1x512x512xbf16>
    %26 = vector.shape_cast %25 : vector<1x512x512xbf16> to vector<512x512xbf16>
    %cst_18 = arith.constant dense<0.000000e+00> : vector<32x512xf32>
    %27 = tpu.matmul %24, %26, %cst_18 {dimension_numbers = #tpu.dot_dimension_numbers<[1], [0], [0], [1], [0, 0, 1, 1], [], []>} : vector<32x512xbf16>, vector<512x512xbf16>, vector<32x512xf32> -> vector<32x512xf32>
    %28 = arith.addf %23, %27 : vector<32x512xf32>
    %c0_19 = arith.constant 0 : index
    %c0_20 = arith.constant 0 : index
    %29 = vector.load %arg4[%c0_19, %c0_20] : memref<1x512xf32, #tpu.memory_space<vmem>>, vector<1x512xf32>
    %30 = vector.broadcast %29 : vector<1x512xf32> to vector<32x512xf32>
    %31 = arith.mulf %28, %30 : vector<32x512xf32>
    %c0_21 = arith.constant 0 : index
    %c0_22 = arith.constant 0 : index
    %32 = vector.load %arg5[%c0_21, %c0_22] : memref<1x512xf32, #tpu.memory_space<vmem>>, vector<1x512xf32>
    %33 = vector.broadcast %32 : vector<1x512xf32> to vector<32x512xf32>
    %34 = arith.addf %31, %33 : vector<32x512xf32>
    %35 = math.tanh %34 : vector<32x512xf32>
    %c0_23 = arith.constant 0 : index
    %c0_24 = arith.constant 0 : index
    %c0_25 = arith.constant 0 : index
    %36 = vector.load %arg6[%c0_23, %c0_24, %c0_25] : memref<1x32x512xf32, #tpu.memory_space<vmem>>, vector<1x32x512xf32>
    %37 = vector.shape_cast %36 : vector<1x32x512xf32> to vector<32x512xf32>
    %38 = vector.shape_cast %35 : vector<32x512xf32> to vector<1x32x512xf32>
    tpu.vector_store %arg6[%c0_23, %c0_24, %c0_25], %38 {strides = array<i32>} : memref<1x32x512xf32, #tpu.memory_space<vmem>>, vector<1x32x512xf32>,
    return
  }
  func.func @transform_0(%arg0: i32, %arg1: i32) -> (i32, i32, i32, i32) {
    %c0_i32 = arith.constant 0 : i32
    %c0_i32_0 = arith.constant 0 : i32
    %c0_i32_1 = arith.constant 0 : i32
    return %arg0, %arg1, %c0_i32, %c0_i32_0 : i32, i32, i32, i32
  }
  func.func @transform_1(%arg0: i32, %arg1: i32) -> (i32, i32, i32) {
    %c0_i32 = arith.constant 0 : i32
    %c0_i32_0 = arith.constant 0 : i32
    %c0_i32_1 = arith.constant 0 : i32
    %c0_i32_2 = arith.constant 0 : i32
    return %c0_i32, %c0_i32_0, %c0_i32_1 : i32, i32, i32
  }
  func.func @transform_2(%arg0: i32, %arg1: i32) -> (i32, i32) {
    %c0_i32 = arith.constant 0 : i32
    %c0_i32_0 = arith.constant 0 : i32
    %c0_i32_1 = arith.constant 0 : i32
    return %c0_i32, %c0_i32_0 : i32, i32
  }
  func.func @transform_3(%arg0: i32, %arg1: i32) -> (i32, i32) {
    %c0_i32 = arith.constant 0 : i32
    %c0_i32_0 = arith.constant 0 : i32
    %c0_i32_1 = arith.constant 0 : i32
    return %c0_i32, %c0_i32_0 : i32, i32
  }
  func.func @transform_4(%arg0: i32, %arg1: i32) -> (i32, i32, i32) {
    %c0_i32 = arith.constant 0 : i32
    %c0_i32_0 = arith.constant 0 : i32
    return %arg0, %arg1, %c0_i32 : i32, i32, i32
  }
}

module attributes {stable_mosaic.version = 11 : i64} {
  func.func @_conv1d_bn_act_kernel(%arg0: i32, %arg1: i32, %arg2: memref<1x1x36x512xf32, #tpu.memory_space<vmem>>, %arg3: memref<5x512x512xbf16, #tpu.memory_space<vmem>>, %arg4: memref<1x512xf32, #tpu.memory_space<vmem>>, %arg5: memref<1x512xf32, #tpu.memory_space<vmem>>, %arg6: memref<1x32x512xf32, #tpu.memory_space<vmem>>) attributes {dimension_semantics = [#tpu.dimension_semantics<parallel>, #tpu.dimension_semantics<parallel>], iteration_bounds = array<i64: 2, 1>, scalar_prefetch = 0 : i64, scratch_operands = 0 : i64, tpu.core_type = #tpu.core_type<tc>, window_params = [{transform_indices = @transform_0, window_bounds = array<i64: 1, 1, 36, 512>}, {pipeline_mode = #tpu.pipeline_mode<synchronous>, transform_indices = @transform_1, window_bounds = array<i64: 5, 512, 512>}, {pipeline_mode = #tpu.pipeline_mode<synchronous>, transform_indices = @transform_2, window_bounds = array<i64: 1, 512>}, {pipeline_mode = #tpu.pipeline_mode<synchronous>, transform_indices = @transform_3, window_bounds = array<i64: 1, 512>}, {transform_indices = @transform_4, window_bounds = array<i64: 1, 32, 512>}]} {
    %c0 = arith.constant 0 : index
    %c0_0 = arith.constant 0 : index
    %c0_1 = arith.constant 0 : index
    %c0_2 = arith.constant 0 : index
    %0 = vector.load %arg2[%c0, %c0_0, %c0_1, %c0_2] : memref<1x1x36x512xf32, #tpu.memory_space<vmem>>, vector<1x1x36x512xf32>
    %1 = vector.shape_cast %0 : vector<1x1x36x512xf32> to vector<36x512xf32>
    %2 = arith.truncf %1 : vector<36x512xf32> to vector<36x512xbf16>
    %cst = arith.constant 0.000000e+00 : f32
    %3 = vector.broadcast %cst : f32 to vector<32x512xf32>
    %4 = vector.extract_strided_slice %2 {offsets = [0, 0], sizes = [32, 512], strides = [1, 1]} : vector<36x512xbf16> to vector<32x512xbf16>
    %c0_3 = arith.constant 0 : index
    %c0_4 = arith.constant 0 : index
    %c0_5 = arith.constant 0 : index
    %5 = vector.load %arg3[%c0_3, %c0_4, %c0_5] : memref<5x512x512xbf16, #tpu.memory_space<vmem>>, vector<1x512x512xbf16>
    %6 = vector.shape_cast %5 : vector<1x512x512xbf16> to vector<512x512xbf16>
    %cst_6 = arith.constant dense<0.000000e+00> : vector<32x512xf32>
    %7 = tpu.matmul %4, %6, %cst_6 {dimension_numbers = #tpu.dot_dimension_numbers<[1], [0], [0], [1], [0, 0, 1, 1], [], []>} : vector<32x512xbf16>, vector<512x512xbf16>, vector<32x512xf32> -> vector<32x512xf32>
    %8 = arith.addf %3, %7 : vector<32x512xf32>
    %9 = vector.extract_strided_slice %2 {offsets = [1, 0], sizes = [32, 512], strides = [1, 1]} : vector<36x512xbf16> to vector<32x512xbf16>
    %c1 = arith.constant 1 : index
    %c0_7 = arith.constant 0 : index
    %c0_8 = arith.constant 0 : index
    %10 = vector.load %arg3[%c1, %c0_7, %c0_8] : memref<5x512x512xbf16, #tpu.memory_space<vmem>>, vector<1x512x512xbf16>
    %11 = vector.shape_cast %10 : vector<1x512x512xbf16> to vector<512x512xbf16>
    %cst_9 = arith.constant dense<0.000000e+00> : vector<32x512xf32>
    %12 = tpu.matmul %9, %11, %cst_9 {dimension_numbers = #tpu.dot_dimension_numbers<[1], [0], [0], [1], [0, 0, 1, 1], [], []>} : vector<32x512xbf16>, vector<512x512xbf16>, vector<32x512xf32> -> vector<32x512xf32>
    %13 = arith.addf %8, %12 : vector<32x512xf32>
    %14 = vector.extract_strided_slice %2 {offsets = [2, 0], sizes = [32, 512], strides = [1, 1]} : vector<36x512xbf16> to vector<32x512xbf16>
    %c2 = arith.constant 2 : index
    %c0_10 = arith.constant 0 : index
    %c0_11 = arith.constant 0 : index
    %15 = vector.load %arg3[%c2, %c0_10, %c0_11] : memref<5x512x512xbf16, #tpu.memory_space<vmem>>, vector<1x512x512xbf16>
    %16 = vector.shape_cast %15 : vector<1x512x512xbf16> to vector<512x512xbf16>
    %cst_12 = arith.constant dense<0.000000e+00> : vector<32x512xf32>
    %17 = tpu.matmul %14, %16, %cst_12 {dimension_numbers = #tpu.dot_dimension_numbers<[1], [0], [0], [1], [0, 0, 1, 1], [], []>} : vector<32x512xbf16>, vector<512x512xbf16>, vector<32x512xf32> -> vector<32x512xf32>
    %18 = arith.addf %13, %17 : vector<32x512xf32>
    %19 = vector.extract_strided_slice %2 {offsets = [3, 0], sizes = [32, 512], strides = [1, 1]} : vector<36x512xbf16> to vector<32x512xbf16>
    %c3 = arith.constant 3 : index
    %c0_13 = arith.constant 0 : index
    %c0_14 = arith.constant 0 : index
    %20 = vector.load %arg3[%c3, %c0_13, %c0_14] : memref<5x512x512xbf16, #tpu.memory_space<vmem>>, vector<1x512x512xbf16>
    %21 = vector.shape_cast %20 : vector<1x512x512xbf16> to vector<512x512xbf16>
    %cst_15 = arith.constant dense<0.000000e+00> : vector<32x512xf32>
    %22 = tpu.matmul %19, %21, %cst_15 {dimension_numbers = #tpu.dot_dimension_numbers<[1], [0], [0], [1], [0, 0, 1, 1], [], []>} : vector<32x512xbf16>, vector<512x512xbf16>, vector<32x512xf32> -> vector<32x512xf32>
    %23 = arith.addf %18, %22 : vector<32x512xf32>
    %24 = vector.extract_strided_slice %2 {offsets = [4, 0], sizes = [32, 512], strides = [1, 1]} : vector<36x512xbf16> to vector<32x512xbf16>
    %c4 = arith.constant 4 : index
    %c0_16 = arith.constant 0 : index
    %c0_17 = arith.constant 0 : index
    %25 = vector.load %arg3[%c4, %c0_16, %c0_17] : memref<5x512x512xbf16, #tpu.memory_space<vmem>>, vector<1x512x512xbf16>
    %26 = vector.shape_cast %25 : vector<1x512x512xbf16> to vector<512x512xbf16>
    %cst_18 = arith.constant dense<0.000000e+00> : vector<32x512xf32>
    %27 = tpu.matmul %24, %26, %cst_18 {dimension_numbers = #tpu.dot_dimension_numbers<[1], [0], [0], [1], [0, 0, 1, 1], [], []>} : vector<32x512xbf16>, vector<512x512xbf16>, vector<32x512xf32> -> vector<32x512xf32>
    %28 = arith.addf %23, %27 : vector<32x512xf32>
    %c0_19 = arith.constant 0 : index
    %c0_20 = arith.constant 0 : index
    %29 = vector.load %arg4[%c0_19, %c0_20] : memref<1x512xf32, #tpu.memory_space<vmem>>, vector<1x512xf32>
    %30 = vector.broadcast %29 : vector<1x512xf32> to vector<32x512xf32>
    %31 = arith.mulf %28, %30 : vector<32x512xf32>
    %c0_21 = arith.constant 0 : index
    %c0_22 = arith.constant 0 : index
    %32 = vector.load %arg5[%c0_21, %c0_22] : memref<1x512xf32, #tpu.memory_space<vmem>>, vector<1x512xf32>
    %33 = vector.broadcast %32 : vector<1x512xf32> to vector<32x512xf32>
    %34 = arith.addf %31, %33 : vector<32x512xf32>
    %35 = math.tanh %34 : vector<32x512xf32>
    %c0_23 = arith.constant 0 : index
    %c0_24 = arith.constant 0 : index
    %c0_25 = arith.constant 0 : index
    %36 = vector.load %arg6[%c0_23, %c0_24, %c0_25] : memref<1x32x512xf32, #tpu.memory_space<vmem>>, vector<1x32x512xf32>
    %37 = vector.shape_cast %36 : vector<1x32x512xf32> to vector<32x512xf32>
    %38 = vector.shape_cast %35 : vector<32x512xf32> to vector<1x32x512xf32>
    tpu.vector_store %arg6[%c0_23, %c0_24, %c0_25], %38 {strides = array<i32>} : memref<1x32x512xf32, #tpu.memory_space<vmem>>, vector<1x32x512xf32>,
    return
  }
  func.func @transform_0(%arg0: i32, %arg1: i32) -> (i32, i32, i32, i32) {
    %c0_i32 = arith.constant 0 : i32
    %c0_i32_0 = arith.constant 0 : i32
    %c0_i32_1 = arith.constant 0 : i32
    return %arg0, %arg1, %c0_i32, %c0_i32_0 : i32, i32, i32, i32
  }
  func.func @transform_1(%arg0: i32, %arg1: i32) -> (i32, i32, i32) {
    %c0_i32 = arith.constant 0 : i32
    %c0_i32_0 = arith.constant 0 : i32
    %c0_i32_1 = arith.constant 0 : i32
    %c0_i32_2 = arith.constant 0 : i32
    return %c0_i32, %c0_i32_0, %c0_i32_1 : i32, i32, i32
  }
  func.func @transform_2(%arg0: i32, %arg1: i32) -> (i32, i32) {
    %c0_i32 = arith.constant 0 : i32
    %c0_i32_0 = arith.constant 0 : i32
    %c0_i32_1 = arith.constant 0 : i32
    return %c0_i32, %c0_i32_0 : i32, i32
  }
  func.func @transform_3(%arg0: i32, %arg1: i32) -> (i32, i32) {
    %c0_i32 = arith.constant 0 : i32
    %c0_i32_0 = arith.constant 0 : i32
    %c0_i32_1 = arith.constant 0 : i32
    return %c0_i32, %c0_i32_0 : i32, i32
  }
  func.func @transform_4(%arg0: i32, %arg1: i32) -> (i32, i32, i32) {
    %c0_i32 = arith.constant 0 : i32
    %c0_i32_0 = arith.constant 0 : i32
    return %arg0, %arg1, %c0_i32 : i32, i32, i32
  }
}

module attributes {stable_mosaic.version = 11 : i64} {
  func.func @_conv1d_bn_act_kernel(%arg0: i32, %arg1: i32, %arg2: memref<1x1x36x512xf32, #tpu.memory_space<vmem>>, %arg3: memref<5x512x16xbf16, #tpu.memory_space<vmem>>, %arg4: memref<1x16xf32, #tpu.memory_space<vmem>>, %arg5: memref<1x16xf32, #tpu.memory_space<vmem>>, %arg6: memref<1x32x16xf32, #tpu.memory_space<vmem>>) attributes {dimension_semantics = [#tpu.dimension_semantics<parallel>, #tpu.dimension_semantics<parallel>], iteration_bounds = array<i64: 2, 1>, scalar_prefetch = 0 : i64, scratch_operands = 0 : i64, tpu.core_type = #tpu.core_type<tc>, window_params = [{transform_indices = @transform_0, window_bounds = array<i64: 1, 1, 36, 512>}, {pipeline_mode = #tpu.pipeline_mode<synchronous>, transform_indices = @transform_1, window_bounds = array<i64: 5, 512, 16>}, {pipeline_mode = #tpu.pipeline_mode<synchronous>, transform_indices = @transform_2, window_bounds = array<i64: 1, 16>}, {pipeline_mode = #tpu.pipeline_mode<synchronous>, transform_indices = @transform_3, window_bounds = array<i64: 1, 16>}, {transform_indices = @transform_4, window_bounds = array<i64: 1, 32, 16>}]} {
    %c0 = arith.constant 0 : index
    %c0_0 = arith.constant 0 : index
    %c0_1 = arith.constant 0 : index
    %c0_2 = arith.constant 0 : index
    %0 = vector.load %arg2[%c0, %c0_0, %c0_1, %c0_2] : memref<1x1x36x512xf32, #tpu.memory_space<vmem>>, vector<1x1x36x512xf32>
    %1 = vector.shape_cast %0 : vector<1x1x36x512xf32> to vector<36x512xf32>
    %2 = arith.truncf %1 : vector<36x512xf32> to vector<36x512xbf16>
    %cst = arith.constant 0.000000e+00 : f32
    %3 = vector.broadcast %cst : f32 to vector<32x16xf32>
    %4 = vector.extract_strided_slice %2 {offsets = [0, 0], sizes = [32, 512], strides = [1, 1]} : vector<36x512xbf16> to vector<32x512xbf16>
    %c0_3 = arith.constant 0 : index
    %c0_4 = arith.constant 0 : index
    %c0_5 = arith.constant 0 : index
    %5 = vector.load %arg3[%c0_3, %c0_4, %c0_5] : memref<5x512x16xbf16, #tpu.memory_space<vmem>>, vector<1x512x16xbf16>
    %6 = vector.shape_cast %5 : vector<1x512x16xbf16> to vector<512x16xbf16>
    %cst_6 = arith.constant dense<0.000000e+00> : vector<32x16xf32>
    %7 = tpu.matmul %4, %6, %cst_6 {dimension_numbers = #tpu.dot_dimension_numbers<[1], [0], [0], [1], [0, 0, 1, 1], [], []>} : vector<32x512xbf16>, vector<512x16xbf16>, vector<32x16xf32> -> vector<32x16xf32>
    %8 = arith.addf %3, %7 : vector<32x16xf32>
    %9 = vector.extract_strided_slice %2 {offsets = [1, 0], sizes = [32, 512], strides = [1, 1]} : vector<36x512xbf16> to vector<32x512xbf16>
    %c1 = arith.constant 1 : index
    %c0_7 = arith.constant 0 : index
    %c0_8 = arith.constant 0 : index
    %10 = vector.load %arg3[%c1, %c0_7, %c0_8] : memref<5x512x16xbf16, #tpu.memory_space<vmem>>, vector<1x512x16xbf16>
    %11 = vector.shape_cast %10 : vector<1x512x16xbf16> to vector<512x16xbf16>
    %cst_9 = arith.constant dense<0.000000e+00> : vector<32x16xf32>
    %12 = tpu.matmul %9, %11, %cst_9 {dimension_numbers = #tpu.dot_dimension_numbers<[1], [0], [0], [1], [0, 0, 1, 1], [], []>} : vector<32x512xbf16>, vector<512x16xbf16>, vector<32x16xf32> -> vector<32x16xf32>
    %13 = arith.addf %8, %12 : vector<32x16xf32>
    %14 = vector.extract_strided_slice %2 {offsets = [2, 0], sizes = [32, 512], strides = [1, 1]} : vector<36x512xbf16> to vector<32x512xbf16>
    %c2 = arith.constant 2 : index
    %c0_10 = arith.constant 0 : index
    %c0_11 = arith.constant 0 : index
    %15 = vector.load %arg3[%c2, %c0_10, %c0_11] : memref<5x512x16xbf16, #tpu.memory_space<vmem>>, vector<1x512x16xbf16>
    %16 = vector.shape_cast %15 : vector<1x512x16xbf16> to vector<512x16xbf16>
    %cst_12 = arith.constant dense<0.000000e+00> : vector<32x16xf32>
    %17 = tpu.matmul %14, %16, %cst_12 {dimension_numbers = #tpu.dot_dimension_numbers<[1], [0], [0], [1], [0, 0, 1, 1], [], []>} : vector<32x512xbf16>, vector<512x16xbf16>, vector<32x16xf32> -> vector<32x16xf32>
    %18 = arith.addf %13, %17 : vector<32x16xf32>
    %19 = vector.extract_strided_slice %2 {offsets = [3, 0], sizes = [32, 512], strides = [1, 1]} : vector<36x512xbf16> to vector<32x512xbf16>
    %c3 = arith.constant 3 : index
    %c0_13 = arith.constant 0 : index
    %c0_14 = arith.constant 0 : index
    %20 = vector.load %arg3[%c3, %c0_13, %c0_14] : memref<5x512x16xbf16, #tpu.memory_space<vmem>>, vector<1x512x16xbf16>
    %21 = vector.shape_cast %20 : vector<1x512x16xbf16> to vector<512x16xbf16>
    %cst_15 = arith.constant dense<0.000000e+00> : vector<32x16xf32>
    %22 = tpu.matmul %19, %21, %cst_15 {dimension_numbers = #tpu.dot_dimension_numbers<[1], [0], [0], [1], [0, 0, 1, 1], [], []>} : vector<32x512xbf16>, vector<512x16xbf16>, vector<32x16xf32> -> vector<32x16xf32>
    %23 = arith.addf %18, %22 : vector<32x16xf32>
    %24 = vector.extract_strided_slice %2 {offsets = [4, 0], sizes = [32, 512], strides = [1, 1]} : vector<36x512xbf16> to vector<32x512xbf16>
    %c4 = arith.constant 4 : index
    %c0_16 = arith.constant 0 : index
    %c0_17 = arith.constant 0 : index
    %25 = vector.load %arg3[%c4, %c0_16, %c0_17] : memref<5x512x16xbf16, #tpu.memory_space<vmem>>, vector<1x512x16xbf16>
    %26 = vector.shape_cast %25 : vector<1x512x16xbf16> to vector<512x16xbf16>
    %cst_18 = arith.constant dense<0.000000e+00> : vector<32x16xf32>
    %27 = tpu.matmul %24, %26, %cst_18 {dimension_numbers = #tpu.dot_dimension_numbers<[1], [0], [0], [1], [0, 0, 1, 1], [], []>} : vector<32x512xbf16>, vector<512x16xbf16>, vector<32x16xf32> -> vector<32x16xf32>
    %28 = arith.addf %23, %27 : vector<32x16xf32>
    %c0_19 = arith.constant 0 : index
    %c0_20 = arith.constant 0 : index
    %29 = vector.load %arg4[%c0_19, %c0_20] : memref<1x16xf32, #tpu.memory_space<vmem>>, vector<1x16xf32>
    %30 = vector.broadcast %29 : vector<1x16xf32> to vector<32x16xf32>
    %31 = arith.mulf %28, %30 : vector<32x16xf32>
    %c0_21 = arith.constant 0 : index
    %c0_22 = arith.constant 0 : index
    %32 = vector.load %arg5[%c0_21, %c0_22] : memref<1x16xf32, #tpu.memory_space<vmem>>, vector<1x16xf32>
    %33 = vector.broadcast %32 : vector<1x16xf32> to vector<32x16xf32>
    %34 = arith.addf %31, %33 : vector<32x16xf32>
    %c0_23 = arith.constant 0 : index
    %c0_24 = arith.constant 0 : index
    %c0_25 = arith.constant 0 : index
    %35 = vector.load %arg6[%c0_23, %c0_24, %c0_25] : memref<1x32x16xf32, #tpu.memory_space<vmem>>, vector<1x32x16xf32>
    %36 = vector.shape_cast %35 : vector<1x32x16xf32> to vector<32x16xf32>
    %37 = vector.shape_cast %34 : vector<32x16xf32> to vector<1x32x16xf32>
    tpu.vector_store %arg6[%c0_23, %c0_24, %c0_25], %37 {strides = array<i32>} : memref<1x32x16xf32, #tpu.memory_space<vmem>>, vector<1x32x16xf32>,
    return
  }
  func.func @transform_0(%arg0: i32, %arg1: i32) -> (i32, i32, i32, i32) {
    %c0_i32 = arith.constant 0 : i32
    %c0_i32_0 = arith.constant 0 : i32
    %c0_i32_1 = arith.constant 0 : i32
    return %arg0, %arg1, %c0_i32, %c0_i32_0 : i32, i32, i32, i32
  }
  func.func @transform_1(%arg0: i32, %arg1: i32) -> (i32, i32, i32) {
    %c0_i32 = arith.constant 0 : i32
    %c0_i32_0 = arith.constant 0 : i32
    %c0_i32_1 = arith.constant 0 : i32
    %c0_i32_2 = arith.constant 0 : i32
    return %c0_i32, %c0_i32_0, %c0_i32_1 : i32, i32, i32
  }
  func.func @transform_2(%arg0: i32, %arg1: i32) -> (i32, i32) {
    %c0_i32 = arith.constant 0 : i32
    %c0_i32_0 = arith.constant 0 : i32
    %c0_i32_1 = arith.constant 0 : i32
    return %c0_i32, %c0_i32_0 : i32, i32
  }
  func.func @transform_3(%arg0: i32, %arg1: i32) -> (i32, i32) {
    %c0_i32 = arith.constant 0 : i32
    %c0_i32_0 = arith.constant 0 : i32
    %c0_i32_1 = arith.constant 0 : i32
    return %c0_i32, %c0_i32_0 : i32, i32
  }
  func.func @transform_4(%arg0: i32, %arg1: i32) -> (i32, i32, i32) {
    %c0_i32 = arith.constant 0 : i32
    %c0_i32_0 = arith.constant 0 : i32
    return %arg0, %arg1, %c0_i32 : i32, i32, i32
  }
}

</mosaic_0001>

<bundles_post_ra>
// kernel: postnet_forward.5
= control target key start
LH: loop header
LB: loop body
LE: loop exit
PB: predicated region body
PF: predicated region fallthrough
CT: control target
= control target key end

     0   :  { %9 = vsyncpa [#allocation3], 0  ;;  %s1946_s0 = inlined_call_operand.vmem [shape: f32[2,1,36,16], index: 0, kind: input, shape index: {}]   ;;  %s1947_s1 = inlined_call_operand.hbm [shape: bf16[5,16,512], index: 1, kind: input, shape index: {}]   ;;  %s1948_s2 = inlined_call_operand.hbm [shape: f32[1,512], index: 2, kind: input, shape index: {}]   ;;  %s1949_s3 = inlined_call_operand.hbm [shape: f32[1,512], index: 3, kind: input, shape index: {}]   ;;  %s1950_s4 = inlined_call_operand.vmem [shape: f32[2,32,512], index: 4, kind: output, shape index: {}]  }
   0x1   :  { %10 = vsyncpa [#allocation5], 0  ;;  %s1691_s15 = smov 0   ;;  %s1693_s16 = smov 0  }
   0x2   :  { %s1695_s17 = smov 0  }
   0x3 LB: > { %s1660_s18 = smov [#allocation4]   ;;  %s1302_s20 = sadd.s32 4294967295, %s1658_s17   ;;  %s1658_s17 = sphi %s1695_s17, %s16_s17   ;;  %s1654_s16 = sphi %s1693_s16, %s1963_s16   ;;  %s1650_s15 = sphi %s1691_s15, %s1962_s15  }
   0x4   : > { %s178_s19 = sshll.u32 %s1660_s18, 4  ;;  %p1304_p0 = scmp.ge.s32.totalorder %s1658_s17, 1  ;;  %s179_s19 = int_to_ptr.vmem [resolvable:$true] %s178_s19 }
   0x5   : > { %p152_p1 = scmp.lt.s32.totalorder %s1658_s17, 3  ;;  %p1709_p2 = scmp.eq.s32.totalorder %s1302_s20, 0 }
   0x6   : > { %s28_s23 = sadd.s32 1, %s1654_s16  ;;  %s1661_s26 = smov [#allocation2]  }
   0x7   : > { %s1954_s21 = scalar_select %p1709_p2, 1, 0 }
   0x8   : > { %p1713_p3 = pnand %p1304_p0, %p152_p1  ;;  %p1726_p6 = scmp.ge.s32.totalorder %s28_s23, 2 }
   0x9   : > { %s164_s27 = sshll.u32 %s1661_s26, 4  ;;  %s1544_s30 = scalar_lea.hbm %s1948_s2, 64  ;;  %s1730_s27 = int_to_ptr.vmem [resolvable:$true] %s164_s27 }
   0xa   : > { %s1955_s22 = scalar_select %p1713_p3, 1, 0 }
   0xb   : > { %p1436_p4 = pneg %p1713_p3  ;;  %p1545_p7 = scmp.ne.s32.totalorder %s1948_s2, %s1544_s30 }
   0xc   : > { %s1957_s25 = scalar_select %p1726_p6, 1, 0 }
   0xd   : > { %p1722_p5 = pnand %p1709_p2, %p1436_p4  ;;  %p1551_p11 = scmp.lt.u32.totalorder %s1544_s30, %s1948_s2 }
   0xf   : > { %p1740_p8 = pneg %p1722_p5 }
  0x11   : > { %p1547_p9 = pnand %p1740_p8, %p1545_p7 }
  0x13   : > { %p1548_p10 = pneg %p1547_p9 }
  0x15   : > { %p1553_p12 = pnand %p1551_p11, %p1548_p10 }
  0x17   : > { %1556 = shalt.err (!%p1553_p12)
}
  0x18   : > { %s1557_s10 = scalar_lea.vmem %s179_s19, 64  ;;  %p1565_p4 = scmp.lt.s32.totalorder %s179_s19, %s179_s19 }
  0x19   : > { %p1558_p13 = scmp.ne.s32.totalorder %s179_s19, %s1557_s10  ;;  %p1566_p2 = scmp.lt.s32.totalorder %s1557_s10, %s1557_s10 }
  0x1b   : > { %p1560_p0 = pnand %p1558_p13, %p1740_p8  ;;  %p1567_p3 = por %p1566_p2, %p1565_p4 }
  0x1d   : > { %p1561_p1 = pneg %p1560_p0 }
  0x1f   : > { %p1568_p6 = pnand %p1567_p3, %p1561_p1 }
  0x21   : > { %1571 = shalt.err (!%p1568_p6)
}
  0x22   : > { %1442 = dma.hbm_to_vmem [thread:$0]  (!%p1722_p5), %s1948_s2, 64, %s179_s19, [#allocation5]  }
  0x23   : > { %p1959_p7 = scmp.ne.s32.totalorder %s1957_s25, 0  ;;  %s1572_s18 = scalar_lea.hbm %s1947_s1, 2560 }
  0x24   : > { %p1573_p2 = scmp.ne.s32.totalorder %s1947_s1, %s1572_s18  ;;  %p1579_p9 = scmp.lt.u32.totalorder %s1572_s18, %s1947_s1 }
  0x25   : > { %s1965_s23 = smov (%p1959_p7, %s28_s23), 0 }
  0x26   : > { %p1575_p3 = pnand %p1573_p2, %p1740_p8 }
  0x28   : > { %p1576_p6 = pneg %p1575_p3 }
  0x2a   : > { %p1581_p10 = pnand %p1579_p9, %p1576_p6 }
  0x2c   : > { %1584 = shalt.err (!%p1581_p10)
}
  0x2d   : > { %s1585_s19 = scalar_lea.vmem %s1730_s27, 2560  ;;  %p1593_p0 = scmp.lt.s32.totalorder %s1730_s27, %s1730_s27 }
  0x2e   : > { %p1586_p11 = scmp.ne.s32.totalorder %s1730_s27, %s1585_s19  ;;  %p1594_p1 = scmp.lt.s32.totalorder %s1585_s19, %s1585_s19 }
  0x30   : > { %p1588_p12 = pnand %p1586_p11, %p1740_p8  ;;  %p1595_p4 = por %p1594_p1, %p1593_p0 }
  0x32   : > { %p1589_p13 = pneg %p1588_p12 }
  0x34   : > { %p1596_p7 = pnand %p1595_p4, %p1589_p13 }
  0x36   : > { %1599 = shalt.err (!%p1596_p7)
}
  0x37   : > { %s1662_s25 = smov 256   ;;  %s1663_s30 = smov 16  }
  0x38   : > { %1439 = dma.hbm_to_vmem [thread:$0]  (!%p1722_p5), %s1947_s1, 2560, %s1730_s27, [#allocation3], %s1662_s25, %s1662_s25, %s1663_s30  }
  0x39   : > { %s1664_s8 = smov [#allocation6]   ;;  %s1600_s12 = scalar_lea.hbm %s1949_s3, 64 }
  0x3a   : > { %s189_s9 = sshll.u32 %s1664_s8, 4  ;;  %p1601_p2 = scmp.ne.s32.totalorder %s1949_s3, %s1600_s12  ;;  %s190_s9 = int_to_ptr.vmem [resolvable:$true] %s189_s9 }
  0x3b   : > { %p1607_p9 = scmp.lt.u32.totalorder %s1600_s12, %s1949_s3 }
  0x3c   : > { %p1603_p3 = pnand %p1601_p2, %p1740_p8 }
  0x3e   : > { %p1604_p6 = pneg %p1603_p3 }
  0x40   : > { %p1609_p10 = pnand %p1607_p9, %p1604_p6 }
  0x42   : > { %1612 = shalt.err (!%p1609_p10)
}
  0x43   : > { %s1613_s27 = scalar_lea.vmem %s190_s9, 64  ;;  %p1621_p0 = scmp.lt.s32.totalorder %s190_s9, %s190_s9 }
  0x44   : > { %p1614_p11 = scmp.ne.s32.totalorder %s190_s9, %s1613_s27  ;;  %p1622_p1 = scmp.lt.s32.totalorder %s1613_s27, %s1613_s27 }
  0x46   : > { %p1616_p12 = pnand %p1614_p11, %p1740_p8  ;;  %p1623_p4 = por %p1622_p1, %p1621_p0 }
  0x48   : > { %p1617_p13 = pneg %p1616_p12 }
  0x4a   : > { %p1624_p7 = pnand %p1623_p4, %p1617_p13 }
  0x4c   : > { %1627 = shalt.err (!%p1624_p7)
}
  0x4d   : > { %1445 = dma.hbm_to_vmem [thread:$0]  (!%p1722_p5), %s1949_s3, 64, %s190_s9, [#allocation5]  }
  0x4e   : > { %p1960_p2 = scmp.ne.s32.totalorder %s1955_s22, 0 }
  0x4f   : > { %p1961_p3 = scmp.ne.s32.totalorder (!%p1960_p2), %s1954_s21, 0 }
  0x50   : > { %214 = sbr.rel (%p1960_p2) target bundleno = 413 (0x19d), region = 36 }
  0x57   : > { %1641 = dma.done.wait (%p1961_p3), [#allocation3], 2560  }
  0x58   : > { %1643 = vsyncadd (%p1961_p3), [#allocation3], 4294964736 }
  0x59   : > { %1645 = dma.done.wait (%p1961_p3), [#allocation5], 128  }
  0x5a   : > { %1647 = vsyncadd (%p1961_p3), [#allocation5], 4294967168  ;;  %p257_p8 = scmp.lt.s32.totalorder %s1650_s15, 1  ;;  %v1665_v0 = vmov 0   ;;  %v1482_v1 = vld [vmem:[#allocation2 + $0x24] ss:$16 sps:$4 sm:$0xff]   ;;  %v1069_v63 = vlaneseq }
  0x5b   : > { %375 = vmatprep.mubr.bf16.mxu0 %v1665_v0  ;;  %428 = vmatprep.mubr.bf16.mxu1 %v1665_v0  ;;  %v1484_v2 = vld [vmem:[#allocation2 + $0x2c] ss:$16 sps:$4 sm:$0xff]   ;;  %v1486_v3 = vld [vmem:[#allocation2 + $0x20] ss:$16 sps:$4 sm:$0xff]   ;;  %v1487_v4 = vld [vmem:[#allocation2 + $0x28] ss:$16 sps:$4 sm:$0xff]  }
  0x5c   : > { %s1967_s15 = smov (!%p257_p8, %s1650_s15), 1  ;;  %343 = vmatprep.subr.bf16.mxu0 %v1482_v1  ;;  %396 = vmatprep.subr.bf16.mxu1 %v1484_v2  ;;  %v1490_v5 = vld [vmem:[#allocation2 + $0x4] ss:$16 sps:$4 sm:$0xff]   ;;  %v1493_v6 = vld [vmem:[#allocation2 + $0xc] ss:$16 sps:$4 sm:$0xff]   ;;  %vm336_vm1 = vcmask 130048  }
  0x5d   : > { %s1423_s22 = smul.u32 40, %s1967_s15  ;;  %344 = vmatpush1.bf16.msra.mxu0 %v1486_v3  ;;  %397 = vmatpush1.bf16.msra.mxu1 %v1487_v4  ;;  %v1488_v19 = vld [vmem:[#allocation2] ss:$16 sps:$4 sm:$0xff]   ;;  %vm295_vm0 = vsmask.f32 7424  ;;  %vm913_vm2 = vcmask 1045504  }
  0x5e   : > { %473 = vmatprep.subr.bf16.mxu0 %v1490_v5  ;;  %526 = vmatprep.subr.bf16.mxu1 %v1493_v6  ;;  %v1491_v22 = vld [vmem:[#allocation2 + $0x8] ss:$16 sps:$4 sm:$0xff]   ;;  %v1496_v26 = vld [vmem:[#allocation2 + $0x44] ss:$16 sps:$4 sm:$0xff]   ;;  %v1499_v27 = vld [vmem:[#allocation2 + $0x4c] ss:$16 sps:$4 sm:$0xff]  }
  0x5f   : > { %s265_s7 = scalar_lea.vmem %s1946_s0, %s1423_s22  ;;  %v1494_v36 = vld [vmem:[#allocation2 + $0x40] ss:$16 sps:$4 sm:$0xff]   ;;  %v1497_v37 = vld [vmem:[#allocation2 + $0x48] ss:$16 sps:$4 sm:$0xff]   ;;  %v1502_v38 = vld [vmem:[#allocation2 + $0x64] ss:$16 sps:$4 sm:$0xff]  }
  0x60   : > { %v278_v7 = vld [vmem:[%s265_s7] sm:$0xff]  ;;  %v279_v8 = vld [vmem:[%s265_s7 + $0x8] sm:$0xff]  ;;  %v280_v9 = vld [vmem:[%s265_s7 + $0x10] sm:$0xff]  ;;  %vm587_vm3 = vcmask 1046528   ;;  %vm746_vm4 = vsmask.f32 6400 }
  0x61   : > { %v281_v10 = vld [vmem:[%s265_s7 + $0x18] sm:$0xff]  ;;  %v1821_v11 = vpack.c.bf16 %v279_v8, %v278_v7  ;;  %v282_v12 = vld [vmem:[%s265_s7 + $0x20] sm:$0xf]  ;;  %v1508_v45 = vld [vmem:[#allocation2 + $0x84] ss:$16 sps:$4 sm:$0xff]   ;;  %v1070_v1 = vshrl.u32 %v1069_v63, 7 }
  0x62   : > { %v1823_v13 = vpack.c.bf16 %v281_v10, %v280_v9  ;;  %v1825_v14 = vpack.c.bf16 %v282_v12, %v282_v12  ;;  %v1505_v39 = vld [vmem:[#allocation2 + $0x6c] ss:$16 sps:$4 sm:$0xff]   ;;  %v1500_v42 = vld [vmem:[#allocation2 + $0x60] ss:$16 sps:$4 sm:$0xff]   ;;  %v1503_v43 = vld [vmem:[#allocation2 + $0x68] ss:$16 sps:$4 sm:$0xff]  }
  0x63   : > { %v297_v15 = vshrl.u32 %v1821_v11, 16  ;;  %v299_v16 = vshll.u32 %v1821_v11, 16  ;;  %v914_v30 = vrot.slane %v1821_v11, 2  ;;  %v588_v40 = vrot.slane %v1821_v11, 1  ;;  %v1511_v46 = vld [vmem:[#allocation2 + $0x8c] ss:$16 sps:$4 sm:$0xff]  }
  0x64   : > { %v304_v17 = vshll.u32 %v1823_v13, 16  ;;  %v312_v21 = vshll.u32 %v1825_v14, 16  ;;  %v308_v24 = vshrl.u32 %v1823_v13, 16  ;;  %v915_v31 = vrot.slane %v1823_v13, 2  ;;  %v1506_v56 = vld [vmem:[#allocation2 + $0x80] ss:$16 sps:$4 sm:$0xff]  }
  0x65   : > { %v301_v18 = vrot.slane %v299_v16, 1  ;;  %v917_v32 = vrot.slane %v1825_v14, 2  ;;  %v589_v41 = vrot.slane %v1823_v13, 1  ;;  %v591_v47 = vrot.slane %v1825_v14, 1  ;;  %v1509_v57 = vld [vmem:[#allocation2 + $0x88] ss:$16 sps:$4 sm:$0xff]  }
  0x66   : > { %v306_v20 = vrot.slane %v304_v17, 1  ;;  %v314_v28 = vrot.slane %v312_v21, 1  ;;  %v1848_v33 = vsel %vm913_vm2, %v914_v30, %v915_v31  ;;  %v747_v48 = vrot.slane %v297_v15, 1  ;;  %v1067_v4 = vld [vmem:[#allocation4] sm:$0xf]  ;;  %s1358_s29 = sshll.u32 %s1967_s15, 7 }
  0x67   : > { %v302_v23 = vor.u32 %v301_v18, %v297_v15  ;;  %v1850_v34 = vsel %vm913_vm2, %v915_v31, %v917_v32  ;;  %v590_v44 = vsel %vm587_vm3, %v588_v40, %v589_v41  ;;  %v748_v49 = vrot.slane %v299_v16, 2  ;;  %v1105_v7 = vld [vmem:[#allocation6] sm:$0xf]  ;;  %s1918_s15 = scalar_lea.vmem %s1950_s4, %s1358_s29 }
  0x68   : > { %v310_v29 = vor.u32 %v308_v24, %v306_v20  ;;  %v751_v50 = vrot.slane %v304_v17, 2  ;;  %v750_v51 = vrot.slane %v308_v24, 1  ;;  %v592_v52 = vsel %vm587_vm3, %v589_v41, %v591_v47 }
  0x69   : > { %v307_v25 = vsel %vm295_vm0, %v302_v23, %v306_v20  ;;  %v749_v53 = vor.u32 %v748_v49, %v747_v48  ;;  %v754_v55 = vshrl.u32 %v1825_v14, 16  ;;  %v757_v60 = vrot.slane %v312_v21, 2 }
  0x6a   : > { %1320 = vmatmul.mubr.msk.bf16.vlgmr.msra.gmra.mrb[0].mxu0 %vm336_vm1, %v307_v25  ;;  %1322 = vmatmul.mubr.msk.bf16.vlgmr.msra.gmra.mrb[0].mxu1 %vm336_vm1, %v307_v25  ;;  %v315_v35 = vsel %vm295_vm0, %v310_v29, %v314_v28  ;;  %v752_v54 = vor.u32 %v751_v50, %v750_v51  ;;  %v1071_v2 = vsub.s32 0, %v1070_v1  ;;  %v1079_v3 = vsub.s32 2, %v1070_v1 }
  0x6b   : > { %474 = vmatpush1.bf16.msra.mxu0 %v1488_v19  ;;  %527 = vmatpush1.bf16.msra.mxu1 %v1491_v22  ;;  %v756_v59 = vrot.slane %v754_v55, 1  ;;  %v1075_v5 = vsub.s32 1, %v1070_v1  ;;  %v1083_v6 = vsub.s32 3, %v1070_v1 }
  0x6c   : > { %385 = vmatprep.mubr.bf16.mxu0 %v1665_v0  ;;  %438 = vmatprep.mubr.bf16.mxu1 %v1665_v0  ;;  %v753_v58 = vsel %vm746_vm4, %v749_v53, %v752_v54  ;;  %v1072_v8 = vrot.slane %v1067_v4, %v1071_v2  ;;  %v1080_v9 = vrot.slane %v1067_v4, %v1079_v3 }
  0x6d   : > { %619 = vmatprep.subr.bf16.mxu0 %v1496_v26  ;;  %672 = vmatprep.subr.bf16.mxu1 %v1499_v27  ;;  %v758_v61 = vor.u32 %v757_v60, %v756_v59  ;;  %v1076_v10 = vrot.slane %v1067_v4, %v1075_v5  ;;  %v1110_v12 = vrot.slane %v1105_v7, %v1071_v2 }
  0x6e   : > { %v1114_v15 = vrot.slane %v1105_v7, %v1075_v5  ;;  %v1909_v16 = vrot.slane %v1105_v7, %v1083_v6 }
  0x6f   : > { %v759_v62 = vsel %vm746_vm4, %v752_v54, %v758_v61 }
  0x72   : > { %1321 = vmatmul.mubr.msk.bf16.gmra.mrb[4].mxu0 %vm336_vm1, %v315_v35  ;;  %1323 = vmatmul.mubr.msk.bf16.gmra.mrb[4].mxu1 %vm336_vm1, %v315_v35 }
  0x73   : > { %505 = vmatprep.mubr.bf16.mxu0 %v1665_v0  ;;  %558 = vmatprep.mubr.bf16.mxu1 %v1665_v0 }
  0x7a   : > { %1328 = vmatmul.mubr.msk.bf16.vlgmr.msra.gmra.mrb[0].mxu0 %vm336_vm1, %v1821_v11  ;;  %1330 = vmatmul.mubr.msk.bf16.vlgmr.msra.gmra.mrb[0].mxu1 %vm336_vm1, %v1821_v11  ;;  %v1084_v11 = vrot.slane %v1067_v4, %v1083_v6 }
  0x7b   : > { %620 = vmatpush1.bf16.msra.mxu0 %v1494_v36  ;;  %673 = vmatpush1.bf16.msra.mxu1 %v1497_v37 }
  0x7c   : > { %515 = vmatprep.mubr.bf16.mxu0 %v1665_v0  ;;  %568 = vmatprep.mubr.bf16.mxu1 %v1665_v0 }
  0x7d   : > { %786 = vmatprep.subr.bf16.mxu0 %v1502_v38  ;;  %839 = vmatprep.subr.bf16.mxu1 %v1505_v39 }
  0x82   : > { %1329 = vmatmul.mubr.msk.bf16.gmra.mrb[4].mxu0 %vm336_vm1, %v1823_v13  ;;  %1331 = vmatmul.mubr.msk.bf16.gmra.mrb[4].mxu1 %vm336_vm1, %v1823_v13 }
  0x83   : > { %651 = vmatprep.mubr.bf16.mxu0 %v1665_v0  ;;  %704 = vmatprep.mubr.bf16.mxu1 %v1665_v0 }
  0x8a   : > { %1336 = vmatmul.mubr.msk.bf16.vlgmr.msra.gmra.mrb[0].mxu0 %vm336_vm1, %v590_v44  ;;  %1338 = vmatmul.mubr.msk.bf16.vlgmr.msra.gmra.mrb[0].mxu1 %vm336_vm1, %v590_v44 }
  0x8b   : > { %787 = vmatpush1.bf16.msra.mxu0 %v1500_v42  ;;  %840 = vmatpush1.bf16.msra.mxu1 %v1503_v43 }
  0x8c   : > { %661 = vmatprep.mubr.bf16.mxu0 %v1665_v0  ;;  %714 = vmatprep.mubr.bf16.mxu1 %v1665_v0 }
  0x8d   : > { %945 = vmatprep.subr.bf16.mxu0 %v1508_v45  ;;  %998 = vmatprep.subr.bf16.mxu1 %v1511_v46 }
  0x92   : > { %1337 = vmatmul.mubr.msk.bf16.gmra.mrb[4].mxu0 %vm336_vm1, %v592_v52  ;;  %1339 = vmatmul.mubr.msk.bf16.gmra.mrb[4].mxu1 %vm336_vm1, %v592_v52 }
  0x93   : > { %818 = vmatprep.mubr.bf16.mxu0 %v1665_v0  ;;  %871 = vmatprep.mubr.bf16.mxu1 %v1665_v0 }
  0x9a   : > { %1344 = vmatmul.mubr.msk.bf16.vlgmr.msra.gmra.mrb[0].mxu0 %vm336_vm1, %v753_v58  ;;  %1346 = vmatmul.mubr.msk.bf16.vlgmr.msra.gmra.mrb[0].mxu1 %vm336_vm1, %v753_v58 }
  0x9b   : > { %946 = vmatpush1.bf16.msra.mxu0 %v1506_v56  ;;  %999 = vmatpush1.bf16.msra.mxu1 %v1509_v57 }
  0x9c   : > { %828 = vmatprep.mubr.bf16.mxu0 %v1665_v0  ;;  %881 = vmatprep.mubr.bf16.mxu1 %v1665_v0 }
  0xa2   : > { %1345 = vmatmul.mubr.msk.bf16.gmra.mrb[4].mxu0 %vm336_vm1, %v759_v62  ;;  %1347 = vmatmul.mubr.msk.bf16.gmra.mrb[4].mxu1 %vm336_vm1, %v759_v62 }
  0xa3   : > { %977 = vmatprep.mubr.bf16.mxu0 %v1665_v0  ;;  %1030 = vmatprep.mubr.bf16.mxu1 %v1665_v0 }
  0xaa   : > { %1352 = vmatmul.mubr.msk.bf16.vlgmr.msra.gmra.mrb[0].mxu0 %vm336_vm1, %v1848_v33  ;;  %1354 = vmatmul.mubr.msk.bf16.vlgmr.msra.gmra.mrb[0].mxu1 %vm336_vm1, %v1848_v33 }
  0xab   : > { %987 = vmatprep.mubr.bf16.mxu0 %v1665_v0  ;;  %1040 = vmatprep.mubr.bf16.mxu1 %v1665_v0  ;;  %v1118_v0 = vrot.slane %v1105_v7, %v1079_v3 }
  0xb2   : > { %1353 = vmatmul.mubr.msk.bf16.gmra.mrb[4].mxu0 %vm336_vm1, %v1850_v34  ;;  %1355 = vmatmul.mubr.msk.bf16.gmra.mrb[4].mxu1 %vm336_vm1, %v1850_v34 }
 0x17d   : > { %v979_v13 = vpop.f32.mrb[0].mxu0  ;;  %v1032_v14 = vpop.f32.mrb[0].mxu1 }
 0x17e   : > { %v1089_v17 = vmul.f32 %v1072_v8, %v979_v13  ;;  %v1091_v18 = vmul.f32 %v1080_v9, %v1032_v14  ;;  %v981_v19 = vpop.f32.mrb[1].mxu0  ;;  %v1034_v20 = vpop.f32.mrb[1].mxu1 }
 0x17f   : > { %v1090_v21 = vmul.f32 %v1076_v10, %v981_v19  ;;  %v1092_v22 = vmul.f32 %v1084_v11, %v1034_v20  ;;  %v983_v23 = vpop.f32.mrb[2].mxu0  ;;  %v1036_v24 = vpop.f32.mrb[2].mxu1 }
 0x180   : > { %v1127_v25 = vadd.f32 %v1110_v12, %v1089_v17  ;;  %v1129_v26 = vadd.f32 %v1118_v0, %v1091_v18  ;;  %v1093_v27 = vmul.f32 %v1072_v8, %v983_v23  ;;  %v1095_v28 = vmul.f32 %v1080_v9, %v1036_v24  ;;  %v985_v29 = vpop.f32.mrb[3].mxu0  ;;  %v1038_v30 = vpop.f32.mrb[3].mxu1 }
 0x181   : > { %v1128_v31 = vadd.f32 %v1114_v15, %v1090_v21  ;;  %v1130_v32 = vadd.f32 %v1909_v16, %v1092_v22  ;;  %v1094_v33 = vmul.f32 %v1076_v10, %v985_v29  ;;  %v1096_v34 = vmul.f32 %v1084_v11, %v1038_v30 }
 0x182   : > { %1512 = vtanh.f32 %v1127_v25  ;;  %v1131_v35 = vadd.f32 %v1110_v12, %v1093_v27  ;;  %v1133_v36 = vadd.f32 %v1118_v0, %v1095_v28 }
 0x183   : > { %1514 = vtanh.f32 %v1129_v26  ;;  %v1132_v37 = vadd.f32 %v1114_v15, %v1094_v33  ;;  %v1134_v38 = vadd.f32 %v1909_v16, %v1096_v34 }
 0x184   : > { %1516 = vtanh.f32 %v1128_v31 }
 0x185   : > { %1518 = vtanh.f32 %v1130_v32  ;;  %v989_v39 = vpop.f32.mrb[4].mxu0  ;;  %v1042_v40 = vpop.f32.mrb[4].mxu1 }
 0x186   : > { %1520 = vtanh.f32 %v1131_v35  ;;  %v1097_v41 = vmul.f32 %v1072_v8, %v989_v39  ;;  %v1099_v42 = vmul.f32 %v1080_v9, %v1042_v40  ;;  %v991_v43 = vpop.f32.mrb[5].mxu0  ;;  %v1044_v44 = vpop.f32.mrb[5].mxu1 }
 0x187   : > { %1522 = vtanh.f32 %v1133_v36  ;;  %v1098_v45 = vmul.f32 %v1076_v10, %v991_v43  ;;  %v1100_v46 = vmul.f32 %v1084_v11, %v1044_v44  ;;  %v993_v47 = vpop.f32.mrb[6].mxu0  ;;  %v1046_v48 = vpop.f32.mrb[6].mxu1 }
 0x188   : > { %1524 = vtanh.f32 %v1132_v37  ;;  %v1135_v49 = vadd.f32 %v1110_v12, %v1097_v41  ;;  %v1137_v50 = vadd.f32 %v1118_v0, %v1099_v42  ;;  %v1101_v51 = vmul.f32 %v1072_v8, %v993_v47  ;;  %v995_v52 = vpop.f32.mrb[7].mxu0  ;;  %v1048_v53 = vpop.f32.mrb[7].mxu1 }
 0x189   : > { %1526 = vtanh.f32 %v1134_v38  ;;  %v1136_v54 = vadd.f32 %v1114_v15, %v1098_v45  ;;  %v1138_v55 = vadd.f32 %v1909_v16, %v1100_v46  ;;  %v1103_v56 = vmul.f32 %v1080_v9, %v1046_v48 }
 0x18a   : > { %1528 = vtanh.f32 %v1135_v49  ;;  %v1139_v57 = vadd.f32 %v1110_v12, %v1101_v51  ;;  %v1102_v58 = vmul.f32 %v1076_v10, %v995_v52  ;;  %v1104_v59 = vmul.f32 %v1084_v11, %v1048_v53 }
 0x18b   : > { %1530 = vtanh.f32 %v1137_v50  ;;  %v1141_v60 = vadd.f32 %v1118_v0, %v1103_v56 }
 0x18c   : > { %v1513_v61 = vpop.eup %1512  ;;  %1532 = vtanh.f32 %v1136_v54  ;;  %v1140_v62 = vadd.f32 %v1114_v15, %v1102_v58  ;;  %v1142_v1 = vadd.f32 %v1909_v16, %v1104_v59 }
 0x18d   : > { %v1515_v63 = vpop.eup %1514  ;;  %1159 = vst [vmem:[%s1918_s15] sm:$0xff] %v1513_v61  ;;  %1534 = vtanh.f32 %v1138_v55 }
 0x18e   : > { %v1517_v2 = vpop.eup %1516  ;;  %1161 = vst [vmem:[%s1918_s15 + $0x10] sm:$0xff] %v1515_v63  ;;  %1536 = vtanh.f32 %v1139_v57 }
 0x18f   : > { %v1519_v3 = vpop.eup %1518  ;;  %1160 = vst [vmem:[%s1918_s15 + $0x8] sm:$0xff] %v1517_v2  ;;  %1538 = vtanh.f32 %v1141_v60 }
 0x190   : > { %v1521_v4 = vpop.eup %1520  ;;  %1162 = vst [vmem:[%s1918_s15 + $0x18] sm:$0xff] %v1519_v3  ;;  %1540 = vtanh.f32 %v1140_v62 }
 0x191   : > { %v1523_v5 = vpop.eup %1522  ;;  %1163 = vst [vmem:[%s1918_s15 + $0x20] sm:$0xff] %v1521_v4  ;;  %1542 = vtanh.f32 %v1142_v1 }
 0x192   : > { %v1525_v6 = vpop.eup %1524  ;;  %1165 = vst [vmem:[%s1918_s15 + $0x30] sm:$0xff] %v1523_v5 }
 0x193   : > { %v1527_v7 = vpop.eup %1526  ;;  %1164 = vst [vmem:[%s1918_s15 + $0x28] sm:$0xff] %v1525_v6 }
 0x194   : > { %v1529_v8 = vpop.eup %1528  ;;  %1166 = vst [vmem:[%s1918_s15 + $0x38] sm:$0xff] %v1527_v7 }
 0x195   : > { %v1531_v9 = vpop.eup %1530  ;;  %1167 = vst [vmem:[%s1918_s15 + $0x40] sm:$0xff] %v1529_v8 }
 0x196   : > { %v1533_v10 = vpop.eup %1532  ;;  %1169 = vst [vmem:[%s1918_s15 + $0x50] sm:$0xff] %v1531_v9 }
 0x197   : > { %v1535_v11 = vpop.eup %1534  ;;  %1168 = vst [vmem:[%s1918_s15 + $0x48] sm:$0xff] %v1533_v10 }
 0x198   : > { %v1537_v12 = vpop.eup %1536  ;;  %1170 = vst [vmem:[%s1918_s15 + $0x58] sm:$0xff] %v1535_v11 }
 0x199   : > { %v1539_v0 = vpop.eup %1538  ;;  %1171 = vst [vmem:[%s1918_s15 + $0x60] sm:$0xff] %v1537_v12 }
 0x19a   : > { %v1541_v13 = vpop.eup %1540  ;;  %1173 = vst [vmem:[%s1918_s15 + $0x70] sm:$0xff] %v1539_v0 }
 0x19b   : > { %v1543_v14 = vpop.eup %1542  ;;  %1172 = vst [vmem:[%s1918_s15 + $0x68] sm:$0xff] %v1541_v13 }
 0x19c   : > { %1174 = vst [vmem:[%s1918_s15 + $0x78] sm:$0xff] %v1543_v14 }
 0x19d PF: > { %s16_s17 = sadd.s32 1, %s1658_s17   ;;  %s1962_s15 = smov %s1654_s16 }
 0x19e   : > { %p13_p5 = scmp.ge.s32.totalorder %s16_s17, 4   ;;  %s1963_s16 = smov %s1965_s23 }
 0x1a0   :  { %15 = sbr.rel (!%p13_p5) target bundleno = 3 (0x3), region = 83 }
 0x1a7   :  { %1207 = vsyncpa [#allocation3], 1 }
 0x1a8   :  { %1209 = vsyncpa [#allocation3 + $0x1], 1 }
 0x1a9   :  { %1210 = vsyncpa [#allocation5], 1 }

// kernel: postnet_forward.9
= control target key start
LH: loop header
LB: loop body
LE: loop exit
PB: predicated region body
PF: predicated region fallthrough
CT: control target
= control target key end

     0   :  { %s3334_s15 = smov 0   ;;  %s3336_s16 = smov 0   ;;  %s4175_s0 = inlined_call_operand.vmem [shape: f32[2,1,36,512], index: 0, kind: input, shape index: {}]   ;;  %s4176_s1 = inlined_call_operand.vmem [shape: bf16[5,512,16], index: 1, kind: input, shape index: {}]   ;;  %s4177_s2 = inlined_call_operand.vmem [shape: f32[1,16], index: 2, kind: input, shape index: {}]   ;;  %s4178_s3 = inlined_call_operand.vmem [shape: f32[1,16], index: 3, kind: input, shape index: {}]   ;;  %s4179_s4 = inlined_call_operand.vmem [shape: f32[2,32,16], index: 4, kind: output, shape index: {}]  }
   0x1   :  { %s3338_s17 = smov 0  }
   0x2 LB: > { %s26_s18 = sadd.s32 1, %s3303_s16  ;;  %p2395_p0 = scmp.ge.s32.totalorder %s3307_s17, 1  ;;  %s3307_s17 = sphi %s3338_s17, %s14_s17   ;;  %s3303_s16 = sphi %s3336_s16, %s4181_s16   ;;  %s3299_s15 = sphi %s3334_s15, %s4180_s15  }
   0x3   : > { %p28_p1 = scmp.ge.s32.totalorder %s26_s18, 2  ;;  %p182_p2 = scmp.lt.s32.totalorder %s3307_s17, 3 }
   0x5   : > { %s4183_s18 = smov (%p28_p1, %s26_s18), 0  ;;  %p183_p3 = pnand %p2395_p0, %p182_p2 }
   0x6   : > { %v3125_v0 = vld [vmem:[%s4176_s1 + $0x140] sm:$0xff] (!%p183_p3)   ;;  %v3129_v4 = vld [vmem:[%s4176_s1 + $0x148] sm:$0xff] (!%p183_p3)   ;;  %v3133_v8 = vld [vmem:[%s4176_s1 + $0x150] sm:$0xff] (!%p183_p3)   ;;  %p216_p4 = scmp.lt.s32.totalorder (!%p183_p3), %s3299_s15, 1  ;;  %vm397_vm0 = vsmask.f32 (!%p183_p3), 7424 }
   0x7   : > { %186 = sbr.rel (%p183_p3) target bundleno = 403 (0x193), region = 36  ;;  %v3126_v1 = vld [vmem:[%s4176_s1 + $0x1c0] sm:$0xff] (!%p183_p3)   ;;  %2820 = vmatprep.subr.bf16.mxu0 (!%p183_p3), %v3125_v0  ;;  %v3130_v5 = vld [vmem:[%s4176_s1 + $0x1c8] sm:$0xff] (!%p183_p3)   ;;  %v3134_v9 = vld [vmem:[%s4176_s1 + $0x1d0] sm:$0xff] (!%p183_p3)   ;;  %vm1143_vm1 = vcmask (!%p183_p3), 1046528   ;;  %vm1951_vm3 = vcmask (!%p183_p3), 1045504  }
   0x8   : > { %v3127_v2 = vld [vmem:[%s4176_s1 + $0x100] sm:$0xff] (!%p183_p3)   ;;  %2848 = vmatprep.subr.bf16.mxu1 (!%p183_p3), %v3126_v1  ;;  %v3131_v6 = vld [vmem:[%s4176_s1 + $0x108] sm:$0xff] (!%p183_p3)   ;;  %v3135_v10 = vld [vmem:[%s4176_s1 + $0x110] sm:$0xff] (!%p183_p3)   ;;  %vm1531_vm2 = vsmask.f32 (!%p183_p3), 6400  ;;  %vm2296_vm4 = vcmask (!%p183_p3), 130048  }
   0x9   : > { %v3128_v3 = vld [vmem:[%s4176_s1 + $0x180] sm:$0xff] (!%p183_p3)   ;;  %2821 = vmatpush3.bf16.msra.mxu0 (!%p183_p3), %v3127_v2  ;;  %v3132_v7 = vld [vmem:[%s4176_s1 + $0x188] sm:$0xff] (!%p183_p3)   ;;  %v3136_v11 = vld [vmem:[%s4176_s1 + $0x190] sm:$0xff] (!%p183_p3)  }
   0xa   : > { %2849 = vmatpush3.bf16.msra.mxu1 (!%p183_p3), %v3128_v3  ;;  %2822 = vmatprep.subr.bf16.mxu0 (!%p183_p3), %v3129_v4  ;;  %v3137_v12 = vld [vmem:[%s4176_s1 + $0x158] sm:$0xff] (!%p183_p3)   ;;  %v3141_v16 = vld [vmem:[%s4176_s1 + $0x160] sm:$0xff] (!%p183_p3)   ;;  %v3145_v20 = vld [vmem:[%s4176_s1 + $0x168] sm:$0xff] (!%p183_p3)  }
   0xb   : > { %2850 = vmatprep.subr.bf16.mxu1 (!%p183_p3), %v3130_v5  ;;  %v3138_v13 = vld [vmem:[%s4176_s1 + $0x1d8] sm:$0xff] (!%p183_p3)   ;;  %v3142_v17 = vld [vmem:[%s4176_s1 + $0x1e0] sm:$0xff] (!%p183_p3)   ;;  %v3146_v21 = vld [vmem:[%s4176_s1 + $0x1e8] sm:$0xff] (!%p183_p3)  }
   0xc   : > { %v3139_v14 = vld [vmem:[%s4176_s1 + $0x118] sm:$0xff] (!%p183_p3)   ;;  %v3143_v18 = vld [vmem:[%s4176_s1 + $0x120] sm:$0xff] (!%p183_p3)   ;;  %v3147_v22 = vld [vmem:[%s4176_s1 + $0x128] sm:$0xff] (!%p183_p3)  }
   0xd   : > { %2823 = vmatpush3.bf16.msra.mxu0 (!%p183_p3), %v3131_v6  ;;  %v3140_v15 = vld [vmem:[%s4176_s1 + $0x198] sm:$0xff] (!%p183_p3)   ;;  %v3144_v19 = vld [vmem:[%s4176_s1 + $0x1a0] sm:$0xff] (!%p183_p3)   ;;  %v3148_v23 = vld [vmem:[%s4176_s1 + $0x1a8] sm:$0xff] (!%p183_p3)  }
   0xe   : > { %2851 = vmatpush3.bf16.msra.mxu1 %v3132_v7  ;;  %2824 = vmatprep.subr.bf16.mxu0 %v3133_v8  ;;  %s4185_s15 = smov (!%p216_p4, %s3299_s15), 1  ;;  %v3149_v24 = vld [vmem:[%s4176_s1 + $0x170] sm:$0xff]   ;;  %v3153_v28 = vld [vmem:[%s4176_s1 + $0x178] sm:$0xff]   ;;  %v3157_v62 = vld [vmem:[%s4176_s1 + $0x40] sm:$0xff]  }
   0xf   : > { %2852 = vmatprep.subr.bf16.mxu1 %v3134_v9  ;;  %v3150_v25 = vld [vmem:[%s4176_s1 + $0x1f0] sm:$0xff]   ;;  %s3100_s27 = smul.u32 160, %s4185_s15  ;;  %v3154_v29 = vld [vmem:[%s4176_s1 + $0x1f8] sm:$0xff]   ;;  %v3158_v9 = vld [vmem:[%s4176_s1 + $0xc0] sm:$0xff]   ;;  %s2819_s13 = sshll.u32 %s4185_s15, 5 }
  0x10   : > { %v3151_v26 = vld [vmem:[%s4176_s1 + $0x130] sm:$0xff]   ;;  %v3155_v30 = vld [vmem:[%s4176_s1 + $0x138] sm:$0xff]   ;;  %s233_s22 = scalar_lea.vmem %s4179_s4, %s2819_s13 }
  0x11   : > { %2825 = vmatpush3.bf16.msra.mxu0 %v3135_v10  ;;  %v3152_v27 = vld [vmem:[%s4176_s1 + $0x1b0] sm:$0xff]   ;;  %s3452_s12 = scalar_lea.vmem %s4175_s0, %s3100_s27  ;;  %v3156_v31 = vld [vmem:[%s4176_s1 + $0x1b8] sm:$0xff]  }
  0x12   : > { %2853 = vmatpush3.bf16.msra.mxu1 %v3136_v11  ;;  %2826 = vmatprep.subr.bf16.mxu0 %v3137_v12  ;;  %v237_v32 = vld [vmem:[%s3452_s12 + $0x8] sm:$0xff]  ;;  %v239_v37 = vld [vmem:[%s3452_s12 + $0x18] sm:$0xff]  ;;  %v236_v43 = vld [vmem:[%s3452_s12] sm:$0xff] }
  0x13   : > { %2854 = vmatprep.subr.bf16.mxu1 %v3138_v13  ;;  %v241_v33 = vld [vmem:[%s3452_s12 + $0x28] sm:$0xff]  ;;  %v243_v38 = vld [vmem:[%s3452_s12 + $0x38] sm:$0xff]  ;;  %v240_v47 = vld [vmem:[%s3452_s12 + $0x20] sm:$0xff] }
  0x14   : > { %v245_v34 = vld [vmem:[%s3452_s12 + $0x48] sm:$0xff]  ;;  %v3464_v36 = vpack.c.bf16 %v241_v33, %v237_v32  ;;  %v247_v40 = vld [vmem:[%s3452_s12 + $0x58] sm:$0xff]  ;;  %v3472_v42 = vpack.c.bf16 %v243_v38, %v239_v37  ;;  %v244_v48 = vld [vmem:[%s3452_s12 + $0x40] sm:$0xff]  ;;  %v3485_v53 = vpack.c.bf16 %v240_v47, %v236_v43 }
  0x15   : > { %2827 = vmatpush3.bf16.msra.mxu0 %v3139_v14  ;;  %v249_v35 = vld [vmem:[%s3452_s12 + $0x68] sm:$0xff]  ;;  %v251_v41 = vld [vmem:[%s3452_s12 + $0x78] sm:$0xff]  ;;  %v248_v49 = vld [vmem:[%s3452_s12 + $0x60] sm:$0xff] }
  0x16   : > { %2855 = vmatpush3.bf16.msra.mxu1 %v3140_v15  ;;  %2828 = vmatprep.subr.bf16.mxu0 %v3141_v16  ;;  %v3468_v39 = vpack.c.bf16 %v249_v35, %v245_v34  ;;  %v411_v44 = vshrl.u32 %v3464_v36, 16  ;;  %v413_v45 = vshll.u32 %v3464_v36, 16  ;;  %v3477_v46 = vpack.c.bf16 %v251_v41, %v247_v40  ;;  %v238_v54 = vld [vmem:[%s3452_s12 + $0x10] sm:$0xff]  ;;  %v3169_v40 = vld [vmem:[%s4176_s1 + $0x58] sm:$0xff]  }
  0x17   : > { %2856 = vmatprep.subr.bf16.mxu1 %v3142_v17  ;;  %v435_v51 = vshrl.u32 %v3472_v42, 16  ;;  %v437_v52 = vshll.u32 %v3472_v42, 16  ;;  %v242_v55 = vld [vmem:[%s3452_s12 + $0x30] sm:$0xff]  ;;  %v3493_v59 = vpack.c.bf16 %v248_v49, %v244_v48  ;;  %v399_v1 = vshrl.u32 %v3485_v53, 16  ;;  %v3159_v17 = vld [vmem:[%s4176_s1] sm:$0xff]   ;;  %v3170_v47 = vld [vmem:[%s4176_s1 + $0xd8] sm:$0xff]  }
  0x18   : > { %v418_v50 = vshll.u32 %v3468_v39, 16  ;;  %v246_v56 = vld [vmem:[%s3452_s12 + $0x50] sm:$0xff]  ;;  %v415_v57 = vrot.slane %v413_v45, 1  ;;  %v442_v58 = vshll.u32 %v3477_v46, 16  ;;  %v3496_v61 = vpack.c.bf16 %v242_v55, %v238_v54  ;;  %v3171_v54 = vld [vmem:[%s4176_s1 + $0x18] sm:$0xff]  }
  0x19   : > { %2829 = vmatpush3.bf16.msra.mxu0 %v3143_v18  ;;  %v250_v60 = vld [vmem:[%s3452_s12 + $0x70] sm:$0xff]  ;;  %v439_v0 = vrot.slane %v437_v52, 1  ;;  %v401_v2 = vshll.u32 %v3485_v53, 16  ;;  %v406_v5 = vshll.u32 %v3493_v59, 16  ;;  %v1147_v41 = vrot.slane %v3464_v36, 1 }
  0x1a   : > { %2857 = vmatpush3.bf16.msra.mxu1 %v3144_v19  ;;  %2830 = vmatprep.subr.bf16.mxu0 %v3145_v20  ;;  %v3503_v63 = vrot.slane %v418_v50, 1  ;;  %v416_v3 = vor.u32 %v415_v57, %v411_v44  ;;  %v3513_v4 = vrot.slane %v442_v58, 1  ;;  %v3516_v6 = vpack.c.bf16 %v250_v60, %v246_v56  ;;  %v3160_v19 = vld [vmem:[%s4176_s1 + $0x80] sm:$0xff]   ;;  %v3166_v32 = vld [vmem:[%s4176_s1 + $0xd0] sm:$0xff]   ;;  %v3172_v56 = vld [vmem:[%s4176_s1 + $0x98] sm:$0xff]  }
  0x1b   : > { %2858 = vmatprep.subr.bf16.mxu1 %v3146_v21  ;;  %v440_v7 = vor.u32 %v439_v0, %v435_v51  ;;  %v403_v8 = vrot.slane %v401_v2, 1  ;;  %v3527_v11 = vrot.slane %v406_v5, 1  ;;  %v423_v12 = vshrl.u32 %v3496_v61, 16  ;;  %v3167_v34 = vld [vmem:[%s4176_s1 + $0x10] sm:$0xff]   ;;  %v3173_v60 = vld [vmem:[%s4176_s1 + $0x60] sm:$0xff]  }
  0x1c   : > { %v421_v10 = vsel %vm397_vm0, %v416_v3, %v3503_v63  ;;  %v425_v13 = vshll.u32 %v3496_v61, 16  ;;  %v430_v16 = vshll.u32 %v3516_v6, 16  ;;  %v462_v33 = vshrl.u32 %v3516_v6, 16  ;;  %v3168_v37 = vld [vmem:[%s4176_s1 + $0x90] sm:$0xff]   ;;  %v3174_v0 = vld [vmem:[%s4176_s1 + $0xe0] sm:$0xff]  }
  0x1d   : > { %2831 = vmatpush3.bf16.msra.mxu0 %v3147_v22  ;;  %710 = vmatprep.mubr.bf16.mxu0 %v421_v10  ;;  %v445_v14 = vsel %vm397_vm0, %v440_v7, %v3513_v4  ;;  %v404_v15 = vor.u32 %v403_v8, %v399_v1  ;;  %v3161_v22 = vld [vmem:[%s4176_s1 + $0x48] sm:$0xff]   ;;  %v454_v48 = vshrl.u32 %v3468_v39, 16  ;;  %v470_v55 = vshrl.u32 %v3477_v46, 16 }
  0x1e   : > { %2859 = vmatpush3.bf16.msra.mxu1 %v3148_v23  ;;  %2832 = vmatprep.subr.bf16.mxu0 %v3149_v24  ;;  %v427_v18 = vrot.slane %v425_v13, 1  ;;  %v3546_v21 = vrot.slane %v430_v16, 1  ;;  %v3162_v23 = vld [vmem:[%s4176_s1 + $0xc8] sm:$0xff]   ;;  %v1549_v38 = vrot.slane %v462_v33, 1  ;;  %v1144_v57 = vrot.slane %v3485_v53, 1 }
  0x1f   : > { %2860 = vmatprep.subr.bf16.mxu1 %v3150_v25  ;;  %759 = vmatprep.mubr.bf16.mxu1 %v445_v14  ;;  %v409_v20 = vsel %vm397_vm0, %v404_v15, %v3527_v11  ;;  %v1536_v25 = vrot.slane %v406_v5, 2  ;;  %v1150_v3 = vrot.slane %v3496_v61, 1  ;;  %v3175_v5 = vld [vmem:[%s4176_s1 + $0x20] sm:$0xff]   ;;  %v1151_v8 = vrot.slane %v3516_v6, 1  ;;  %v3177_v14 = vld [vmem:[%s4176_s1 + $0x68] sm:$0xff]  }
  0x20   : > { %v428_v24 = vor.u32 %v427_v18, %v423_v12  ;;  %v1539_v10 = vrot.slane %v411_v44, 1  ;;  %v253_v18 = vld [vmem:[%s3452_s12 + $0x88] sm:$0xf]  ;;  %v1542_v44 = vrot.slane %v454_v48, 1 }
  0x21   : > { %2833 = vmatpush3.bf16.msra.mxu0 %v3151_v26  ;;  %v3163_v26 = vld [vmem:[%s4176_s1 + $0x8] sm:$0xff]   ;;  %v3630_v15 = vsel %vm1143_vm1, %v1150_v3, %v1151_v8  ;;  %v3185_v3 = vld [vmem:[%s4176_s1 + $0x78] sm:$0xff]  }
  0x22   : > { %2861 = vmatpush3.bf16.msra.mxu1 %v3152_v27  ;;  %2834 = vmatprep.subr.bf16.mxu0 %v3153_v28  ;;  %v433_v27 = vsel %vm397_vm0, %v428_v24, %v3546_v21  ;;  %v1550_v28 = vrot.slane %v430_v16, 2  ;;  %v1540_v16 = vrot.slane %v413_v45, 2  ;;  %v3179_v45 = vld [vmem:[%s4176_s1 + $0x28] sm:$0xff]   ;;  %v1543_v24 = vrot.slane %v418_v50, 2 }
  0x23   : > { %2862 = vmatprep.subr.bf16.mxu1 %v3154_v29  ;;  %v3164_v29 = vld [vmem:[%s4176_s1 + $0x88] sm:$0xff]  }
  0x24   : > { %v3592_v49 = vor.u32 %v1550_v28, %v1549_v38  ;;  %v3180_v50 = vld [vmem:[%s4176_s1 + $0xa8] sm:$0xff]  }
  0x25   : > { %2835 = vmatpush3.bf16.msra.mxu0 %v3155_v30  ;;  %v3165_v30 = vld [vmem:[%s4176_s1 + $0x50] sm:$0xff]  }
  0x26   : > { %2863 = vmatpush3.bf16.msra.mxu1 %v3156_v31  ;;  %2876 = vmatprep.subr.bf16.mxu0 %v3157_v62  ;;  %v446_v31 = vshrl.u32 %v3493_v59, 16  ;;  %v1145_v62 = vrot.slane %v3493_v59, 1 }
  0x27   : > { %2904 = vmatprep.subr.bf16.mxu1 %v3158_v9  ;;  %v3176_v9 = vld [vmem:[%s4176_s1 + $0xa0] sm:$0xff]  }
  0x28   : > { %711 = vmatmul.mubr.bf16.vlgmr.msra.gmra.mrb[0].mxu0 %v409_v20  ;;  %v1535_v35 = vrot.slane %v446_v31, 1  ;;  %v3616_v7 = vsel %vm1143_vm1, %v1144_v57, %v1145_v62  ;;  %v3639_v20 = vpack.c.bf16 %v253_v18, %v253_v18  ;;  %v3182_v57 = vld [vmem:[%s4176_s1 + $0xf0] sm:$0xff]   ;;  %v3188_v18 = vld [vmem:[%s4176_s1 + $0xb8] sm:$0xff]  }
  0x29   : > { %2877 = vmatpush3.bf16.msra.mxu0 %v3159_v17  ;;  %760 = vmatmul.mubr.bf16.vlgmr.msra.gmra.mrb[0].mxu1 %v433_v27  ;;  %v3178_v17 = vld [vmem:[%s4176_s1 + $0xe8] sm:$0xff]   ;;  %v456_v27 = vor.u32 %v454_v48, %v3503_v63 }
  0x2a   : > { %2878 = vmatprep.subr.bf16.mxu0 %v3161_v22  ;;  %2905 = vmatpush3.bf16.msra.mxu1 %v3160_v19  ;;  %v3586_v43 = vor.u32 %v1536_v25, %v1535_v35  ;;  %v255_v19 = vld [vmem:[%s3452_s12 + $0x98] sm:$0xf]  ;;  %v3650_v25 = vrot.slane %v399_v1, 1  ;;  %v458_v28 = vshll.u32 %v3639_v20, 16  ;;  %v252_v1 = vld [vmem:[%s3452_s12 + $0x80] sm:$0xf] }
  0x2b   : > { %2906 = vmatprep.subr.bf16.mxu1 %v3162_v23  ;;  %v3641_v22 = vpack.c.bf16 %v255_v19, %v255_v19  ;;  %v1541_v23 = vor.u32 %v1540_v16, %v1539_v10  ;;  %v3181_v35 = vld [vmem:[%s4176_s1 + $0x70] sm:$0xff]   ;;  %v3186_v10 = vld [vmem:[%s4176_s1 + $0xf8] sm:$0xff]   ;;  %v1154_v19 = vrot.slane %v3477_v46, 1 }
  0x2c   : > { %v3187_v16 = vld [vmem:[%s4176_s1 + $0x38] sm:$0xff]  }
  0x2d   : > { %2879 = vmatpush3.bf16.msra.mxu0 %v3163_v26  ;;  %v3654_v26 = vrot.slane %v423_v12, 1  ;;  %v3669_v12 = vpack.c.bf16 %v252_v1, %v252_v1 }
  0x2e   : > { %2880 = vmatprep.subr.bf16.mxu0 %v3165_v30  ;;  %2907 = vmatpush3.bf16.msra.mxu1 %v3164_v29  ;;  %v472_v29 = vor.u32 %v470_v55, %v3513_v4  ;;  %v474_v30 = vshll.u32 %v3641_v22, 16  ;;  %v1148_v4 = vrot.slane %v3468_v39, 1 }
  0x2f   : > { %2908 = vmatprep.subr.bf16.mxu1 %v3166_v32  ;;  %v254_v32 = vld [vmem:[%s3452_s12 + $0x90] sm:$0xf]  ;;  %v450_v48 = vshll.u32 %v3669_v12, 16 }
  0x30   : > { %v3671_v63 = vpack.c.bf16 %v254_v32, %v254_v32  ;;  %v476_v38 = vrot.slane %v474_v30, 1  ;;  %v1547_v32 = vrot.slane %v425_v13, 2 }
  0x31   : > { %2881 = vmatpush3.bf16.msra.mxu0 %v3167_v34  ;;  %v3667_v34 = vor.u32 %v1543_v24, %v1542_v44  ;;  %v3189_v44 = vld [vmem:[%s4176_s1 + $0x240] sm:$0xff]  }
  0x32   : > { %2882 = vmatprep.subr.bf16.mxu0 %v3169_v40  ;;  %2909 = vmatpush3.bf16.msra.mxu1 %v3168_v37  ;;  %v460_v37 = vrot.slane %v458_v28, 1  ;;  %v3191_v24 = vld [vmem:[%s4176_s1 + $0x200] sm:$0xff]   ;;  %v1548_v13 = vor.u32 %v1547_v32, %v3654_v26  ;;  %v3197_v26 = vld [vmem:[%s4176_s1 + $0x250] sm:$0xff]   ;;  %v1956_v32 = vrot.slane %v3468_v39, 2 }
  0x33   : > { %2910 = vmatprep.subr.bf16.mxu1 %v3170_v47  ;;  %v3683_v40 = vsel %vm1531_vm2, %v1541_v23, %v3667_v34  ;;  %v448_v47 = vor.u32 %v446_v31, %v3527_v11  ;;  %v477_v11 = vsel %vm397_vm0, %v472_v29, %v476_v38  ;;  %v1556_v23 = vrot.slane %v470_v55, 1  ;;  %v3193_v55 = vld [vmem:[%s4176_s1 + $0x248] sm:$0xff]  }
  0x34   : > { %767 = vmatprep.mubr.bf16.mxu1 %v477_v11  ;;  %v1557_v29 = vrot.slane %v442_v58, 2  ;;  %v3194_v58 = vld [vmem:[%s4176_s1 + $0x2c8] sm:$0xff]  }
  0x35   : > { %2883 = vmatpush3.bf16.msra.mxu0 %v3171_v54  ;;  %v464_v54 = vor.u32 %v462_v33, %v3546_v21  ;;  %v452_v21 = vrot.slane %v450_v48, 1  ;;  %v3184_v33 = vld [vmem:[%s4176_s1 + $0xb0] sm:$0xff]  }
  0x36   : > { %2884 = vmatprep.subr.bf16.mxu0 %v3173_v60  ;;  %2911 = vmatpush3.bf16.msra.mxu1 %v3172_v56  ;;  %v466_v56 = vshll.u32 %v3671_v63, 16  ;;  %v3183_v60 = vld [vmem:[%s4176_s1 + $0x30] sm:$0xff]   ;;  %v1558_v1 = vor.u32 %v1557_v29, %v1556_v23 }
  0x37   : > { %2912 = vmatprep.subr.bf16.mxu1 %v3174_v0  ;;  %v461_v0 = vsel %vm397_vm0, %v456_v27, %v460_v37  ;;  %v1566_v37 = vshrl.u32 %v3639_v20, 16 }
  0x38   : > { %718 = vmatprep.mubr.bf16.mxu0 %v461_v0  ;;  %v468_v31 = vrot.slane %v466_v56, 1  ;;  %v3198_v0 = vld [vmem:[%s4176_s1 + $0x2d0] sm:$0xff]  }
  0x39   : > { %2885 = vmatpush3.bf16.msra.mxu0 %v3175_v5  ;;  %v453_v5 = vsel %vm397_vm0, %v448_v47, %v452_v21  ;;  %v1569_v47 = vrot.slane %v458_v28, 2  ;;  %v3781_v28 = vsel %vm1531_vm2, %v1548_v13, %v3592_v49  ;;  %v1581_v21 = vrot.slane %v474_v30, 2  ;;  %v3201_v30 = vld [vmem:[%s4176_s1 + $0x258] sm:$0xff]   ;;  %v3211_v13 = vld [vmem:[%s4176_s1 + $0x228] sm:$0xff]  }
  0x3a   : > { %2886 = vmatprep.subr.bf16.mxu0 %v3177_v14  ;;  %2913 = vmatpush3.bf16.msra.mxu1 %v3176_v9  ;;  %v469_v9 = vsel %vm397_vm0, %v464_v54, %v468_v31  ;;  %v1153_v14 = vrot.slane %v3472_v42, 1  ;;  %v3199_v31 = vld [vmem:[%s4176_s1 + $0x210] sm:$0xff]  }
  0x3b   : > { %2914 = vmatprep.subr.bf16.mxu1 %v3178_v17  ;;  %719 = vmatmul.mubr.bf16.gmra.mrb[4].mxu0 %v453_v5  ;;  %v1553_v17 = vrot.slane %v435_v51, 1  ;;  %v3190_v51 = vld [vmem:[%s4176_s1 + $0x2c0] sm:$0xff]  }
  0x3c   : > { %768 = vmatmul.mubr.bf16.gmra.mrb[4].mxu1 %v469_v9  ;;  %1000 = vmatprep.mubr.bf16.mxu0 %v3464_v36  ;;  %v1560_v9 = vshrl.u32 %v3669_v12, 16  ;;  %v1155_v23 = vsel %vm1143_vm1, %v1153_v14, %v1154_v19 }
  0x3d   : > { %2887 = vmatpush3.bf16.msra.mxu0 %v3179_v45  ;;  %1049 = vmatprep.mubr.bf16.mxu1 %v3472_v42  ;;  %v1554_v45 = vrot.slane %v437_v52, 2  ;;  %v3192_v52 = vld [vmem:[%s4176_s1 + $0x280] sm:$0xff]  }
  0x3e   : > { %2888 = vmatprep.subr.bf16.mxu0 %v3181_v35  ;;  %2915 = vmatpush3.bf16.msra.mxu1 %v3180_v50  ;;  %v1533_v50 = vrot.slane %v401_v2, 2  ;;  %v3195_v2 = vld [vmem:[%s4176_s1 + $0x208] sm:$0xff]  }
  0x3f   : > { %2916 = vmatprep.subr.bf16.mxu1 %v3182_v57  ;;  %v1555_v27 = vor.u32 %v1554_v45, %v1553_v17  ;;  %v1568_v57 = vrot.slane %v1566_v37, 1  ;;  %v3202_v17 = vld [vmem:[%s4176_s1 + $0x2d8] sm:$0xff]   ;;  %v1572_v45 = vshrl.u32 %v3671_v63, 16 }
  0x40   : > { %v1534_v35 = vor.u32 %v1533_v50, %v3650_v25  ;;  %v3196_v25 = vld [vmem:[%s4176_s1 + $0x288] sm:$0xff]  }
  0x41   : > { %2889 = vmatpush3.bf16.msra.mxu0 %v3183_v60  ;;  %v3763_v38 = vsel %vm1531_vm2, %v1555_v27, %v1558_v1  ;;  %v1578_v60 = vshrl.u32 %v3641_v22, 16  ;;  %v1570_v11 = vor.u32 %v1569_v47, %v1568_v57  ;;  %v3205_v27 = vld [vmem:[%s4176_s1 + $0x260] sm:$0xff]   ;;  %v1574_v29 = vrot.slane %v1572_v45, 1  ;;  %v3213_v57 = vld [vmem:[%s4176_s1 + $0x270] sm:$0xff]  }
  0x42   : > { %2890 = vmatprep.subr.bf16.mxu0 %v3185_v3  ;;  %2917 = vmatpush3.bf16.msra.mxu1 %v3184_v33  ;;  %v3774_v54 = vsel %vm1531_vm2, %v1534_v35, %v3586_v43  ;;  %v3200_v3 = vld [vmem:[%s4176_s1 + $0x290] sm:$0xff]   ;;  %v1961_v35 = vrot.slane %v3472_v42, 2  ;;  %v1952_v47 = vrot.slane %v3485_v53, 2  ;;  %v3212_v42 = vld [vmem:[%s4176_s1 + $0x2a8] sm:$0xff]  }
  0x43   : > { %2918 = vmatprep.subr.bf16.mxu1 %v3186_v10  ;;  %v1580_v33 = vrot.slane %v1578_v60, 1  ;;  %v3799_v5 = vsel %vm1531_vm2, %v3667_v34, %v1570_v11  ;;  %v3203_v34 = vld [vmem:[%s4176_s1 + $0x218] sm:$0xff]   ;;  %v3215_v11 = vld [vmem:[%s4176_s1 + $0x230] sm:$0xff]  }
  0x45   : > { %2891 = vmatpush3.bf16.msra.mxu0 %v3187_v16  ;;  %v1582_v10 = vor.u32 %v1581_v21, %v1580_v33  ;;  %v1563_v16 = vrot.slane %v450_v48, 2  ;;  %v1966_v21 = vrot.slane %v3639_v20, 2  ;;  %v1970_v33 = vrot.slane %v3641_v22, 2 }
  0x46   : > { %2932 = vmatprep.subr.bf16.mxu0 %v3189_v44  ;;  %2919 = vmatpush3.bf16.msra.mxu1 %v3188_v18  ;;  %v1562_v18 = vrot.slane %v1560_v9, 1  ;;  %v1149_v44 = vsel %vm1143_vm1, %v1147_v41, %v1148_v4  ;;  %v1575_v41 = vrot.slane %v466_v56, 2  ;;  %v3207_v56 = vld [vmem:[%s4176_s1 + $0x220] sm:$0xff]  }
  0x47   : > { %2960 = vmatprep.subr.bf16.mxu1 %v3190_v51  ;;  %v3820_v48 = vsel %vm1531_vm2, %v1558_v1, %v1582_v10  ;;  %v3204_v51 = vld [vmem:[%s4176_s1 + $0x298] sm:$0xff]   ;;  %v3208_v1 = vld [vmem:[%s4176_s1 + $0x2a0] sm:$0xff]   ;;  %v3904_v9 = vsel %vm1951_vm3, %v1956_v32, %v1966_v21 }
  0x48   : > { %1001 = vmatmul.mubr.bf16.vlgmr.msra.gmra.mrb[8].mxu0 %v3485_v53  ;;  %v1576_v50 = vor.u32 %v1575_v41, %v1574_v29  ;;  %v3214_v53 = vld [vmem:[%s4176_s1 + $0x2f0] sm:$0xff]   ;;  %v3218_v10 = vld [vmem:[%s4176_s1 + $0x2f8] sm:$0xff]   ;;  %v1158_v41 = vrot.slane %v3639_v20, 1  ;;  %v1162_v29 = vrot.slane %v3641_v22, 1  ;;  %v3227_v20 = vld [vmem:[%s4176_s1 + $0x308] sm:$0xff]  }
  0x49   : > { %1050 = vmatmul.mubr.bf16.vlgmr.msra.gmra.mrb[8].mxu1 %v3496_v61  ;;  %2933 = vmatpush3.bf16.msra.mxu0 %v3191_v24  ;;  %v1564_v24 = vor.u32 %v1563_v16, %v1562_v18  ;;  %v3219_v18 = vld [vmem:[%s4176_s1 + $0x238] sm:$0xff]   ;;  %v3254_v21 = vld [vmem:[%s4176_s1 + $0x4c0] sm:$0xff]  }
  0x4a   : > { %2961 = vmatpush3.bf16.msra.mxu1 %v3192_v52  ;;  %2934 = vmatprep.subr.bf16.mxu0 %v3193_v55  ;;  %v3206_v52 = vld [vmem:[%s4176_s1 + $0x2e0] sm:$0xff]   ;;  %v1955_v55 = vrot.slane %v3464_v36, 2  ;;  %v3210_v36 = vld [vmem:[%s4176_s1 + $0x2e8] sm:$0xff]   ;;  %v1159_v22 = vsel %vm1143_vm1, %v1148_v4, %v1158_v41 }
  0x4b   : > { %2962 = vmatprep.subr.bf16.mxu1 %v3194_v58  ;;  %1008 = vmatprep.mubr.bf16.mxu0 %v3468_v39  ;;  %v3842_v14 = vsel %vm1531_vm2, %v3586_v43, %v1564_v24  ;;  %v3209_v43 = vld [vmem:[%s4176_s1 + $0x268] sm:$0xff]   ;;  %v3857_v58 = vsel %vm1531_vm2, %v3592_v49, %v1576_v50  ;;  %v3223_v24 = vld [vmem:[%s4176_s1 + $0x300] sm:$0xff]   ;;  %v3229_v39 = vld [vmem:[%s4176_s1 + $0x350] sm:$0xff]  }
  0x4c   : > { %1057 = vmatprep.mubr.bf16.mxu1 %v3477_v46  ;;  %v3864_v37 = vsel %vm1951_vm3, %v1955_v55, %v1956_v32  ;;  %v3228_v50 = vld [vmem:[%s4176_s1 + $0x388] sm:$0xff]   ;;  %v1163_v55 = vsel %vm1143_vm1, %v1154_v19, %v1162_v29  ;;  %v3233_v19 = vld [vmem:[%s4176_s1 + $0x358] sm:$0xff]   ;;  %v3238_v32 = vld [vmem:[%s4176_s1 + $0x3e0] sm:$0xff]  }
  0x4d   : > { %2935 = vmatpush3.bf16.msra.mxu0 %v3195_v2  ;;  %v1962_v2 = vrot.slane %v3477_v46, 2  ;;  %v3231_v46 = vld [vmem:[%s4176_s1 + $0x310] sm:$0xff]   ;;  %v3272_v41 = vld [vmem:[%s4176_s1 + $0x4a0] sm:$0xff]   ;;  %v3276_v29 = vld [vmem:[%s4176_s1 + $0x4a8] sm:$0xff]  }
  0x4e   : > { %2963 = vmatpush3.bf16.msra.mxu1 %v3196_v25  ;;  %2936 = vmatprep.subr.bf16.mxu0 %v3197_v26  ;;  %v1953_v25 = vrot.slane %v3493_v59, 2  ;;  %v1958_v26 = vrot.slane %v3496_v61, 2  ;;  %v3216_v61 = vld [vmem:[%s4176_s1 + $0x2b0] sm:$0xff]  }
  0x4f   : > { %2964 = vmatprep.subr.bf16.mxu1 %v3198_v0  ;;  %v3875_v49 = vsel %vm1951_vm3, %v1961_v35, %v1962_v2  ;;  %v1959_v0 = vrot.slane %v3516_v6, 2  ;;  %v3911_v16 = vsel %vm1951_vm3, %v1962_v2, %v1970_v33  ;;  %v3240_v35 = vld [vmem:[%s4176_s1 + $0x3a0] sm:$0xff]   ;;  %v3244_v2 = vld [vmem:[%s4176_s1 + $0x3a8] sm:$0xff]  }
  0x50   : > { %1009 = vmatmul.mubr.bf16.gmra.mrb[12].mxu0 %v3493_v59  ;;  %v3886_v60 = vsel %vm1951_vm3, %v1952_v47, %v1953_v25  ;;  %v3234_v59 = vld [vmem:[%s4176_s1 + $0x3d8] sm:$0xff]   ;;  %v3246_v47 = vld [vmem:[%s4176_s1 + $0x3f0] sm:$0xff]   ;;  %v3256_v33 = vld [vmem:[%s4176_s1 + $0x480] sm:$0xff]  }
  0x51   : > { %2937 = vmatpush3.bf16.msra.mxu0 %v3199_v31  ;;  %1058 = vmatmul.mubr.bf16.gmra.mrb[12].mxu1 %v3516_v6  ;;  %v3897_v31 = vsel %vm1951_vm3, %v1958_v26, %v1959_v0  ;;  %v3236_v6 = vld [vmem:[%s4176_s1 + $0x398] sm:$0xff]  }
  0x52   : > { %2965 = vmatpush3.bf16.msra.mxu1 %v3200_v3  ;;  %2938 = vmatprep.subr.bf16.mxu0 %v3201_v30  ;;  %v3217_v3 = vld [vmem:[%s4176_s1 + $0x278] sm:$0xff]   ;;  %v1964_v30 = vrot.slane %v3669_v12, 2 }
  0x53   : > { %2966 = vmatprep.subr.bf16.mxu1 %v3202_v17  ;;  %1396 = vmatprep.mubr.bf16.mxu0 %v1149_v44  ;;  %v1968_v17 = vrot.slane %v3671_v63, 2  ;;  %v3220_v44 = vld [vmem:[%s4176_s1 + $0x2b8] sm:$0xff]  }
  0x54   : > { %1445 = vmatprep.mubr.bf16.mxu1 %v1155_v23  ;;  %v3222_v23 = vld [vmem:[%s4176_s1 + $0x3c0] sm:$0xff]   ;;  %v3250_v26 = vld [vmem:[%s4176_s1 + $0x3f8] sm:$0xff]  }
  0x55   : > { %2939 = vmatpush3.bf16.msra.mxu0 %v3203_v34  ;;  %v3918_v34 = vsel %vm1951_vm3, %v1953_v25, %v1964_v30  ;;  %v3924_v45 = vsel %vm1951_vm3, %v1959_v0, %v1968_v17  ;;  %v3248_v25 = vld [vmem:[%s4176_s1 + $0x3b0] sm:$0xff]   ;;  %v3252_v0 = vld [vmem:[%s4176_s1 + $0x3b8] sm:$0xff]   ;;  %v3258_v30 = vld [vmem:[%s4176_s1 + $0x4c8] sm:$0xff]  }
  0x56   : > { %2967 = vmatpush3.bf16.msra.mxu1 %v3204_v51  ;;  %2940 = vmatprep.subr.bf16.mxu0 %v3205_v27  ;;  %v3221_v51 = vld [vmem:[%s4176_s1 + $0x340] sm:$0xff]   ;;  %v3260_v17 = vld [vmem:[%s4176_s1 + $0x488] sm:$0xff]  }
  0x57   : > { %2968 = vmatprep.subr.bf16.mxu1 %v3206_v52  ;;  %v3224_v27 = vld [vmem:[%s4176_s1 + $0x380] sm:$0xff]   ;;  %v3225_v52 = vld [vmem:[%s4176_s1 + $0x348] sm:$0xff]  }
  0x59   : > { %2941 = vmatpush3.bf16.msra.mxu0 %v3207_v56  ;;  %v3226_v56 = vld [vmem:[%s4176_s1 + $0x3c8] sm:$0xff]  }
  0x5a   : > { %2969 = vmatpush3.bf16.msra.mxu1 %v3208_v1  ;;  %2942 = vmatprep.subr.bf16.mxu0 %v3209_v43  ;;  %v1160_v1 = vrot.slane %v3671_v63, 1  ;;  %v3232_v63 = vld [vmem:[%s4176_s1 + $0x390] sm:$0xff]   ;;  %v3239_v43 = vld [vmem:[%s4176_s1 + $0x320] sm:$0xff]  }
  0x5b   : > { %2970 = vmatprep.subr.bf16.mxu1 %v3210_v36  ;;  %v3241_v36 = vld [vmem:[%s4176_s1 + $0x368] sm:$0xff]  }
  0x5c   : > { %v1161_v4 = vsel %vm1143_vm1, %v1151_v8, %v1160_v1  ;;  %v3237_v8 = vld [vmem:[%s4176_s1 + $0x360] sm:$0xff]   ;;  %v3284_v1 = vld [vmem:[%s4176_s1 + $0x4b8] sm:$0xff]  }
  0x5d   : > { %2943 = vmatpush3.bf16.msra.mxu0 %v3211_v13  ;;  %v3245_v13 = vld [vmem:[%s4176_s1 + $0x370] sm:$0xff]  }
  0x5e   : > { %2971 = vmatpush3.bf16.msra.mxu1 %v3212_v42  ;;  %2944 = vmatprep.subr.bf16.mxu0 %v3213_v57  ;;  %v3247_v42 = vld [vmem:[%s4176_s1 + $0x330] sm:$0xff]   ;;  %v3249_v57 = vld [vmem:[%s4176_s1 + $0x378] sm:$0xff]  }
  0x5f   : > { %2972 = vmatprep.subr.bf16.mxu1 %v3214_v53  ;;  %v3251_v53 = vld [vmem:[%s4176_s1 + $0x338] sm:$0xff]  }
  0x61   : > { %2945 = vmatpush3.bf16.msra.mxu0 %v3215_v11  ;;  %v3253_v11 = vld [vmem:[%s4176_s1 + $0x440] sm:$0xff]  }
  0x62   : > { %2973 = vmatpush3.bf16.msra.mxu1 %v3216_v61  ;;  %2946 = vmatprep.subr.bf16.mxu0 %v3217_v3  ;;  %v3255_v61 = vld [vmem:[%s4176_s1 + $0x400] sm:$0xff]   ;;  %v3257_v3 = vld [vmem:[%s4176_s1 + $0x448] sm:$0xff]  }
  0x63   : > { %2974 = vmatprep.subr.bf16.mxu1 %v3218_v10  ;;  %v3259_v10 = vld [vmem:[%s4176_s1 + $0x408] sm:$0xff]  }
  0x65   : > { %2947 = vmatpush3.bf16.msra.mxu0 %v3219_v18  ;;  %v3261_v18 = vld [vmem:[%s4176_s1 + $0x450] sm:$0xff]  }
  0x66   : > { %2975 = vmatpush3.bf16.msra.mxu1 %v3220_v44  ;;  %2988 = vmatprep.subr.bf16.mxu0 %v3221_v51  ;;  %v3264_v44 = vld [vmem:[%s4176_s1 + $0x490] sm:$0xff]   ;;  %v3267_v51 = vld [vmem:[%s4176_s1 + $0x418] sm:$0xff]  }
  0x67   : > { %3016 = vmatprep.subr.bf16.mxu1 %v3222_v23  ;;  %v3268_v23 = vld [vmem:[%s4176_s1 + $0x498] sm:$0xff]  }
  0x68   : > { %1397 = vmatmul.mubr.bf16.vlgmr.msra.gmra.mrb[16].mxu0 %v3616_v7  ;;  %v1156_v7 = vrot.slane %v3669_v12, 1 }
  0x69   : > { %1446 = vmatmul.mubr.bf16.vlgmr.msra.gmra.mrb[16].mxu1 %v3630_v15  ;;  %2989 = vmatpush3.bf16.msra.mxu0 %v3223_v24  ;;  %v3230_v15 = vld [vmem:[%s4176_s1 + $0x3d0] sm:$0xff]   ;;  %v3269_v24 = vld [vmem:[%s4176_s1 + $0x460] sm:$0xff]  }
  0x6a   : > { %3017 = vmatpush3.bf16.msra.mxu1 %v3224_v27  ;;  %2990 = vmatprep.subr.bf16.mxu0 %v3225_v52  ;;  %v1157_v12 = vsel %vm1143_vm1, %v1145_v62, %v1156_v7  ;;  %v3235_v62 = vld [vmem:[%s4176_s1 + $0x318] sm:$0xff]   ;;  %v3273_v27 = vld [vmem:[%s4176_s1 + $0x468] sm:$0xff]   ;;  %v3277_v52 = vld [vmem:[%s4176_s1 + $0x470] sm:$0xff]  }
  0x6b   : > { %3018 = vmatprep.subr.bf16.mxu1 %v3226_v56  ;;  %1404 = vmatprep.mubr.bf16.mxu0 %v1159_v22  ;;  %v3278_v56 = vld [vmem:[%s4176_s1 + $0x4f0] sm:$0xff]   ;;  %v3283_v7 = vld [vmem:[%s4176_s1 + $0x438] sm:$0xff]  }
  0x6c   : > { %1453 = vmatprep.mubr.bf16.mxu1 %v1163_v55  ;;  %v3280_v22 = vld [vmem:[%s4176_s1 + $0x4b0] sm:$0xff]   ;;  %v3282_v55 = vld [vmem:[%s4176_s1 + $0x4f8] sm:$0xff]  }
  0x6d   : > { %2991 = vmatpush3.bf16.msra.mxu0 %v3227_v20  ;;  %v3279_v20 = vld [vmem:[%s4176_s1 + $0x430] sm:$0xff]  }
  0x6e   : > { %3019 = vmatpush3.bf16.msra.mxu1 %v3228_v50  ;;  %2992 = vmatprep.subr.bf16.mxu0 %v3229_v39  ;;  %v3281_v50 = vld [vmem:[%s4176_s1 + $0x478] sm:$0xff]  }
  0x6f   : > { %3020 = vmatprep.subr.bf16.mxu1 %v3230_v15 }
  0x70   : > { %1405 = vmatmul.mubr.bf16.gmra.mrb[20].mxu0 %v1157_v12 }
  0x71   : > { %1454 = vmatmul.mubr.bf16.gmra.mrb[20].mxu1 %v1161_v4  ;;  %2993 = vmatpush3.bf16.msra.mxu0 %v3231_v46 }
  0x72   : > { %3021 = vmatpush3.bf16.msra.mxu1 %v3232_v63  ;;  %2994 = vmatprep.subr.bf16.mxu0 %v3233_v19 }
  0x73   : > { %3022 = vmatprep.subr.bf16.mxu1 %v3234_v59  ;;  %1816 = vmatprep.mubr.bf16.mxu0 %v3683_v40  ;;  %v3242_v40 = vld [vmem:[%s4176_s1 + $0x3e8] sm:$0xff]  }
  0x74   : > { %1865 = vmatprep.mubr.bf16.mxu1 %v3763_v38  ;;  %v3243_v38 = vld [vmem:[%s4176_s1 + $0x328] sm:$0xff]  }
  0x75   : > { %2995 = vmatpush3.bf16.msra.mxu0 %v3235_v62 }
  0x76   : > { %3023 = vmatpush3.bf16.msra.mxu1 %v3236_v6  ;;  %2996 = vmatprep.subr.bf16.mxu0 %v3237_v8 }
  0x77   : > { %3024 = vmatprep.subr.bf16.mxu1 %v3238_v32 }
  0x79   : > { %2997 = vmatpush3.bf16.msra.mxu0 %v3239_v43 }
  0x7a   : > { %3025 = vmatpush3.bf16.msra.mxu1 %v3240_v35  ;;  %2998 = vmatprep.subr.bf16.mxu0 %v3241_v36 }
  0x7b   : > { %3026 = vmatprep.subr.bf16.mxu1 %v3242_v40 }
  0x7d   : > { %2999 = vmatpush3.bf16.msra.mxu0 %v3243_v38 }
  0x7e   : > { %3027 = vmatpush3.bf16.msra.mxu1 %v3244_v2  ;;  %3000 = vmatprep.subr.bf16.mxu0 %v3245_v13 }
  0x7f   : > { %3028 = vmatprep.subr.bf16.mxu1 %v3246_v47 }
  0x81   : > { %3001 = vmatpush3.bf16.msra.mxu0 %v3247_v42 }
  0x82   : > { %3029 = vmatpush3.bf16.msra.mxu1 %v3248_v25  ;;  %3002 = vmatprep.subr.bf16.mxu0 %v3249_v57 }
  0x83   : > { %3030 = vmatprep.subr.bf16.mxu1 %v3250_v26 }
  0x85   : > { %3003 = vmatpush3.bf16.msra.mxu0 %v3251_v53 }
  0x86   : > { %3031 = vmatpush3.bf16.msra.mxu1 %v3252_v0  ;;  %3044 = vmatprep.subr.bf16.mxu0 %v3253_v11 }
  0x87   : > { %3072 = vmatprep.subr.bf16.mxu1 %v3254_v21 }
  0x88   : > { %1817 = vmatmul.mubr.bf16.vlgmr.msra.gmra.mrb[24].mxu0 %v3774_v54  ;;  %v3262_v54 = vld [vmem:[%s4176_s1 + $0x4d0] sm:$0xff]  }
  0x89   : > { %1866 = vmatmul.mubr.bf16.vlgmr.msra.gmra.mrb[24].mxu1 %v3781_v28  ;;  %3045 = vmatpush3.bf16.msra.mxu0 %v3255_v61  ;;  %v3263_v28 = vld [vmem:[%s4176_s1 + $0x410] sm:$0xff]  }
  0x8a   : > { %3073 = vmatpush3.bf16.msra.mxu1 %v3256_v33  ;;  %3046 = vmatprep.subr.bf16.mxu0 %v3257_v3 }
  0x8b   : > { %3074 = vmatprep.subr.bf16.mxu1 %v3258_v30  ;;  %1824 = vmatprep.mubr.bf16.mxu0 %v3799_v5  ;;  %v3265_v5 = vld [vmem:[%s4176_s1 + $0x458] sm:$0xff]  }
  0x8c   : > { %1873 = vmatprep.mubr.bf16.mxu1 %v3820_v48  ;;  %v3266_v48 = vld [vmem:[%s4176_s1 + $0x4d8] sm:$0xff]  }
  0x8d   : > { %3047 = vmatpush3.bf16.msra.mxu0 %v3259_v10 }
  0x8e   : > { %3075 = vmatpush3.bf16.msra.mxu1 %v3260_v17  ;;  %3048 = vmatprep.subr.bf16.mxu0 %v3261_v18 }
  0x8f   : > { %3076 = vmatprep.subr.bf16.mxu1 %v3262_v54 }
  0x90   : > { %1825 = vmatmul.mubr.bf16.gmra.mrb[28].mxu0 %v3842_v14  ;;  %v3270_v14 = vld [vmem:[%s4176_s1 + $0x4e0] sm:$0xff]  }
  0x91   : > { %1874 = vmatmul.mubr.bf16.gmra.mrb[28].mxu1 %v3857_v58  ;;  %3049 = vmatpush3.bf16.msra.mxu0 %v3263_v28  ;;  %v3271_v58 = vld [vmem:[%s4176_s1 + $0x420] sm:$0xff]  }
  0x92   : > { %3077 = vmatpush3.bf16.msra.mxu1 %v3264_v44  ;;  %3050 = vmatprep.subr.bf16.mxu0 %v3265_v5 }
  0x93   : > { %3078 = vmatprep.subr.bf16.mxu1 %v3266_v48  ;;  %2204 = vmatprep.mubr.bf16.mxu0 %v3864_v37  ;;  %v3274_v37 = vld [vmem:[%s4176_s1 + $0x4e8] sm:$0xff]  }
  0x94   : > { %2253 = vmatprep.mubr.bf16.mxu1 %v3875_v49  ;;  %v3275_v49 = vld [vmem:[%s4176_s1 + $0x428] sm:$0xff]  }
  0x95   : > { %3051 = vmatpush3.bf16.msra.mxu0 %v3267_v51 }
  0x96   : > { %3079 = vmatpush3.bf16.msra.mxu1 %v3268_v23  ;;  %3052 = vmatprep.subr.bf16.mxu0 %v3269_v24 }
  0x97   : > { %3080 = vmatprep.subr.bf16.mxu1 %v3270_v14 }
  0x99   : > { %3053 = vmatpush3.bf16.msra.mxu0 %v3271_v58 }
  0x9a   : > { %3081 = vmatpush3.bf16.msra.mxu1 %v3272_v41  ;;  %3054 = vmatprep.subr.bf16.mxu0 %v3273_v27 }
  0x9b   : > { %3082 = vmatprep.subr.bf16.mxu1 %v3274_v37 }
  0x9d   : > { %3055 = vmatpush3.bf16.msra.mxu0 %v3275_v49 }
  0x9e   : > { %3083 = vmatpush3.bf16.msra.mxu1 %v3276_v29  ;;  %3056 = vmatprep.subr.bf16.mxu0 %v3277_v52 }
  0x9f   : > { %3084 = vmatprep.subr.bf16.mxu1 %v3278_v56 }
  0xa1   : > { %3057 = vmatpush3.bf16.msra.mxu0 %v3279_v20 }
  0xa2   : > { %3085 = vmatpush3.bf16.msra.mxu1 %v3280_v22  ;;  %3058 = vmatprep.subr.bf16.mxu0 %v3281_v50 }
  0xa3   : > { %3086 = vmatprep.subr.bf16.mxu1 %v3282_v55 }
  0xa5   : > { %3059 = vmatpush3.bf16.msra.mxu0 %v3283_v7 }
  0xa6   : > { %3087 = vmatpush3.bf16.msra.mxu1 %v3284_v1 }
  0xa8   : > { %2205 = vmatmul.mubr.bf16.vlgmr.msra.gmra.mrb[32].mxu0 %v3886_v60 }
  0xa9   : > { %2254 = vmatmul.mubr.bf16.vlgmr.msra.gmra.mrb[32].mxu1 %v3897_v31  ;;  %2212 = vmatprep.mubr.bf16.mxu0 %v3904_v9 }
  0xaa   : > { %2261 = vmatprep.mubr.bf16.mxu1 %v3911_v16 }
  0xb0   : > { %2213 = vmatmul.mubr.bf16.gmra.mrb[36].mxu0 %v3918_v34 }
  0xb1   : > { %2262 = vmatmul.mubr.bf16.gmra.mrb[36].mxu1 %v3924_v45 }
  0xfb   : > { %v2836_v39 = vpop.f32.mrb[0].mxu0 }
  0xfc   : > { %v2837_v15 = vpop.f32.mrb[1].mxu0  ;;  %v2864_v63 = vpop.f32.mrb[0].mxu1 }
  0xfd   : > { %v2838_v46 = vadd.f32 %v2837_v15, %v2836_v39  ;;  %v2839_v12 = vpop.f32.mrb[2].mxu0  ;;  %v2865_v19 = vpop.f32.mrb[1].mxu1 }
  0xfe   : > { %v2840_v4 = vpop.f32.mrb[3].mxu0  ;;  %v2866_v62 = vadd.f32 %v2865_v19, %v2864_v63  ;;  %v2867_v60 = vpop.f32.mrb[2].mxu1 }
  0xff   : > { %v2841_v59 = vadd.f32 %v2840_v4, %v2839_v12  ;;  %v2868_v6 = vpop.f32.mrb[3].mxu1 }
 0x100   : > { %v762_v31 = vadd.f32 %v2866_v62, %v2838_v46  ;;  %v2869_v8 = vadd.f32 %v2868_v6, %v2867_v60 }
 0x102   : > { %v765_v9 = vadd.f32 %v2869_v8, %v2841_v59 }
 0x10e   : > { %v2842_v32 = vpop.f32.mrb[4].mxu0 }
 0x10f   : > { %v2870_v16 = vpop.f32.mrb[4].mxu1  ;;  %v2843_v43 = vpop.f32.mrb[5].mxu0 }
 0x110   : > { %v2871_v34 = vpop.f32.mrb[5].mxu1  ;;  %v2844_v35 = vadd.f32 %v2843_v43, %v2842_v32  ;;  %v2845_v36 = vpop.f32.mrb[6].mxu0 }
 0x111   : > { %v2872_v45 = vadd.f32 %v2871_v34, %v2870_v16  ;;  %v2873_v40 = vpop.f32.mrb[6].mxu1  ;;  %v2846_v38 = vpop.f32.mrb[7].mxu0 }
 0x112   : > { %v2874_v2 = vpop.f32.mrb[7].mxu1  ;;  %v2847_v47 = vadd.f32 %v2846_v38, %v2845_v36 }
 0x113   : > { %v770_v13 = vadd.f32 %v2872_v45, %v2844_v35  ;;  %v2875_v42 = vadd.f32 %v2874_v2, %v2873_v40 }
 0x115   : > { %v773_v25 = vadd.f32 %v2875_v42, %v2847_v47 }
 0x11b   : > { %v2892_v57 = vpop.f32.mrb[8].mxu0 }
 0x11c   : > { %v2920_v26 = vpop.f32.mrb[8].mxu1  ;;  %v2893_v53 = vpop.f32.mrb[9].mxu0 }
 0x11d   : > { %v2894_v0 = vadd.f32 %v2893_v53, %v2892_v57  ;;  %v2921_v11 = vpop.f32.mrb[9].mxu1  ;;  %v2895_v21 = vpop.f32.mrb[10].mxu0 }
 0x11e   : > { %v2922_v61 = vadd.f32 %v2921_v11, %v2920_v26  ;;  %v2923_v33 = vpop.f32.mrb[10].mxu1  ;;  %v2896_v3 = vpop.f32.mrb[11].mxu0 }
 0x11f   : > { %v1003_v30 = vadd.f32 %v2894_v0, %v762_v31  ;;  %v2897_v10 = vadd.f32 %v2896_v3, %v2895_v21  ;;  %v2924_v17 = vpop.f32.mrb[11].mxu1 }
 0x120   : > { %v2925_v18 = vadd.f32 %v2924_v17, %v2923_v33 }
 0x121   : > { %v1052_v54 = vadd.f32 %v2922_v61, %v1003_v30  ;;  %v1006_v28 = vadd.f32 %v2897_v10, %v765_v9 }
 0x123   : > { %v1055_v44 = vadd.f32 %v2925_v18, %v1006_v28  ;;  %v2898_v5 = vpop.f32.mrb[12].mxu0 }
 0x124   : > { %v2899_v48 = vpop.f32.mrb[13].mxu0  ;;  %v2926_v51 = vpop.f32.mrb[12].mxu1 }
 0x125   : > { %v2900_v23 = vadd.f32 %v2899_v48, %v2898_v5  ;;  %v2901_v24 = vpop.f32.mrb[14].mxu0  ;;  %v2927_v14 = vpop.f32.mrb[13].mxu1 }
 0x126   : > { %v2902_v58 = vpop.f32.mrb[15].mxu0  ;;  %v2928_v41 = vadd.f32 %v2927_v14, %v2926_v51  ;;  %v2929_v27 = vpop.f32.mrb[14].mxu1 }
 0x127   : > { %v1011_v37 = vadd.f32 %v2900_v23, %v770_v13  ;;  %v2903_v49 = vadd.f32 %v2902_v58, %v2901_v24  ;;  %v2930_v29 = vpop.f32.mrb[15].mxu1 }
 0x128   : > { %v2931_v52 = vadd.f32 %v2930_v29, %v2929_v27 }
 0x129   : > { %v1014_v56 = vadd.f32 %v2903_v49, %v773_v25  ;;  %v1060_v20 = vadd.f32 %v2928_v41, %v1011_v37 }
 0x12b   : > { %v1063_v22 = vadd.f32 %v2931_v52, %v1014_v56 }
 0x13b   : > { %v2948_v50 = vpop.f32.mrb[16].mxu0 }
 0x13c   : > { %v2976_v55 = vpop.f32.mrb[16].mxu1  ;;  %v2949_v7 = vpop.f32.mrb[17].mxu0 }
 0x13d   : > { %v2950_v1 = vadd.f32 %v2949_v7, %v2948_v50  ;;  %v2977_v39 = vpop.f32.mrb[17].mxu1  ;;  %v2951_v15 = vpop.f32.mrb[18].mxu0 }
 0x13e   : > { %v2978_v46 = vadd.f32 %v2977_v39, %v2976_v55  ;;  %v2979_v12 = vpop.f32.mrb[18].mxu1  ;;  %v2952_v63 = vpop.f32.mrb[19].mxu0 }
 0x13f   : > { %v2953_v4 = vadd.f32 %v2952_v63, %v2951_v15  ;;  %v2980_v19 = vpop.f32.mrb[19].mxu1 }
 0x140   : > { %v1448_v59 = vadd.f32 %v2978_v46, %v2950_v1  ;;  %v2981_v62 = vadd.f32 %v2980_v19, %v2979_v12 }
 0x142   : > { %v1462_v60 = vadd.f32 %v1448_v59, %v1052_v54  ;;  %v1451_v6 = vadd.f32 %v2981_v62, %v2953_v4 }
 0x143   : > { %v2954_v31 = vpop.f32.mrb[20].mxu0 }
 0x144   : > { %v1463_v8 = vadd.f32 %v1451_v6, %v1055_v44  ;;  %v2982_v9 = vpop.f32.mrb[20].mxu1  ;;  %v2955_v32 = vpop.f32.mrb[21].mxu0 }
 0x145   : > { %v2956_v16 = vadd.f32 %v2955_v32, %v2954_v31  ;;  %v2983_v43 = vpop.f32.mrb[21].mxu1  ;;  %v2957_v34 = vpop.f32.mrb[22].mxu0 }
 0x146   : > { %v2984_v35 = vadd.f32 %v2983_v43, %v2982_v9  ;;  %v2985_v45 = vpop.f32.mrb[22].mxu1  ;;  %v2958_v36 = vpop.f32.mrb[23].mxu0 }
 0x147   : > { %v2959_v40 = vadd.f32 %v2958_v36, %v2957_v34  ;;  %v2986_v38 = vpop.f32.mrb[23].mxu1 }
 0x148   : > { %v1456_v2 = vadd.f32 %v2984_v35, %v2956_v16  ;;  %v2987_v13 = vadd.f32 %v2986_v38, %v2985_v45 }
 0x14a   : > { %v1464_v47 = vadd.f32 %v1456_v2, %v1060_v20  ;;  %v1459_v42 = vadd.f32 %v2987_v13, %v2959_v40 }
 0x14c   : > { %v1465_v25 = vadd.f32 %v1459_v42, %v1063_v22 }
 0x15b   : > { %v3004_v57 = vpop.f32.mrb[24].mxu0 }
 0x15c   : > { %v3032_v26 = vpop.f32.mrb[24].mxu1  ;;  %v3005_v53 = vpop.f32.mrb[25].mxu0 }
 0x15d   : > { %v3006_v0 = vadd.f32 %v3005_v53, %v3004_v57  ;;  %v3033_v11 = vpop.f32.mrb[25].mxu1  ;;  %v3007_v21 = vpop.f32.mrb[26].mxu0 }
 0x15e   : > { %v3034_v61 = vadd.f32 %v3033_v11, %v3032_v26  ;;  %v3035_v33 = vpop.f32.mrb[26].mxu1  ;;  %v3008_v3 = vpop.f32.mrb[27].mxu0 }
 0x15f   : > { %v3009_v30 = vadd.f32 %v3008_v3, %v3007_v21  ;;  %v3036_v10 = vpop.f32.mrb[27].mxu1 }
 0x160   : > { %v1868_v17 = vadd.f32 %v3034_v61, %v3006_v0  ;;  %v3037_v18 = vadd.f32 %v3036_v10, %v3035_v33 }
 0x162   : > { %v1882_v54 = vadd.f32 %v1868_v17, %v1462_v60  ;;  %v1871_v28 = vadd.f32 %v3037_v18, %v3009_v30  ;;  %v2815_v60 = vld [vmem:[%s4177_s2] ss:$0 sm:$0xff] }
 0x163   : > { %v3010_v44 = vpop.f32.mrb[28].mxu0 }
 0x164   : > { %v1883_v5 = vadd.f32 %v1871_v28, %v1463_v8  ;;  %v3038_v48 = vpop.f32.mrb[28].mxu1  ;;  %v3011_v51 = vpop.f32.mrb[29].mxu0  ;;  %v2816_v8 = vld [vmem:[%s4178_s3] ss:$0 sm:$0xff] }
 0x165   : > { %v3012_v23 = vadd.f32 %v3011_v51, %v3010_v44  ;;  %v3039_v24 = vpop.f32.mrb[29].mxu1  ;;  %v3013_v14 = vpop.f32.mrb[30].mxu0 }
 0x166   : > { %v3040_v58 = vadd.f32 %v3039_v24, %v3038_v48  ;;  %v3041_v41 = vpop.f32.mrb[30].mxu1  ;;  %v3014_v27 = vpop.f32.mrb[31].mxu0 }
 0x167   : > { %v3015_v37 = vadd.f32 %v3014_v27, %v3013_v14  ;;  %v3042_v49 = vpop.f32.mrb[31].mxu1 }
 0x168   : > { %v1876_v29 = vadd.f32 %v3040_v58, %v3012_v23  ;;  %v3043_v52 = vadd.f32 %v3042_v49, %v3041_v41 }
 0x16a   : > { %v1884_v56 = vadd.f32 %v1876_v29, %v1464_v47  ;;  %v1879_v20 = vadd.f32 %v3043_v52, %v3015_v37 }
 0x16c   : > { %v1885_v22 = vadd.f32 %v1879_v20, %v1465_v25 }
 0x17b   : > { %v3060_v50 = vpop.f32.mrb[32].mxu0 }
 0x17c   : > { %v3088_v55 = vpop.f32.mrb[32].mxu1  ;;  %v3061_v7 = vpop.f32.mrb[33].mxu0 }
 0x17d   : > { %v3062_v1 = vadd.f32 %v3061_v7, %v3060_v50  ;;  %v3089_v39 = vpop.f32.mrb[33].mxu1  ;;  %v3063_v15 = vpop.f32.mrb[34].mxu0 }
 0x17e   : > { %v3090_v46 = vadd.f32 %v3089_v39, %v3088_v55  ;;  %v3091_v12 = vpop.f32.mrb[34].mxu1  ;;  %v3064_v63 = vpop.f32.mrb[35].mxu0 }
 0x17f   : > { %v3065_v4 = vadd.f32 %v3064_v63, %v3063_v15  ;;  %v3092_v19 = vpop.f32.mrb[35].mxu1 }
 0x180   : > { %v2256_v59 = vadd.f32 %v3090_v46, %v3062_v1  ;;  %v3093_v62 = vadd.f32 %v3092_v19, %v3091_v12 }
 0x182   : > { %v2270_v6 = vadd.f32 %v2256_v59, %v1882_v54  ;;  %v2259_v31 = vadd.f32 %v3093_v62, %v3065_v4 }
 0x183   : > { %v3066_v9 = vpop.f32.mrb[36].mxu0 }
 0x184   : > { %v2281_v32 = vmul.f32 %v2815_v60, %v2270_v6  ;;  %v2271_v16 = vadd.f32 %v2259_v31, %v1883_v5  ;;  %v3094_v43 = vpop.f32.mrb[36].mxu1  ;;  %v3067_v34 = vpop.f32.mrb[37].mxu0 }
 0x185   : > { %v3068_v35 = vadd.f32 %v3067_v34, %v3066_v9  ;;  %v3095_v45 = vpop.f32.mrb[37].mxu1  ;;  %v3069_v36 = vpop.f32.mrb[38].mxu0 }
 0x186   : > { %v2292_v40 = vadd.f32 %v2816_v8, %v2281_v32  ;;  %v2282_v38 = vmul.f32 %v2815_v60, %v2271_v16  ;;  %v3096_v2 = vadd.f32 %v3095_v45, %v3094_v43  ;;  %v3097_v13 = vpop.f32.mrb[38].mxu1  ;;  %v3070_v47 = vpop.f32.mrb[39].mxu0 }
 0x187   : > { %v3071_v42 = vadd.f32 %v3070_v47, %v3069_v36  ;;  %v3098_v25 = vpop.f32.mrb[39].mxu1 }
 0x188   : > { %2297 = vst.msk [vmem:[%s233_s22] sm:$0xff] %vm2296_vm4, %v2292_v40  ;;  %v2293_v57 = vadd.f32 %v2816_v8, %v2282_v38  ;;  %v2264_v26 = vadd.f32 %v3096_v2, %v3068_v35  ;;  %v3099_v53 = vadd.f32 %v3098_v25, %v3097_v13 }
 0x18a   : > { %2298 = vst.msk [vmem:[%s233_s22 + $0x8] sm:$0xff] %vm2296_vm4, %v2293_v57  ;;  %v2272_v0 = vadd.f32 %v2264_v26, %v1884_v56  ;;  %v2267_v11 = vadd.f32 %v3099_v53, %v3071_v42 }
 0x18c   : > { %v2283_v21 = vmul.f32 %v2815_v60, %v2272_v0  ;;  %v2273_v61 = vadd.f32 %v2267_v11, %v1885_v22 }
 0x18e   : > { %v2294_v33 = vadd.f32 %v2816_v8, %v2283_v21  ;;  %v2284_v3 = vmul.f32 %v2815_v60, %v2273_v61 }
 0x190   : > { %2299 = vst.msk [vmem:[%s233_s22 + $0x10] sm:$0xff] %vm2296_vm4, %v2294_v33  ;;  %v2295_v30 = vadd.f32 %v2816_v8, %v2284_v3 }
 0x192   : > { %2300 = vst.msk [vmem:[%s233_s22 + $0x18] sm:$0xff] %vm2296_vm4, %v2295_v30 }
 0x193 PF: > { %s14_s17 = sadd.s32 1, %s3307_s17   ;;  %s4180_s15 = smov %s3303_s16 }
 0x194   : > { %p11_p5 = scmp.ge.s32.totalorder %s14_s17, 4   ;;  %s4181_s16 = smov %s4183_s18 }
 0x196   :  { %13 = sbr.rel (!%p11_p5) target bundleno = 2 (0x2), region = 70 }

// kernel: postnet_forward.7
= control target key start
LH: loop header
LB: loop body
LE: loop exit
PB: predicated region body
PF: predicated region fallthrough
CT: control target
= control target key end

     0   :  { %s8018_s15 = smov 0   ;;  %s8020_s16 = smov 0   ;;  %s10275_s0 = inlined_call_operand.vmem [shape: f32[2,1,36,512], index: 0, kind: input, shape index: {}]   ;;  %s10276_s1 = inlined_call_operand.vmem [shape: bf16[5,512,512], index: 1, kind: input, shape index: {}]   ;;  %s10277_s2 = inlined_call_operand.vmem [shape: f32[1,512], index: 2, kind: input, shape index: {}]   ;;  %s10278_s3 = inlined_call_operand.vmem [shape: f32[1,512], index: 3, kind: input, shape index: {}]   ;;  %s10279_s4 = inlined_call_operand.vmem [shape: f32[2,32,512], index: 4, kind: output, shape index: {}]  }
   0x1   :  { %s8022_s17 = smov 0  }
   0x2 LB: > { %s26_s18 = sadd.s32 1, %s7987_s16  ;;  %p5649_p0 = scmp.ge.s32.totalorder %s7991_s17, 1  ;;  %s7991_s17 = sphi %s8022_s17, %s14_s17   ;;  %s7987_s16 = sphi %s8020_s16, %s10281_s16   ;;  %s7983_s15 = sphi %s8018_s15, %s10280_s15  }
   0x3   : > { %p28_p1 = scmp.ge.s32.totalorder %s26_s18, 2  ;;  %p182_p2 = scmp.lt.s32.totalorder %s7991_s17, 3 }
   0x5   : > { %s10283_s18 = smov (%p28_p1, %s26_s18), 0  ;;  %p183_p3 = pnand %p5649_p0, %p182_p2 }
   0x6   : > { %v6977_v0 = vld [vmem:[%s10276_s1 + $0x404] ss:$16 sps:$4 sm:$0xff] (!%p183_p3)   ;;  %v6979_v1 = vld [vmem:[%s10276_s1 + $0x40c] ss:$16 sps:$4 sm:$0xff] (!%p183_p3)   ;;  %v6981_v2 = vld [vmem:[%s10276_s1 + $0x400] ss:$16 sps:$4 sm:$0xff] (!%p183_p3)  }
   0x7   : > { %186 = sbr.rel (%p183_p3) target bundleno = 890 (0x37a), region = 36  ;;  %1255 = vmatprep.subr.bf16.mxu0 (!%p183_p3), %v6977_v0  ;;  %v6982_v3 = vld [vmem:[%s10276_s1 + $0x408] ss:$16 sps:$4 sm:$0xff] (!%p183_p3)   ;;  %1361 = vmatprep.subr.bf16.mxu1 (!%p183_p3), %v6979_v1  ;;  %v6983_v4 = vld [vmem:[%s10276_s1 + $0x424] ss:$16 sps:$4 sm:$0xff] (!%p183_p3)   ;;  %p217_p4 = scmp.lt.s32.totalorder (!%p183_p3), %s7983_s15, 1 }
   0x8   : > { %1256 = vmatpush1.bf16.msra.mxu0 (!%p183_p3), %v6981_v2  ;;  %1362 = vmatpush1.bf16.msra.mxu1 (!%p183_p3), %v6982_v3  ;;  %v6985_v5 = vld [vmem:[%s10276_s1 + $0x42c] ss:$16 sps:$4 sm:$0xff] (!%p183_p3)   ;;  %v6987_v6 = vld [vmem:[%s10276_s1 + $0x420] ss:$16 sps:$4 sm:$0xff] (!%p183_p3)   ;;  %v6988_v7 = vld [vmem:[%s10276_s1 + $0x428] ss:$16 sps:$4 sm:$0xff] (!%p183_p3)  }
   0x9   : > { %1257 = vmatprep.subr.bf16.mxu0 (!%p183_p3), %v6983_v4  ;;  %1363 = vmatprep.subr.bf16.mxu1 (!%p183_p3), %v6985_v5  ;;  %v6989_v8 = vld [vmem:[%s10276_s1 + $0x444] ss:$16 sps:$4 sm:$0xff] (!%p183_p3)   ;;  %v6991_v9 = vld [vmem:[%s10276_s1 + $0x44c] ss:$16 sps:$4 sm:$0xff] (!%p183_p3)   ;;  %v6993_v10 = vld [vmem:[%s10276_s1 + $0x440] ss:$16 sps:$4 sm:$0xff] (!%p183_p3)  }
   0xa   : > { %v6994_v11 = vld [vmem:[%s10276_s1 + $0x448] ss:$16 sps:$4 sm:$0xff] (!%p183_p3)   ;;  %v6995_v12 = vld [vmem:[%s10276_s1 + $0x464] ss:$16 sps:$4 sm:$0xff] (!%p183_p3)   ;;  %v6997_v13 = vld [vmem:[%s10276_s1 + $0x46c] ss:$16 sps:$4 sm:$0xff] (!%p183_p3)  }
   0xb   : > { %v6999_v14 = vld [vmem:[%s10276_s1 + $0x460] ss:$16 sps:$4 sm:$0xff] (!%p183_p3)   ;;  %v7000_v15 = vld [vmem:[%s10276_s1 + $0x468] ss:$16 sps:$4 sm:$0xff] (!%p183_p3)   ;;  %v7001_v16 = vld [vmem:[%s10276_s1 + $0x484] ss:$16 sps:$4 sm:$0xff] (!%p183_p3)  }
   0xc   : > { %1258 = vmatpush1.bf16.msra.mxu0 (!%p183_p3), %v6987_v6  ;;  %1364 = vmatpush1.bf16.msra.mxu1 (!%p183_p3), %v6988_v7  ;;  %v7003_v17 = vld [vmem:[%s10276_s1 + $0x48c] ss:$16 sps:$4 sm:$0xff] (!%p183_p3)   ;;  %v7005_v18 = vld [vmem:[%s10276_s1 + $0x480] ss:$16 sps:$4 sm:$0xff] (!%p183_p3)   ;;  %v7006_v19 = vld [vmem:[%s10276_s1 + $0x488] ss:$16 sps:$4 sm:$0xff] (!%p183_p3)  }
   0xd   : > { %1259 = vmatprep.subr.bf16.mxu0 (!%p183_p3), %v6989_v8  ;;  %1365 = vmatprep.subr.bf16.mxu1 (!%p183_p3), %v6991_v9  ;;  %v7007_v20 = vld [vmem:[%s10276_s1 + $0x4a4] ss:$16 sps:$4 sm:$0xff] (!%p183_p3)   ;;  %v7009_v21 = vld [vmem:[%s10276_s1 + $0x4ac] ss:$16 sps:$4 sm:$0xff] (!%p183_p3)   ;;  %v7011_v22 = vld [vmem:[%s10276_s1 + $0x4a0] ss:$16 sps:$4 sm:$0xff] (!%p183_p3)  }
   0xe   : > { %v7012_v23 = vld [vmem:[%s10276_s1 + $0x4a8] ss:$16 sps:$4 sm:$0xff]   ;;  %v7013_v24 = vld [vmem:[%s10276_s1 + $0x4c4] ss:$16 sps:$4 sm:$0xff]   ;;  %v7015_v25 = vld [vmem:[%s10276_s1 + $0x4cc] ss:$16 sps:$4 sm:$0xff]  }
   0xf   : > { %v7017_v26 = vld [vmem:[%s10276_s1 + $0x4c0] ss:$16 sps:$4 sm:$0xff]   ;;  %v7018_v27 = vld [vmem:[%s10276_s1 + $0x4c8] ss:$16 sps:$4 sm:$0xff]   ;;  %v7019_v28 = vld [vmem:[%s10276_s1 + $0x4e4] ss:$16 sps:$4 sm:$0xff]  }
  0x10   : > { %1260 = vmatpush1.bf16.msra.mxu0 %v6993_v10  ;;  %1366 = vmatpush1.bf16.msra.mxu1 %v6994_v11  ;;  %v7021_v29 = vld [vmem:[%s10276_s1 + $0x4ec] ss:$16 sps:$4 sm:$0xff]   ;;  %v7023_v30 = vld [vmem:[%s10276_s1 + $0x4e0] ss:$16 sps:$4 sm:$0xff]   ;;  %v7024_v31 = vld [vmem:[%s10276_s1 + $0x4e8] ss:$16 sps:$4 sm:$0xff]  }
  0x11   : > { %1261 = vmatprep.subr.bf16.mxu0 %v6995_v12  ;;  %1367 = vmatprep.subr.bf16.mxu1 %v6997_v13  ;;  %v7025_v32 = vld [vmem:[%s10276_s1 + $0x504] ss:$16 sps:$4 sm:$0xff]   ;;  %v7027_v33 = vld [vmem:[%s10276_s1 + $0x50c] ss:$16 sps:$4 sm:$0xff]   ;;  %v7029_v34 = vld [vmem:[%s10276_s1 + $0x500] ss:$16 sps:$4 sm:$0xff]  }
  0x12   : > { %v7030_v35 = vld [vmem:[%s10276_s1 + $0x508] ss:$16 sps:$4 sm:$0xff]   ;;  %s10285_s15 = smov (!%p217_p4, %s7983_s15), 1  ;;  %v7031_v36 = vld [vmem:[%s10276_s1 + $0x524] ss:$16 sps:$4 sm:$0xff]   ;;  %vm2460_vm1 = vcmask 1046528  }
  0x13   : > { %v7033_v37 = vld [vmem:[%s10276_s1 + $0x52c] ss:$16 sps:$4 sm:$0xff]   ;;  %v7035_v38 = vld [vmem:[%s10276_s1 + $0x520] ss:$16 sps:$4 sm:$0xff]   ;;  %s6952_s5 = smul.u32 160, %s10285_s15  ;;  %vm4544_vm3 = vcmask 1045504  }
  0x14   : > { %1262 = vmatpush1.bf16.msra.mxu0 %v6999_v14  ;;  %1368 = vmatpush1.bf16.msra.mxu1 %v7000_v15  ;;  %v7036_v39 = vld [vmem:[%s10276_s1 + $0x528] ss:$16 sps:$4 sm:$0xff]   ;;  %v7037_v40 = vld [vmem:[%s10276_s1 + $0x544] ss:$16 sps:$4 sm:$0xff]   ;;  %v7039_v41 = vld [vmem:[%s10276_s1 + $0x54c] ss:$16 sps:$4 sm:$0xff]  }
  0x15   : > { %1263 = vmatprep.subr.bf16.mxu0 %v7001_v16  ;;  %1369 = vmatprep.subr.bf16.mxu1 %v7003_v17  ;;  %v7041_v42 = vld [vmem:[%s10276_s1 + $0x540] ss:$16 sps:$4 sm:$0xff]   ;;  %v7042_v43 = vld [vmem:[%s10276_s1 + $0x548] ss:$16 sps:$4 sm:$0xff]   ;;  %s8178_s22 = scalar_lea.vmem %s10275_s0, %s6952_s5  ;;  %v7043_v44 = vld [vmem:[%s10276_s1 + $0x564] ss:$16 sps:$4 sm:$0xff]  }
  0x16   : > { %v7045_v45 = vld [vmem:[%s10276_s1 + $0x56c] ss:$16 sps:$4 sm:$0xff]   ;;  %v7047_v46 = vld [vmem:[%s10276_s1 + $0x560] ss:$16 sps:$4 sm:$0xff]   ;;  %v7048_v47 = vld [vmem:[%s10276_s1 + $0x568] ss:$16 sps:$4 sm:$0xff]  }
  0x17   : > { %v238_v48 = vld [vmem:[%s8178_s22 + $0x8] sm:$0xff]  ;;  %v7049_v52 = vld [vmem:[%s10276_s1 + $0x584] ss:$16 sps:$4 sm:$0xff]   ;;  %v7053_v56 = vld [vmem:[%s10276_s1 + $0x580] ss:$16 sps:$4 sm:$0xff]   ;;  %s6807_s13 = sshll.u32 %s10285_s15, 7 }
  0x18   : > { %1264 = vmatpush1.bf16.msra.mxu0 %v7005_v18  ;;  %1370 = vmatpush1.bf16.msra.mxu1 %v7006_v19  ;;  %v242_v49 = vld [vmem:[%s8178_s22 + $0x28] sm:$0xff]  ;;  %v237_v60 = vld [vmem:[%s8178_s22] sm:$0xff]  ;;  %vm526_vm0 = vsmask.f32 7424  ;;  %vm3486_vm2 = vsmask.f32 6400  ;;  %s10247_s15 = scalar_lea.vmem %s10279_s4, %s6807_s13 }
  0x19   : > { %1265 = vmatprep.subr.bf16.mxu0 %v7007_v20  ;;  %1371 = vmatprep.subr.bf16.mxu1 %v7009_v21  ;;  %v246_v50 = vld [vmem:[%s8178_s22 + $0x48] sm:$0xff]  ;;  %v8199_v53 = vpack.c.bf16 %v242_v49, %v238_v48  ;;  %v7055_v62 = vld [vmem:[%s10276_s1 + $0x5a4] ss:$16 sps:$4 sm:$0xff]   ;;  %v7059_v7 = vld [vmem:[%s10276_s1 + $0x5a0] ss:$16 sps:$4 sm:$0xff]  }
  0x1a   : > { %v250_v51 = vld [vmem:[%s8178_s22 + $0x68] sm:$0xff]  ;;  %v241_v63 = vld [vmem:[%s8178_s22 + $0x20] sm:$0xff] }
  0x1b   : > { %v8201_v54 = vpack.c.bf16 %v250_v51, %v246_v50  ;;  %v7051_v55 = vld [vmem:[%s10276_s1 + $0x58c] ss:$16 sps:$4 sm:$0xff]   ;;  %v540_v57 = vshrl.u32 %v8199_v53, 16  ;;  %v542_v58 = vshll.u32 %v8199_v53, 16  ;;  %v7054_v61 = vld [vmem:[%s10276_s1 + $0x588] ss:$16 sps:$4 sm:$0xff]   ;;  %v8229_v3 = vpack.c.bf16 %v241_v63, %v237_v60 }
  0x1c   : > { %1266 = vmatpush1.bf16.msra.mxu0 %v7011_v22  ;;  %1372 = vmatpush1.bf16.msra.mxu1 %v7012_v23  ;;  %v7057_v0 = vld [vmem:[%s10276_s1 + $0x5ac] ss:$16 sps:$4 sm:$0xff]   ;;  %v245_v4 = vld [vmem:[%s8178_s22 + $0x40] sm:$0xff]  ;;  %v7060_v8 = vld [vmem:[%s10276_s1 + $0x5a8] ss:$16 sps:$4 sm:$0xff]  }
  0x1d   : > { %1267 = vmatprep.subr.bf16.mxu0 %v7013_v24  ;;  %1373 = vmatprep.subr.bf16.mxu1 %v7015_v25  ;;  %v547_v59 = vshll.u32 %v8201_v54, 16  ;;  %v544_v1 = vrot.slane %v542_v58, 1  ;;  %v249_v5 = vld [vmem:[%s8178_s22 + $0x60] sm:$0xff]  ;;  %v530_v11 = vshll.u32 %v8229_v3, 16  ;;  %v7063_v13 = vld [vmem:[%s10276_s1 + $0x5cc] ss:$16 sps:$4 sm:$0xff]  }
  0x1e   : > { %v8243_v10 = vpack.c.bf16 %v249_v5, %v245_v4  ;;  %v7061_v12 = vld [vmem:[%s10276_s1 + $0x5c4] ss:$16 sps:$4 sm:$0xff]   ;;  %v7065_v14 = vld [vmem:[%s10276_s1 + $0x5c0] ss:$16 sps:$4 sm:$0xff]   ;;  %v7066_v15 = vld [vmem:[%s10276_s1 + $0x5c8] ss:$16 sps:$4 sm:$0xff]  }
  0x1f   : > { %v8227_v2 = vrot.slane %v547_v59, 1  ;;  %v545_v6 = vor.u32 %v544_v1, %v540_v57  ;;  %v528_v16 = vshrl.u32 %v8229_v3, 16  ;;  %v532_v17 = vrot.slane %v530_v11, 1  ;;  %v7067_v19 = vld [vmem:[%s10276_s1 + $0x5e4] ss:$16 sps:$4 sm:$0xff]  }
  0x20   : > { %1268 = vmatpush1.bf16.msra.mxu0 %v7017_v26  ;;  %1374 = vmatpush1.bf16.msra.mxu1 %v7018_v27  ;;  %v535_v18 = vshll.u32 %v8243_v10, 16  ;;  %v7069_v20 = vld [vmem:[%s10276_s1 + $0x5ec] ss:$16 sps:$4 sm:$0xff]   ;;  %v7071_v21 = vld [vmem:[%s10276_s1 + $0x5e0] ss:$16 sps:$4 sm:$0xff]   ;;  %v583_v48 = vshrl.u32 %v8201_v54, 16 }
  0x21   : > { %1269 = vmatprep.subr.bf16.mxu0 %v7019_v28  ;;  %1375 = vmatprep.subr.bf16.mxu1 %v7021_v29  ;;  %v550_v9 = vsel %vm526_vm0, %v545_v6, %v8227_v2  ;;  %v7072_v22 = vld [vmem:[%s10276_s1 + $0x5e8] ss:$16 sps:$4 sm:$0xff]   ;;  %v533_v23 = vor.u32 %v532_v17, %v528_v16  ;;  %v7075_v25 = vld [vmem:[%s10276_s1 + $0x604] ss:$16 sps:$4 sm:$0xff]   ;;  %v7078_v26 = vld [vmem:[%s10276_s1 + $0x60c] ss:$16 sps:$4 sm:$0xff]  }
  0x22   : > { %1287 = vmatprep.mubr.bf16.mxu0 %v550_v9  ;;  %1393 = vmatprep.mubr.bf16.mxu1 %v550_v9  ;;  %v8278_v24 = vrot.slane %v535_v18, 1  ;;  %v7073_v27 = vld [vmem:[%s10276_s1 + $0x600] ss:$16 sps:$4 sm:$0xff]   ;;  %v7076_v28 = vld [vmem:[%s10276_s1 + $0x608] ss:$16 sps:$4 sm:$0xff]   ;;  %v575_v60 = vshrl.u32 %v8243_v10, 16 }
  0x23   : > { %v7103_v49 = vld [vmem:[%s10276_s1 + $0x6a0] ss:$16 sps:$4 sm:$0xff]   ;;  %v254_v50 = vld [vmem:[%s8178_s22 + $0x88] sm:$0xf]  ;;  %v7120_v6 = vld [vmem:[%s10276_s1 + $0x6ec] ss:$16 sps:$4 sm:$0xff]  }
  0x24   : > { %1270 = vmatpush1.bf16.msra.mxu0 %v7023_v30  ;;  %1376 = vmatpush1.bf16.msra.mxu1 %v7024_v31  ;;  %v538_v29 = vsel %vm526_vm0, %v533_v23, %v8278_v24  ;;  %v7081_v30 = vld [vmem:[%s10276_s1 + $0x624] ss:$16 sps:$4 sm:$0xff]   ;;  %v7084_v31 = vld [vmem:[%s10276_s1 + $0x62c] ss:$16 sps:$4 sm:$0xff]   ;;  %v7106_v51 = vld [vmem:[%s10276_s1 + $0x6a8] ss:$16 sps:$4 sm:$0xff]  }
  0x25   : > { %1271 = vmatprep.subr.bf16.mxu0 %v7025_v32  ;;  %1377 = vmatprep.subr.bf16.mxu1 %v7027_v33  ;;  %v7079_v32 = vld [vmem:[%s10276_s1 + $0x620] ss:$16 sps:$4 sm:$0xff]   ;;  %v7082_v33 = vld [vmem:[%s10276_s1 + $0x628] ss:$16 sps:$4 sm:$0xff]  }
  0x26   : > { %v253_v63 = vld [vmem:[%s8178_s22 + $0x80] sm:$0xf]  ;;  %v7112_v1 = vld [vmem:[%s10276_s1 + $0x6c8] ss:$16 sps:$4 sm:$0xff]  }
  0x27   : > { %v8376_v4 = vpack.c.bf16 %v253_v63, %v253_v63  ;;  %v240_v9 = vld [vmem:[%s8178_s22 + $0x18] sm:$0xff] }
  0x28   : > { %1272 = vmatpush1.bf16.msra.mxu0 %v7029_v34  ;;  %1378 = vmatpush1.bf16.msra.mxu1 %v7030_v35  ;;  %v7087_v34 = vld [vmem:[%s10276_s1 + $0x644] ss:$16 sps:$4 sm:$0xff]   ;;  %v7090_v35 = vld [vmem:[%s10276_s1 + $0x64c] ss:$16 sps:$4 sm:$0xff]  }
  0x29   : > { %1273 = vmatprep.subr.bf16.mxu0 %v7031_v36  ;;  %1379 = vmatprep.subr.bf16.mxu1 %v7033_v37  ;;  %v7085_v36 = vld [vmem:[%s10276_s1 + $0x640] ss:$16 sps:$4 sm:$0xff]   ;;  %v7088_v37 = vld [vmem:[%s10276_s1 + $0x648] ss:$16 sps:$4 sm:$0xff]   ;;  %v7156_v63 = vld [vmem:[%s10276_s1 + $0x7ac] ss:$16 sps:$4 sm:$0xff]  }
  0x2c   : > { %1274 = vmatpush1.bf16.msra.mxu0 %v7035_v38  ;;  %1380 = vmatpush1.bf16.msra.mxu1 %v7036_v39  ;;  %v7093_v38 = vld [vmem:[%s10276_s1 + $0x664] ss:$16 sps:$4 sm:$0xff]   ;;  %v7096_v39 = vld [vmem:[%s10276_s1 + $0x66c] ss:$16 sps:$4 sm:$0xff]  }
  0x2d   : > { %1275 = vmatprep.subr.bf16.mxu0 %v7037_v40  ;;  %1381 = vmatprep.subr.bf16.mxu1 %v7039_v41  ;;  %v7091_v40 = vld [vmem:[%s10276_s1 + $0x660] ss:$16 sps:$4 sm:$0xff]   ;;  %v7094_v41 = vld [vmem:[%s10276_s1 + $0x668] ss:$16 sps:$4 sm:$0xff]  }
  0x30   : > { %1276 = vmatpush1.bf16.msra.mxu0 %v7041_v42  ;;  %1382 = vmatpush1.bf16.msra.mxu1 %v7042_v43  ;;  %v7099_v42 = vld [vmem:[%s10276_s1 + $0x684] ss:$16 sps:$4 sm:$0xff]   ;;  %v7102_v43 = vld [vmem:[%s10276_s1 + $0x68c] ss:$16 sps:$4 sm:$0xff]  }
  0x31   : > { %1277 = vmatprep.subr.bf16.mxu0 %v7043_v44  ;;  %1383 = vmatprep.subr.bf16.mxu1 %v7045_v45  ;;  %v7097_v44 = vld [vmem:[%s10276_s1 + $0x680] ss:$16 sps:$4 sm:$0xff]   ;;  %v7100_v45 = vld [vmem:[%s10276_s1 + $0x688] ss:$16 sps:$4 sm:$0xff]  }
  0x34   : > { %1278 = vmatpush1.bf16.msra.mxu0 %v7047_v46  ;;  %1384 = vmatpush1.bf16.msra.mxu1 %v7048_v47  ;;  %v7105_v46 = vld [vmem:[%s10276_s1 + $0x6a4] ss:$16 sps:$4 sm:$0xff]   ;;  %v7108_v47 = vld [vmem:[%s10276_s1 + $0x6ac] ss:$16 sps:$4 sm:$0xff]  }
  0x35   : > { %1279 = vmatprep.subr.bf16.mxu0 %v7049_v52  ;;  %1385 = vmatprep.subr.bf16.mxu1 %v7051_v55  ;;  %v7111_v52 = vld [vmem:[%s10276_s1 + $0x6c4] ss:$16 sps:$4 sm:$0xff]   ;;  %v8359_v55 = vpack.c.bf16 %v254_v50, %v254_v50 }
  0x36   : > { %v239_v50 = vld [vmem:[%s8178_s22 + $0x10] sm:$0xff] }
  0x38   : > { %1280 = vmatpush1.bf16.msra.mxu0 %v7053_v56  ;;  %1386 = vmatpush1.bf16.msra.mxu1 %v7054_v61  ;;  %v7114_v56 = vld [vmem:[%s10276_s1 + $0x6cc] ss:$16 sps:$4 sm:$0xff]   ;;  %v585_v61 = vor.u32 %v583_v48, %v8227_v2  ;;  %v7117_v2 = vld [vmem:[%s10276_s1 + $0x6e4] ss:$16 sps:$4 sm:$0xff]  }
  0x39   : > { %1281 = vmatprep.subr.bf16.mxu0 %v7055_v62  ;;  %1387 = vmatprep.subr.bf16.mxu1 %v7057_v0  ;;  %v587_v62 = vshll.u32 %v8359_v55, 16  ;;  %v7109_v0 = vld [vmem:[%s10276_s1 + $0x6c0] ss:$16 sps:$4 sm:$0xff]  }
  0x3b   : > { %v589_v5 = vrot.slane %v587_v62, 1 }
  0x3c   : > { %1282 = vmatpush1.bf16.msra.mxu0 %v7059_v7  ;;  %1388 = vmatpush1.bf16.msra.mxu1 %v7060_v8  ;;  %v577_v7 = vor.u32 %v575_v60, %v8278_v24  ;;  %v579_v8 = vshll.u32 %v8376_v4, 16 }
  0x3d   : > { %1283 = vmatprep.subr.bf16.mxu0 %v7061_v12  ;;  %1389 = vmatprep.subr.bf16.mxu1 %v7063_v13  ;;  %v244_v12 = vld [vmem:[%s8178_s22 + $0x38] sm:$0xff]  ;;  %v590_v13 = vsel %vm526_vm0, %v585_v61, %v589_v5  ;;  %v7153_v61 = vld [vmem:[%s10276_s1 + $0x7a4] ss:$16 sps:$4 sm:$0xff]   ;;  %v7151_v5 = vld [vmem:[%s10276_s1 + $0x7a0] ss:$16 sps:$4 sm:$0xff]  }
  0x3e   : > { %v8395_v17 = vpack.c.bf16 %v244_v12, %v240_v9 }
  0x40   : > { %1284 = vmatpush1.bf16.msra.mxu0 %v7065_v14  ;;  %1390 = vmatpush1.bf16.msra.mxu1 %v7066_v15  ;;  %v248_v14 = vld [vmem:[%s8178_s22 + $0x58] sm:$0xff]  ;;  %v564_v23 = vshrl.u32 %v8395_v17, 16  ;;  %v566_v24 = vshll.u32 %v8395_v17, 16 }
  0x41   : > { %1285 = vmatprep.subr.bf16.mxu0 %v7067_v19  ;;  %1391 = vmatprep.subr.bf16.mxu1 %v7069_v20  ;;  %v252_v15 = vld [vmem:[%s8178_s22 + $0x78] sm:$0xff]  ;;  %v7115_v19 = vld [vmem:[%s10276_s1 + $0x6e0] ss:$16 sps:$4 sm:$0xff]   ;;  %v581_v20 = vrot.slane %v579_v8, 1 }
  0x44   : > { %1286 = vmatpush1.bf16.msra.mxu0 %v7071_v21  ;;  %1392 = vmatpush1.bf16.msra.mxu1 %v7072_v22  ;;  %v8402_v21 = vpack.c.bf16 %v252_v15, %v248_v14  ;;  %v7118_v22 = vld [vmem:[%s10276_s1 + $0x6e8] ss:$16 sps:$4 sm:$0xff]   ;;  %v7157_v14 = vld [vmem:[%s10276_s1 + $0x7c0] ss:$16 sps:$4 sm:$0xff]  }
  0x45   : > { %1308 = vmatprep.subr.bf16.mxu0 %v7075_v25  ;;  %1414 = vmatprep.subr.bf16.mxu1 %v7078_v26  ;;  %v7123_v25 = vld [vmem:[%s10276_s1 + $0x704] ss:$16 sps:$4 sm:$0xff]   ;;  %v7126_v26 = vld [vmem:[%s10276_s1 + $0x70c] ss:$16 sps:$4 sm:$0xff]   ;;  %v7160_v15 = vld [vmem:[%s10276_s1 + $0x7c8] ss:$16 sps:$4 sm:$0xff]  }
  0x47   : > { %1288 = vmatmul.mubr.bf16.vlgmr.msra.gmra.mrb[0].mxu0 %v538_v29  ;;  %1394 = vmatmul.mubr.bf16.vlgmr.msra.gmra.mrb[0].mxu1 %v538_v29  ;;  %v568_v29 = vrot.slane %v566_v24, 1 }
  0x48   : > { %1309 = vmatpush1.bf16.msra.mxu0 %v7073_v27  ;;  %1415 = vmatpush1.bf16.msra.mxu1 %v7076_v28  ;;  %v582_v27 = vsel %vm526_vm0, %v577_v7, %v581_v20  ;;  %v571_v28 = vshll.u32 %v8402_v21, 16  ;;  %v7159_v7 = vld [vmem:[%s10276_s1 + $0x7c4] ss:$16 sps:$4 sm:$0xff]  }
  0x49   : > { %1310 = vmatprep.subr.bf16.mxu0 %v7081_v30  ;;  %1416 = vmatprep.subr.bf16.mxu1 %v7084_v31  ;;  %v7121_v30 = vld [vmem:[%s10276_s1 + $0x700] ss:$16 sps:$4 sm:$0xff]   ;;  %v7124_v31 = vld [vmem:[%s10276_s1 + $0x708] ss:$16 sps:$4 sm:$0xff]  }
  0x4a   : > { %1297 = vmatprep.mubr.bf16.mxu0 %v590_v13  ;;  %1403 = vmatprep.mubr.bf16.mxu1 %v590_v13  ;;  %v7162_v13 = vld [vmem:[%s10276_s1 + $0x7cc] ss:$16 sps:$4 sm:$0xff]  }
  0x4c   : > { %1311 = vmatpush1.bf16.msra.mxu0 %v7079_v32  ;;  %1417 = vmatpush1.bf16.msra.mxu1 %v7082_v33  ;;  %v8427_v32 = vrot.slane %v571_v28, 1  ;;  %v7129_v33 = vld [vmem:[%s10276_s1 + $0x724] ss:$16 sps:$4 sm:$0xff]  }
  0x4d   : > { %1312 = vmatprep.subr.bf16.mxu0 %v7087_v34  ;;  %1418 = vmatprep.subr.bf16.mxu1 %v7090_v35  ;;  %v569_v34 = vor.u32 %v568_v29, %v564_v23  ;;  %v7132_v35 = vld [vmem:[%s10276_s1 + $0x72c] ss:$16 sps:$4 sm:$0xff]   ;;  %v7166_v29 = vld [vmem:[%s10276_s1 + $0x7e8] ss:$16 sps:$4 sm:$0xff]  }
  0x4f   : > { %1298 = vmatmul.mubr.bf16.gmra.mrb[4].mxu0 %v582_v27  ;;  %1404 = vmatmul.mubr.bf16.gmra.mrb[4].mxu1 %v582_v27  ;;  %v7163_v27 = vld [vmem:[%s10276_s1 + $0x7e0] ss:$16 sps:$4 sm:$0xff]  }
  0x50   : > { %1313 = vmatpush1.bf16.msra.mxu0 %v7085_v36  ;;  %1419 = vmatpush1.bf16.msra.mxu1 %v7088_v37  ;;  %v574_v36 = vsel %vm526_vm0, %v569_v34, %v8427_v32  ;;  %v7127_v37 = vld [vmem:[%s10276_s1 + $0x720] ss:$16 sps:$4 sm:$0xff]   ;;  %v7174_v34 = vld [vmem:[%s10276_s1 + $0xc] ss:$16 sps:$4 sm:$0xff]  }
  0x51   : > { %1314 = vmatprep.subr.bf16.mxu0 %v7093_v38  ;;  %1420 = vmatprep.subr.bf16.mxu1 %v7096_v39  ;;  %v7130_v38 = vld [vmem:[%s10276_s1 + $0x728] ss:$16 sps:$4 sm:$0xff]   ;;  %v7135_v39 = vld [vmem:[%s10276_s1 + $0x744] ss:$16 sps:$4 sm:$0xff]  }
  0x52   : > { %1340 = vmatprep.mubr.bf16.mxu0 %v574_v36  ;;  %1446 = vmatprep.mubr.bf16.mxu1 %v574_v36  ;;  %v7172_v36 = vld [vmem:[%s10276_s1 + $0x8] ss:$16 sps:$4 sm:$0xff]  }
  0x54   : > { %1315 = vmatpush1.bf16.msra.mxu0 %v7091_v40  ;;  %1421 = vmatpush1.bf16.msra.mxu1 %v7094_v41  ;;  %v7138_v40 = vld [vmem:[%s10276_s1 + $0x74c] ss:$16 sps:$4 sm:$0xff]   ;;  %v7133_v41 = vld [vmem:[%s10276_s1 + $0x740] ss:$16 sps:$4 sm:$0xff]  }
  0x55   : > { %1316 = vmatprep.subr.bf16.mxu0 %v7099_v42  ;;  %1422 = vmatprep.subr.bf16.mxu1 %v7102_v43  ;;  %v7136_v42 = vld [vmem:[%s10276_s1 + $0x748] ss:$16 sps:$4 sm:$0xff]   ;;  %v7141_v43 = vld [vmem:[%s10276_s1 + $0x764] ss:$16 sps:$4 sm:$0xff]  }
  0x58   : > { %1317 = vmatpush1.bf16.msra.mxu0 %v7097_v44  ;;  %1423 = vmatpush1.bf16.msra.mxu1 %v7100_v45  ;;  %v7144_v44 = vld [vmem:[%s10276_s1 + $0x76c] ss:$16 sps:$4 sm:$0xff]   ;;  %v7139_v45 = vld [vmem:[%s10276_s1 + $0x760] ss:$16 sps:$4 sm:$0xff]  }
  0x59   : > { %1318 = vmatprep.subr.bf16.mxu0 %v7105_v46  ;;  %1424 = vmatprep.subr.bf16.mxu1 %v7108_v47  ;;  %v7142_v46 = vld [vmem:[%s10276_s1 + $0x768] ss:$16 sps:$4 sm:$0xff]   ;;  %v7147_v47 = vld [vmem:[%s10276_s1 + $0x784] ss:$16 sps:$4 sm:$0xff]  }
  0x5c   : > { %1319 = vmatpush1.bf16.msra.mxu0 %v7103_v49  ;;  %1425 = vmatpush1.bf16.msra.mxu1 %v7106_v51  ;;  %v7150_v49 = vld [vmem:[%s10276_s1 + $0x78c] ss:$16 sps:$4 sm:$0xff]   ;;  %v243_v51 = vld [vmem:[%s8178_s22 + $0x30] sm:$0xff] }
  0x5d   : > { %1320 = vmatprep.subr.bf16.mxu0 %v7111_v52  ;;  %1426 = vmatprep.subr.bf16.mxu1 %v7114_v56  ;;  %v7145_v52 = vld [vmem:[%s10276_s1 + $0x780] ss:$16 sps:$4 sm:$0xff]   ;;  %v7148_v56 = vld [vmem:[%s10276_s1 + $0x788] ss:$16 sps:$4 sm:$0xff]  }
  0x60   : > { %1321 = vmatpush1.bf16.msra.mxu0 %v7109_v0  ;;  %1427 = vmatpush1.bf16.msra.mxu1 %v7112_v1  ;;  %v247_v0 = vld [vmem:[%s8178_s22 + $0x50] sm:$0xff]  ;;  %v8490_v1 = vpack.c.bf16 %v243_v51, %v239_v50  ;;  %v7186_v51 = vld [vmem:[%s10276_s1 + $0x4c] ss:$16 sps:$4 sm:$0xff]  }
  0x61   : > { %1322 = vmatprep.subr.bf16.mxu0 %v7117_v2  ;;  %1428 = vmatprep.subr.bf16.mxu1 %v7120_v6  ;;  %v251_v2 = vld [vmem:[%s8178_s22 + $0x70] sm:$0xff]  ;;  %v7154_v6 = vld [vmem:[%s10276_s1 + $0x7a8] ss:$16 sps:$4 sm:$0xff]  }
  0x62   : > { %v8502_v9 = vpack.c.bf16 %v251_v2, %v247_v0  ;;  %v554_v12 = vshll.u32 %v8490_v1, 16  ;;  %v552_v20 = vshrl.u32 %v8490_v1, 16  ;;  %v7183_v50 = vld [vmem:[%s10276_s1 + $0x44] ss:$16 sps:$4 sm:$0xff]   ;;  %v7184_v0 = vld [vmem:[%s10276_s1 + $0x48] ss:$16 sps:$4 sm:$0xff]  }
  0x64   : > { %1323 = vmatpush1.bf16.msra.mxu0 %v7115_v19  ;;  %1429 = vmatpush1.bf16.msra.mxu1 %v7118_v22  ;;  %v7165_v19 = vld [vmem:[%s10276_s1 + $0x7e4] ss:$16 sps:$4 sm:$0xff]   ;;  %v556_v22 = vrot.slane %v554_v12, 1 }
  0x65   : > { %1324 = vmatprep.subr.bf16.mxu0 %v7123_v25  ;;  %1430 = vmatprep.subr.bf16.mxu1 %v7126_v26  ;;  %v559_v25 = vshll.u32 %v8502_v9, 16  ;;  %v7168_v26 = vld [vmem:[%s10276_s1 + $0x7ec] ss:$16 sps:$4 sm:$0xff]  }
  0x68   : > { %1325 = vmatpush1.bf16.msra.mxu0 %v7121_v30  ;;  %1431 = vmatpush1.bf16.msra.mxu1 %v7124_v31  ;;  %v7171_v30 = vld [vmem:[%s10276_s1 + $0x4] ss:$16 sps:$4 sm:$0xff]   ;;  %v557_v31 = vor.u32 %v556_v22, %v552_v20  ;;  %v7198_v22 = vld [vmem:[%s10276_s1 + $0x8c] ss:$16 sps:$4 sm:$0xff]  }
  0x69   : > { %1326 = vmatprep.subr.bf16.mxu0 %v7129_v33  ;;  %1432 = vmatprep.subr.bf16.mxu1 %v7132_v35  ;;  %v561_v33 = vrot.slane %v559_v25, 1  ;;  %v7169_v35 = vld [vmem:[%s10276_s1] ss:$16 sps:$4 sm:$0xff]  }
  0x6c   : > { %1327 = vmatpush1.bf16.msra.mxu0 %v7127_v37  ;;  %1433 = vmatpush1.bf16.msra.mxu1 %v7130_v38  ;;  %v562_v37 = vsel %vm526_vm0, %v557_v31, %v561_v33  ;;  %v7177_v38 = vld [vmem:[%s10276_s1 + $0x24] ss:$16 sps:$4 sm:$0xff]   ;;  %v7199_v31 = vld [vmem:[%s10276_s1 + $0xa0] ss:$16 sps:$4 sm:$0xff]  }
  0x6d   : > { %1328 = vmatprep.subr.bf16.mxu0 %v7135_v39  ;;  %1434 = vmatprep.subr.bf16.mxu1 %v7138_v40  ;;  %v599_v39 = vshrl.u32 %v8402_v21, 16  ;;  %v7180_v40 = vld [vmem:[%s10276_s1 + $0x2c] ss:$16 sps:$4 sm:$0xff]  }
  0x70   : > { %1329 = vmatpush1.bf16.msra.mxu0 %v7133_v41  ;;  %1435 = vmatpush1.bf16.msra.mxu1 %v7136_v42  ;;  %v256_v41 = vld [vmem:[%s8178_s22 + $0x98] sm:$0xf] }
  0x71   : > { %1330 = vmatprep.subr.bf16.mxu0 %v7141_v43  ;;  %1436 = vmatprep.subr.bf16.mxu1 %v7144_v44  ;;  %v8555_v42 = vpack.c.bf16 %v256_v41, %v256_v41  ;;  %v7175_v43 = vld [vmem:[%s10276_s1 + $0x20] ss:$16 sps:$4 sm:$0xff]   ;;  %v591_v44 = vshrl.u32 %v8502_v9, 16 }
  0x72   : > { %v7211_v41 = vld [vmem:[%s10276_s1 + $0xe0] ss:$16 sps:$4 sm:$0xff]  }
  0x74   : > { %1331 = vmatpush1.bf16.msra.mxu0 %v7139_v45  ;;  %1437 = vmatpush1.bf16.msra.mxu1 %v7142_v46  ;;  %v7178_v45 = vld [vmem:[%s10276_s1 + $0x28] ss:$16 sps:$4 sm:$0xff]   ;;  %v601_v46 = vor.u32 %v599_v39, %v8427_v32  ;;  %v593_v32 = vor.u32 %v591_v44, %v561_v33 }
  0x75   : > { %1332 = vmatprep.subr.bf16.mxu0 %v7147_v47  ;;  %1438 = vmatprep.subr.bf16.mxu1 %v7150_v49  ;;  %v603_v47 = vshll.u32 %v8555_v42, 16  ;;  %v255_v49 = vld [vmem:[%s8178_s22 + $0x90] sm:$0xf]  ;;  %v7202_v33 = vld [vmem:[%s10276_s1 + $0xa8] ss:$16 sps:$4 sm:$0xff]  }
  0x78   : > { %1333 = vmatpush1.bf16.msra.mxu0 %v7145_v52  ;;  %1439 = vmatpush1.bf16.msra.mxu1 %v7148_v56  ;;  %v8575_v52 = vpack.c.bf16 %v255_v49, %v255_v49  ;;  %v605_v56 = vrot.slane %v603_v47, 1  ;;  %v7217_v49 = vld [vmem:[%s10276_s1 + $0x100] ss:$16 sps:$4 sm:$0xff]  }
  0x79   : > { %1334 = vmatprep.subr.bf16.mxu0 %v7153_v61  ;;  %1440 = vmatprep.subr.bf16.mxu1 %v7156_v63  ;;  %v7181_v63 = vld [vmem:[%s10276_s1 + $0x40] ss:$16 sps:$4 sm:$0xff]  }
  0x7a   : > { %v595_v61 = vshll.u32 %v8575_v52, 16  ;;  %v606_v2 = vsel %vm526_vm0, %v601_v46, %v605_v56  ;;  %v7222_v46 = vld [vmem:[%s10276_s1 + $0x10c] ss:$16 sps:$4 sm:$0xff]  }
  0x7b   : > { %v7228_v56 = vld [vmem:[%s10276_s1 + $0x12c] ss:$16 sps:$4 sm:$0xff]  }
  0x7c   : > { %1335 = vmatpush1.bf16.msra.mxu0 %v7151_v5  ;;  %1441 = vmatpush1.bf16.msra.mxu1 %v7154_v6  ;;  %v7189_v5 = vld [vmem:[%s10276_s1 + $0x64] ss:$16 sps:$4 sm:$0xff]   ;;  %v7192_v6 = vld [vmem:[%s10276_s1 + $0x6c] ss:$16 sps:$4 sm:$0xff]  }
  0x7d   : > { %1336 = vmatprep.subr.bf16.mxu0 %v7159_v7  ;;  %1442 = vmatprep.subr.bf16.mxu1 %v7162_v13  ;;  %v597_v7 = vrot.slane %v595_v61, 1 }
  0x7f   : > { %v598_v13 = vsel %vm526_vm0, %v593_v32, %v597_v7  ;;  %v7223_v32 = vld [vmem:[%s10276_s1 + $0x120] ss:$16 sps:$4 sm:$0xff]   ;;  %v7237_v7 = vld [vmem:[%s10276_s1 + $0x164] ss:$16 sps:$4 sm:$0xff]  }
  0x80   : > { %1337 = vmatpush1.bf16.msra.mxu0 %v7157_v14  ;;  %1443 = vmatpush1.bf16.msra.mxu1 %v7160_v15  ;;  %v7187_v14 = vld [vmem:[%s10276_s1 + $0x60] ss:$16 sps:$4 sm:$0xff]   ;;  %v7190_v15 = vld [vmem:[%s10276_s1 + $0x68] ss:$16 sps:$4 sm:$0xff]  }
  0x81   : > { %1338 = vmatprep.subr.bf16.mxu0 %v7165_v19  ;;  %1444 = vmatprep.subr.bf16.mxu1 %v7168_v26  ;;  %v7195_v19 = vld [vmem:[%s10276_s1 + $0x84] ss:$16 sps:$4 sm:$0xff]   ;;  %v7193_v26 = vld [vmem:[%s10276_s1 + $0x80] ss:$16 sps:$4 sm:$0xff]  }
  0x84   : > { %1339 = vmatpush1.bf16.msra.mxu0 %v7163_v27  ;;  %1445 = vmatpush1.bf16.msra.mxu1 %v7166_v29  ;;  %v7196_v27 = vld [vmem:[%s10276_s1 + $0x88] ss:$16 sps:$4 sm:$0xff]   ;;  %v7201_v29 = vld [vmem:[%s10276_s1 + $0xa4] ss:$16 sps:$4 sm:$0xff]  }
  0x85   : > { %2107 = vmatprep.subr.bf16.mxu0 %v7171_v30  ;;  %2213 = vmatprep.subr.bf16.mxu1 %v7174_v34  ;;  %v7204_v30 = vld [vmem:[%s10276_s1 + $0xac] ss:$16 sps:$4 sm:$0xff]   ;;  %v7207_v34 = vld [vmem:[%s10276_s1 + $0xc4] ss:$16 sps:$4 sm:$0xff]  }
  0x87   : > { %1341 = vmatmul.mubr.bf16.vlgmr.msra.gmra.mrb[0].mxu0 %v562_v37  ;;  %1447 = vmatmul.mubr.bf16.vlgmr.msra.gmra.mrb[0].mxu1 %v562_v37  ;;  %v7208_v37 = vld [vmem:[%s10276_s1 + $0xc8] ss:$16 sps:$4 sm:$0xff]  }
  0x88   : > { %2108 = vmatpush1.bf16.msra.mxu0 %v7169_v35  ;;  %2214 = vmatpush1.bf16.msra.mxu1 %v7172_v36  ;;  %v7210_v35 = vld [vmem:[%s10276_s1 + $0xcc] ss:$16 sps:$4 sm:$0xff]   ;;  %v7205_v36 = vld [vmem:[%s10276_s1 + $0xc0] ss:$16 sps:$4 sm:$0xff]  }
  0x89   : > { %2109 = vmatprep.subr.bf16.mxu0 %v7177_v38  ;;  %2215 = vmatprep.subr.bf16.mxu1 %v7180_v40  ;;  %v7213_v38 = vld [vmem:[%s10276_s1 + $0xe4] ss:$16 sps:$4 sm:$0xff]   ;;  %v7216_v40 = vld [vmem:[%s10276_s1 + $0xec] ss:$16 sps:$4 sm:$0xff]  }
  0x8a   : > { %1350 = vmatprep.mubr.bf16.mxu0 %v606_v2  ;;  %1456 = vmatprep.mubr.bf16.mxu1 %v606_v2  ;;  %v7234_v2 = vld [vmem:[%s10276_s1 + $0x14c] ss:$16 sps:$4 sm:$0xff]  }
  0x8c   : > { %2110 = vmatpush1.bf16.msra.mxu0 %v7175_v43  ;;  %2216 = vmatpush1.bf16.msra.mxu1 %v7178_v45  ;;  %v7214_v43 = vld [vmem:[%s10276_s1 + $0xe8] ss:$16 sps:$4 sm:$0xff]   ;;  %v7219_v45 = vld [vmem:[%s10276_s1 + $0x104] ss:$16 sps:$4 sm:$0xff]  }
  0x8d   : > { %2111 = vmatprep.subr.bf16.mxu0 %v7183_v50  ;;  %2217 = vmatprep.subr.bf16.mxu1 %v7186_v51  ;;  %v7220_v50 = vld [vmem:[%s10276_s1 + $0x108] ss:$16 sps:$4 sm:$0xff]   ;;  %v7225_v51 = vld [vmem:[%s10276_s1 + $0x124] ss:$16 sps:$4 sm:$0xff]  }
  0x8f   : > { %1351 = vmatmul.mubr.bf16.gmra.mrb[4].mxu0 %v598_v13  ;;  %1457 = vmatmul.mubr.bf16.gmra.mrb[4].mxu1 %v598_v13  ;;  %v7240_v13 = vld [vmem:[%s10276_s1 + $0x16c] ss:$16 sps:$4 sm:$0xff]  }
  0x90   : > { %2112 = vmatpush1.bf16.msra.mxu0 %v7181_v63  ;;  %2218 = vmatpush1.bf16.msra.mxu1 %v7184_v0  ;;  %v7226_v63 = vld [vmem:[%s10276_s1 + $0x128] ss:$16 sps:$4 sm:$0xff]   ;;  %v7231_v0 = vld [vmem:[%s10276_s1 + $0x144] ss:$16 sps:$4 sm:$0xff]  }
  0x91   : > { %2113 = vmatprep.subr.bf16.mxu0 %v7189_v5  ;;  %2219 = vmatprep.subr.bf16.mxu1 %v7192_v6  ;;  %v7229_v5 = vld [vmem:[%s10276_s1 + $0x140] ss:$16 sps:$4 sm:$0xff]   ;;  %v7232_v6 = vld [vmem:[%s10276_s1 + $0x148] ss:$16 sps:$4 sm:$0xff]  }
  0x92   : > { %2139 = vmatprep.mubr.bf16.mxu0 %v8199_v53  ;;  %2245 = vmatprep.mubr.bf16.mxu1 %v8199_v53 }
  0x94   : > { %2114 = vmatpush1.bf16.msra.mxu0 %v7187_v14  ;;  %2220 = vmatpush1.bf16.msra.mxu1 %v7190_v15  ;;  %v7235_v14 = vld [vmem:[%s10276_s1 + $0x160] ss:$16 sps:$4 sm:$0xff]   ;;  %v7238_v15 = vld [vmem:[%s10276_s1 + $0x168] ss:$16 sps:$4 sm:$0xff]  }
  0x95   : > { %2115 = vmatprep.subr.bf16.mxu0 %v7195_v19  ;;  %2221 = vmatprep.subr.bf16.mxu1 %v7198_v22  ;;  %v7243_v19 = vld [vmem:[%s10276_s1 + $0x184] ss:$16 sps:$4 sm:$0xff]   ;;  %v7246_v22 = vld [vmem:[%s10276_s1 + $0x18c] ss:$16 sps:$4 sm:$0xff]  }
  0x98   : > { %2116 = vmatpush1.bf16.msra.mxu0 %v7193_v26  ;;  %2222 = vmatpush1.bf16.msra.mxu1 %v7196_v27  ;;  %v7241_v26 = vld [vmem:[%s10276_s1 + $0x180] ss:$16 sps:$4 sm:$0xff]   ;;  %v7244_v27 = vld [vmem:[%s10276_s1 + $0x188] ss:$16 sps:$4 sm:$0xff]  }
  0x99   : > { %2117 = vmatprep.subr.bf16.mxu0 %v7201_v29  ;;  %2223 = vmatprep.subr.bf16.mxu1 %v7204_v30  ;;  %v7249_v29 = vld [vmem:[%s10276_s1 + $0x1a4] ss:$16 sps:$4 sm:$0xff]   ;;  %v7252_v30 = vld [vmem:[%s10276_s1 + $0x1ac] ss:$16 sps:$4 sm:$0xff]  }
  0x9c   : > { %2118 = vmatpush1.bf16.msra.mxu0 %v7199_v31  ;;  %2224 = vmatpush1.bf16.msra.mxu1 %v7202_v33  ;;  %v7247_v31 = vld [vmem:[%s10276_s1 + $0x1a0] ss:$16 sps:$4 sm:$0xff]   ;;  %v7250_v33 = vld [vmem:[%s10276_s1 + $0x1a8] ss:$16 sps:$4 sm:$0xff]  }
  0x9d   : > { %2119 = vmatprep.subr.bf16.mxu0 %v7207_v34  ;;  %2225 = vmatprep.subr.bf16.mxu1 %v7210_v35  ;;  %v7255_v34 = vld [vmem:[%s10276_s1 + $0x1c4] ss:$16 sps:$4 sm:$0xff]   ;;  %v7258_v35 = vld [vmem:[%s10276_s1 + $0x1cc] ss:$16 sps:$4 sm:$0xff]  }
  0xa0   : > { %2120 = vmatpush1.bf16.msra.mxu0 %v7205_v36  ;;  %2226 = vmatpush1.bf16.msra.mxu1 %v7208_v37  ;;  %v7253_v36 = vld [vmem:[%s10276_s1 + $0x1c0] ss:$16 sps:$4 sm:$0xff]   ;;  %v7256_v37 = vld [vmem:[%s10276_s1 + $0x1c8] ss:$16 sps:$4 sm:$0xff]  }
  0xa1   : > { %2121 = vmatprep.subr.bf16.mxu0 %v7213_v38  ;;  %2227 = vmatprep.subr.bf16.mxu1 %v7216_v40  ;;  %v7261_v38 = vld [vmem:[%s10276_s1 + $0x1e4] ss:$16 sps:$4 sm:$0xff]   ;;  %v7264_v40 = vld [vmem:[%s10276_s1 + $0x1ec] ss:$16 sps:$4 sm:$0xff]  }
  0xa4   : > { %2122 = vmatpush1.bf16.msra.mxu0 %v7211_v41  ;;  %2228 = vmatpush1.bf16.msra.mxu1 %v7214_v43  ;;  %v7259_v41 = vld [vmem:[%s10276_s1 + $0x1e0] ss:$16 sps:$4 sm:$0xff]   ;;  %v7262_v43 = vld [vmem:[%s10276_s1 + $0x1e8] ss:$16 sps:$4 sm:$0xff]  }
  0xa5   : > { %2123 = vmatprep.subr.bf16.mxu0 %v7219_v45  ;;  %2229 = vmatprep.subr.bf16.mxu1 %v7222_v46  ;;  %v7267_v45 = vld [vmem:[%s10276_s1 + $0x204] ss:$16 sps:$4 sm:$0xff]   ;;  %v7270_v46 = vld [vmem:[%s10276_s1 + $0x20c] ss:$16 sps:$4 sm:$0xff]  }
  0xa8   : > { %2124 = vmatpush1.bf16.msra.mxu0 %v7217_v49  ;;  %2230 = vmatpush1.bf16.msra.mxu1 %v7220_v50  ;;  %v7265_v49 = vld [vmem:[%s10276_s1 + $0x200] ss:$16 sps:$4 sm:$0xff]   ;;  %v7268_v50 = vld [vmem:[%s10276_s1 + $0x208] ss:$16 sps:$4 sm:$0xff]  }
  0xa9   : > { %2125 = vmatprep.subr.bf16.mxu0 %v7225_v51  ;;  %2231 = vmatprep.subr.bf16.mxu1 %v7228_v56  ;;  %v7273_v51 = vld [vmem:[%s10276_s1 + $0x224] ss:$16 sps:$4 sm:$0xff]   ;;  %v7276_v56 = vld [vmem:[%s10276_s1 + $0x22c] ss:$16 sps:$4 sm:$0xff]  }
  0xac   : > { %2126 = vmatpush1.bf16.msra.mxu0 %v7223_v32  ;;  %2232 = vmatpush1.bf16.msra.mxu1 %v7226_v63  ;;  %v7271_v32 = vld [vmem:[%s10276_s1 + $0x220] ss:$16 sps:$4 sm:$0xff]   ;;  %v7274_v63 = vld [vmem:[%s10276_s1 + $0x228] ss:$16 sps:$4 sm:$0xff]  }
  0xad   : > { %2127 = vmatprep.subr.bf16.mxu0 %v7231_v0  ;;  %2233 = vmatprep.subr.bf16.mxu1 %v7234_v2  ;;  %v7279_v0 = vld [vmem:[%s10276_s1 + $0x244] ss:$16 sps:$4 sm:$0xff]   ;;  %v7282_v2 = vld [vmem:[%s10276_s1 + $0x24c] ss:$16 sps:$4 sm:$0xff]  }
  0xb0   : > { %2128 = vmatpush1.bf16.msra.mxu0 %v7229_v5  ;;  %2234 = vmatpush1.bf16.msra.mxu1 %v7232_v6  ;;  %v7277_v5 = vld [vmem:[%s10276_s1 + $0x240] ss:$16 sps:$4 sm:$0xff]   ;;  %v7280_v6 = vld [vmem:[%s10276_s1 + $0x248] ss:$16 sps:$4 sm:$0xff]  }
  0xb1   : > { %2129 = vmatprep.subr.bf16.mxu0 %v7237_v7  ;;  %2235 = vmatprep.subr.bf16.mxu1 %v7240_v13  ;;  %v7285_v7 = vld [vmem:[%s10276_s1 + $0x264] ss:$16 sps:$4 sm:$0xff]   ;;  %v7288_v13 = vld [vmem:[%s10276_s1 + $0x26c] ss:$16 sps:$4 sm:$0xff]  }
  0xb4   : > { %2130 = vmatpush1.bf16.msra.mxu0 %v7235_v14  ;;  %2236 = vmatpush1.bf16.msra.mxu1 %v7238_v15  ;;  %v7283_v14 = vld [vmem:[%s10276_s1 + $0x260] ss:$16 sps:$4 sm:$0xff]   ;;  %v7286_v15 = vld [vmem:[%s10276_s1 + $0x268] ss:$16 sps:$4 sm:$0xff]  }
  0xb5   : > { %2131 = vmatprep.subr.bf16.mxu0 %v7243_v19  ;;  %2237 = vmatprep.subr.bf16.mxu1 %v7246_v22  ;;  %v7291_v19 = vld [vmem:[%s10276_s1 + $0x284] ss:$16 sps:$4 sm:$0xff]   ;;  %v7294_v22 = vld [vmem:[%s10276_s1 + $0x28c] ss:$16 sps:$4 sm:$0xff]  }
  0xb8   : > { %2132 = vmatpush1.bf16.msra.mxu0 %v7241_v26  ;;  %2238 = vmatpush1.bf16.msra.mxu1 %v7244_v27  ;;  %v7289_v26 = vld [vmem:[%s10276_s1 + $0x280] ss:$16 sps:$4 sm:$0xff]   ;;  %v7292_v27 = vld [vmem:[%s10276_s1 + $0x288] ss:$16 sps:$4 sm:$0xff]  }
  0xb9   : > { %2133 = vmatprep.subr.bf16.mxu0 %v7249_v29  ;;  %2239 = vmatprep.subr.bf16.mxu1 %v7252_v30  ;;  %v7297_v29 = vld [vmem:[%s10276_s1 + $0x2a4] ss:$16 sps:$4 sm:$0xff]   ;;  %v7300_v30 = vld [vmem:[%s10276_s1 + $0x2ac] ss:$16 sps:$4 sm:$0xff]  }
  0xbc   : > { %2134 = vmatpush1.bf16.msra.mxu0 %v7247_v31  ;;  %2240 = vmatpush1.bf16.msra.mxu1 %v7250_v33  ;;  %v7295_v31 = vld [vmem:[%s10276_s1 + $0x2a0] ss:$16 sps:$4 sm:$0xff]   ;;  %v7298_v33 = vld [vmem:[%s10276_s1 + $0x2a8] ss:$16 sps:$4 sm:$0xff]  }
  0xbd   : > { %2135 = vmatprep.subr.bf16.mxu0 %v7255_v34  ;;  %2241 = vmatprep.subr.bf16.mxu1 %v7258_v35  ;;  %v7303_v34 = vld [vmem:[%s10276_s1 + $0x2c4] ss:$16 sps:$4 sm:$0xff]   ;;  %v7306_v35 = vld [vmem:[%s10276_s1 + $0x2cc] ss:$16 sps:$4 sm:$0xff]  }
  0xc0   : > { %2136 = vmatpush1.bf16.msra.mxu0 %v7253_v36  ;;  %2242 = vmatpush1.bf16.msra.mxu1 %v7256_v37  ;;  %v7301_v36 = vld [vmem:[%s10276_s1 + $0x2c0] ss:$16 sps:$4 sm:$0xff]   ;;  %v7304_v37 = vld [vmem:[%s10276_s1 + $0x2c8] ss:$16 sps:$4 sm:$0xff]  }
  0xc1   : > { %2137 = vmatprep.subr.bf16.mxu0 %v7261_v38  ;;  %2243 = vmatprep.subr.bf16.mxu1 %v7264_v40  ;;  %v7309_v38 = vld [vmem:[%s10276_s1 + $0x2e4] ss:$16 sps:$4 sm:$0xff]   ;;  %v7312_v40 = vld [vmem:[%s10276_s1 + $0x2ec] ss:$16 sps:$4 sm:$0xff]  }
  0xc4   : > { %2138 = vmatpush1.bf16.msra.mxu0 %v7259_v41  ;;  %2244 = vmatpush1.bf16.msra.mxu1 %v7262_v43  ;;  %v7307_v41 = vld [vmem:[%s10276_s1 + $0x2e0] ss:$16 sps:$4 sm:$0xff]   ;;  %v7310_v43 = vld [vmem:[%s10276_s1 + $0x2e8] ss:$16 sps:$4 sm:$0xff]  }
  0xc5   : > { %2160 = vmatprep.subr.bf16.mxu0 %v7267_v45  ;;  %2266 = vmatprep.subr.bf16.mxu1 %v7270_v46  ;;  %v7315_v45 = vld [vmem:[%s10276_s1 + $0x304] ss:$16 sps:$4 sm:$0xff]   ;;  %v7318_v46 = vld [vmem:[%s10276_s1 + $0x30c] ss:$16 sps:$4 sm:$0xff]  }
  0xc7   : > { %2140 = vmatmul.mubr.bf16.vlgmr.msra.gmra.mrb[0].mxu0 %v8229_v3  ;;  %2246 = vmatmul.mubr.bf16.vlgmr.msra.gmra.mrb[0].mxu1 %v8229_v3 }
  0xc8   : > { %2161 = vmatpush1.bf16.msra.mxu0 %v7265_v49  ;;  %2267 = vmatpush1.bf16.msra.mxu1 %v7268_v50  ;;  %v7313_v49 = vld [vmem:[%s10276_s1 + $0x300] ss:$16 sps:$4 sm:$0xff]   ;;  %v7316_v50 = vld [vmem:[%s10276_s1 + $0x308] ss:$16 sps:$4 sm:$0xff]  }
  0xc9   : > { %2162 = vmatprep.subr.bf16.mxu0 %v7273_v51  ;;  %2268 = vmatprep.subr.bf16.mxu1 %v7276_v56  ;;  %v7321_v51 = vld [vmem:[%s10276_s1 + $0x324] ss:$16 sps:$4 sm:$0xff]   ;;  %v7324_v56 = vld [vmem:[%s10276_s1 + $0x32c] ss:$16 sps:$4 sm:$0xff]  }
  0xca   : > { %2149 = vmatprep.mubr.bf16.mxu0 %v8201_v54  ;;  %2255 = vmatprep.mubr.bf16.mxu1 %v8201_v54 }
  0xcc   : > { %2163 = vmatpush1.bf16.msra.mxu0 %v7271_v32  ;;  %2269 = vmatpush1.bf16.msra.mxu1 %v7274_v63  ;;  %v7319_v32 = vld [vmem:[%s10276_s1 + $0x320] ss:$16 sps:$4 sm:$0xff]   ;;  %v7322_v63 = vld [vmem:[%s10276_s1 + $0x328] ss:$16 sps:$4 sm:$0xff]  }
  0xcd   : > { %2164 = vmatprep.subr.bf16.mxu0 %v7279_v0  ;;  %2270 = vmatprep.subr.bf16.mxu1 %v7282_v2  ;;  %v7327_v0 = vld [vmem:[%s10276_s1 + $0x344] ss:$16 sps:$4 sm:$0xff]   ;;  %v7330_v2 = vld [vmem:[%s10276_s1 + $0x34c] ss:$16 sps:$4 sm:$0xff]  }
  0xcf   : > { %2150 = vmatmul.mubr.bf16.gmra.mrb[4].mxu0 %v8243_v10  ;;  %2256 = vmatmul.mubr.bf16.gmra.mrb[4].mxu1 %v8243_v10 }
  0xd0   : > { %2165 = vmatpush1.bf16.msra.mxu0 %v7277_v5  ;;  %2271 = vmatpush1.bf16.msra.mxu1 %v7280_v6  ;;  %v7325_v5 = vld [vmem:[%s10276_s1 + $0x340] ss:$16 sps:$4 sm:$0xff]   ;;  %v7328_v6 = vld [vmem:[%s10276_s1 + $0x348] ss:$16 sps:$4 sm:$0xff]  }
  0xd1   : > { %2166 = vmatprep.subr.bf16.mxu0 %v7285_v7  ;;  %2272 = vmatprep.subr.bf16.mxu1 %v7288_v13  ;;  %v7333_v7 = vld [vmem:[%s10276_s1 + $0x364] ss:$16 sps:$4 sm:$0xff]   ;;  %v7336_v13 = vld [vmem:[%s10276_s1 + $0x36c] ss:$16 sps:$4 sm:$0xff]  }
  0xd2   : > { %2192 = vmatprep.mubr.bf16.mxu0 %v8395_v17  ;;  %2298 = vmatprep.mubr.bf16.mxu1 %v8395_v17 }
  0xd4   : > { %2167 = vmatpush1.bf16.msra.mxu0 %v7283_v14  ;;  %2273 = vmatpush1.bf16.msra.mxu1 %v7286_v15  ;;  %v7331_v14 = vld [vmem:[%s10276_s1 + $0x360] ss:$16 sps:$4 sm:$0xff]   ;;  %v7334_v15 = vld [vmem:[%s10276_s1 + $0x368] ss:$16 sps:$4 sm:$0xff]  }
  0xd5   : > { %2168 = vmatprep.subr.bf16.mxu0 %v7291_v19  ;;  %2274 = vmatprep.subr.bf16.mxu1 %v7294_v22  ;;  %v7339_v19 = vld [vmem:[%s10276_s1 + $0x384] ss:$16 sps:$4 sm:$0xff]   ;;  %v7342_v22 = vld [vmem:[%s10276_s1 + $0x38c] ss:$16 sps:$4 sm:$0xff]  }
  0xd8   : > { %2169 = vmatpush1.bf16.msra.mxu0 %v7289_v26  ;;  %2275 = vmatpush1.bf16.msra.mxu1 %v7292_v27  ;;  %v7337_v26 = vld [vmem:[%s10276_s1 + $0x380] ss:$16 sps:$4 sm:$0xff]   ;;  %v7340_v27 = vld [vmem:[%s10276_s1 + $0x388] ss:$16 sps:$4 sm:$0xff]  }
  0xd9   : > { %2170 = vmatprep.subr.bf16.mxu0 %v7297_v29  ;;  %2276 = vmatprep.subr.bf16.mxu1 %v7300_v30  ;;  %v7345_v29 = vld [vmem:[%s10276_s1 + $0x3a4] ss:$16 sps:$4 sm:$0xff]   ;;  %v7348_v30 = vld [vmem:[%s10276_s1 + $0x3ac] ss:$16 sps:$4 sm:$0xff]  }
  0xdc   : > { %2171 = vmatpush1.bf16.msra.mxu0 %v7295_v31  ;;  %2277 = vmatpush1.bf16.msra.mxu1 %v7298_v33  ;;  %v7343_v31 = vld [vmem:[%s10276_s1 + $0x3a0] ss:$16 sps:$4 sm:$0xff]   ;;  %v7346_v33 = vld [vmem:[%s10276_s1 + $0x3a8] ss:$16 sps:$4 sm:$0xff]  }
  0xdd   : > { %2172 = vmatprep.subr.bf16.mxu0 %v7303_v34  ;;  %2278 = vmatprep.subr.bf16.mxu1 %v7306_v35  ;;  %v7351_v34 = vld [vmem:[%s10276_s1 + $0x3c4] ss:$16 sps:$4 sm:$0xff]   ;;  %v7354_v35 = vld [vmem:[%s10276_s1 + $0x3cc] ss:$16 sps:$4 sm:$0xff]  }
  0xe0   : > { %2173 = vmatpush1.bf16.msra.mxu0 %v7301_v36  ;;  %2279 = vmatpush1.bf16.msra.mxu1 %v7304_v37  ;;  %v7349_v36 = vld [vmem:[%s10276_s1 + $0x3c0] ss:$16 sps:$4 sm:$0xff]   ;;  %v7352_v37 = vld [vmem:[%s10276_s1 + $0x3c8] ss:$16 sps:$4 sm:$0xff]  }
  0xe1   : > { %2174 = vmatprep.subr.bf16.mxu0 %v7309_v38  ;;  %2280 = vmatprep.subr.bf16.mxu1 %v7312_v40  ;;  %v7357_v38 = vld [vmem:[%s10276_s1 + $0x3e4] ss:$16 sps:$4 sm:$0xff]   ;;  %v7360_v40 = vld [vmem:[%s10276_s1 + $0x3ec] ss:$16 sps:$4 sm:$0xff]  }
  0xe4   : > { %2175 = vmatpush1.bf16.msra.mxu0 %v7307_v41  ;;  %2281 = vmatpush1.bf16.msra.mxu1 %v7310_v43  ;;  %v7355_v41 = vld [vmem:[%s10276_s1 + $0x3e0] ss:$16 sps:$4 sm:$0xff]   ;;  %v7358_v43 = vld [vmem:[%s10276_s1 + $0x3e8] ss:$16 sps:$4 sm:$0xff]  }
  0xe5   : > { %2176 = vmatprep.subr.bf16.mxu0 %v7315_v45  ;;  %2282 = vmatprep.subr.bf16.mxu1 %v7318_v46  ;;  %v7363_v45 = vld [vmem:[%s10276_s1 + $0x804] ss:$16 sps:$4 sm:$0xff]   ;;  %v7366_v46 = vld [vmem:[%s10276_s1 + $0x80c] ss:$16 sps:$4 sm:$0xff]  }
  0xe8   : > { %2177 = vmatpush1.bf16.msra.mxu0 %v7313_v49  ;;  %2283 = vmatpush1.bf16.msra.mxu1 %v7316_v50  ;;  %v7361_v49 = vld [vmem:[%s10276_s1 + $0x800] ss:$16 sps:$4 sm:$0xff]   ;;  %v7364_v50 = vld [vmem:[%s10276_s1 + $0x808] ss:$16 sps:$4 sm:$0xff]  }
  0xe9   : > { %2178 = vmatprep.subr.bf16.mxu0 %v7321_v51  ;;  %2284 = vmatprep.subr.bf16.mxu1 %v7324_v56  ;;  %v7369_v51 = vld [vmem:[%s10276_s1 + $0x824] ss:$16 sps:$4 sm:$0xff]   ;;  %v7372_v56 = vld [vmem:[%s10276_s1 + $0x82c] ss:$16 sps:$4 sm:$0xff]  }
  0xec   : > { %2179 = vmatpush1.bf16.msra.mxu0 %v7319_v32  ;;  %2285 = vmatpush1.bf16.msra.mxu1 %v7322_v63  ;;  %v7367_v32 = vld [vmem:[%s10276_s1 + $0x820] ss:$16 sps:$4 sm:$0xff]   ;;  %v7370_v63 = vld [vmem:[%s10276_s1 + $0x828] ss:$16 sps:$4 sm:$0xff]  }
  0xed   : > { %2180 = vmatprep.subr.bf16.mxu0 %v7327_v0  ;;  %2286 = vmatprep.subr.bf16.mxu1 %v7330_v2  ;;  %v7375_v0 = vld [vmem:[%s10276_s1 + $0x844] ss:$16 sps:$4 sm:$0xff]   ;;  %v7378_v2 = vld [vmem:[%s10276_s1 + $0x84c] ss:$16 sps:$4 sm:$0xff]  }
  0xf0   : > { %2181 = vmatpush1.bf16.msra.mxu0 %v7325_v5  ;;  %2287 = vmatpush1.bf16.msra.mxu1 %v7328_v6  ;;  %v2464_v5 = vrot.slane %v8199_v53, 1  ;;  %v2465_v6 = vrot.slane %v8201_v54, 1 }
  0xf1   : > { %2182 = vmatprep.subr.bf16.mxu0 %v7333_v7  ;;  %2288 = vmatprep.subr.bf16.mxu1 %v7336_v13  ;;  %v7373_v7 = vld [vmem:[%s10276_s1 + $0x840] ss:$16 sps:$4 sm:$0xff]   ;;  %v7376_v13 = vld [vmem:[%s10276_s1 + $0x848] ss:$16 sps:$4 sm:$0xff]  }
  0xf4   : > { %2183 = vmatpush1.bf16.msra.mxu0 %v7331_v14  ;;  %2289 = vmatpush1.bf16.msra.mxu1 %v7334_v15  ;;  %v7381_v14 = vld [vmem:[%s10276_s1 + $0x864] ss:$16 sps:$4 sm:$0xff]   ;;  %v7384_v15 = vld [vmem:[%s10276_s1 + $0x86c] ss:$16 sps:$4 sm:$0xff]  }
  0xf5   : > { %2184 = vmatprep.subr.bf16.mxu0 %v7339_v19  ;;  %2290 = vmatprep.subr.bf16.mxu1 %v7342_v22  ;;  %v2466_v19 = vsel %vm2460_vm1, %v2464_v5, %v2465_v6  ;;  %v7379_v22 = vld [vmem:[%s10276_s1 + $0x860] ss:$16 sps:$4 sm:$0xff]   ;;  %v7418_v5 = vld [vmem:[%s10276_s1 + $0x928] ss:$16 sps:$4 sm:$0xff]  }
  0xf8   : > { %2185 = vmatpush1.bf16.msra.mxu0 %v7337_v26  ;;  %2291 = vmatpush1.bf16.msra.mxu1 %v7340_v27  ;;  %v7382_v26 = vld [vmem:[%s10276_s1 + $0x868] ss:$16 sps:$4 sm:$0xff]   ;;  %v7387_v27 = vld [vmem:[%s10276_s1 + $0x884] ss:$16 sps:$4 sm:$0xff]  }
  0xf9   : > { %2186 = vmatprep.subr.bf16.mxu0 %v7345_v29  ;;  %2292 = vmatprep.subr.bf16.mxu1 %v7348_v30  ;;  %v7390_v29 = vld [vmem:[%s10276_s1 + $0x88c] ss:$16 sps:$4 sm:$0xff]   ;;  %v7385_v30 = vld [vmem:[%s10276_s1 + $0x880] ss:$16 sps:$4 sm:$0xff]  }
  0xfc   : > { %2187 = vmatpush1.bf16.msra.mxu0 %v7343_v31  ;;  %2293 = vmatpush1.bf16.msra.mxu1 %v7346_v33  ;;  %v7388_v31 = vld [vmem:[%s10276_s1 + $0x888] ss:$16 sps:$4 sm:$0xff]   ;;  %v7393_v33 = vld [vmem:[%s10276_s1 + $0x8a4] ss:$16 sps:$4 sm:$0xff]  }
  0xfd   : > { %2188 = vmatprep.subr.bf16.mxu0 %v7351_v34  ;;  %2294 = vmatprep.subr.bf16.mxu1 %v7354_v35  ;;  %v7396_v34 = vld [vmem:[%s10276_s1 + $0x8ac] ss:$16 sps:$4 sm:$0xff]   ;;  %v7391_v35 = vld [vmem:[%s10276_s1 + $0x8a0] ss:$16 sps:$4 sm:$0xff]  }
 0x100   : > { %2189 = vmatpush1.bf16.msra.mxu0 %v7349_v36  ;;  %2295 = vmatpush1.bf16.msra.mxu1 %v7352_v37  ;;  %v7394_v36 = vld [vmem:[%s10276_s1 + $0x8a8] ss:$16 sps:$4 sm:$0xff]   ;;  %v7399_v37 = vld [vmem:[%s10276_s1 + $0x8c4] ss:$16 sps:$4 sm:$0xff]  }
 0x101   : > { %2190 = vmatprep.subr.bf16.mxu0 %v7357_v38  ;;  %2296 = vmatprep.subr.bf16.mxu1 %v7360_v40  ;;  %v7402_v38 = vld [vmem:[%s10276_s1 + $0x8cc] ss:$16 sps:$4 sm:$0xff]   ;;  %v7397_v40 = vld [vmem:[%s10276_s1 + $0x8c0] ss:$16 sps:$4 sm:$0xff]  }
 0x104   : > { %2191 = vmatpush1.bf16.msra.mxu0 %v7355_v41  ;;  %2297 = vmatpush1.bf16.msra.mxu1 %v7358_v43  ;;  %v7400_v41 = vld [vmem:[%s10276_s1 + $0x8c8] ss:$16 sps:$4 sm:$0xff]   ;;  %v7405_v43 = vld [vmem:[%s10276_s1 + $0x8e4] ss:$16 sps:$4 sm:$0xff]  }
 0x105   : > { %3129 = vmatprep.subr.bf16.mxu0 %v7363_v45  ;;  %3235 = vmatprep.subr.bf16.mxu1 %v7366_v46  ;;  %v7408_v45 = vld [vmem:[%s10276_s1 + $0x8ec] ss:$16 sps:$4 sm:$0xff]   ;;  %v7403_v46 = vld [vmem:[%s10276_s1 + $0x8e0] ss:$16 sps:$4 sm:$0xff]  }
 0x107   : > { %2193 = vmatmul.mubr.bf16.vlgmr.msra.gmra.mrb[0].mxu0 %v8490_v1  ;;  %2299 = vmatmul.mubr.bf16.vlgmr.msra.gmra.mrb[0].mxu1 %v8490_v1 }
 0x108   : > { %3130 = vmatpush1.bf16.msra.mxu0 %v7361_v49  ;;  %3236 = vmatpush1.bf16.msra.mxu1 %v7364_v50  ;;  %v7406_v49 = vld [vmem:[%s10276_s1 + $0x8e8] ss:$16 sps:$4 sm:$0xff]   ;;  %v7411_v50 = vld [vmem:[%s10276_s1 + $0x904] ss:$16 sps:$4 sm:$0xff]  }
 0x109   : > { %3131 = vmatprep.subr.bf16.mxu0 %v7369_v51  ;;  %3237 = vmatprep.subr.bf16.mxu1 %v7372_v56  ;;  %v7414_v51 = vld [vmem:[%s10276_s1 + $0x90c] ss:$16 sps:$4 sm:$0xff]   ;;  %v7409_v56 = vld [vmem:[%s10276_s1 + $0x900] ss:$16 sps:$4 sm:$0xff]  }
 0x10a   : > { %2202 = vmatprep.mubr.bf16.mxu0 %v8402_v21  ;;  %2308 = vmatprep.mubr.bf16.mxu1 %v8402_v21 }
 0x10c   : > { %3132 = vmatpush1.bf16.msra.mxu0 %v7367_v32  ;;  %3238 = vmatpush1.bf16.msra.mxu1 %v7370_v63  ;;  %v7412_v32 = vld [vmem:[%s10276_s1 + $0x908] ss:$16 sps:$4 sm:$0xff]   ;;  %v7417_v63 = vld [vmem:[%s10276_s1 + $0x924] ss:$16 sps:$4 sm:$0xff]  }
 0x10d   : > { %3133 = vmatprep.subr.bf16.mxu0 %v7375_v0  ;;  %3239 = vmatprep.subr.bf16.mxu1 %v7378_v2  ;;  %v7420_v0 = vld [vmem:[%s10276_s1 + $0x92c] ss:$16 sps:$4 sm:$0xff]   ;;  %v7415_v2 = vld [vmem:[%s10276_s1 + $0x920] ss:$16 sps:$4 sm:$0xff]  }
 0x10f   : > { %2203 = vmatmul.mubr.bf16.gmra.mrb[4].mxu0 %v8502_v9  ;;  %2309 = vmatmul.mubr.bf16.gmra.mrb[4].mxu1 %v8502_v9 }
 0x110   : > { %3134 = vmatpush1.bf16.msra.mxu0 %v7373_v7  ;;  %3240 = vmatpush1.bf16.msra.mxu1 %v7376_v13  ;;  %v7423_v7 = vld [vmem:[%s10276_s1 + $0x944] ss:$16 sps:$4 sm:$0xff]   ;;  %v7426_v13 = vld [vmem:[%s10276_s1 + $0x94c] ss:$16 sps:$4 sm:$0xff]  }
 0x111   : > { %3135 = vmatprep.subr.bf16.mxu0 %v7381_v14  ;;  %3241 = vmatprep.subr.bf16.mxu1 %v7384_v15  ;;  %v7421_v14 = vld [vmem:[%s10276_s1 + $0x940] ss:$16 sps:$4 sm:$0xff]   ;;  %v7424_v15 = vld [vmem:[%s10276_s1 + $0x948] ss:$16 sps:$4 sm:$0xff]  }
 0x112   : > { %3161 = vmatprep.mubr.bf16.mxu0 %v2466_v19  ;;  %3267 = vmatprep.mubr.bf16.mxu1 %v2466_v19  ;;  %v7429_v19 = vld [vmem:[%s10276_s1 + $0x964] ss:$16 sps:$4 sm:$0xff]  }
 0x114   : > { %3136 = vmatpush1.bf16.msra.mxu0 %v7379_v22  ;;  %3242 = vmatpush1.bf16.msra.mxu1 %v7382_v26  ;;  %v7432_v22 = vld [vmem:[%s10276_s1 + $0x96c] ss:$16 sps:$4 sm:$0xff]   ;;  %v7427_v26 = vld [vmem:[%s10276_s1 + $0x960] ss:$16 sps:$4 sm:$0xff]  }
 0x115   : > { %3137 = vmatprep.subr.bf16.mxu0 %v7387_v27  ;;  %3243 = vmatprep.subr.bf16.mxu1 %v7390_v29  ;;  %v7430_v27 = vld [vmem:[%s10276_s1 + $0x968] ss:$16 sps:$4 sm:$0xff]   ;;  %v7435_v29 = vld [vmem:[%s10276_s1 + $0x984] ss:$16 sps:$4 sm:$0xff]  }
 0x118   : > { %3138 = vmatpush1.bf16.msra.mxu0 %v7385_v30  ;;  %3244 = vmatpush1.bf16.msra.mxu1 %v7388_v31  ;;  %v7438_v30 = vld [vmem:[%s10276_s1 + $0x98c] ss:$16 sps:$4 sm:$0xff]   ;;  %v7433_v31 = vld [vmem:[%s10276_s1 + $0x980] ss:$16 sps:$4 sm:$0xff]  }
 0x119   : > { %3139 = vmatprep.subr.bf16.mxu0 %v7393_v33  ;;  %3245 = vmatprep.subr.bf16.mxu1 %v7396_v34  ;;  %v7436_v33 = vld [vmem:[%s10276_s1 + $0x988] ss:$16 sps:$4 sm:$0xff]   ;;  %v7441_v34 = vld [vmem:[%s10276_s1 + $0x9a4] ss:$16 sps:$4 sm:$0xff]  }
 0x11c   : > { %3140 = vmatpush1.bf16.msra.mxu0 %v7391_v35  ;;  %3246 = vmatpush1.bf16.msra.mxu1 %v7394_v36  ;;  %v7444_v35 = vld [vmem:[%s10276_s1 + $0x9ac] ss:$16 sps:$4 sm:$0xff]   ;;  %v7439_v36 = vld [vmem:[%s10276_s1 + $0x9a0] ss:$16 sps:$4 sm:$0xff]  }
 0x11d   : > { %3141 = vmatprep.subr.bf16.mxu0 %v7399_v37  ;;  %3247 = vmatprep.subr.bf16.mxu1 %v7402_v38  ;;  %v7442_v37 = vld [vmem:[%s10276_s1 + $0x9a8] ss:$16 sps:$4 sm:$0xff]   ;;  %v7447_v38 = vld [vmem:[%s10276_s1 + $0x9c4] ss:$16 sps:$4 sm:$0xff]  }
 0x120   : > { %3142 = vmatpush1.bf16.msra.mxu0 %v7397_v40  ;;  %3248 = vmatpush1.bf16.msra.mxu1 %v7400_v41  ;;  %v7450_v40 = vld [vmem:[%s10276_s1 + $0x9cc] ss:$16 sps:$4 sm:$0xff]   ;;  %v7445_v41 = vld [vmem:[%s10276_s1 + $0x9c0] ss:$16 sps:$4 sm:$0xff]  }
 0x121   : > { %3143 = vmatprep.subr.bf16.mxu0 %v7405_v43  ;;  %3249 = vmatprep.subr.bf16.mxu1 %v7408_v45  ;;  %v7448_v43 = vld [vmem:[%s10276_s1 + $0x9c8] ss:$16 sps:$4 sm:$0xff]   ;;  %v7453_v45 = vld [vmem:[%s10276_s1 + $0x9e4] ss:$16 sps:$4 sm:$0xff]  }
 0x124   : > { %3144 = vmatpush1.bf16.msra.mxu0 %v7403_v46  ;;  %3250 = vmatpush1.bf16.msra.mxu1 %v7406_v49  ;;  %v7456_v46 = vld [vmem:[%s10276_s1 + $0x9ec] ss:$16 sps:$4 sm:$0xff]   ;;  %v3487_v49 = vrot.slane %v528_v16, 1  ;;  %v3490_v16 = vrot.slane %v575_v60, 1  ;;  %v7457_v60 = vld [vmem:[%s10276_s1 + $0xa00] ss:$16 sps:$4 sm:$0xff]  }
 0x125   : > { %3145 = vmatprep.subr.bf16.mxu0 %v7411_v50  ;;  %3251 = vmatprep.subr.bf16.mxu1 %v7414_v51  ;;  %v3491_v50 = vrot.slane %v535_v18, 2  ;;  %v2461_v51 = vrot.slane %v8229_v3, 1  ;;  %v7459_v18 = vld [vmem:[%s10276_s1 + $0xa04] ss:$16 sps:$4 sm:$0xff]  }
 0x128   : > { %3146 = vmatpush1.bf16.msra.mxu0 %v7409_v56  ;;  %3252 = vmatpush1.bf16.msra.mxu1 %v7412_v32  ;;  %v7451_v56 = vld [vmem:[%s10276_s1 + $0x9e0] ss:$16 sps:$4 sm:$0xff]   ;;  %v7454_v32 = vld [vmem:[%s10276_s1 + $0x9e8] ss:$16 sps:$4 sm:$0xff]  }
 0x129   : > { %3147 = vmatprep.subr.bf16.mxu0 %v7417_v63  ;;  %3253 = vmatprep.subr.bf16.mxu1 %v7420_v0  ;;  %v2462_v63 = vrot.slane %v8243_v10, 1  ;;  %v7462_v0 = vld [vmem:[%s10276_s1 + $0xa0c] ss:$16 sps:$4 sm:$0xff]  }
 0x12c   : > { %3148 = vmatpush1.bf16.msra.mxu0 %v7415_v2  ;;  %3254 = vmatpush1.bf16.msra.mxu1 %v7418_v5  ;;  %v2475_v2 = vrot.slane %v8359_v55, 1  ;;  %v3488_v5 = vrot.slane %v530_v11, 2  ;;  %v7468_v11 = vld [vmem:[%s10276_s1 + $0xa2c] ss:$16 sps:$4 sm:$0xff]  }
 0x12d   : > { %3149 = vmatprep.subr.bf16.mxu0 %v7423_v7  ;;  %3255 = vmatprep.subr.bf16.mxu1 %v7426_v13  ;;  %v7460_v7 = vld [vmem:[%s10276_s1 + $0xa08] ss:$16 sps:$4 sm:$0xff]   ;;  %v2463_v13 = vsel %vm2460_vm1, %v2461_v51, %v2462_v63 }
 0x12e   : > { %v7484_v51 = vld [vmem:[%s10276_s1 + $0xa88] ss:$16 sps:$4 sm:$0xff]  }
 0x130   : > { %3150 = vmatpush1.bf16.msra.mxu0 %v7421_v14  ;;  %3256 = vmatpush1.bf16.msra.mxu1 %v7424_v15  ;;  %v7465_v14 = vld [vmem:[%s10276_s1 + $0xa24] ss:$16 sps:$4 sm:$0xff]   ;;  %v3489_v15 = vor.u32 %v3488_v5, %v3487_v49  ;;  %v7486_v49 = vld [vmem:[%s10276_s1 + $0xa8c] ss:$16 sps:$4 sm:$0xff]   ;;  %v7496_v5 = vld [vmem:[%s10276_s1 + $0xac8] ss:$16 sps:$4 sm:$0xff]  }
 0x131   : > { %3151 = vmatprep.subr.bf16.mxu0 %v7429_v19  ;;  %3257 = vmatprep.subr.bf16.mxu1 %v7432_v22  ;;  %v9183_v19 = vor.u32 %v3491_v50, %v3490_v16  ;;  %v2476_v22 = vsel %vm2460_vm1, %v2465_v6, %v2475_v2  ;;  %v7471_v6 = vld [vmem:[%s10276_s1 + $0xa44] ss:$16 sps:$4 sm:$0xff]   ;;  %v7481_v50 = vld [vmem:[%s10276_s1 + $0xa80] ss:$16 sps:$4 sm:$0xff]   ;;  %v7490_v16 = vld [vmem:[%s10276_s1 + $0xaa8] ss:$16 sps:$4 sm:$0xff]  }
 0x132   : > { %v7493_v2 = vld [vmem:[%s10276_s1 + $0xac0] ss:$16 sps:$4 sm:$0xff]  }
 0x134   : > { %3152 = vmatpush1.bf16.msra.mxu0 %v7427_v26  ;;  %3258 = vmatpush1.bf16.msra.mxu1 %v7430_v27  ;;  %v9190_v26 = vsel %vm3486_vm2, %v3489_v15, %v9183_v19  ;;  %v7463_v27 = vld [vmem:[%s10276_s1 + $0xa20] ss:$16 sps:$4 sm:$0xff]   ;;  %v7510_v15 = vld [vmem:[%s10276_s1 + $0xb0c] ss:$16 sps:$4 sm:$0xff]  }
 0x135   : > { %3153 = vmatprep.subr.bf16.mxu0 %v7435_v29  ;;  %3259 = vmatprep.subr.bf16.mxu1 %v7438_v30  ;;  %v7466_v29 = vld [vmem:[%s10276_s1 + $0xa28] ss:$16 sps:$4 sm:$0xff]   ;;  %v2473_v30 = vrot.slane %v8376_v4, 1 }
 0x138   : > { %3154 = vmatpush1.bf16.msra.mxu0 %v7433_v31  ;;  %3260 = vmatpush1.bf16.msra.mxu1 %v7436_v33  ;;  %v7474_v31 = vld [vmem:[%s10276_s1 + $0xa4c] ss:$16 sps:$4 sm:$0xff]   ;;  %v2470_v33 = vrot.slane %v8395_v17, 1 }
 0x139   : > { %3155 = vmatprep.subr.bf16.mxu0 %v7441_v34  ;;  %3261 = vmatprep.subr.bf16.mxu1 %v7444_v35  ;;  %v2471_v34 = vrot.slane %v8402_v21, 1  ;;  %v7469_v35 = vld [vmem:[%s10276_s1 + $0xa40] ss:$16 sps:$4 sm:$0xff]  }
 0x13c   : > { %3156 = vmatpush1.bf16.msra.mxu0 %v7439_v36  ;;  %3262 = vmatpush1.bf16.msra.mxu1 %v7442_v37  ;;  %v7472_v36 = vld [vmem:[%s10276_s1 + $0xa48] ss:$16 sps:$4 sm:$0xff]   ;;  %v2474_v37 = vsel %vm2460_vm1, %v2462_v63, %v2473_v30  ;;  %v7487_v63 = vld [vmem:[%s10276_s1 + $0xaa0] ss:$16 sps:$4 sm:$0xff]   ;;  %v7516_v30 = vld [vmem:[%s10276_s1 + $0xb2c] ss:$16 sps:$4 sm:$0xff]  }
 0x13d   : > { %3157 = vmatprep.subr.bf16.mxu0 %v7447_v38  ;;  %3263 = vmatprep.subr.bf16.mxu1 %v7450_v40  ;;  %v7477_v38 = vld [vmem:[%s10276_s1 + $0xa64] ss:$16 sps:$4 sm:$0xff]   ;;  %v7480_v40 = vld [vmem:[%s10276_s1 + $0xa6c] ss:$16 sps:$4 sm:$0xff]  }
 0x140   : > { %3158 = vmatpush1.bf16.msra.mxu0 %v7445_v41  ;;  %3264 = vmatpush1.bf16.msra.mxu1 %v7448_v43  ;;  %v2472_v41 = vsel %vm2460_vm1, %v2470_v33, %v2471_v34  ;;  %v7475_v43 = vld [vmem:[%s10276_s1 + $0xa60] ss:$16 sps:$4 sm:$0xff]   ;;  %v7519_v33 = vld [vmem:[%s10276_s1 + $0xb44] ss:$16 sps:$4 sm:$0xff]  }
 0x141   : > { %3159 = vmatprep.subr.bf16.mxu0 %v7453_v45  ;;  %3265 = vmatprep.subr.bf16.mxu1 %v7456_v46  ;;  %v7478_v45 = vld [vmem:[%s10276_s1 + $0xa68] ss:$16 sps:$4 sm:$0xff]   ;;  %v7483_v46 = vld [vmem:[%s10276_s1 + $0xa84] ss:$16 sps:$4 sm:$0xff]  }
 0x144   : > { %3160 = vmatpush1.bf16.msra.mxu0 %v7451_v56  ;;  %3266 = vmatpush1.bf16.msra.mxu1 %v7454_v32  ;;  %v7489_v56 = vld [vmem:[%s10276_s1 + $0xaa4] ss:$16 sps:$4 sm:$0xff]   ;;  %v7492_v32 = vld [vmem:[%s10276_s1 + $0xaac] ss:$16 sps:$4 sm:$0xff]  }
 0x145   : > { %3182 = vmatprep.subr.bf16.mxu0 %v7459_v18  ;;  %3288 = vmatprep.subr.bf16.mxu1 %v7462_v0  ;;  %v7495_v18 = vld [vmem:[%s10276_s1 + $0xac4] ss:$16 sps:$4 sm:$0xff]   ;;  %v7498_v0 = vld [vmem:[%s10276_s1 + $0xacc] ss:$16 sps:$4 sm:$0xff]  }
 0x147   : > { %3162 = vmatmul.mubr.bf16.vlgmr.msra.gmra.mrb[0].mxu0 %v2463_v13  ;;  %3268 = vmatmul.mubr.bf16.vlgmr.msra.gmra.mrb[0].mxu1 %v2463_v13  ;;  %v7499_v13 = vld [vmem:[%s10276_s1 + $0xae0] ss:$16 sps:$4 sm:$0xff]  }
 0x148   : > { %3183 = vmatpush1.bf16.msra.mxu0 %v7457_v60  ;;  %3289 = vmatpush1.bf16.msra.mxu1 %v7460_v7  ;;  %v7501_v60 = vld [vmem:[%s10276_s1 + $0xae4] ss:$16 sps:$4 sm:$0xff]   ;;  %v7504_v7 = vld [vmem:[%s10276_s1 + $0xaec] ss:$16 sps:$4 sm:$0xff]  }
 0x149   : > { %3184 = vmatprep.subr.bf16.mxu0 %v7465_v14  ;;  %3290 = vmatprep.subr.bf16.mxu1 %v7468_v11  ;;  %v7502_v14 = vld [vmem:[%s10276_s1 + $0xae8] ss:$16 sps:$4 sm:$0xff]   ;;  %v7507_v11 = vld [vmem:[%s10276_s1 + $0xb04] ss:$16 sps:$4 sm:$0xff]  }
 0x14a   : > { %3171 = vmatprep.mubr.bf16.mxu0 %v2476_v22  ;;  %3277 = vmatprep.mubr.bf16.mxu1 %v2476_v22  ;;  %v7505_v22 = vld [vmem:[%s10276_s1 + $0xb00] ss:$16 sps:$4 sm:$0xff]  }
 0x14c   : > { %3185 = vmatpush1.bf16.msra.mxu0 %v7463_v27  ;;  %3291 = vmatpush1.bf16.msra.mxu1 %v7466_v29  ;;  %v7508_v27 = vld [vmem:[%s10276_s1 + $0xb08] ss:$16 sps:$4 sm:$0xff]   ;;  %v7513_v29 = vld [vmem:[%s10276_s1 + $0xb24] ss:$16 sps:$4 sm:$0xff]  }
 0x14d   : > { %3186 = vmatprep.subr.bf16.mxu0 %v7471_v6  ;;  %3292 = vmatprep.subr.bf16.mxu1 %v7474_v31  ;;  %v7511_v6 = vld [vmem:[%s10276_s1 + $0xb20] ss:$16 sps:$4 sm:$0xff]   ;;  %v7514_v31 = vld [vmem:[%s10276_s1 + $0xb28] ss:$16 sps:$4 sm:$0xff]  }
 0x14f   : > { %3172 = vmatmul.mubr.bf16.gmra.mrb[4].mxu0 %v2474_v37  ;;  %3278 = vmatmul.mubr.bf16.gmra.mrb[4].mxu1 %v2474_v37  ;;  %v7520_v37 = vld [vmem:[%s10276_s1 + $0xb48] ss:$16 sps:$4 sm:$0xff]  }
 0x150   : > { %3187 = vmatpush1.bf16.msra.mxu0 %v7469_v35  ;;  %3293 = vmatpush1.bf16.msra.mxu1 %v7472_v36  ;;  %v7522_v35 = vld [vmem:[%s10276_s1 + $0xb4c] ss:$16 sps:$4 sm:$0xff]   ;;  %v7517_v36 = vld [vmem:[%s10276_s1 + $0xb40] ss:$16 sps:$4 sm:$0xff]  }
 0x151   : > { %3188 = vmatprep.subr.bf16.mxu0 %v7477_v38  ;;  %3294 = vmatprep.subr.bf16.mxu1 %v7480_v40  ;;  %v7525_v38 = vld [vmem:[%s10276_s1 + $0xb64] ss:$16 sps:$4 sm:$0xff]   ;;  %v7528_v40 = vld [vmem:[%s10276_s1 + $0xb6c] ss:$16 sps:$4 sm:$0xff]  }
 0x152   : > { %3214 = vmatprep.mubr.bf16.mxu0 %v2472_v41  ;;  %3320 = vmatprep.mubr.bf16.mxu1 %v2472_v41  ;;  %v7523_v41 = vld [vmem:[%s10276_s1 + $0xb60] ss:$16 sps:$4 sm:$0xff]  }
 0x154   : > { %3189 = vmatpush1.bf16.msra.mxu0 %v7475_v43  ;;  %3295 = vmatpush1.bf16.msra.mxu1 %v7478_v45  ;;  %v7526_v43 = vld [vmem:[%s10276_s1 + $0xb68] ss:$16 sps:$4 sm:$0xff]   ;;  %v7531_v45 = vld [vmem:[%s10276_s1 + $0xb84] ss:$16 sps:$4 sm:$0xff]  }
 0x155   : > { %3190 = vmatprep.subr.bf16.mxu0 %v7483_v46  ;;  %3296 = vmatprep.subr.bf16.mxu1 %v7486_v49  ;;  %v7534_v46 = vld [vmem:[%s10276_s1 + $0xb8c] ss:$16 sps:$4 sm:$0xff]   ;;  %v7529_v49 = vld [vmem:[%s10276_s1 + $0xb80] ss:$16 sps:$4 sm:$0xff]  }
 0x158   : > { %3191 = vmatpush1.bf16.msra.mxu0 %v7481_v50  ;;  %3297 = vmatpush1.bf16.msra.mxu1 %v7484_v51  ;;  %v7532_v50 = vld [vmem:[%s10276_s1 + $0xb88] ss:$16 sps:$4 sm:$0xff]   ;;  %v7537_v51 = vld [vmem:[%s10276_s1 + $0xba4] ss:$16 sps:$4 sm:$0xff]  }
 0x159   : > { %3192 = vmatprep.subr.bf16.mxu0 %v7489_v56  ;;  %3298 = vmatprep.subr.bf16.mxu1 %v7492_v32  ;;  %v7540_v56 = vld [vmem:[%s10276_s1 + $0xbac] ss:$16 sps:$4 sm:$0xff]   ;;  %v7535_v32 = vld [vmem:[%s10276_s1 + $0xba0] ss:$16 sps:$4 sm:$0xff]  }
 0x15c   : > { %3193 = vmatpush1.bf16.msra.mxu0 %v7487_v63  ;;  %3299 = vmatpush1.bf16.msra.mxu1 %v7490_v16  ;;  %v7538_v63 = vld [vmem:[%s10276_s1 + $0xba8] ss:$16 sps:$4 sm:$0xff]   ;;  %v7543_v16 = vld [vmem:[%s10276_s1 + $0xbc4] ss:$16 sps:$4 sm:$0xff]  }
 0x15d   : > { %3194 = vmatprep.subr.bf16.mxu0 %v7495_v18  ;;  %3300 = vmatprep.subr.bf16.mxu1 %v7498_v0  ;;  %v7546_v18 = vld [vmem:[%s10276_s1 + $0xbcc] ss:$16 sps:$4 sm:$0xff]   ;;  %v7541_v0 = vld [vmem:[%s10276_s1 + $0xbc0] ss:$16 sps:$4 sm:$0xff]  }
 0x160   : > { %3195 = vmatpush1.bf16.msra.mxu0 %v7493_v2  ;;  %3301 = vmatpush1.bf16.msra.mxu1 %v7496_v5  ;;  %v7544_v2 = vld [vmem:[%s10276_s1 + $0xbc8] ss:$16 sps:$4 sm:$0xff]   ;;  %v7549_v5 = vld [vmem:[%s10276_s1 + $0xbe4] ss:$16 sps:$4 sm:$0xff]  }
 0x161   : > { %3196 = vmatprep.subr.bf16.mxu0 %v7501_v60  ;;  %3302 = vmatprep.subr.bf16.mxu1 %v7504_v7  ;;  %v7552_v60 = vld [vmem:[%s10276_s1 + $0xbec] ss:$16 sps:$4 sm:$0xff]   ;;  %v2467_v7 = vrot.slane %v8490_v1, 1 }
 0x164   : > { %3197 = vmatpush1.bf16.msra.mxu0 %v7499_v13  ;;  %3303 = vmatpush1.bf16.msra.mxu1 %v7502_v14  ;;  %v7547_v13 = vld [vmem:[%s10276_s1 + $0xbe0] ss:$16 sps:$4 sm:$0xff]   ;;  %v7550_v14 = vld [vmem:[%s10276_s1 + $0xbe8] ss:$16 sps:$4 sm:$0xff]  }
 0x165   : > { %3198 = vmatprep.subr.bf16.mxu0 %v7507_v11  ;;  %3304 = vmatprep.subr.bf16.mxu1 %v7510_v15  ;;  %v2468_v11 = vrot.slane %v8502_v9, 1  ;;  %v7555_v15 = vld [vmem:[%s10276_s1 + $0xc04] ss:$16 sps:$4 sm:$0xff]  }
 0x168   : > { %3199 = vmatpush1.bf16.msra.mxu0 %v7505_v22  ;;  %3305 = vmatpush1.bf16.msra.mxu1 %v7508_v27  ;;  %v7558_v22 = vld [vmem:[%s10276_s1 + $0xc0c] ss:$16 sps:$4 sm:$0xff]   ;;  %v2479_v27 = vrot.slane %v8555_v42, 1 }
 0x169   : > { %3200 = vmatprep.subr.bf16.mxu0 %v7513_v29  ;;  %3306 = vmatprep.subr.bf16.mxu1 %v7516_v30  ;;  %v7553_v29 = vld [vmem:[%s10276_s1 + $0xc00] ss:$16 sps:$4 sm:$0xff]   ;;  %v7556_v30 = vld [vmem:[%s10276_s1 + $0xc08] ss:$16 sps:$4 sm:$0xff]  }
 0x16c   : > { %3201 = vmatpush1.bf16.msra.mxu0 %v7511_v6  ;;  %3307 = vmatpush1.bf16.msra.mxu1 %v7514_v31  ;;  %v2469_v6 = vsel %vm2460_vm1, %v2467_v7, %v2468_v11  ;;  %v7561_v31 = vld [vmem:[%s10276_s1 + $0xc24] ss:$16 sps:$4 sm:$0xff]   ;;  %v7583_v7 = vld [vmem:[%s10276_s1 + $0xca0] ss:$16 sps:$4 sm:$0xff]  }
 0x16d   : > { %3202 = vmatprep.subr.bf16.mxu0 %v7519_v33  ;;  %3308 = vmatprep.subr.bf16.mxu1 %v7522_v35  ;;  %v7564_v33 = vld [vmem:[%s10276_s1 + $0xc2c] ss:$16 sps:$4 sm:$0xff]   ;;  %v3494_v35 = vrot.slane %v540_v57, 1  ;;  %v7559_v57 = vld [vmem:[%s10276_s1 + $0xc20] ss:$16 sps:$4 sm:$0xff]  }
 0x170   : > { %3203 = vmatpush1.bf16.msra.mxu0 %v7517_v36  ;;  %3309 = vmatpush1.bf16.msra.mxu1 %v7520_v37  ;;  %v2480_v36 = vsel %vm2460_vm1, %v2471_v34, %v2479_v27  ;;  %v3495_v37 = vrot.slane %v542_v58, 2  ;;  %v2477_v34 = vrot.slane %v8575_v52, 1  ;;  %v7567_v58 = vld [vmem:[%s10276_s1 + $0xc44] ss:$16 sps:$4 sm:$0xff]  }
 0x171   : > { %3204 = vmatprep.subr.bf16.mxu0 %v7525_v38  ;;  %3310 = vmatprep.subr.bf16.mxu1 %v7528_v40  ;;  %v3497_v38 = vrot.slane %v583_v48, 1  ;;  %v3498_v40 = vrot.slane %v547_v59, 2  ;;  %v7570_v59 = vld [vmem:[%s10276_s1 + $0xc4c] ss:$16 sps:$4 sm:$0xff]   ;;  %v7597_v27 = vld [vmem:[%s10276_s1 + $0xce4] ss:$16 sps:$4 sm:$0xff]  }
 0x172   : > { %v3496_v48 = vor.u32 %v3495_v37, %v3494_v35  ;;  %v7601_v35 = vld [vmem:[%s10276_s1 + $0xd00] ss:$16 sps:$4 sm:$0xff]   ;;  %v7609_v37 = vld [vmem:[%s10276_s1 + $0xd24] ss:$16 sps:$4 sm:$0xff]  }
 0x174   : > { %3205 = vmatpush1.bf16.msra.mxu0 %v7523_v41  ;;  %3311 = vmatpush1.bf16.msra.mxu1 %v7526_v43  ;;  %v7562_v41 = vld [vmem:[%s10276_s1 + $0xc28] ss:$16 sps:$4 sm:$0xff]   ;;  %v9419_v43 = vor.u32 %v3498_v40, %v3497_v38  ;;  %v7612_v38 = vld [vmem:[%s10276_s1 + $0xd2c] ss:$16 sps:$4 sm:$0xff]   ;;  %v7607_v40 = vld [vmem:[%s10276_s1 + $0xd20] ss:$16 sps:$4 sm:$0xff]  }
 0x175   : > { %3206 = vmatprep.subr.bf16.mxu0 %v7531_v45  ;;  %3312 = vmatprep.subr.bf16.mxu1 %v7534_v46  ;;  %v7565_v45 = vld [vmem:[%s10276_s1 + $0xc40] ss:$16 sps:$4 sm:$0xff]   ;;  %v7568_v46 = vld [vmem:[%s10276_s1 + $0xc48] ss:$16 sps:$4 sm:$0xff]  }
 0x178   : > { %3207 = vmatpush1.bf16.msra.mxu0 %v7529_v49  ;;  %3313 = vmatpush1.bf16.msra.mxu1 %v7532_v50  ;;  %v2478_v49 = vsel %vm2460_vm1, %v2468_v11, %v2477_v34  ;;  %v7573_v50 = vld [vmem:[%s10276_s1 + $0xc64] ss:$16 sps:$4 sm:$0xff]   ;;  %v7594_v11 = vld [vmem:[%s10276_s1 + $0xccc] ss:$16 sps:$4 sm:$0xff]  }
 0x179   : > { %3208 = vmatprep.subr.bf16.mxu0 %v7537_v51  ;;  %3314 = vmatprep.subr.bf16.mxu1 %v7540_v56  ;;  %v7576_v51 = vld [vmem:[%s10276_s1 + $0xc6c] ss:$16 sps:$4 sm:$0xff]   ;;  %v3500_v56 = vsel %vm3486_vm2, %v3496_v48, %v9419_v43  ;;  %v7621_v48 = vld [vmem:[%s10276_s1 + $0xd64] ss:$16 sps:$4 sm:$0xff]  }
 0x17a   : > { %v7618_v34 = vld [vmem:[%s10276_s1 + $0xd4c] ss:$16 sps:$4 sm:$0xff]  }
 0x17c   : > { %3209 = vmatpush1.bf16.msra.mxu0 %v7535_v32  ;;  %3315 = vmatpush1.bf16.msra.mxu1 %v7538_v63  ;;  %v7571_v32 = vld [vmem:[%s10276_s1 + $0xc60] ss:$16 sps:$4 sm:$0xff]   ;;  %v7574_v63 = vld [vmem:[%s10276_s1 + $0xc68] ss:$16 sps:$4 sm:$0xff]  }
 0x17d   : > { %3210 = vmatprep.subr.bf16.mxu0 %v7543_v16  ;;  %3316 = vmatprep.subr.bf16.mxu1 %v7546_v18  ;;  %v7579_v16 = vld [vmem:[%s10276_s1 + $0xc84] ss:$16 sps:$4 sm:$0xff]   ;;  %v7582_v18 = vld [vmem:[%s10276_s1 + $0xc8c] ss:$16 sps:$4 sm:$0xff]  }
 0x180   : > { %3211 = vmatpush1.bf16.msra.mxu0 %v7541_v0  ;;  %3317 = vmatpush1.bf16.msra.mxu1 %v7544_v2  ;;  %v7577_v0 = vld [vmem:[%s10276_s1 + $0xc80] ss:$16 sps:$4 sm:$0xff]   ;;  %v7580_v2 = vld [vmem:[%s10276_s1 + $0xc88] ss:$16 sps:$4 sm:$0xff]  }
 0x181   : > { %3212 = vmatprep.subr.bf16.mxu0 %v7549_v5  ;;  %3318 = vmatprep.subr.bf16.mxu1 %v7552_v60  ;;  %v7585_v5 = vld [vmem:[%s10276_s1 + $0xca4] ss:$16 sps:$4 sm:$0xff]   ;;  %v7588_v60 = vld [vmem:[%s10276_s1 + $0xcac] ss:$16 sps:$4 sm:$0xff]  }
 0x184   : > { %3213 = vmatpush1.bf16.msra.mxu0 %v7547_v13  ;;  %3319 = vmatpush1.bf16.msra.mxu1 %v7550_v14  ;;  %v7586_v13 = vld [vmem:[%s10276_s1 + $0xca8] ss:$16 sps:$4 sm:$0xff]   ;;  %v7591_v14 = vld [vmem:[%s10276_s1 + $0xcc4] ss:$16 sps:$4 sm:$0xff]  }
 0x185   : > { %4187 = vmatprep.subr.bf16.mxu0 %v7555_v15  ;;  %4293 = vmatprep.subr.bf16.mxu1 %v7558_v22  ;;  %v7589_v15 = vld [vmem:[%s10276_s1 + $0xcc0] ss:$16 sps:$4 sm:$0xff]   ;;  %v7592_v22 = vld [vmem:[%s10276_s1 + $0xcc8] ss:$16 sps:$4 sm:$0xff]  }
 0x187   : > { %3215 = vmatmul.mubr.bf16.vlgmr.msra.gmra.mrb[0].mxu0 %v2469_v6  ;;  %3321 = vmatmul.mubr.bf16.vlgmr.msra.gmra.mrb[0].mxu1 %v2469_v6  ;;  %v7598_v6 = vld [vmem:[%s10276_s1 + $0xce8] ss:$16 sps:$4 sm:$0xff]  }
 0x188   : > { %4188 = vmatpush1.bf16.msra.mxu0 %v7553_v29  ;;  %4294 = vmatpush1.bf16.msra.mxu1 %v7556_v30  ;;  %v7600_v29 = vld [vmem:[%s10276_s1 + $0xcec] ss:$16 sps:$4 sm:$0xff]   ;;  %v7595_v30 = vld [vmem:[%s10276_s1 + $0xce0] ss:$16 sps:$4 sm:$0xff]  }
 0x189   : > { %4189 = vmatprep.subr.bf16.mxu0 %v7561_v31  ;;  %4295 = vmatprep.subr.bf16.mxu1 %v7564_v33  ;;  %v7603_v31 = vld [vmem:[%s10276_s1 + $0xd04] ss:$16 sps:$4 sm:$0xff]   ;;  %v7606_v33 = vld [vmem:[%s10276_s1 + $0xd0c] ss:$16 sps:$4 sm:$0xff]  }
 0x18a   : > { %3224 = vmatprep.mubr.bf16.mxu0 %v2480_v36  ;;  %3330 = vmatprep.mubr.bf16.mxu1 %v2480_v36  ;;  %v7604_v36 = vld [vmem:[%s10276_s1 + $0xd08] ss:$16 sps:$4 sm:$0xff]  }
 0x18c   : > { %4190 = vmatpush1.bf16.msra.mxu0 %v7559_v57  ;;  %4296 = vmatpush1.bf16.msra.mxu1 %v7562_v41  ;;  %v7610_v57 = vld [vmem:[%s10276_s1 + $0xd28] ss:$16 sps:$4 sm:$0xff]   ;;  %v7615_v41 = vld [vmem:[%s10276_s1 + $0xd44] ss:$16 sps:$4 sm:$0xff]  }
 0x18d   : > { %4191 = vmatprep.subr.bf16.mxu0 %v7567_v58  ;;  %4297 = vmatprep.subr.bf16.mxu1 %v7570_v59  ;;  %v7613_v58 = vld [vmem:[%s10276_s1 + $0xd40] ss:$16 sps:$4 sm:$0xff]   ;;  %v7616_v59 = vld [vmem:[%s10276_s1 + $0xd48] ss:$16 sps:$4 sm:$0xff]  }
 0x18f   : > { %3225 = vmatmul.mubr.bf16.gmra.mrb[4].mxu0 %v2478_v49  ;;  %3331 = vmatmul.mubr.bf16.gmra.mrb[4].mxu1 %v2478_v49  ;;  %v7622_v49 = vld [vmem:[%s10276_s1 + $0xd68] ss:$16 sps:$4 sm:$0xff]  }
 0x190   : > { %4192 = vmatpush1.bf16.msra.mxu0 %v7565_v45  ;;  %4298 = vmatpush1.bf16.msra.mxu1 %v7568_v46  ;;  %v7624_v45 = vld [vmem:[%s10276_s1 + $0xd6c] ss:$16 sps:$4 sm:$0xff]   ;;  %v7619_v46 = vld [vmem:[%s10276_s1 + $0xd60] ss:$16 sps:$4 sm:$0xff]  }
 0x191   : > { %4193 = vmatprep.subr.bf16.mxu0 %v7573_v50  ;;  %4299 = vmatprep.subr.bf16.mxu1 %v7576_v51  ;;  %v7627_v50 = vld [vmem:[%s10276_s1 + $0xd84] ss:$16 sps:$4 sm:$0xff]   ;;  %v7630_v51 = vld [vmem:[%s10276_s1 + $0xd8c] ss:$16 sps:$4 sm:$0xff]  }
 0x192   : > { %4219 = vmatprep.mubr.bf16.mxu0 %v3500_v56  ;;  %4325 = vmatprep.mubr.bf16.mxu1 %v3500_v56  ;;  %v7625_v56 = vld [vmem:[%s10276_s1 + $0xd80] ss:$16 sps:$4 sm:$0xff]  }
 0x194   : > { %4194 = vmatpush1.bf16.msra.mxu0 %v7571_v32  ;;  %4300 = vmatpush1.bf16.msra.mxu1 %v7574_v63  ;;  %v7628_v32 = vld [vmem:[%s10276_s1 + $0xd88] ss:$16 sps:$4 sm:$0xff]   ;;  %v7633_v63 = vld [vmem:[%s10276_s1 + $0xda4] ss:$16 sps:$4 sm:$0xff]  }
 0x195   : > { %4195 = vmatprep.subr.bf16.mxu0 %v7579_v16  ;;  %4301 = vmatprep.subr.bf16.mxu1 %v7582_v18  ;;  %v7636_v16 = vld [vmem:[%s10276_s1 + $0xdac] ss:$16 sps:$4 sm:$0xff]   ;;  %v7631_v18 = vld [vmem:[%s10276_s1 + $0xda0] ss:$16 sps:$4 sm:$0xff]  }
 0x198   : > { %4196 = vmatpush1.bf16.msra.mxu0 %v7577_v0  ;;  %4302 = vmatpush1.bf16.msra.mxu1 %v7580_v2  ;;  %v7634_v0 = vld [vmem:[%s10276_s1 + $0xda8] ss:$16 sps:$4 sm:$0xff]   ;;  %v7639_v2 = vld [vmem:[%s10276_s1 + $0xdc4] ss:$16 sps:$4 sm:$0xff]  }
 0x199   : > { %4197 = vmatprep.subr.bf16.mxu0 %v7585_v5  ;;  %4303 = vmatprep.subr.bf16.mxu1 %v7588_v60  ;;  %v7642_v5 = vld [vmem:[%s10276_s1 + $0xdcc] ss:$16 sps:$4 sm:$0xff]   ;;  %v3521_v60 = vshrl.u32 %v8359_v55, 16 }
 0x19c   : > { %4198 = vmatpush1.bf16.msra.mxu0 %v7583_v7  ;;  %4304 = vmatpush1.bf16.msra.mxu1 %v7586_v13  ;;  %v7637_v7 = vld [vmem:[%s10276_s1 + $0xdc0] ss:$16 sps:$4 sm:$0xff]   ;;  %v7640_v13 = vld [vmem:[%s10276_s1 + $0xdc8] ss:$16 sps:$4 sm:$0xff]  }
 0x19d   : > { %4199 = vmatprep.subr.bf16.mxu0 %v7591_v14  ;;  %4305 = vmatprep.subr.bf16.mxu1 %v7594_v11  ;;  %v7645_v14 = vld [vmem:[%s10276_s1 + $0xde4] ss:$16 sps:$4 sm:$0xff]   ;;  %v7648_v11 = vld [vmem:[%s10276_s1 + $0xdec] ss:$16 sps:$4 sm:$0xff]  }
 0x1a0   : > { %4200 = vmatpush1.bf16.msra.mxu0 %v7589_v15  ;;  %4306 = vmatpush1.bf16.msra.mxu1 %v7592_v22  ;;  %v3523_v15 = vrot.slane %v3521_v60, 1  ;;  %v3524_v22 = vrot.slane %v587_v62, 2  ;;  %v7654_v62 = vld [vmem:[%s10276_s1 + $0xe0c] ss:$16 sps:$4 sm:$0xff]   ;;  %v7682_v60 = vld [vmem:[%s10276_s1 + $0xea8] ss:$16 sps:$4 sm:$0xff]  }
 0x1a1   : > { %4201 = vmatprep.subr.bf16.mxu0 %v7597_v27  ;;  %4307 = vmatprep.subr.bf16.mxu1 %v7600_v29  ;;  %v7643_v27 = vld [vmem:[%s10276_s1 + $0xde0] ss:$16 sps:$4 sm:$0xff]   ;;  %v7646_v29 = vld [vmem:[%s10276_s1 + $0xde8] ss:$16 sps:$4 sm:$0xff]  }
 0x1a4   : > { %4202 = vmatpush1.bf16.msra.mxu0 %v7595_v30  ;;  %4308 = vmatpush1.bf16.msra.mxu1 %v7598_v6  ;;  %v3515_v30 = vshrl.u32 %v8376_v4, 16  ;;  %v7651_v6 = vld [vmem:[%s10276_s1 + $0xe04] ss:$16 sps:$4 sm:$0xff]  }
 0x1a5   : > { %4203 = vmatprep.subr.bf16.mxu0 %v7603_v31  ;;  %4309 = vmatprep.subr.bf16.mxu1 %v7606_v33  ;;  %v3525_v31 = vor.u32 %v3524_v22, %v3523_v15  ;;  %v7649_v33 = vld [vmem:[%s10276_s1 + $0xe00] ss:$16 sps:$4 sm:$0xff]   ;;  %v7693_v15 = vld [vmem:[%s10276_s1 + $0xee4] ss:$16 sps:$4 sm:$0xff]   ;;  %v7696_v22 = vld [vmem:[%s10276_s1 + $0xeec] ss:$16 sps:$4 sm:$0xff]  }
 0x1a8   : > { %4204 = vmatpush1.bf16.msra.mxu0 %v7601_v35  ;;  %4310 = vmatpush1.bf16.msra.mxu1 %v7604_v36  ;;  %v7652_v35 = vld [vmem:[%s10276_s1 + $0xe08] ss:$16 sps:$4 sm:$0xff]   ;;  %v3517_v36 = vrot.slane %v3515_v30, 1  ;;  %v7699_v30 = vld [vmem:[%s10276_s1 + $0xf04] ss:$16 sps:$4 sm:$0xff]  }
 0x1a9   : > { %4205 = vmatprep.subr.bf16.mxu0 %v7609_v37  ;;  %4311 = vmatprep.subr.bf16.mxu1 %v7612_v38  ;;  %v3518_v37 = vrot.slane %v579_v8, 2  ;;  %v7657_v38 = vld [vmem:[%s10276_s1 + $0xe24] ss:$16 sps:$4 sm:$0xff]   ;;  %v3508_v8 = vrot.slane %v564_v23, 1 }
 0x1ab   : > { %v3519_v23 = vor.u32 %v3518_v37, %v3517_v36  ;;  %v7703_v36 = vld [vmem:[%s10276_s1 + $0xf20] ss:$16 sps:$4 sm:$0xff]   ;;  %v7706_v37 = vld [vmem:[%s10276_s1 + $0xf28] ss:$16 sps:$4 sm:$0xff]  }
 0x1ac   : > { %4206 = vmatpush1.bf16.msra.mxu0 %v7607_v40  ;;  %4312 = vmatpush1.bf16.msra.mxu1 %v7610_v57  ;;  %v7660_v40 = vld [vmem:[%s10276_s1 + $0xe2c] ss:$16 sps:$4 sm:$0xff]   ;;  %v3526_v57 = vsel %vm3486_vm2, %v9419_v43, %v3525_v31  ;;  %v7655_v43 = vld [vmem:[%s10276_s1 + $0xe20] ss:$16 sps:$4 sm:$0xff]   ;;  %v7700_v31 = vld [vmem:[%s10276_s1 + $0xf08] ss:$16 sps:$4 sm:$0xff]  }
 0x1ad   : > { %4207 = vmatprep.subr.bf16.mxu0 %v7615_v41  ;;  %4313 = vmatprep.subr.bf16.mxu1 %v7618_v34  ;;  %v3509_v41 = vrot.slane %v566_v24, 2  ;;  %v3511_v34 = vrot.slane %v599_v39, 1  ;;  %v7663_v24 = vld [vmem:[%s10276_s1 + $0xe44] ss:$16 sps:$4 sm:$0xff]  }
 0x1af   : > { %v3510_v39 = vor.u32 %v3509_v41, %v3508_v8  ;;  %v7712_v8 = vld [vmem:[%s10276_s1 + $0xf48] ss:$16 sps:$4 sm:$0xff]   ;;  %v7717_v41 = vld [vmem:[%s10276_s1 + $0xf64] ss:$16 sps:$4 sm:$0xff]  }
 0x1b0   : > { %4208 = vmatpush1.bf16.msra.mxu0 %v7613_v58  ;;  %4314 = vmatpush1.bf16.msra.mxu1 %v7616_v59  ;;  %v3512_v58 = vrot.slane %v571_v28, 2  ;;  %v7666_v28 = vld [vmem:[%s10276_s1 + $0xe4c] ss:$16 sps:$4 sm:$0xff]  }
 0x1b1   : > { %4209 = vmatprep.subr.bf16.mxu0 %v7621_v48  ;;  %4315 = vmatprep.subr.bf16.mxu1 %v7624_v45  ;;  %v7661_v48 = vld [vmem:[%s10276_s1 + $0xe40] ss:$16 sps:$4 sm:$0xff]   ;;  %v7664_v45 = vld [vmem:[%s10276_s1 + $0xe48] ss:$16 sps:$4 sm:$0xff]  }
 0x1b2   : > { %v9634_v59 = vor.u32 %v3512_v58, %v3511_v34  ;;  %v7720_v34 = vld [vmem:[%s10276_s1 + $0xf6c] ss:$16 sps:$4 sm:$0xff]   ;;  %v7715_v58 = vld [vmem:[%s10276_s1 + $0xf60] ss:$16 sps:$4 sm:$0xff]  }
 0x1b4   : > { %4210 = vmatpush1.bf16.msra.mxu0 %v7619_v46  ;;  %4316 = vmatpush1.bf16.msra.mxu1 %v7622_v49  ;;  %v3520_v46 = vsel %vm3486_vm2, %v9183_v19, %v3519_v23  ;;  %v7669_v49 = vld [vmem:[%s10276_s1 + $0xe64] ss:$16 sps:$4 sm:$0xff]   ;;  %v7667_v19 = vld [vmem:[%s10276_s1 + $0xe60] ss:$16 sps:$4 sm:$0xff]   ;;  %v7726_v23 = vld [vmem:[%s10276_s1 + $0xf8c] ss:$16 sps:$4 sm:$0xff]  }
 0x1b5   : > { %4211 = vmatprep.subr.bf16.mxu0 %v7627_v50  ;;  %4317 = vmatprep.subr.bf16.mxu1 %v7630_v51  ;;  %v7672_v50 = vld [vmem:[%s10276_s1 + $0xe6c] ss:$16 sps:$4 sm:$0xff]   ;;  %v3514_v51 = vsel %vm3486_vm2, %v3510_v39, %v9634_v59  ;;  %v7729_v39 = vld [vmem:[%s10276_s1 + $0xfa4] ss:$16 sps:$4 sm:$0xff]  }
 0x1b8   : > { %4212 = vmatpush1.bf16.msra.mxu0 %v7625_v56  ;;  %4318 = vmatpush1.bf16.msra.mxu1 %v7628_v32  ;;  %v7670_v56 = vld [vmem:[%s10276_s1 + $0xe68] ss:$16 sps:$4 sm:$0xff]   ;;  %v7675_v32 = vld [vmem:[%s10276_s1 + $0xe84] ss:$16 sps:$4 sm:$0xff]  }
 0x1b9   : > { %4213 = vmatprep.subr.bf16.mxu0 %v7633_v63  ;;  %4319 = vmatprep.subr.bf16.mxu1 %v7636_v16  ;;  %v7678_v63 = vld [vmem:[%s10276_s1 + $0xe8c] ss:$16 sps:$4 sm:$0xff]   ;;  %v7673_v16 = vld [vmem:[%s10276_s1 + $0xe80] ss:$16 sps:$4 sm:$0xff]  }
 0x1bc   : > { %4214 = vmatpush1.bf16.msra.mxu0 %v7631_v18  ;;  %4320 = vmatpush1.bf16.msra.mxu1 %v7634_v0  ;;  %v7676_v18 = vld [vmem:[%s10276_s1 + $0xe88] ss:$16 sps:$4 sm:$0xff]   ;;  %v7681_v0 = vld [vmem:[%s10276_s1 + $0xea4] ss:$16 sps:$4 sm:$0xff]  }
 0x1bd   : > { %4215 = vmatprep.subr.bf16.mxu0 %v7639_v2  ;;  %4321 = vmatprep.subr.bf16.mxu1 %v7642_v5  ;;  %v7684_v2 = vld [vmem:[%s10276_s1 + $0xeac] ss:$16 sps:$4 sm:$0xff]   ;;  %v7679_v5 = vld [vmem:[%s10276_s1 + $0xea0] ss:$16 sps:$4 sm:$0xff]  }
 0x1c0   : > { %4216 = vmatpush1.bf16.msra.mxu0 %v7637_v7  ;;  %4322 = vmatpush1.bf16.msra.mxu1 %v7640_v13  ;;  %v7687_v7 = vld [vmem:[%s10276_s1 + $0xec4] ss:$16 sps:$4 sm:$0xff]   ;;  %v7690_v13 = vld [vmem:[%s10276_s1 + $0xecc] ss:$16 sps:$4 sm:$0xff]  }
 0x1c1   : > { %4217 = vmatprep.subr.bf16.mxu0 %v7645_v14  ;;  %4323 = vmatprep.subr.bf16.mxu1 %v7648_v11  ;;  %v7685_v14 = vld [vmem:[%s10276_s1 + $0xec0] ss:$16 sps:$4 sm:$0xff]   ;;  %v7688_v11 = vld [vmem:[%s10276_s1 + $0xec8] ss:$16 sps:$4 sm:$0xff]  }
 0x1c4   : > { %4218 = vmatpush1.bf16.msra.mxu0 %v7643_v27  ;;  %4324 = vmatpush1.bf16.msra.mxu1 %v7646_v29  ;;  %v7691_v27 = vld [vmem:[%s10276_s1 + $0xee0] ss:$16 sps:$4 sm:$0xff]   ;;  %v7694_v29 = vld [vmem:[%s10276_s1 + $0xee8] ss:$16 sps:$4 sm:$0xff]  }
 0x1c5   : > { %4240 = vmatprep.subr.bf16.mxu0 %v7651_v6  ;;  %4346 = vmatprep.subr.bf16.mxu1 %v7654_v62  ;;  %v7702_v6 = vld [vmem:[%s10276_s1 + $0xf0c] ss:$16 sps:$4 sm:$0xff]   ;;  %v7697_v62 = vld [vmem:[%s10276_s1 + $0xf00] ss:$16 sps:$4 sm:$0xff]  }
 0x1c7   : > { %4220 = vmatmul.mubr.bf16.vlgmr.msra.gmra.mrb[0].mxu0 %v9190_v26  ;;  %4326 = vmatmul.mubr.bf16.vlgmr.msra.gmra.mrb[0].mxu1 %v9190_v26  ;;  %v7658_v26 = vld [vmem:[%s10276_s1 + $0xe28] ss:$16 sps:$4 sm:$0xff]  }
 0x1c8   : > { %4241 = vmatpush1.bf16.msra.mxu0 %v7649_v33  ;;  %4347 = vmatpush1.bf16.msra.mxu1 %v7652_v35  ;;  %v7705_v33 = vld [vmem:[%s10276_s1 + $0xf24] ss:$16 sps:$4 sm:$0xff]   ;;  %v7708_v35 = vld [vmem:[%s10276_s1 + $0xf2c] ss:$16 sps:$4 sm:$0xff]  }
 0x1c9   : > { %4242 = vmatprep.subr.bf16.mxu0 %v7657_v38  ;;  %4348 = vmatprep.subr.bf16.mxu1 %v7660_v40  ;;  %v7711_v38 = vld [vmem:[%s10276_s1 + $0xf44] ss:$16 sps:$4 sm:$0xff]   ;;  %v7714_v40 = vld [vmem:[%s10276_s1 + $0xf4c] ss:$16 sps:$4 sm:$0xff]  }
 0x1ca   : > { %4229 = vmatprep.mubr.bf16.mxu0 %v3526_v57  ;;  %4335 = vmatprep.mubr.bf16.mxu1 %v3526_v57  ;;  %v7709_v57 = vld [vmem:[%s10276_s1 + $0xf40] ss:$16 sps:$4 sm:$0xff]  }
 0x1cc   : > { %4243 = vmatpush1.bf16.msra.mxu0 %v7655_v43  ;;  %4349 = vmatpush1.bf16.msra.mxu1 %v7658_v26  ;;  %v7718_v43 = vld [vmem:[%s10276_s1 + $0xf68] ss:$16 sps:$4 sm:$0xff]   ;;  %v7723_v26 = vld [vmem:[%s10276_s1 + $0xf84] ss:$16 sps:$4 sm:$0xff]  }
 0x1cd   : > { %4244 = vmatprep.subr.bf16.mxu0 %v7663_v24  ;;  %4350 = vmatprep.subr.bf16.mxu1 %v7666_v28  ;;  %v7721_v24 = vld [vmem:[%s10276_s1 + $0xf80] ss:$16 sps:$4 sm:$0xff]   ;;  %v7724_v28 = vld [vmem:[%s10276_s1 + $0xf88] ss:$16 sps:$4 sm:$0xff]  }
 0x1cf   : > { %4230 = vmatmul.mubr.bf16.gmra.mrb[4].mxu0 %v3520_v46  ;;  %4336 = vmatmul.mubr.bf16.gmra.mrb[4].mxu1 %v3520_v46  ;;  %v7730_v46 = vld [vmem:[%s10276_s1 + $0xfa8] ss:$16 sps:$4 sm:$0xff]  }
 0x1d0   : > { %4245 = vmatpush1.bf16.msra.mxu0 %v7661_v48  ;;  %4351 = vmatpush1.bf16.msra.mxu1 %v7664_v45  ;;  %v7732_v48 = vld [vmem:[%s10276_s1 + $0xfac] ss:$16 sps:$4 sm:$0xff]   ;;  %v7727_v45 = vld [vmem:[%s10276_s1 + $0xfa0] ss:$16 sps:$4 sm:$0xff]  }
 0x1d1   : > { %4246 = vmatprep.subr.bf16.mxu0 %v7669_v49  ;;  %4352 = vmatprep.subr.bf16.mxu1 %v7672_v50  ;;  %v7735_v49 = vld [vmem:[%s10276_s1 + $0xfc4] ss:$16 sps:$4 sm:$0xff]   ;;  %v7738_v50 = vld [vmem:[%s10276_s1 + $0xfcc] ss:$16 sps:$4 sm:$0xff]  }
 0x1d2   : > { %4272 = vmatprep.mubr.bf16.mxu0 %v3514_v51  ;;  %4378 = vmatprep.mubr.bf16.mxu1 %v3514_v51  ;;  %v7733_v51 = vld [vmem:[%s10276_s1 + $0xfc0] ss:$16 sps:$4 sm:$0xff]  }
 0x1d4   : > { %4247 = vmatpush1.bf16.msra.mxu0 %v7667_v19  ;;  %4353 = vmatpush1.bf16.msra.mxu1 %v7670_v56  ;;  %v3533_v19 = vshrl.u32 %v8555_v42, 16  ;;  %v3504_v56 = vrot.slane %v591_v44, 1  ;;  %v7741_v44 = vld [vmem:[%s10276_s1 + $0xfe4] ss:$16 sps:$4 sm:$0xff]  }
 0x1d5   : > { %4248 = vmatprep.subr.bf16.mxu0 %v7675_v32  ;;  %4354 = vmatprep.subr.bf16.mxu1 %v7678_v63  ;;  %v7736_v32 = vld [vmem:[%s10276_s1 + $0xfc8] ss:$16 sps:$4 sm:$0xff]   ;;  %v3501_v63 = vrot.slane %v552_v20, 1  ;;  %v3536_v20 = vrot.slane %v603_v47, 2  ;;  %v7747_v47 = vld [vmem:[%s10276_s1 + $0x1004] ss:$16 sps:$4 sm:$0xff]  }
 0x1d8   : > { %4249 = vmatpush1.bf16.msra.mxu0 %v7673_v16  ;;  %4355 = vmatpush1.bf16.msra.mxu1 %v7676_v18  ;;  %v3502_v16 = vrot.slane %v554_v12, 2  ;;  %v3505_v18 = vrot.slane %v559_v25, 2  ;;  %v7739_v12 = vld [vmem:[%s10276_s1 + $0xfe0] ss:$16 sps:$4 sm:$0xff]   ;;  %v7742_v25 = vld [vmem:[%s10276_s1 + $0xfe8] ss:$16 sps:$4 sm:$0xff]  }
 0x1d9   : > { %4250 = vmatprep.subr.bf16.mxu0 %v7681_v0  ;;  %4356 = vmatprep.subr.bf16.mxu1 %v7684_v2  ;;  %v7744_v0 = vld [vmem:[%s10276_s1 + $0xfec] ss:$16 sps:$4 sm:$0xff]   ;;  %v3535_v2 = vrot.slane %v3533_v19, 1  ;;  %v7789_v19 = vld [vmem:[%s10276_s1 + $0x10e4] ss:$16 sps:$4 sm:$0xff]  }
 0x1dc   : > { %4251 = vmatpush1.bf16.msra.mxu0 %v7679_v5  ;;  %4357 = vmatpush1.bf16.msra.mxu1 %v7682_v60  ;;  %v3503_v5 = vor.u32 %v3502_v16, %v3501_v63  ;;  %v3506_v60 = vor.u32 %v3505_v18, %v3504_v56  ;;  %v7792_v56 = vld [vmem:[%s10276_s1 + $0x10ec] ss:$16 sps:$4 sm:$0xff]   ;;  %v7790_v63 = vld [vmem:[%s10276_s1 + $0x10e8] ss:$16 sps:$4 sm:$0xff]   ;;  %v7795_v16 = vld [vmem:[%s10276_s1 + $0x1104] ss:$16 sps:$4 sm:$0xff]  }
 0x1dd   : > { %4252 = vmatprep.subr.bf16.mxu0 %v7687_v7  ;;  %4358 = vmatprep.subr.bf16.mxu1 %v7690_v13  ;;  %v3527_v7 = vshrl.u32 %v8575_v52, 16  ;;  %v7750_v13 = vld [vmem:[%s10276_s1 + $0x100c] ss:$16 sps:$4 sm:$0xff]  }
 0x1de   : > { %v7798_v18 = vld [vmem:[%s10276_s1 + $0x110c] ss:$16 sps:$4 sm:$0xff]  }
 0x1e0   : > { %4253 = vmatpush1.bf16.msra.mxu0 %v7685_v14  ;;  %4359 = vmatpush1.bf16.msra.mxu1 %v7688_v11  ;;  %v3537_v14 = vor.u32 %v3536_v20, %v3535_v2  ;;  %v7745_v11 = vld [vmem:[%s10276_s1 + $0x1000] ss:$16 sps:$4 sm:$0xff]   ;;  %v7801_v2 = vld [vmem:[%s10276_s1 + $0x1124] ss:$16 sps:$4 sm:$0xff]   ;;  %v7804_v20 = vld [vmem:[%s10276_s1 + $0x112c] ss:$16 sps:$4 sm:$0xff]  }
 0x1e1   : > { %4254 = vmatprep.subr.bf16.mxu0 %v7693_v15  ;;  %4360 = vmatprep.subr.bf16.mxu1 %v7696_v22  ;;  %v7748_v15 = vld [vmem:[%s10276_s1 + $0x1008] ss:$16 sps:$4 sm:$0xff]   ;;  %v3507_v22 = vsel %vm3486_vm2, %v3503_v5, %v3506_v60  ;;  %v7807_v5 = vld [vmem:[%s10276_s1 + $0x1144] ss:$16 sps:$4 sm:$0xff]  }
 0x1e4   : > { %4255 = vmatpush1.bf16.msra.mxu0 %v7691_v27  ;;  %4361 = vmatpush1.bf16.msra.mxu1 %v7694_v29  ;;  %v3529_v27 = vrot.slane %v3527_v7, 1  ;;  %v3530_v29 = vrot.slane %v595_v61, 2  ;;  %v7751_v61 = vld [vmem:[%s10276_s1 + $0x1020] ss:$16 sps:$4 sm:$0xff]  }
 0x1e5   : > { %4256 = vmatprep.subr.bf16.mxu0 %v7699_v30  ;;  %4362 = vmatprep.subr.bf16.mxu1 %v7702_v6  ;;  %v7753_v30 = vld [vmem:[%s10276_s1 + $0x1024] ss:$16 sps:$4 sm:$0xff]   ;;  %v7756_v6 = vld [vmem:[%s10276_s1 + $0x102c] ss:$16 sps:$4 sm:$0xff]   ;;  %v7805_v7 = vld [vmem:[%s10276_s1 + $0x1140] ss:$16 sps:$4 sm:$0xff]  }
 0x1e8   : > { %4257 = vmatpush1.bf16.msra.mxu0 %v7697_v62  ;;  %4363 = vmatpush1.bf16.msra.mxu1 %v7700_v31  ;;  %v3538_v62 = vsel %vm3486_vm2, %v9634_v59, %v3537_v14  ;;  %v7754_v31 = vld [vmem:[%s10276_s1 + $0x1028] ss:$16 sps:$4 sm:$0xff]   ;;  %v7762_v59 = vld [vmem:[%s10276_s1 + $0x104c] ss:$16 sps:$4 sm:$0xff]  }
 0x1e9   : > { %4258 = vmatprep.subr.bf16.mxu0 %v7705_v33  ;;  %4364 = vmatprep.subr.bf16.mxu1 %v7708_v35  ;;  %v3531_v33 = vor.u32 %v3530_v29, %v3529_v27  ;;  %v7759_v35 = vld [vmem:[%s10276_s1 + $0x1044] ss:$16 sps:$4 sm:$0xff]   ;;  %v7816_v14 = vld [vmem:[%s10276_s1 + $0x116c] ss:$16 sps:$4 sm:$0xff]   ;;  %v7817_v29 = vld [vmem:[%s10276_s1 + $0x1180] ss:$16 sps:$4 sm:$0xff]  }
 0x1ea   : > { %v7822_v27 = vld [vmem:[%s10276_s1 + $0x118c] ss:$16 sps:$4 sm:$0xff]  }
 0x1ec   : > { %4259 = vmatpush1.bf16.msra.mxu0 %v7703_v36  ;;  %4365 = vmatpush1.bf16.msra.mxu1 %v7706_v37  ;;  %v4548_v36 = vrot.slane %v8199_v53, 2  ;;  %v4549_v37 = vrot.slane %v8201_v54, 2  ;;  %v7765_v53 = vld [vmem:[%s10276_s1 + $0x1064] ss:$16 sps:$4 sm:$0xff]  }
 0x1ed   : > { %4260 = vmatprep.subr.bf16.mxu0 %v7711_v38  ;;  %4366 = vmatprep.subr.bf16.mxu1 %v7714_v40  ;;  %v7757_v38 = vld [vmem:[%s10276_s1 + $0x1040] ss:$16 sps:$4 sm:$0xff]   ;;  %v7760_v40 = vld [vmem:[%s10276_s1 + $0x1048] ss:$16 sps:$4 sm:$0xff]   ;;  %v7855_v54 = vld [vmem:[%s10276_s1 + $0x1244] ss:$16 sps:$4 sm:$0xff]  }
 0x1f0   : > { %4261 = vmatpush1.bf16.msra.mxu0 %v7709_v57  ;;  %4367 = vmatpush1.bf16.msra.mxu1 %v7712_v8  ;;  %v3532_v57 = vsel %vm3486_vm2, %v3506_v60, %v3531_v33  ;;  %v7768_v8 = vld [vmem:[%s10276_s1 + $0x106c] ss:$16 sps:$4 sm:$0xff]   ;;  %v7831_v33 = vld [vmem:[%s10276_s1 + $0x11c4] ss:$16 sps:$4 sm:$0xff]  }
 0x1f1   : > { %4262 = vmatprep.subr.bf16.mxu0 %v7717_v41  ;;  %4368 = vmatprep.subr.bf16.mxu1 %v7720_v34  ;;  %v4550_v41 = vsel %vm4544_vm3, %v4548_v36, %v4549_v37  ;;  %v7763_v34 = vld [vmem:[%s10276_s1 + $0x1060] ss:$16 sps:$4 sm:$0xff]   ;;  %v7810_v60 = vld [vmem:[%s10276_s1 + $0x114c] ss:$16 sps:$4 sm:$0xff]   ;;  %v7832_v36 = vld [vmem:[%s10276_s1 + $0x11c8] ss:$16 sps:$4 sm:$0xff]  }
 0x1f4   : > { %4263 = vmatpush1.bf16.msra.mxu0 %v7715_v58  ;;  %4369 = vmatpush1.bf16.msra.mxu1 %v7718_v43  ;;  %v7766_v58 = vld [vmem:[%s10276_s1 + $0x1068] ss:$16 sps:$4 sm:$0xff]   ;;  %v7771_v43 = vld [vmem:[%s10276_s1 + $0x1084] ss:$16 sps:$4 sm:$0xff]  }
 0x1f5   : > { %4264 = vmatprep.subr.bf16.mxu0 %v7723_v26  ;;  %4370 = vmatprep.subr.bf16.mxu1 %v7726_v23  ;;  %v7774_v26 = vld [vmem:[%s10276_s1 + $0x108c] ss:$16 sps:$4 sm:$0xff]   ;;  %v7769_v23 = vld [vmem:[%s10276_s1 + $0x1080] ss:$16 sps:$4 sm:$0xff]  }
 0x1f8   : > { %4265 = vmatpush1.bf16.msra.mxu0 %v7721_v24  ;;  %4371 = vmatpush1.bf16.msra.mxu1 %v7724_v28  ;;  %v7772_v24 = vld [vmem:[%s10276_s1 + $0x1088] ss:$16 sps:$4 sm:$0xff]   ;;  %v7777_v28 = vld [vmem:[%s10276_s1 + $0x10a4] ss:$16 sps:$4 sm:$0xff]  }
 0x1f9   : > { %4266 = vmatprep.subr.bf16.mxu0 %v7729_v39  ;;  %4372 = vmatprep.subr.bf16.mxu1 %v7732_v48  ;;  %v7780_v39 = vld [vmem:[%s10276_s1 + $0x10ac] ss:$16 sps:$4 sm:$0xff]   ;;  %v7775_v48 = vld [vmem:[%s10276_s1 + $0x10a0] ss:$16 sps:$4 sm:$0xff]  }
 0x1fc   : > { %4267 = vmatpush1.bf16.msra.mxu0 %v7727_v45  ;;  %4373 = vmatpush1.bf16.msra.mxu1 %v7730_v46  ;;  %v7778_v45 = vld [vmem:[%s10276_s1 + $0x10a8] ss:$16 sps:$4 sm:$0xff]   ;;  %v7783_v46 = vld [vmem:[%s10276_s1 + $0x10c4] ss:$16 sps:$4 sm:$0xff]  }
 0x1fd   : > { %4268 = vmatprep.subr.bf16.mxu0 %v7735_v49  ;;  %4374 = vmatprep.subr.bf16.mxu1 %v7738_v50  ;;  %v7786_v49 = vld [vmem:[%s10276_s1 + $0x10cc] ss:$16 sps:$4 sm:$0xff]   ;;  %v7781_v50 = vld [vmem:[%s10276_s1 + $0x10c0] ss:$16 sps:$4 sm:$0xff]  }
 0x200   : > { %4269 = vmatpush1.bf16.msra.mxu0 %v7733_v51  ;;  %4375 = vmatpush1.bf16.msra.mxu1 %v7736_v32  ;;  %v7784_v51 = vld [vmem:[%s10276_s1 + $0x10c8] ss:$16 sps:$4 sm:$0xff]   ;;  %v7787_v32 = vld [vmem:[%s10276_s1 + $0x10e0] ss:$16 sps:$4 sm:$0xff]  }
 0x201   : > { %4270 = vmatprep.subr.bf16.mxu0 %v7741_v44  ;;  %4376 = vmatprep.subr.bf16.mxu1 %v7744_v0  ;;  %v7793_v44 = vld [vmem:[%s10276_s1 + $0x1100] ss:$16 sps:$4 sm:$0xff]   ;;  %v7796_v0 = vld [vmem:[%s10276_s1 + $0x1108] ss:$16 sps:$4 sm:$0xff]  }
 0x204   : > { %4271 = vmatpush1.bf16.msra.mxu0 %v7739_v12  ;;  %4377 = vmatpush1.bf16.msra.mxu1 %v7742_v25  ;;  %v7799_v12 = vld [vmem:[%s10276_s1 + $0x1120] ss:$16 sps:$4 sm:$0xff]   ;;  %v7802_v25 = vld [vmem:[%s10276_s1 + $0x1128] ss:$16 sps:$4 sm:$0xff]  }
 0x205   : > { %5213 = vmatprep.subr.bf16.mxu0 %v7747_v47  ;;  %5319 = vmatprep.subr.bf16.mxu1 %v7750_v13  ;;  %v7808_v47 = vld [vmem:[%s10276_s1 + $0x1148] ss:$16 sps:$4 sm:$0xff]   ;;  %v7813_v13 = vld [vmem:[%s10276_s1 + $0x1164] ss:$16 sps:$4 sm:$0xff]  }
 0x207   : > { %4273 = vmatmul.mubr.bf16.vlgmr.msra.gmra.mrb[0].mxu0 %v3507_v22  ;;  %4379 = vmatmul.mubr.bf16.vlgmr.msra.gmra.mrb[0].mxu1 %v3507_v22  ;;  %v7819_v22 = vld [vmem:[%s10276_s1 + $0x1184] ss:$16 sps:$4 sm:$0xff]  }
 0x208   : > { %5214 = vmatpush1.bf16.msra.mxu0 %v7745_v11  ;;  %5320 = vmatpush1.bf16.msra.mxu1 %v7748_v15  ;;  %v7811_v11 = vld [vmem:[%s10276_s1 + $0x1160] ss:$16 sps:$4 sm:$0xff]   ;;  %v7814_v15 = vld [vmem:[%s10276_s1 + $0x1168] ss:$16 sps:$4 sm:$0xff]  }
 0x209   : > { %5215 = vmatprep.subr.bf16.mxu0 %v7753_v30  ;;  %5321 = vmatprep.subr.bf16.mxu1 %v7756_v6  ;;  %v7820_v30 = vld [vmem:[%s10276_s1 + $0x1188] ss:$16 sps:$4 sm:$0xff]   ;;  %v7825_v6 = vld [vmem:[%s10276_s1 + $0x11a4] ss:$16 sps:$4 sm:$0xff]  }
 0x20a   : > { %4282 = vmatprep.mubr.bf16.mxu0 %v3538_v62  ;;  %4388 = vmatprep.mubr.bf16.mxu1 %v3538_v62  ;;  %v7828_v62 = vld [vmem:[%s10276_s1 + $0x11ac] ss:$16 sps:$4 sm:$0xff]  }
 0x20c   : > { %5216 = vmatpush1.bf16.msra.mxu0 %v7751_v61  ;;  %5322 = vmatpush1.bf16.msra.mxu1 %v7754_v31  ;;  %v7823_v61 = vld [vmem:[%s10276_s1 + $0x11a0] ss:$16 sps:$4 sm:$0xff]   ;;  %v7826_v31 = vld [vmem:[%s10276_s1 + $0x11a8] ss:$16 sps:$4 sm:$0xff]  }
 0x20d   : > { %5217 = vmatprep.subr.bf16.mxu0 %v7759_v35  ;;  %5323 = vmatprep.subr.bf16.mxu1 %v7762_v59  ;;  %v7834_v35 = vld [vmem:[%s10276_s1 + $0x11cc] ss:$16 sps:$4 sm:$0xff]   ;;  %v7829_v59 = vld [vmem:[%s10276_s1 + $0x11c0] ss:$16 sps:$4 sm:$0xff]  }
 0x20f   : > { %4283 = vmatmul.mubr.bf16.gmra.mrb[4].mxu0 %v3532_v57  ;;  %4389 = vmatmul.mubr.bf16.gmra.mrb[4].mxu1 %v3532_v57  ;;  %v7835_v57 = vld [vmem:[%s10276_s1 + $0x11e0] ss:$16 sps:$4 sm:$0xff]  }
 0x210   : > { %5218 = vmatpush1.bf16.msra.mxu0 %v7757_v38  ;;  %5324 = vmatpush1.bf16.msra.mxu1 %v7760_v40  ;;  %v7837_v38 = vld [vmem:[%s10276_s1 + $0x11e4] ss:$16 sps:$4 sm:$0xff]   ;;  %v7840_v40 = vld [vmem:[%s10276_s1 + $0x11ec] ss:$16 sps:$4 sm:$0xff]  }
 0x211   : > { %5219 = vmatprep.subr.bf16.mxu0 %v7765_v53  ;;  %5325 = vmatprep.subr.bf16.mxu1 %v7768_v8  ;;  %v7838_v53 = vld [vmem:[%s10276_s1 + $0x11e8] ss:$16 sps:$4 sm:$0xff]   ;;  %v4545_v8 = vrot.slane %v8229_v3, 2  ;;  %v7841_v3 = vld [vmem:[%s10276_s1 + $0x1200] ss:$16 sps:$4 sm:$0xff]  }
 0x212   : > { %5245 = vmatprep.mubr.bf16.mxu0 %v4550_v41  ;;  %5351 = vmatprep.mubr.bf16.mxu1 %v4550_v41  ;;  %v4546_v41 = vrot.slane %v8243_v10, 2  ;;  %v7844_v10 = vld [vmem:[%s10276_s1 + $0x1208] ss:$16 sps:$4 sm:$0xff]  }
 0x214   : > { %5220 = vmatpush1.bf16.msra.mxu0 %v7763_v34  ;;  %5326 = vmatpush1.bf16.msra.mxu1 %v7766_v58  ;;  %v7843_v34 = vld [vmem:[%s10276_s1 + $0x1204] ss:$16 sps:$4 sm:$0xff]   ;;  %v7846_v58 = vld [vmem:[%s10276_s1 + $0x120c] ss:$16 sps:$4 sm:$0xff]  }
 0x215   : > { %5221 = vmatprep.subr.bf16.mxu0 %v7771_v43  ;;  %5327 = vmatprep.subr.bf16.mxu1 %v7774_v26  ;;  %v4559_v43 = vrot.slane %v8359_v55, 2  ;;  %v4547_v26 = vsel %vm4544_vm3, %v4545_v8, %v4546_v41  ;;  %v7852_v55 = vld [vmem:[%s10276_s1 + $0x122c] ss:$16 sps:$4 sm:$0xff]  }
 0x216   : > { %v7918_v8 = vld [vmem:[%s10276_s1 + $0x138c] ss:$16 sps:$4 sm:$0xff]  }
 0x218   : > { %5222 = vmatpush1.bf16.msra.mxu0 %v7769_v23  ;;  %5328 = vmatpush1.bf16.msra.mxu1 %v7772_v24  ;;  %v7849_v23 = vld [vmem:[%s10276_s1 + $0x1224] ss:$16 sps:$4 sm:$0xff]   ;;  %v4560_v24 = vsel %vm4544_vm3, %v4549_v37, %v4559_v43  ;;  %v7858_v37 = vld [vmem:[%s10276_s1 + $0x124c] ss:$16 sps:$4 sm:$0xff]  }
 0x219   : > { %5223 = vmatprep.subr.bf16.mxu0 %v7777_v28  ;;  %5329 = vmatprep.subr.bf16.mxu1 %v7780_v39  ;;  %v7847_v28 = vld [vmem:[%s10276_s1 + $0x1220] ss:$16 sps:$4 sm:$0xff]   ;;  %v7850_v39 = vld [vmem:[%s10276_s1 + $0x1228] ss:$16 sps:$4 sm:$0xff]   ;;  %v7924_v43 = vld [vmem:[%s10276_s1 + $0x13ac] ss:$16 sps:$4 sm:$0xff]  }
 0x21c   : > { %5224 = vmatpush1.bf16.msra.mxu0 %v7775_v48  ;;  %5330 = vmatpush1.bf16.msra.mxu1 %v7778_v45  ;;  %v4557_v48 = vrot.slane %v8376_v4, 2  ;;  %v4554_v45 = vrot.slane %v8395_v17, 2  ;;  %v7853_v4 = vld [vmem:[%s10276_s1 + $0x1240] ss:$16 sps:$4 sm:$0xff]   ;;  %v7861_v17 = vld [vmem:[%s10276_s1 + $0x1264] ss:$16 sps:$4 sm:$0xff]  }
 0x21d   : > { %5225 = vmatprep.subr.bf16.mxu0 %v7783_v46  ;;  %5331 = vmatprep.subr.bf16.mxu1 %v7786_v49  ;;  %v4555_v46 = vrot.slane %v8402_v21, 2  ;;  %v7856_v49 = vld [vmem:[%s10276_s1 + $0x1248] ss:$16 sps:$4 sm:$0xff]   ;;  %v5441_v21 = vld [vmem:[%s10277_s2] sm:$0xf] }
 0x220   : > { %5226 = vmatpush1.bf16.msra.mxu0 %v7781_v50  ;;  %5332 = vmatpush1.bf16.msra.mxu1 %v7784_v51  ;;  %v4558_v50 = vsel %vm4544_vm3, %v4546_v41, %v4557_v48  ;;  %v7864_v51 = vld [vmem:[%s10276_s1 + $0x126c] ss:$16 sps:$4 sm:$0xff]   ;;  %v7913_v41 = vld [vmem:[%s10276_s1 + $0x1380] ss:$16 sps:$4 sm:$0xff]  }
 0x221   : > { %5227 = vmatprep.subr.bf16.mxu0 %v7789_v19  ;;  %5333 = vmatprep.subr.bf16.mxu1 %v7792_v56  ;;  %v4556_v19 = vsel %vm4544_vm3, %v4554_v45, %v4555_v46  ;;  %v7859_v56 = vld [vmem:[%s10276_s1 + $0x1260] ss:$16 sps:$4 sm:$0xff]   ;;  %v4552_v45 = vrot.slane %v8502_v9, 2 }
 0x222   : > { %v7931_v48 = vld [vmem:[%s10276_s1 + $0x13e0] ss:$16 sps:$4 sm:$0xff]  }
 0x224   : > { %5228 = vmatpush1.bf16.msra.mxu0 %v7787_v32  ;;  %5334 = vmatpush1.bf16.msra.mxu1 %v7790_v63  ;;  %v7862_v32 = vld [vmem:[%s10276_s1 + $0x1268] ss:$16 sps:$4 sm:$0xff]   ;;  %v7867_v63 = vld [vmem:[%s10276_s1 + $0x1284] ss:$16 sps:$4 sm:$0xff]  }
 0x225   : > { %5229 = vmatprep.subr.bf16.mxu0 %v7795_v16  ;;  %5335 = vmatprep.subr.bf16.mxu1 %v7798_v18  ;;  %v7870_v16 = vld [vmem:[%s10276_s1 + $0x128c] ss:$16 sps:$4 sm:$0xff]   ;;  %v7865_v18 = vld [vmem:[%s10276_s1 + $0x1280] ss:$16 sps:$4 sm:$0xff]  }
 0x228   : > { %5230 = vmatpush1.bf16.msra.mxu0 %v7793_v44  ;;  %5336 = vmatpush1.bf16.msra.mxu1 %v7796_v0  ;;  %v7868_v44 = vld [vmem:[%s10276_s1 + $0x1288] ss:$16 sps:$4 sm:$0xff]   ;;  %v7873_v0 = vld [vmem:[%s10276_s1 + $0x12a4] ss:$16 sps:$4 sm:$0xff]  }
 0x229   : > { %5231 = vmatprep.subr.bf16.mxu0 %v7801_v2  ;;  %5337 = vmatprep.subr.bf16.mxu1 %v7804_v20  ;;  %v7876_v2 = vld [vmem:[%s10276_s1 + $0x12ac] ss:$16 sps:$4 sm:$0xff]   ;;  %v7871_v20 = vld [vmem:[%s10276_s1 + $0x12a0] ss:$16 sps:$4 sm:$0xff]  }
 0x22c   : > { %5232 = vmatpush1.bf16.msra.mxu0 %v7799_v12  ;;  %5338 = vmatpush1.bf16.msra.mxu1 %v7802_v25  ;;  %v7874_v12 = vld [vmem:[%s10276_s1 + $0x12a8] ss:$16 sps:$4 sm:$0xff]   ;;  %v7879_v25 = vld [vmem:[%s10276_s1 + $0x12c4] ss:$16 sps:$4 sm:$0xff]  }
 0x22d   : > { %5233 = vmatprep.subr.bf16.mxu0 %v7807_v5  ;;  %5339 = vmatprep.subr.bf16.mxu1 %v7810_v60  ;;  %v7882_v5 = vld [vmem:[%s10276_s1 + $0x12cc] ss:$16 sps:$4 sm:$0xff]   ;;  %v7877_v60 = vld [vmem:[%s10276_s1 + $0x12c0] ss:$16 sps:$4 sm:$0xff]  }
 0x230   : > { %5234 = vmatpush1.bf16.msra.mxu0 %v7805_v7  ;;  %5340 = vmatpush1.bf16.msra.mxu1 %v7808_v47  ;;  %v7880_v7 = vld [vmem:[%s10276_s1 + $0x12c8] ss:$16 sps:$4 sm:$0xff]   ;;  %v7885_v47 = vld [vmem:[%s10276_s1 + $0x12e4] ss:$16 sps:$4 sm:$0xff]  }
 0x231   : > { %5235 = vmatprep.subr.bf16.mxu0 %v7813_v13  ;;  %5341 = vmatprep.subr.bf16.mxu1 %v7816_v14  ;;  %v7888_v13 = vld [vmem:[%s10276_s1 + $0x12ec] ss:$16 sps:$4 sm:$0xff]   ;;  %v7883_v14 = vld [vmem:[%s10276_s1 + $0x12e0] ss:$16 sps:$4 sm:$0xff]  }
 0x234   : > { %5236 = vmatpush1.bf16.msra.mxu0 %v7811_v11  ;;  %5342 = vmatpush1.bf16.msra.mxu1 %v7814_v15  ;;  %v7886_v11 = vld [vmem:[%s10276_s1 + $0x12e8] ss:$16 sps:$4 sm:$0xff]   ;;  %v7891_v15 = vld [vmem:[%s10276_s1 + $0x1304] ss:$16 sps:$4 sm:$0xff]  }
 0x235   : > { %5237 = vmatprep.subr.bf16.mxu0 %v7819_v22  ;;  %5343 = vmatprep.subr.bf16.mxu1 %v7822_v27  ;;  %v7894_v22 = vld [vmem:[%s10276_s1 + $0x130c] ss:$16 sps:$4 sm:$0xff]   ;;  %v7889_v27 = vld [vmem:[%s10276_s1 + $0x1300] ss:$16 sps:$4 sm:$0xff]  }
 0x238   : > { %5238 = vmatpush1.bf16.msra.mxu0 %v7817_v29  ;;  %5344 = vmatpush1.bf16.msra.mxu1 %v7820_v30  ;;  %v7892_v29 = vld [vmem:[%s10276_s1 + $0x1308] ss:$16 sps:$4 sm:$0xff]   ;;  %v7897_v30 = vld [vmem:[%s10276_s1 + $0x1324] ss:$16 sps:$4 sm:$0xff]  }
 0x239   : > { %5239 = vmatprep.subr.bf16.mxu0 %v7825_v6  ;;  %5345 = vmatprep.subr.bf16.mxu1 %v7828_v62  ;;  %v7900_v6 = vld [vmem:[%s10276_s1 + $0x132c] ss:$16 sps:$4 sm:$0xff]   ;;  %v7895_v62 = vld [vmem:[%s10276_s1 + $0x1320] ss:$16 sps:$4 sm:$0xff]  }
 0x23c   : > { %5240 = vmatpush1.bf16.msra.mxu0 %v7823_v61  ;;  %5346 = vmatpush1.bf16.msra.mxu1 %v7826_v31  ;;  %v7898_v61 = vld [vmem:[%s10276_s1 + $0x1328] ss:$16 sps:$4 sm:$0xff]   ;;  %v7903_v31 = vld [vmem:[%s10276_s1 + $0x1344] ss:$16 sps:$4 sm:$0xff]  }
 0x23d   : > { %5241 = vmatprep.subr.bf16.mxu0 %v7831_v33  ;;  %5347 = vmatprep.subr.bf16.mxu1 %v7834_v35  ;;  %v7906_v33 = vld [vmem:[%s10276_s1 + $0x134c] ss:$16 sps:$4 sm:$0xff]   ;;  %v7901_v35 = vld [vmem:[%s10276_s1 + $0x1340] ss:$16 sps:$4 sm:$0xff]  }
 0x240   : > { %5242 = vmatpush1.bf16.msra.mxu0 %v7829_v59  ;;  %5348 = vmatpush1.bf16.msra.mxu1 %v7832_v36  ;;  %v7904_v59 = vld [vmem:[%s10276_s1 + $0x1348] ss:$16 sps:$4 sm:$0xff]   ;;  %v7909_v36 = vld [vmem:[%s10276_s1 + $0x1364] ss:$16 sps:$4 sm:$0xff]  }
 0x241   : > { %5243 = vmatprep.subr.bf16.mxu0 %v7837_v38  ;;  %5349 = vmatprep.subr.bf16.mxu1 %v7840_v40  ;;  %v7912_v38 = vld [vmem:[%s10276_s1 + $0x136c] ss:$16 sps:$4 sm:$0xff]   ;;  %v7907_v40 = vld [vmem:[%s10276_s1 + $0x1360] ss:$16 sps:$4 sm:$0xff]  }
 0x244   : > { %5244 = vmatpush1.bf16.msra.mxu0 %v7835_v57  ;;  %5350 = vmatpush1.bf16.msra.mxu1 %v7838_v53  ;;  %v7910_v57 = vld [vmem:[%s10276_s1 + $0x1368] ss:$16 sps:$4 sm:$0xff]   ;;  %v7915_v53 = vld [vmem:[%s10276_s1 + $0x1384] ss:$16 sps:$4 sm:$0xff]  }
 0x245   : > { %5266 = vmatprep.subr.bf16.mxu0 %v7843_v34  ;;  %5372 = vmatprep.subr.bf16.mxu1 %v7846_v58  ;;  %v7916_v34 = vld [vmem:[%s10276_s1 + $0x1388] ss:$16 sps:$4 sm:$0xff]   ;;  %v7921_v58 = vld [vmem:[%s10276_s1 + $0x13a4] ss:$16 sps:$4 sm:$0xff]  }
 0x247   : > { %5246 = vmatmul.mubr.bf16.vlgmr.msra.gmra.mrb[0].mxu0 %v4547_v26  ;;  %5352 = vmatmul.mubr.bf16.vlgmr.msra.gmra.mrb[0].mxu1 %v4547_v26  ;;  %v7927_v26 = vld [vmem:[%s10276_s1 + $0x13c4] ss:$16 sps:$4 sm:$0xff]  }
 0x248   : > { %5267 = vmatpush1.bf16.msra.mxu0 %v7841_v3  ;;  %5373 = vmatpush1.bf16.msra.mxu1 %v7844_v10  ;;  %v7919_v3 = vld [vmem:[%s10276_s1 + $0x13a0] ss:$16 sps:$4 sm:$0xff]   ;;  %v7922_v10 = vld [vmem:[%s10276_s1 + $0x13a8] ss:$16 sps:$4 sm:$0xff]  }
 0x249   : > { %5268 = vmatprep.subr.bf16.mxu0 %v7849_v23  ;;  %5374 = vmatprep.subr.bf16.mxu1 %v7852_v55  ;;  %v7930_v23 = vld [vmem:[%s10276_s1 + $0x13cc] ss:$16 sps:$4 sm:$0xff]   ;;  %v7925_v55 = vld [vmem:[%s10276_s1 + $0x13c0] ss:$16 sps:$4 sm:$0xff]  }
 0x24a   : > { %5255 = vmatprep.mubr.bf16.mxu0 %v4560_v24  ;;  %5361 = vmatprep.mubr.bf16.mxu1 %v4560_v24  ;;  %v7928_v24 = vld [vmem:[%s10276_s1 + $0x13c8] ss:$16 sps:$4 sm:$0xff]  }
 0x24c   : > { %5269 = vmatpush1.bf16.msra.mxu0 %v7847_v28  ;;  %5375 = vmatpush1.bf16.msra.mxu1 %v7850_v39  ;;  %v7933_v28 = vld [vmem:[%s10276_s1 + $0x13e4] ss:$16 sps:$4 sm:$0xff]   ;;  %v7936_v39 = vld [vmem:[%s10276_s1 + $0x13ec] ss:$16 sps:$4 sm:$0xff]  }
 0x24d   : > { %5270 = vmatprep.subr.bf16.mxu0 %v7855_v54  ;;  %5376 = vmatprep.subr.bf16.mxu1 %v7858_v37  ;;  %v7934_v54 = vld [vmem:[%s10276_s1 + $0x13e8] ss:$16 sps:$4 sm:$0xff]   ;;  %v4551_v37 = vrot.slane %v8490_v1, 2  ;;  %v4561_v1 = vrot.slane %v8575_v52, 2 }
 0x24f   : > { %5256 = vmatmul.mubr.bf16.gmra.mrb[4].mxu0 %v4558_v50  ;;  %5362 = vmatmul.mubr.bf16.gmra.mrb[4].mxu1 %v4558_v50  ;;  %v4562_v9 = vsel %vm4544_vm3, %v4552_v45, %v4561_v1 }
 0x250   : > { %5271 = vmatpush1.bf16.msra.mxu0 %v7853_v4  ;;  %5377 = vmatpush1.bf16.msra.mxu1 %v7856_v49  ;;  %v4563_v4 = vrot.slane %v8555_v42, 2  ;;  %v4553_v49 = vsel %vm4544_vm3, %v4551_v37, %v4552_v45 }
 0x251   : > { %5272 = vmatprep.subr.bf16.mxu0 %v7861_v17  ;;  %5378 = vmatprep.subr.bf16.mxu1 %v7864_v51  ;;  %v5443_v17 = vlaneseq }
 0x252   : > { %5298 = vmatprep.mubr.bf16.mxu0 %v4556_v19  ;;  %5404 = vmatprep.mubr.bf16.mxu1 %v4556_v19  ;;  %v4564_v50 = vsel %vm4544_vm3, %v4555_v46, %v4563_v4 }
 0x253   : > { %v5444_v42 = vshrl.u32 %v5443_v17, 7 }
 0x254   : > { %5273 = vmatpush1.bf16.msra.mxu0 %v7859_v56  ;;  %5379 = vmatpush1.bf16.msra.mxu1 %v7862_v32  ;;  %v5479_v32 = vld [vmem:[%s10278_s3] sm:$0xf] }
 0x255   : > { %5274 = vmatprep.subr.bf16.mxu0 %v7867_v63  ;;  %5380 = vmatprep.subr.bf16.mxu1 %v7870_v16  ;;  %v5445_v51 = vsub.s32 0, %v5444_v42  ;;  %v5453_v19 = vsub.s32 2, %v5444_v42  ;;  %v5449_v56 = vsub.s32 1, %v5444_v42  ;;  %v5457_v46 = vsub.s32 3, %v5444_v42 }
 0x257   : > { %v5446_v63 = vrot.slane %v5441_v21, %v5445_v51  ;;  %v5454_v52 = vrot.slane %v5441_v21, %v5453_v19  ;;  %v5450_v16 = vrot.slane %v5441_v21, %v5449_v56 }
 0x258   : > { %5275 = vmatpush1.bf16.msra.mxu0 %v7865_v18  ;;  %5381 = vmatpush1.bf16.msra.mxu1 %v7868_v44  ;;  %v5458_v18 = vrot.slane %v5441_v21, %v5457_v46  ;;  %v5484_v44 = vrot.slane %v5479_v32, %v5445_v51 }
 0x259   : > { %5276 = vmatprep.subr.bf16.mxu0 %v7873_v0  ;;  %5382 = vmatprep.subr.bf16.mxu1 %v7876_v2  ;;  %v5492_v0 = vrot.slane %v5479_v32, %v5453_v19 }
 0x25c   : > { %5277 = vmatpush1.bf16.msra.mxu0 %v7871_v20  ;;  %5383 = vmatpush1.bf16.msra.mxu1 %v7874_v12  ;;  %v5488_v12 = vrot.slane %v5479_v32, %v5449_v56 }
 0x25d   : > { %5278 = vmatprep.subr.bf16.mxu0 %v7879_v25  ;;  %5384 = vmatprep.subr.bf16.mxu1 %v7882_v5  ;;  %v10238_v25 = vrot.slane %v5479_v32, %v5457_v46 }
 0x260   : > { %5279 = vmatpush1.bf16.msra.mxu0 %v7877_v60  ;;  %5385 = vmatpush1.bf16.msra.mxu1 %v7880_v7 }
 0x261   : > { %5280 = vmatprep.subr.bf16.mxu0 %v7885_v47  ;;  %5386 = vmatprep.subr.bf16.mxu1 %v7888_v13 }
 0x264   : > { %5281 = vmatpush1.bf16.msra.mxu0 %v7883_v14  ;;  %5387 = vmatpush1.bf16.msra.mxu1 %v7886_v11 }
 0x265   : > { %5282 = vmatprep.subr.bf16.mxu0 %v7891_v15  ;;  %5388 = vmatprep.subr.bf16.mxu1 %v7894_v22 }
 0x268   : > { %5283 = vmatpush1.bf16.msra.mxu0 %v7889_v27  ;;  %5389 = vmatpush1.bf16.msra.mxu1 %v7892_v29 }
 0x269   : > { %5284 = vmatprep.subr.bf16.mxu0 %v7897_v30  ;;  %5390 = vmatprep.subr.bf16.mxu1 %v7900_v6 }
 0x26c   : > { %5285 = vmatpush1.bf16.msra.mxu0 %v7895_v62  ;;  %5391 = vmatpush1.bf16.msra.mxu1 %v7898_v61 }
 0x26d   : > { %5286 = vmatprep.subr.bf16.mxu0 %v7903_v31  ;;  %5392 = vmatprep.subr.bf16.mxu1 %v7906_v33 }
 0x270   : > { %5287 = vmatpush1.bf16.msra.mxu0 %v7901_v35  ;;  %5393 = vmatpush1.bf16.msra.mxu1 %v7904_v59 }
 0x271   : > { %5288 = vmatprep.subr.bf16.mxu0 %v7909_v36  ;;  %5394 = vmatprep.subr.bf16.mxu1 %v7912_v38 }
 0x274   : > { %5289 = vmatpush1.bf16.msra.mxu0 %v7907_v40  ;;  %5395 = vmatpush1.bf16.msra.mxu1 %v7910_v57 }
 0x275   : > { %5290 = vmatprep.subr.bf16.mxu0 %v7915_v53  ;;  %5396 = vmatprep.subr.bf16.mxu1 %v7918_v8 }
 0x278   : > { %5291 = vmatpush1.bf16.msra.mxu0 %v7913_v41  ;;  %5397 = vmatpush1.bf16.msra.mxu1 %v7916_v34 }
 0x279   : > { %5292 = vmatprep.subr.bf16.mxu0 %v7921_v58  ;;  %5398 = vmatprep.subr.bf16.mxu1 %v7924_v43 }
 0x27c   : > { %5293 = vmatpush1.bf16.msra.mxu0 %v7919_v3  ;;  %5399 = vmatpush1.bf16.msra.mxu1 %v7922_v10 }
 0x27d   : > { %5294 = vmatprep.subr.bf16.mxu0 %v7927_v26  ;;  %5400 = vmatprep.subr.bf16.mxu1 %v7930_v23 }
 0x280   : > { %5295 = vmatpush1.bf16.msra.mxu0 %v7925_v55  ;;  %5401 = vmatpush1.bf16.msra.mxu1 %v7928_v24 }
 0x281   : > { %5296 = vmatprep.subr.bf16.mxu0 %v7933_v28  ;;  %5402 = vmatprep.subr.bf16.mxu1 %v7936_v39 }
 0x284   : > { %5297 = vmatpush1.bf16.msra.mxu0 %v7931_v48  ;;  %5403 = vmatpush1.bf16.msra.mxu1 %v7934_v54 }
 0x287   : > { %5299 = vmatmul.mubr.bf16.vlgmr.msra.gmra.mrb[0].mxu0 %v4553_v49  ;;  %5405 = vmatmul.mubr.bf16.vlgmr.msra.gmra.mrb[0].mxu1 %v4553_v49 }
 0x288   : > { %5308 = vmatprep.mubr.bf16.mxu0 %v4564_v50  ;;  %5414 = vmatprep.mubr.bf16.mxu1 %v4564_v50 }
 0x28f   : > { %5309 = vmatmul.mubr.bf16.gmra.mrb[4].mxu0 %v4562_v9  ;;  %5415 = vmatmul.mubr.bf16.gmra.mrb[4].mxu1 %v4562_v9 }
 0x35a   : > { %v5300_v2 = vpop.f32.mrb[0].mxu0  ;;  %v5406_v20 = vpop.f32.mrb[0].mxu1 }
 0x35b   : > { %v5463_v5 = vmul.f32 %v5446_v63, %v5300_v2  ;;  %v5465_v60 = vmul.f32 %v5454_v52, %v5406_v20  ;;  %v5302_v7 = vpop.f32.mrb[1].mxu0  ;;  %v5408_v47 = vpop.f32.mrb[1].mxu1 }
 0x35c   : > { %v5464_v13 = vmul.f32 %v5450_v16, %v5302_v7  ;;  %v5466_v14 = vmul.f32 %v5458_v18, %v5408_v47  ;;  %v5304_v11 = vpop.f32.mrb[2].mxu0  ;;  %v5410_v15 = vpop.f32.mrb[2].mxu1 }
 0x35d   : > { %v5501_v22 = vadd.f32 %v5484_v44, %v5463_v5  ;;  %v5503_v27 = vadd.f32 %v5492_v0, %v5465_v60  ;;  %v5467_v29 = vmul.f32 %v5446_v63, %v5304_v11  ;;  %v5469_v30 = vmul.f32 %v5454_v52, %v5410_v15  ;;  %v5306_v6 = vpop.f32.mrb[3].mxu0  ;;  %v5412_v62 = vpop.f32.mrb[3].mxu1 }
 0x35e   : > { %v5502_v61 = vadd.f32 %v5488_v12, %v5464_v13  ;;  %v5504_v31 = vadd.f32 %v10238_v25, %v5466_v14  ;;  %v5468_v33 = vmul.f32 %v5450_v16, %v5306_v6  ;;  %v5470_v35 = vmul.f32 %v5458_v18, %v5412_v62 }
 0x35f   : > { %7937 = vtanh.f32 %v5501_v22  ;;  %v5505_v59 = vadd.f32 %v5484_v44, %v5467_v29  ;;  %v5507_v36 = vadd.f32 %v5492_v0, %v5469_v30 }
 0x360   : > { %7939 = vtanh.f32 %v5503_v27  ;;  %v5506_v38 = vadd.f32 %v5488_v12, %v5468_v33  ;;  %v5508_v40 = vadd.f32 %v10238_v25, %v5470_v35 }
 0x361   : > { %7941 = vtanh.f32 %v5502_v61 }
 0x362   : > { %7943 = vtanh.f32 %v5504_v31  ;;  %v5310_v57 = vpop.f32.mrb[4].mxu0  ;;  %v5416_v53 = vpop.f32.mrb[4].mxu1 }
 0x363   : > { %7945 = vtanh.f32 %v5505_v59  ;;  %v5471_v8 = vmul.f32 %v5446_v63, %v5310_v57  ;;  %v5473_v41 = vmul.f32 %v5454_v52, %v5416_v53  ;;  %v5312_v34 = vpop.f32.mrb[5].mxu0  ;;  %v5418_v58 = vpop.f32.mrb[5].mxu1 }
 0x364   : > { %7947 = vtanh.f32 %v5507_v36  ;;  %v5472_v43 = vmul.f32 %v5450_v16, %v5312_v34  ;;  %v5474_v3 = vmul.f32 %v5458_v18, %v5418_v58  ;;  %v5314_v10 = vpop.f32.mrb[6].mxu0  ;;  %v5420_v26 = vpop.f32.mrb[6].mxu1 }
 0x365   : > { %7949 = vtanh.f32 %v5506_v38  ;;  %v5509_v23 = vadd.f32 %v5484_v44, %v5471_v8  ;;  %v5511_v55 = vadd.f32 %v5492_v0, %v5473_v41  ;;  %v5475_v24 = vmul.f32 %v5446_v63, %v5314_v10  ;;  %v5316_v28 = vpop.f32.mrb[7].mxu0  ;;  %v5422_v39 = vpop.f32.mrb[7].mxu1 }
 0x366   : > { %7951 = vtanh.f32 %v5508_v40  ;;  %v5510_v48 = vadd.f32 %v5488_v12, %v5472_v43  ;;  %v5512_v54 = vadd.f32 %v10238_v25, %v5474_v3  ;;  %v5477_v37 = vmul.f32 %v5454_v52, %v5420_v26 }
 0x367   : > { %7953 = vtanh.f32 %v5509_v23  ;;  %v5513_v45 = vadd.f32 %v5484_v44, %v5475_v24  ;;  %v5476_v4 = vmul.f32 %v5450_v16, %v5316_v28  ;;  %v5478_v49 = vmul.f32 %v5458_v18, %v5422_v39 }
 0x368   : > { %7955 = vtanh.f32 %v5511_v55  ;;  %v5515_v50 = vadd.f32 %v5492_v0, %v5477_v37 }
 0x369   : > { %v7938_v1 = vpop.eup %7937  ;;  %7957 = vtanh.f32 %v5510_v48  ;;  %v5514_v9 = vadd.f32 %v5488_v12, %v5476_v4  ;;  %v5516_v42 = vadd.f32 %v10238_v25, %v5478_v49 }
 0x36a   : > { %v7940_v17 = vpop.eup %7939  ;;  %5533 = vst [vmem:[%s10247_s15] sm:$0xff] %v7938_v1  ;;  %7959 = vtanh.f32 %v5512_v54 }
 0x36b   : > { %v7942_v51 = vpop.eup %7941  ;;  %5535 = vst [vmem:[%s10247_s15 + $0x10] sm:$0xff] %v7940_v17  ;;  %7961 = vtanh.f32 %v5513_v45 }
 0x36c   : > { %v7944_v19 = vpop.eup %7943  ;;  %5534 = vst [vmem:[%s10247_s15 + $0x8] sm:$0xff] %v7942_v51  ;;  %7963 = vtanh.f32 %v5515_v50 }
 0x36d   : > { %v7946_v21 = vpop.eup %7945  ;;  %5536 = vst [vmem:[%s10247_s15 + $0x18] sm:$0xff] %v7944_v19  ;;  %7965 = vtanh.f32 %v5514_v9 }
 0x36e   : > { %v7948_v56 = vpop.eup %7947  ;;  %5537 = vst [vmem:[%s10247_s15 + $0x20] sm:$0xff] %v7946_v21  ;;  %7967 = vtanh.f32 %v5516_v42 }
 0x36f   : > { %v7950_v46 = vpop.eup %7949  ;;  %5539 = vst [vmem:[%s10247_s15 + $0x30] sm:$0xff] %v7948_v56 }
 0x370   : > { %v7952_v32 = vpop.eup %7951  ;;  %5538 = vst [vmem:[%s10247_s15 + $0x28] sm:$0xff] %v7950_v46 }
 0x371   : > { %v7954_v63 = vpop.eup %7953  ;;  %5540 = vst [vmem:[%s10247_s15 + $0x38] sm:$0xff] %v7952_v32 }
 0x372   : > { %v7956_v52 = vpop.eup %7955  ;;  %5541 = vst [vmem:[%s10247_s15 + $0x40] sm:$0xff] %v7954_v63 }
 0x373   : > { %v7958_v16 = vpop.eup %7957  ;;  %5543 = vst [vmem:[%s10247_s15 + $0x50] sm:$0xff] %v7956_v52 }
 0x374   : > { %v7960_v18 = vpop.eup %7959  ;;  %5542 = vst [vmem:[%s10247_s15 + $0x48] sm:$0xff] %v7958_v16 }
 0x375   : > { %v7962_v44 = vpop.eup %7961  ;;  %5544 = vst [vmem:[%s10247_s15 + $0x58] sm:$0xff] %v7960_v18 }
 0x376   : > { %v7964_v0 = vpop.eup %7963  ;;  %5545 = vst [vmem:[%s10247_s15 + $0x60] sm:$0xff] %v7962_v44 }
 0x377   : > { %v7966_v2 = vpop.eup %7965  ;;  %5547 = vst [vmem:[%s10247_s15 + $0x70] sm:$0xff] %v7964_v0 }
 0x378   : > { %v7968_v20 = vpop.eup %7967  ;;  %5546 = vst [vmem:[%s10247_s15 + $0x68] sm:$0xff] %v7966_v2 }
 0x379   : > { %5548 = vst [vmem:[%s10247_s15 + $0x78] sm:$0xff] %v7968_v20 }
 0x37a PF: > { %s14_s17 = sadd.s32 1, %s7991_s17   ;;  %s10280_s15 = smov %s7987_s16 }
 0x37b   : > { %p11_p5 = scmp.ge.s32.totalorder %s14_s17, 4   ;;  %s10281_s16 = smov %s10283_s18 }
 0x37d   :  { %13 = sbr.rel (!%p11_p5) target bundleno = 2 (0x2), region = 70 }

// kernel: postnet_forward.6
= control target key start
LH: loop header
LB: loop body
LE: loop exit
PB: predicated region body
PF: predicated region fallthrough
CT: control target
= control target key end

     0   :  { %9 = vsyncpa [#allocation3], 0  ;;  %s8144_s0 = inlined_call_operand.vmem [shape: f32[2,1,36,512], index: 0, kind: input, shape index: {}]   ;;  %s8145_s1 = inlined_call_operand.hbm [shape: bf16[5,512,512], index: 1, kind: input, shape index: {}]   ;;  %s8146_s2 = inlined_call_operand.hbm [shape: f32[1,512], index: 2, kind: input, shape index: {}]   ;;  %s8147_s3 = inlined_call_operand.hbm [shape: f32[1,512], index: 3, kind: input, shape index: {}]   ;;  %s8148_s4 = inlined_call_operand.vmem [shape: f32[2,32,512], index: 4, kind: output, shape index: {}]  }
   0x1   :  { %10 = vsyncpa [#allocation5], 0  ;;  %s7713_s15 = smov 0   ;;  %s7715_s16 = smov 0  }
   0x2   :  { %s7717_s17 = smov 0  }
   0x3 LB: > { %s7683_s18 = smov [#allocation4]   ;;  %s5716_s20 = sadd.s32 4294967295, %s7681_s17   ;;  %s7681_s17 = sphi %s7717_s17, %s16_s17   ;;  %s7677_s16 = sphi %s7715_s16, %s8161_s16   ;;  %s7673_s15 = sphi %s7713_s15, %s8160_s15  }
   0x4   : > { %s178_s19 = sshll.u32 %s7683_s18, 4  ;;  %p5718_p0 = scmp.ge.s32.totalorder %s7681_s17, 1  ;;  %s179_s19 = int_to_ptr.vmem [resolvable:$true] %s178_s19 }
   0x5   : > { %p152_p1 = scmp.lt.s32.totalorder %s7681_s17, 3  ;;  %p7731_p2 = scmp.eq.s32.totalorder %s5716_s20, 0 }
   0x6   : > { %s28_s23 = sadd.s32 1, %s7677_s16  ;;  %s7684_s26 = smov [#allocation2]  }
   0x7   : > { %s8152_s21 = scalar_select %p7731_p2, 1, 0 }
   0x8   : > { %p7735_p3 = pnand %p5718_p0, %p152_p1  ;;  %p7748_p6 = scmp.ge.s32.totalorder %s28_s23, 2 }
   0x9   : > { %s164_s27 = sshll.u32 %s7684_s26, 4  ;;  %s7567_s30 = scalar_lea.hbm %s8146_s2, 64  ;;  %s7752_s27 = int_to_ptr.vmem [resolvable:$true] %s164_s27 }
   0xa   : > { %s8153_s22 = scalar_select %p7735_p3, 1, 0 }
   0xb   : > { %p6530_p4 = pneg %p7735_p3  ;;  %p7568_p7 = scmp.ne.s32.totalorder %s8146_s2, %s7567_s30 }
   0xc   : > { %s8155_s25 = scalar_select %p7748_p6, 1, 0 }
   0xd   : > { %p7744_p5 = pnand %p7731_p2, %p6530_p4  ;;  %p7574_p11 = scmp.lt.u32.totalorder %s7567_s30, %s8146_s2 }
   0xf   : > { %p7762_p8 = pneg %p7744_p5 }
  0x11   : > { %p7570_p9 = pnand %p7762_p8, %p7568_p7 }
  0x13   : > { %p7571_p10 = pneg %p7570_p9 }
  0x15   : > { %p7576_p12 = pnand %p7574_p11, %p7571_p10 }
  0x17   : > { %7579 = shalt.err (!%p7576_p12)
}
  0x18   : > { %s7580_s10 = scalar_lea.vmem %s179_s19, 64  ;;  %p7588_p4 = scmp.lt.s32.totalorder %s179_s19, %s179_s19 }
  0x19   : > { %p7581_p13 = scmp.ne.s32.totalorder %s179_s19, %s7580_s10  ;;  %p7589_p2 = scmp.lt.s32.totalorder %s7580_s10, %s7580_s10 }
  0x1b   : > { %p7583_p0 = pnand %p7581_p13, %p7762_p8  ;;  %p7590_p3 = por %p7589_p2, %p7588_p4 }
  0x1d   : > { %p7584_p1 = pneg %p7583_p0 }
  0x1f   : > { %p7591_p6 = pnand %p7590_p3, %p7584_p1 }
  0x21   : > { %7594 = shalt.err (!%p7591_p6)
}
  0x22   : > { %6536 = dma.hbm_to_vmem [thread:$0]  (!%p7744_p5), %s8146_s2, 64, %s179_s19, [#allocation5]  }
  0x23   : > { %p8157_p7 = scmp.ne.s32.totalorder %s8155_s25, 0  ;;  %s7595_s18 = scalar_lea.hbm %s8145_s1, 81920 }
  0x24   : > { %p7596_p2 = scmp.ne.s32.totalorder %s8145_s1, %s7595_s18  ;;  %p7602_p9 = scmp.lt.u32.totalorder %s7595_s18, %s8145_s1 }
  0x25   : > { %s8163_s23 = smov (%p8157_p7, %s28_s23), 0 }
  0x26   : > { %p7598_p3 = pnand %p7596_p2, %p7762_p8 }
  0x28   : > { %p7599_p6 = pneg %p7598_p3 }
  0x2a   : > { %p7604_p10 = pnand %p7602_p9, %p7599_p6 }
  0x2c   : > { %7607 = shalt.err (!%p7604_p10)
}
  0x2d   : > { %s7608_s19 = scalar_lea.vmem %s7752_s27, 81920  ;;  %p7616_p0 = scmp.lt.s32.totalorder %s7752_s27, %s7752_s27 }
  0x2e   : > { %p7609_p11 = scmp.ne.s32.totalorder %s7752_s27, %s7608_s19  ;;  %p7617_p1 = scmp.lt.s32.totalorder %s7608_s19, %s7608_s19 }
  0x30   : > { %p7611_p12 = pnand %p7609_p11, %p7762_p8  ;;  %p7618_p4 = por %p7617_p1, %p7616_p0 }
  0x32   : > { %p7612_p13 = pneg %p7611_p12 }
  0x34   : > { %p7619_p7 = pnand %p7618_p4, %p7612_p13 }
  0x36   : > { %7622 = shalt.err (!%p7619_p7)
}
  0x37   : > { %s7685_s25 = smov 256   ;;  %s7686_s30 = smov 16  }
  0x38   : > { %6533 = dma.hbm_to_vmem [thread:$0]  (!%p7744_p5), %s8145_s1, 81920, %s7752_s27, [#allocation3], %s7685_s25, %s7685_s25, %s7686_s30  }
  0x39   : > { %s7687_s8 = smov [#allocation6]   ;;  %s7623_s12 = scalar_lea.hbm %s8147_s3, 64 }
  0x3a   : > { %s189_s9 = sshll.u32 %s7687_s8, 4  ;;  %p7624_p2 = scmp.ne.s32.totalorder %s8147_s3, %s7623_s12  ;;  %s190_s9 = int_to_ptr.vmem [resolvable:$true] %s189_s9 }
  0x3b   : > { %p7630_p9 = scmp.lt.u32.totalorder %s7623_s12, %s8147_s3 }
  0x3c   : > { %p7626_p3 = pnand %p7624_p2, %p7762_p8 }
  0x3e   : > { %p7627_p6 = pneg %p7626_p3 }
  0x40   : > { %p7632_p10 = pnand %p7630_p9, %p7627_p6 }
  0x42   : > { %7635 = shalt.err (!%p7632_p10)
}
  0x43   : > { %s7636_s27 = scalar_lea.vmem %s190_s9, 64  ;;  %p7644_p0 = scmp.lt.s32.totalorder %s190_s9, %s190_s9 }
  0x44   : > { %p7637_p11 = scmp.ne.s32.totalorder %s190_s9, %s7636_s27  ;;  %p7645_p1 = scmp.lt.s32.totalorder %s7636_s27, %s7636_s27 }
  0x46   : > { %p7639_p12 = pnand %p7637_p11, %p7762_p8  ;;  %p7646_p4 = por %p7645_p1, %p7644_p0 }
  0x48   : > { %p7640_p13 = pneg %p7639_p12 }
  0x4a   : > { %p7647_p7 = pnand %p7646_p4, %p7640_p13 }
  0x4c   : > { %7650 = shalt.err (!%p7647_p7)
}
  0x4d   : > { %6539 = dma.hbm_to_vmem [thread:$0]  (!%p7744_p5), %s8147_s3, 64, %s190_s9, [#allocation5]  }
  0x4e   : > { %p8158_p2 = scmp.ne.s32.totalorder %s8153_s22, 0 }
  0x4f   : > { %p8159_p3 = scmp.ne.s32.totalorder (!%p8158_p2), %s8152_s21, 0 }
  0x50   : > { %214 = sbr.rel (%p8158_p2) target bundleno = 974 (0x3ce), region = 36 }
  0x57   : > { %7664 = dma.done.wait (%p8159_p3), [#allocation3], 81920  }
  0x58   : > { %7666 = vsyncadd (%p8159_p3), [#allocation3], 4294885376 }
  0x59   : > { %7668 = dma.done.wait (%p8159_p3), [#allocation5], 128  }
  0x5a   : > { %7670 = vsyncadd (%p8159_p3), [#allocation5], 4294967168  ;;  %v6575_v0 = vld [vmem:[#allocation2 + $0x404] ss:$16 sps:$4 sm:$0xff]   ;;  %v6577_v1 = vld [vmem:[#allocation2 + $0x40c] ss:$16 sps:$4 sm:$0xff]  }
  0x5b   : > { %1295 = vmatprep.subr.bf16.mxu0 %v6575_v0  ;;  %v6579_v2 = vld [vmem:[#allocation2 + $0x400] ss:$16 sps:$4 sm:$0xff]   ;;  %v6580_v3 = vld [vmem:[#allocation2 + $0x408] ss:$16 sps:$4 sm:$0xff]   ;;  %1401 = vmatprep.subr.bf16.mxu1 %v6577_v1  ;;  %v6581_v4 = vld [vmem:[#allocation2 + $0x424] ss:$16 sps:$4 sm:$0xff]  }
  0x5c   : > { %1296 = vmatpush1.bf16.msra.mxu0 %v6579_v2  ;;  %1402 = vmatpush1.bf16.msra.mxu1 %v6580_v3  ;;  %v6583_v5 = vld [vmem:[#allocation2 + $0x42c] ss:$16 sps:$4 sm:$0xff]   ;;  %v6585_v6 = vld [vmem:[#allocation2 + $0x420] ss:$16 sps:$4 sm:$0xff]   ;;  %v6586_v7 = vld [vmem:[#allocation2 + $0x428] ss:$16 sps:$4 sm:$0xff]  }
  0x5d   : > { %1297 = vmatprep.subr.bf16.mxu0 %v6581_v4  ;;  %1403 = vmatprep.subr.bf16.mxu1 %v6583_v5  ;;  %v6587_v8 = vld [vmem:[#allocation2 + $0x444] ss:$16 sps:$4 sm:$0xff]   ;;  %v6589_v9 = vld [vmem:[#allocation2 + $0x44c] ss:$16 sps:$4 sm:$0xff]   ;;  %v6591_v10 = vld [vmem:[#allocation2 + $0x440] ss:$16 sps:$4 sm:$0xff]  }
  0x5e   : > { %v6592_v11 = vld [vmem:[#allocation2 + $0x448] ss:$16 sps:$4 sm:$0xff]   ;;  %v6593_v12 = vld [vmem:[#allocation2 + $0x464] ss:$16 sps:$4 sm:$0xff]   ;;  %v6595_v13 = vld [vmem:[#allocation2 + $0x46c] ss:$16 sps:$4 sm:$0xff]  }
  0x5f   : > { %v6597_v14 = vld [vmem:[#allocation2 + $0x460] ss:$16 sps:$4 sm:$0xff]   ;;  %v6598_v15 = vld [vmem:[#allocation2 + $0x468] ss:$16 sps:$4 sm:$0xff]   ;;  %v6599_v16 = vld [vmem:[#allocation2 + $0x484] ss:$16 sps:$4 sm:$0xff]  }
  0x60   : > { %1298 = vmatpush1.bf16.msra.mxu0 %v6585_v6  ;;  %1404 = vmatpush1.bf16.msra.mxu1 %v6586_v7  ;;  %v6601_v17 = vld [vmem:[#allocation2 + $0x48c] ss:$16 sps:$4 sm:$0xff]   ;;  %v6603_v18 = vld [vmem:[#allocation2 + $0x480] ss:$16 sps:$4 sm:$0xff]   ;;  %v6604_v19 = vld [vmem:[#allocation2 + $0x488] ss:$16 sps:$4 sm:$0xff]  }
  0x61   : > { %1299 = vmatprep.subr.bf16.mxu0 %v6587_v8  ;;  %1405 = vmatprep.subr.bf16.mxu1 %v6589_v9  ;;  %v6605_v20 = vld [vmem:[#allocation2 + $0x4a4] ss:$16 sps:$4 sm:$0xff]   ;;  %v6607_v21 = vld [vmem:[#allocation2 + $0x4ac] ss:$16 sps:$4 sm:$0xff]   ;;  %v6609_v22 = vld [vmem:[#allocation2 + $0x4a0] ss:$16 sps:$4 sm:$0xff]  }
  0x62   : > { %v6610_v23 = vld [vmem:[#allocation2 + $0x4a8] ss:$16 sps:$4 sm:$0xff]   ;;  %v6611_v24 = vld [vmem:[#allocation2 + $0x4c4] ss:$16 sps:$4 sm:$0xff]   ;;  %v6613_v25 = vld [vmem:[#allocation2 + $0x4cc] ss:$16 sps:$4 sm:$0xff]  }
  0x63   : > { %v6615_v26 = vld [vmem:[#allocation2 + $0x4c0] ss:$16 sps:$4 sm:$0xff]   ;;  %v6616_v27 = vld [vmem:[#allocation2 + $0x4c8] ss:$16 sps:$4 sm:$0xff]   ;;  %v6617_v28 = vld [vmem:[#allocation2 + $0x4e4] ss:$16 sps:$4 sm:$0xff]  }
  0x64   : > { %1300 = vmatpush1.bf16.msra.mxu0 %v6591_v10  ;;  %1406 = vmatpush1.bf16.msra.mxu1 %v6592_v11  ;;  %v6619_v29 = vld [vmem:[#allocation2 + $0x4ec] ss:$16 sps:$4 sm:$0xff]   ;;  %v6621_v30 = vld [vmem:[#allocation2 + $0x4e0] ss:$16 sps:$4 sm:$0xff]   ;;  %p257_p5 = scmp.lt.s32.totalorder %s7673_s15, 1  ;;  %vm2500_vm1 = vcmask 1046528  }
  0x65   : > { %1301 = vmatprep.subr.bf16.mxu0 %v6593_v12  ;;  %1407 = vmatprep.subr.bf16.mxu1 %v6595_v13  ;;  %v6622_v31 = vld [vmem:[#allocation2 + $0x4e8] ss:$16 sps:$4 sm:$0xff]   ;;  %v6623_v32 = vld [vmem:[#allocation2 + $0x504] ss:$16 sps:$4 sm:$0xff]   ;;  %v6625_v33 = vld [vmem:[#allocation2 + $0x50c] ss:$16 sps:$4 sm:$0xff]  }
  0x66   : > { %v6627_v34 = vld [vmem:[#allocation2 + $0x500] ss:$16 sps:$4 sm:$0xff]   ;;  %v6628_v35 = vld [vmem:[#allocation2 + $0x508] ss:$16 sps:$4 sm:$0xff]   ;;  %s8165_s15 = smov (!%p257_p5, %s7673_s15), 1  ;;  %vm4584_vm3 = vcmask 1045504  }
  0x67   : > { %v6629_v36 = vld [vmem:[#allocation2 + $0x524] ss:$16 sps:$4 sm:$0xff]   ;;  %v6631_v37 = vld [vmem:[#allocation2 + $0x52c] ss:$16 sps:$4 sm:$0xff]   ;;  %v6633_v38 = vld [vmem:[#allocation2 + $0x520] ss:$16 sps:$4 sm:$0xff]  }
  0x68   : > { %1302 = vmatpush1.bf16.msra.mxu0 %v6597_v14  ;;  %1408 = vmatpush1.bf16.msra.mxu1 %v6598_v15  ;;  %s6517_s21 = smul.u32 160, %s8165_s15  ;;  %v6634_v39 = vld [vmem:[#allocation2 + $0x528] ss:$16 sps:$4 sm:$0xff]   ;;  %v6635_v40 = vld [vmem:[#allocation2 + $0x544] ss:$16 sps:$4 sm:$0xff]   ;;  %s6372_s29 = sshll.u32 %s8165_s15, 7 }
  0x69   : > { %1303 = vmatprep.subr.bf16.mxu0 %v6599_v16  ;;  %1409 = vmatprep.subr.bf16.mxu1 %v6601_v17  ;;  %v6637_v41 = vld [vmem:[#allocation2 + $0x54c] ss:$16 sps:$4 sm:$0xff]   ;;  %v6639_v42 = vld [vmem:[#allocation2 + $0x540] ss:$16 sps:$4 sm:$0xff]   ;;  %v6640_v43 = vld [vmem:[#allocation2 + $0x548] ss:$16 sps:$4 sm:$0xff]   ;;  %s8116_s15 = scalar_lea.vmem %s8148_s4, %s6372_s29 }
  0x6a   : > { %s7841_s7 = scalar_lea.vmem %s8144_s0, %s6517_s21  ;;  %v6641_v44 = vld [vmem:[#allocation2 + $0x564] ss:$16 sps:$4 sm:$0xff]   ;;  %v6643_v45 = vld [vmem:[#allocation2 + $0x56c] ss:$16 sps:$4 sm:$0xff]   ;;  %v6645_v46 = vld [vmem:[#allocation2 + $0x560] ss:$16 sps:$4 sm:$0xff]  }
  0x6b   : > { %v6646_v47 = vld [vmem:[#allocation2 + $0x568] ss:$16 sps:$4 sm:$0xff]   ;;  %v6647_v52 = vld [vmem:[#allocation2 + $0x584] ss:$16 sps:$4 sm:$0xff]   ;;  %v6649_v55 = vld [vmem:[#allocation2 + $0x58c] ss:$16 sps:$4 sm:$0xff]  }
  0x6c   : > { %1304 = vmatpush1.bf16.msra.mxu0 %v6603_v18  ;;  %1410 = vmatpush1.bf16.msra.mxu1 %v6604_v19  ;;  %v278_v48 = vld [vmem:[%s7841_s7 + $0x8] sm:$0xff]  ;;  %v6651_v56 = vld [vmem:[#allocation2 + $0x580] ss:$16 sps:$4 sm:$0xff]   ;;  %v6653_v62 = vld [vmem:[#allocation2 + $0x5a4] ss:$16 sps:$4 sm:$0xff]  }
  0x6d   : > { %1305 = vmatprep.subr.bf16.mxu0 %v6605_v20  ;;  %1411 = vmatprep.subr.bf16.mxu1 %v6607_v21  ;;  %v282_v49 = vld [vmem:[%s7841_s7 + $0x28] sm:$0xff]  ;;  %v277_v60 = vld [vmem:[%s7841_s7] sm:$0xff]  ;;  %vm566_vm0 = vsmask.f32 7424  ;;  %vm3526_vm2 = vsmask.f32 6400 }
  0x6e   : > { %v286_v50 = vld [vmem:[%s7841_s7 + $0x48] sm:$0xff]  ;;  %v7847_v53 = vpack.c.bf16 %v282_v49, %v278_v48  ;;  %v281_v63 = vld [vmem:[%s7841_s7 + $0x20] sm:$0xff] }
  0x6f   : > { %v290_v51 = vld [vmem:[%s7841_s7 + $0x68] sm:$0xff]  ;;  %v7862_v3 = vpack.c.bf16 %v281_v63, %v277_v60  ;;  %v285_v4 = vld [vmem:[%s7841_s7 + $0x40] sm:$0xff] }
  0x70   : > { %1306 = vmatpush1.bf16.msra.mxu0 %v6609_v22  ;;  %1412 = vmatpush1.bf16.msra.mxu1 %v6610_v23  ;;  %v7849_v54 = vpack.c.bf16 %v290_v51, %v286_v50  ;;  %v580_v57 = vshrl.u32 %v7847_v53, 16  ;;  %v582_v58 = vshll.u32 %v7847_v53, 16  ;;  %v6652_v61 = vld [vmem:[#allocation2 + $0x588] ss:$16 sps:$4 sm:$0xff]   ;;  %v6655_v0 = vld [vmem:[#allocation2 + $0x5ac] ss:$16 sps:$4 sm:$0xff]  }
  0x71   : > { %1307 = vmatprep.subr.bf16.mxu0 %v6611_v24  ;;  %1413 = vmatprep.subr.bf16.mxu1 %v6613_v25  ;;  %v289_v5 = vld [vmem:[%s7841_s7 + $0x60] sm:$0xff]  ;;  %v6658_v8 = vld [vmem:[#allocation2 + $0x5a8] ss:$16 sps:$4 sm:$0xff]   ;;  %v570_v11 = vshll.u32 %v7862_v3, 16  ;;  %v6661_v13 = vld [vmem:[#allocation2 + $0x5cc] ss:$16 sps:$4 sm:$0xff]  }
  0x72   : > { %v587_v59 = vshll.u32 %v7849_v54, 16  ;;  %v584_v1 = vrot.slane %v582_v58, 1  ;;  %v6657_v7 = vld [vmem:[#allocation2 + $0x5a0] ss:$16 sps:$4 sm:$0xff]   ;;  %v7870_v10 = vpack.c.bf16 %v289_v5, %v285_v4  ;;  %v6659_v12 = vld [vmem:[#allocation2 + $0x5c4] ss:$16 sps:$4 sm:$0xff]  }
  0x73   : > { %v6663_v14 = vld [vmem:[#allocation2 + $0x5c0] ss:$16 sps:$4 sm:$0xff]   ;;  %v6664_v15 = vld [vmem:[#allocation2 + $0x5c8] ss:$16 sps:$4 sm:$0xff]   ;;  %v568_v16 = vshrl.u32 %v7862_v3, 16  ;;  %v572_v17 = vrot.slane %v570_v11, 1 }
  0x74   : > { %1308 = vmatpush1.bf16.msra.mxu0 %v6615_v26  ;;  %1414 = vmatpush1.bf16.msra.mxu1 %v6616_v27  ;;  %v7860_v2 = vrot.slane %v587_v59, 1  ;;  %v585_v6 = vor.u32 %v584_v1, %v580_v57  ;;  %v575_v18 = vshll.u32 %v7870_v10, 16  ;;  %v6665_v19 = vld [vmem:[#allocation2 + $0x5e4] ss:$16 sps:$4 sm:$0xff]   ;;  %v6667_v20 = vld [vmem:[#allocation2 + $0x5ec] ss:$16 sps:$4 sm:$0xff]  }
  0x75   : > { %1309 = vmatprep.subr.bf16.mxu0 %v6617_v28  ;;  %1415 = vmatprep.subr.bf16.mxu1 %v6619_v29  ;;  %v6669_v21 = vld [vmem:[#allocation2 + $0x5e0] ss:$16 sps:$4 sm:$0xff]   ;;  %v6670_v22 = vld [vmem:[#allocation2 + $0x5e8] ss:$16 sps:$4 sm:$0xff]   ;;  %v573_v23 = vor.u32 %v572_v17, %v568_v16  ;;  %v6673_v25 = vld [vmem:[#allocation2 + $0x604] ss:$16 sps:$4 sm:$0xff]  }
  0x76   : > { %v590_v9 = vsel %vm566_vm0, %v585_v6, %v7860_v2  ;;  %v7881_v24 = vrot.slane %v575_v18, 1  ;;  %v6676_v26 = vld [vmem:[#allocation2 + $0x60c] ss:$16 sps:$4 sm:$0xff]   ;;  %v6671_v27 = vld [vmem:[#allocation2 + $0x600] ss:$16 sps:$4 sm:$0xff]   ;;  %v623_v48 = vshrl.u32 %v7849_v54, 16 }
  0x77   : > { %1327 = vmatprep.mubr.bf16.mxu0 %v590_v9  ;;  %1433 = vmatprep.mubr.bf16.mxu1 %v590_v9  ;;  %v6674_v28 = vld [vmem:[#allocation2 + $0x608] ss:$16 sps:$4 sm:$0xff]   ;;  %v6701_v49 = vld [vmem:[#allocation2 + $0x6a0] ss:$16 sps:$4 sm:$0xff]   ;;  %v615_v60 = vshrl.u32 %v7870_v10, 16 }
  0x78   : > { %1310 = vmatpush1.bf16.msra.mxu0 %v6621_v30  ;;  %1416 = vmatpush1.bf16.msra.mxu1 %v6622_v31  ;;  %v578_v29 = vsel %vm566_vm0, %v573_v23, %v7881_v24  ;;  %v6679_v30 = vld [vmem:[#allocation2 + $0x624] ss:$16 sps:$4 sm:$0xff]   ;;  %v6682_v31 = vld [vmem:[#allocation2 + $0x62c] ss:$16 sps:$4 sm:$0xff]   ;;  %v294_v50 = vld [vmem:[%s7841_s7 + $0x88] sm:$0xf] }
  0x79   : > { %1311 = vmatprep.subr.bf16.mxu0 %v6623_v32  ;;  %1417 = vmatprep.subr.bf16.mxu1 %v6625_v33  ;;  %v6677_v32 = vld [vmem:[#allocation2 + $0x620] ss:$16 sps:$4 sm:$0xff]   ;;  %v6680_v33 = vld [vmem:[#allocation2 + $0x628] ss:$16 sps:$4 sm:$0xff]   ;;  %v6715_v5 = vld [vmem:[#allocation2 + $0x6e4] ss:$16 sps:$4 sm:$0xff]  }
  0x7a   : > { %v6704_v51 = vld [vmem:[#allocation2 + $0x6a8] ss:$16 sps:$4 sm:$0xff]   ;;  %v293_v63 = vld [vmem:[%s7841_s7 + $0x80] sm:$0xf] }
  0x7b   : > { %v6710_v1 = vld [vmem:[#allocation2 + $0x6c8] ss:$16 sps:$4 sm:$0xff]   ;;  %v7895_v4 = vpack.c.bf16 %v293_v63, %v293_v63  ;;  %v6754_v63 = vld [vmem:[#allocation2 + $0x7ac] ss:$16 sps:$4 sm:$0xff]  }
  0x7c   : > { %1312 = vmatpush1.bf16.msra.mxu0 %v6627_v34  ;;  %1418 = vmatpush1.bf16.msra.mxu1 %v6628_v35  ;;  %v6685_v34 = vld [vmem:[#allocation2 + $0x644] ss:$16 sps:$4 sm:$0xff]   ;;  %v6688_v35 = vld [vmem:[#allocation2 + $0x64c] ss:$16 sps:$4 sm:$0xff]  }
  0x7d   : > { %1313 = vmatprep.subr.bf16.mxu0 %v6629_v36  ;;  %1419 = vmatprep.subr.bf16.mxu1 %v6631_v37  ;;  %v6683_v36 = vld [vmem:[#allocation2 + $0x640] ss:$16 sps:$4 sm:$0xff]   ;;  %v6686_v37 = vld [vmem:[#allocation2 + $0x648] ss:$16 sps:$4 sm:$0xff]  }
  0x7e   : > { %v280_v9 = vld [vmem:[%s7841_s7 + $0x18] sm:$0xff] }
  0x80   : > { %1314 = vmatpush1.bf16.msra.mxu0 %v6633_v38  ;;  %1420 = vmatpush1.bf16.msra.mxu1 %v6634_v39  ;;  %v6691_v38 = vld [vmem:[#allocation2 + $0x664] ss:$16 sps:$4 sm:$0xff]   ;;  %v6694_v39 = vld [vmem:[#allocation2 + $0x66c] ss:$16 sps:$4 sm:$0xff]  }
  0x81   : > { %1315 = vmatprep.subr.bf16.mxu0 %v6635_v40  ;;  %1421 = vmatprep.subr.bf16.mxu1 %v6637_v41  ;;  %v6689_v40 = vld [vmem:[#allocation2 + $0x660] ss:$16 sps:$4 sm:$0xff]   ;;  %v6692_v41 = vld [vmem:[#allocation2 + $0x668] ss:$16 sps:$4 sm:$0xff]  }
  0x84   : > { %1316 = vmatpush1.bf16.msra.mxu0 %v6639_v42  ;;  %1422 = vmatpush1.bf16.msra.mxu1 %v6640_v43  ;;  %v6697_v42 = vld [vmem:[#allocation2 + $0x684] ss:$16 sps:$4 sm:$0xff]   ;;  %v6700_v43 = vld [vmem:[#allocation2 + $0x68c] ss:$16 sps:$4 sm:$0xff]  }
  0x85   : > { %1317 = vmatprep.subr.bf16.mxu0 %v6641_v44  ;;  %1423 = vmatprep.subr.bf16.mxu1 %v6643_v45  ;;  %v6695_v44 = vld [vmem:[#allocation2 + $0x680] ss:$16 sps:$4 sm:$0xff]   ;;  %v6698_v45 = vld [vmem:[#allocation2 + $0x688] ss:$16 sps:$4 sm:$0xff]  }
  0x88   : > { %1318 = vmatpush1.bf16.msra.mxu0 %v6645_v46  ;;  %1424 = vmatpush1.bf16.msra.mxu1 %v6646_v47  ;;  %v6703_v46 = vld [vmem:[#allocation2 + $0x6a4] ss:$16 sps:$4 sm:$0xff]   ;;  %v6706_v47 = vld [vmem:[#allocation2 + $0x6ac] ss:$16 sps:$4 sm:$0xff]  }
  0x89   : > { %1319 = vmatprep.subr.bf16.mxu0 %v6647_v52  ;;  %1425 = vmatprep.subr.bf16.mxu1 %v6649_v55  ;;  %v6709_v52 = vld [vmem:[#allocation2 + $0x6c4] ss:$16 sps:$4 sm:$0xff]   ;;  %v7887_v55 = vpack.c.bf16 %v294_v50, %v294_v50 }
  0x8a   : > { %v279_v50 = vld [vmem:[%s7841_s7 + $0x10] sm:$0xff] }
  0x8c   : > { %1320 = vmatpush1.bf16.msra.mxu0 %v6651_v56  ;;  %1426 = vmatpush1.bf16.msra.mxu1 %v6652_v61  ;;  %v6712_v56 = vld [vmem:[#allocation2 + $0x6cc] ss:$16 sps:$4 sm:$0xff]   ;;  %v625_v61 = vor.u32 %v623_v48, %v7860_v2  ;;  %v617_v2 = vor.u32 %v615_v60, %v7881_v24 }
  0x8d   : > { %1321 = vmatprep.subr.bf16.mxu0 %v6653_v62  ;;  %1427 = vmatprep.subr.bf16.mxu1 %v6655_v0  ;;  %v627_v62 = vshll.u32 %v7887_v55, 16  ;;  %v6707_v0 = vld [vmem:[#allocation2 + $0x6c0] ss:$16 sps:$4 sm:$0xff]  }
  0x8f   : > { %v629_v6 = vrot.slane %v627_v62, 1 }
  0x90   : > { %1322 = vmatpush1.bf16.msra.mxu0 %v6657_v7  ;;  %1428 = vmatpush1.bf16.msra.mxu1 %v6658_v8  ;;  %v6718_v7 = vld [vmem:[#allocation2 + $0x6ec] ss:$16 sps:$4 sm:$0xff]   ;;  %v619_v8 = vshll.u32 %v7895_v4, 16 }
  0x91   : > { %1323 = vmatprep.subr.bf16.mxu0 %v6659_v12  ;;  %1429 = vmatprep.subr.bf16.mxu1 %v6661_v13  ;;  %v284_v12 = vld [vmem:[%s7841_s7 + $0x38] sm:$0xff]  ;;  %v630_v13 = vsel %vm566_vm0, %v625_v61, %v629_v6  ;;  %v6751_v61 = vld [vmem:[#allocation2 + $0x7a4] ss:$16 sps:$4 sm:$0xff]   ;;  %v6749_v6 = vld [vmem:[#allocation2 + $0x7a0] ss:$16 sps:$4 sm:$0xff]  }
  0x92   : > { %v7908_v17 = vpack.c.bf16 %v284_v12, %v280_v9 }
  0x94   : > { %1324 = vmatpush1.bf16.msra.mxu0 %v6663_v14  ;;  %1430 = vmatpush1.bf16.msra.mxu1 %v6664_v15  ;;  %v288_v14 = vld [vmem:[%s7841_s7 + $0x58] sm:$0xff]  ;;  %v604_v23 = vshrl.u32 %v7908_v17, 16  ;;  %v606_v24 = vshll.u32 %v7908_v17, 16 }
  0x95   : > { %1325 = vmatprep.subr.bf16.mxu0 %v6665_v19  ;;  %1431 = vmatprep.subr.bf16.mxu1 %v6667_v20  ;;  %v292_v15 = vld [vmem:[%s7841_s7 + $0x78] sm:$0xff]  ;;  %v6713_v19 = vld [vmem:[#allocation2 + $0x6e0] ss:$16 sps:$4 sm:$0xff]   ;;  %v621_v20 = vrot.slane %v619_v8, 1 }
  0x98   : > { %1326 = vmatpush1.bf16.msra.mxu0 %v6669_v21  ;;  %1432 = vmatpush1.bf16.msra.mxu1 %v6670_v22  ;;  %v7912_v21 = vpack.c.bf16 %v292_v15, %v288_v14  ;;  %v6716_v22 = vld [vmem:[#allocation2 + $0x6e8] ss:$16 sps:$4 sm:$0xff]   ;;  %v6755_v14 = vld [vmem:[#allocation2 + $0x7c0] ss:$16 sps:$4 sm:$0xff]  }
  0x99   : > { %1348 = vmatprep.subr.bf16.mxu0 %v6673_v25  ;;  %1454 = vmatprep.subr.bf16.mxu1 %v6676_v26  ;;  %v6721_v25 = vld [vmem:[#allocation2 + $0x704] ss:$16 sps:$4 sm:$0xff]   ;;  %v6724_v26 = vld [vmem:[#allocation2 + $0x70c] ss:$16 sps:$4 sm:$0xff]   ;;  %v6758_v15 = vld [vmem:[#allocation2 + $0x7c8] ss:$16 sps:$4 sm:$0xff]  }
  0x9b   : > { %1328 = vmatmul.mubr.bf16.vlgmr.msra.gmra.mrb[0].mxu0 %v578_v29  ;;  %1434 = vmatmul.mubr.bf16.vlgmr.msra.gmra.mrb[0].mxu1 %v578_v29  ;;  %v608_v29 = vrot.slane %v606_v24, 1 }
  0x9c   : > { %1349 = vmatpush1.bf16.msra.mxu0 %v6671_v27  ;;  %1455 = vmatpush1.bf16.msra.mxu1 %v6674_v28  ;;  %v622_v27 = vsel %vm566_vm0, %v617_v2, %v621_v20  ;;  %v611_v28 = vshll.u32 %v7912_v21, 16  ;;  %v6757_v2 = vld [vmem:[#allocation2 + $0x7c4] ss:$16 sps:$4 sm:$0xff]  }
  0x9d   : > { %1350 = vmatprep.subr.bf16.mxu0 %v6679_v30  ;;  %1456 = vmatprep.subr.bf16.mxu1 %v6682_v31  ;;  %v6719_v30 = vld [vmem:[#allocation2 + $0x700] ss:$16 sps:$4 sm:$0xff]   ;;  %v6722_v31 = vld [vmem:[#allocation2 + $0x708] ss:$16 sps:$4 sm:$0xff]  }
  0x9e   : > { %1337 = vmatprep.mubr.bf16.mxu0 %v630_v13  ;;  %1443 = vmatprep.mubr.bf16.mxu1 %v630_v13  ;;  %v6760_v13 = vld [vmem:[#allocation2 + $0x7cc] ss:$16 sps:$4 sm:$0xff]  }
  0xa0   : > { %1351 = vmatpush1.bf16.msra.mxu0 %v6677_v32  ;;  %1457 = vmatpush1.bf16.msra.mxu1 %v6680_v33  ;;  %v7922_v32 = vrot.slane %v611_v28, 1  ;;  %v6727_v33 = vld [vmem:[#allocation2 + $0x724] ss:$16 sps:$4 sm:$0xff]  }
  0xa1   : > { %1352 = vmatprep.subr.bf16.mxu0 %v6685_v34  ;;  %1458 = vmatprep.subr.bf16.mxu1 %v6688_v35  ;;  %v609_v34 = vor.u32 %v608_v29, %v604_v23  ;;  %v6730_v35 = vld [vmem:[#allocation2 + $0x72c] ss:$16 sps:$4 sm:$0xff]   ;;  %v6764_v29 = vld [vmem:[#allocation2 + $0x7e8] ss:$16 sps:$4 sm:$0xff]  }
  0xa3   : > { %1338 = vmatmul.mubr.bf16.gmra.mrb[4].mxu0 %v622_v27  ;;  %1444 = vmatmul.mubr.bf16.gmra.mrb[4].mxu1 %v622_v27  ;;  %v6761_v27 = vld [vmem:[#allocation2 + $0x7e0] ss:$16 sps:$4 sm:$0xff]  }
  0xa4   : > { %1353 = vmatpush1.bf16.msra.mxu0 %v6683_v36  ;;  %1459 = vmatpush1.bf16.msra.mxu1 %v6686_v37  ;;  %v614_v36 = vsel %vm566_vm0, %v609_v34, %v7922_v32  ;;  %v6725_v37 = vld [vmem:[#allocation2 + $0x720] ss:$16 sps:$4 sm:$0xff]   ;;  %v6772_v34 = vld [vmem:[#allocation2 + $0xc] ss:$16 sps:$4 sm:$0xff]  }
  0xa5   : > { %1354 = vmatprep.subr.bf16.mxu0 %v6691_v38  ;;  %1460 = vmatprep.subr.bf16.mxu1 %v6694_v39  ;;  %v6728_v38 = vld [vmem:[#allocation2 + $0x728] ss:$16 sps:$4 sm:$0xff]   ;;  %v6733_v39 = vld [vmem:[#allocation2 + $0x744] ss:$16 sps:$4 sm:$0xff]  }
  0xa6   : > { %1380 = vmatprep.mubr.bf16.mxu0 %v614_v36  ;;  %1486 = vmatprep.mubr.bf16.mxu1 %v614_v36  ;;  %v6770_v36 = vld [vmem:[#allocation2 + $0x8] ss:$16 sps:$4 sm:$0xff]  }
  0xa8   : > { %1355 = vmatpush1.bf16.msra.mxu0 %v6689_v40  ;;  %1461 = vmatpush1.bf16.msra.mxu1 %v6692_v41  ;;  %v6736_v40 = vld [vmem:[#allocation2 + $0x74c] ss:$16 sps:$4 sm:$0xff]   ;;  %v6731_v41 = vld [vmem:[#allocation2 + $0x740] ss:$16 sps:$4 sm:$0xff]  }
  0xa9   : > { %1356 = vmatprep.subr.bf16.mxu0 %v6697_v42  ;;  %1462 = vmatprep.subr.bf16.mxu1 %v6700_v43  ;;  %v6734_v42 = vld [vmem:[#allocation2 + $0x748] ss:$16 sps:$4 sm:$0xff]   ;;  %v6739_v43 = vld [vmem:[#allocation2 + $0x764] ss:$16 sps:$4 sm:$0xff]  }
  0xac   : > { %1357 = vmatpush1.bf16.msra.mxu0 %v6695_v44  ;;  %1463 = vmatpush1.bf16.msra.mxu1 %v6698_v45  ;;  %v6742_v44 = vld [vmem:[#allocation2 + $0x76c] ss:$16 sps:$4 sm:$0xff]   ;;  %v6737_v45 = vld [vmem:[#allocation2 + $0x760] ss:$16 sps:$4 sm:$0xff]  }
  0xad   : > { %1358 = vmatprep.subr.bf16.mxu0 %v6703_v46  ;;  %1464 = vmatprep.subr.bf16.mxu1 %v6706_v47  ;;  %v6740_v46 = vld [vmem:[#allocation2 + $0x768] ss:$16 sps:$4 sm:$0xff]   ;;  %v6745_v47 = vld [vmem:[#allocation2 + $0x784] ss:$16 sps:$4 sm:$0xff]  }
  0xb0   : > { %1359 = vmatpush1.bf16.msra.mxu0 %v6701_v49  ;;  %1465 = vmatpush1.bf16.msra.mxu1 %v6704_v51  ;;  %v6748_v49 = vld [vmem:[#allocation2 + $0x78c] ss:$16 sps:$4 sm:$0xff]   ;;  %v283_v51 = vld [vmem:[%s7841_s7 + $0x30] sm:$0xff] }
  0xb1   : > { %1360 = vmatprep.subr.bf16.mxu0 %v6709_v52  ;;  %1466 = vmatprep.subr.bf16.mxu1 %v6712_v56  ;;  %v6743_v52 = vld [vmem:[#allocation2 + $0x780] ss:$16 sps:$4 sm:$0xff]   ;;  %v6746_v56 = vld [vmem:[#allocation2 + $0x788] ss:$16 sps:$4 sm:$0xff]  }
  0xb4   : > { %1361 = vmatpush1.bf16.msra.mxu0 %v6707_v0  ;;  %1467 = vmatpush1.bf16.msra.mxu1 %v6710_v1  ;;  %v287_v0 = vld [vmem:[%s7841_s7 + $0x50] sm:$0xff]  ;;  %v7931_v1 = vpack.c.bf16 %v283_v51, %v279_v50  ;;  %v6784_v51 = vld [vmem:[#allocation2 + $0x4c] ss:$16 sps:$4 sm:$0xff]  }
  0xb5   : > { %1362 = vmatprep.subr.bf16.mxu0 %v6715_v5  ;;  %1468 = vmatprep.subr.bf16.mxu1 %v6718_v7  ;;  %v291_v5 = vld [vmem:[%s7841_s7 + $0x70] sm:$0xff]  ;;  %v6752_v7 = vld [vmem:[#allocation2 + $0x7a8] ss:$16 sps:$4 sm:$0xff]  }
  0xb6   : > { %v7934_v9 = vpack.c.bf16 %v291_v5, %v287_v0  ;;  %v594_v12 = vshll.u32 %v7931_v1, 16  ;;  %v592_v20 = vshrl.u32 %v7931_v1, 16  ;;  %v6781_v50 = vld [vmem:[#allocation2 + $0x44] ss:$16 sps:$4 sm:$0xff]   ;;  %v6782_v0 = vld [vmem:[#allocation2 + $0x48] ss:$16 sps:$4 sm:$0xff]  }
  0xb8   : > { %1363 = vmatpush1.bf16.msra.mxu0 %v6713_v19  ;;  %1469 = vmatpush1.bf16.msra.mxu1 %v6716_v22  ;;  %v6763_v19 = vld [vmem:[#allocation2 + $0x7e4] ss:$16 sps:$4 sm:$0xff]   ;;  %v596_v22 = vrot.slane %v594_v12, 1 }
  0xb9   : > { %1364 = vmatprep.subr.bf16.mxu0 %v6721_v25  ;;  %1470 = vmatprep.subr.bf16.mxu1 %v6724_v26  ;;  %v599_v25 = vshll.u32 %v7934_v9, 16  ;;  %v6766_v26 = vld [vmem:[#allocation2 + $0x7ec] ss:$16 sps:$4 sm:$0xff]  }
  0xbc   : > { %1365 = vmatpush1.bf16.msra.mxu0 %v6719_v30  ;;  %1471 = vmatpush1.bf16.msra.mxu1 %v6722_v31  ;;  %v6769_v30 = vld [vmem:[#allocation2 + $0x4] ss:$16 sps:$4 sm:$0xff]   ;;  %v597_v31 = vor.u32 %v596_v22, %v592_v20  ;;  %v6796_v22 = vld [vmem:[#allocation2 + $0x8c] ss:$16 sps:$4 sm:$0xff]  }
  0xbd   : > { %1366 = vmatprep.subr.bf16.mxu0 %v6727_v33  ;;  %1472 = vmatprep.subr.bf16.mxu1 %v6730_v35  ;;  %v601_v33 = vrot.slane %v599_v25, 1  ;;  %v6767_v35 = vld [vmem:[#allocation2] ss:$16 sps:$4 sm:$0xff]  }
  0xc0   : > { %1367 = vmatpush1.bf16.msra.mxu0 %v6725_v37  ;;  %1473 = vmatpush1.bf16.msra.mxu1 %v6728_v38  ;;  %v602_v37 = vsel %vm566_vm0, %v597_v31, %v601_v33  ;;  %v6775_v38 = vld [vmem:[#allocation2 + $0x24] ss:$16 sps:$4 sm:$0xff]   ;;  %v6797_v31 = vld [vmem:[#allocation2 + $0xa0] ss:$16 sps:$4 sm:$0xff]  }
  0xc1   : > { %1368 = vmatprep.subr.bf16.mxu0 %v6733_v39  ;;  %1474 = vmatprep.subr.bf16.mxu1 %v6736_v40  ;;  %v639_v39 = vshrl.u32 %v7912_v21, 16  ;;  %v6778_v40 = vld [vmem:[#allocation2 + $0x2c] ss:$16 sps:$4 sm:$0xff]  }
  0xc4   : > { %1369 = vmatpush1.bf16.msra.mxu0 %v6731_v41  ;;  %1475 = vmatpush1.bf16.msra.mxu1 %v6734_v42  ;;  %v296_v41 = vld [vmem:[%s7841_s7 + $0x98] sm:$0xf] }
  0xc5   : > { %1370 = vmatprep.subr.bf16.mxu0 %v6739_v43  ;;  %1476 = vmatprep.subr.bf16.mxu1 %v6742_v44  ;;  %v7948_v42 = vpack.c.bf16 %v296_v41, %v296_v41  ;;  %v6773_v43 = vld [vmem:[#allocation2 + $0x20] ss:$16 sps:$4 sm:$0xff]   ;;  %v631_v44 = vshrl.u32 %v7934_v9, 16 }
  0xc6   : > { %v6809_v41 = vld [vmem:[#allocation2 + $0xe0] ss:$16 sps:$4 sm:$0xff]  }
  0xc8   : > { %1371 = vmatpush1.bf16.msra.mxu0 %v6737_v45  ;;  %1477 = vmatpush1.bf16.msra.mxu1 %v6740_v46  ;;  %v6776_v45 = vld [vmem:[#allocation2 + $0x28] ss:$16 sps:$4 sm:$0xff]   ;;  %v641_v46 = vor.u32 %v639_v39, %v7922_v32  ;;  %v6779_v32 = vld [vmem:[#allocation2 + $0x40] ss:$16 sps:$4 sm:$0xff]  }
  0xc9   : > { %1372 = vmatprep.subr.bf16.mxu0 %v6745_v47  ;;  %1478 = vmatprep.subr.bf16.mxu1 %v6748_v49  ;;  %v643_v47 = vshll.u32 %v7948_v42, 16  ;;  %v295_v49 = vld [vmem:[%s7841_s7 + $0x90] sm:$0xf] }
  0xcc   : > { %1373 = vmatpush1.bf16.msra.mxu0 %v6743_v52  ;;  %1479 = vmatpush1.bf16.msra.mxu1 %v6746_v56  ;;  %v7956_v52 = vpack.c.bf16 %v295_v49, %v295_v49  ;;  %v645_v56 = vrot.slane %v643_v47, 1  ;;  %v6815_v49 = vld [vmem:[#allocation2 + $0x100] ss:$16 sps:$4 sm:$0xff]  }
  0xcd   : > { %1374 = vmatprep.subr.bf16.mxu0 %v6751_v61  ;;  %1480 = vmatprep.subr.bf16.mxu1 %v6754_v63  ;;  %v633_v61 = vor.u32 %v631_v44, %v601_v33  ;;  %v6800_v33 = vld [vmem:[#allocation2 + $0xa8] ss:$16 sps:$4 sm:$0xff]  }
  0xce   : > { %v635_v63 = vshll.u32 %v7956_v52, 16  ;;  %v646_v5 = vsel %vm566_vm0, %v641_v46, %v645_v56  ;;  %v6820_v46 = vld [vmem:[#allocation2 + $0x10c] ss:$16 sps:$4 sm:$0xff]  }
  0xcf   : > { %v6826_v56 = vld [vmem:[#allocation2 + $0x12c] ss:$16 sps:$4 sm:$0xff]  }
  0xd0   : > { %1375 = vmatpush1.bf16.msra.mxu0 %v6749_v6  ;;  %1481 = vmatpush1.bf16.msra.mxu1 %v6752_v7  ;;  %v6787_v6 = vld [vmem:[#allocation2 + $0x64] ss:$16 sps:$4 sm:$0xff]   ;;  %v6790_v7 = vld [vmem:[#allocation2 + $0x6c] ss:$16 sps:$4 sm:$0xff]  }
  0xd1   : > { %1376 = vmatprep.subr.bf16.mxu0 %v6757_v2  ;;  %1482 = vmatprep.subr.bf16.mxu1 %v6760_v13  ;;  %v637_v2 = vrot.slane %v635_v63, 1 }
  0xd3   : > { %v638_v13 = vsel %vm566_vm0, %v633_v61, %v637_v2  ;;  %v6821_v61 = vld [vmem:[#allocation2 + $0x120] ss:$16 sps:$4 sm:$0xff]   ;;  %v6835_v2 = vld [vmem:[#allocation2 + $0x164] ss:$16 sps:$4 sm:$0xff]  }
  0xd4   : > { %1377 = vmatpush1.bf16.msra.mxu0 %v6755_v14  ;;  %1483 = vmatpush1.bf16.msra.mxu1 %v6758_v15  ;;  %v6785_v14 = vld [vmem:[#allocation2 + $0x60] ss:$16 sps:$4 sm:$0xff]   ;;  %v6788_v15 = vld [vmem:[#allocation2 + $0x68] ss:$16 sps:$4 sm:$0xff]  }
  0xd5   : > { %1378 = vmatprep.subr.bf16.mxu0 %v6763_v19  ;;  %1484 = vmatprep.subr.bf16.mxu1 %v6766_v26  ;;  %v6793_v19 = vld [vmem:[#allocation2 + $0x84] ss:$16 sps:$4 sm:$0xff]   ;;  %v6791_v26 = vld [vmem:[#allocation2 + $0x80] ss:$16 sps:$4 sm:$0xff]  }
  0xd8   : > { %1379 = vmatpush1.bf16.msra.mxu0 %v6761_v27  ;;  %1485 = vmatpush1.bf16.msra.mxu1 %v6764_v29  ;;  %v6794_v27 = vld [vmem:[#allocation2 + $0x88] ss:$16 sps:$4 sm:$0xff]   ;;  %v6799_v29 = vld [vmem:[#allocation2 + $0xa4] ss:$16 sps:$4 sm:$0xff]  }
  0xd9   : > { %2147 = vmatprep.subr.bf16.mxu0 %v6769_v30  ;;  %2253 = vmatprep.subr.bf16.mxu1 %v6772_v34  ;;  %v6802_v30 = vld [vmem:[#allocation2 + $0xac] ss:$16 sps:$4 sm:$0xff]   ;;  %v6805_v34 = vld [vmem:[#allocation2 + $0xc4] ss:$16 sps:$4 sm:$0xff]  }
  0xdb   : > { %1381 = vmatmul.mubr.bf16.vlgmr.msra.gmra.mrb[0].mxu0 %v602_v37  ;;  %1487 = vmatmul.mubr.bf16.vlgmr.msra.gmra.mrb[0].mxu1 %v602_v37  ;;  %v6806_v37 = vld [vmem:[#allocation2 + $0xc8] ss:$16 sps:$4 sm:$0xff]  }
  0xdc   : > { %2148 = vmatpush1.bf16.msra.mxu0 %v6767_v35  ;;  %2254 = vmatpush1.bf16.msra.mxu1 %v6770_v36  ;;  %v6808_v35 = vld [vmem:[#allocation2 + $0xcc] ss:$16 sps:$4 sm:$0xff]   ;;  %v6803_v36 = vld [vmem:[#allocation2 + $0xc0] ss:$16 sps:$4 sm:$0xff]  }
  0xdd   : > { %2149 = vmatprep.subr.bf16.mxu0 %v6775_v38  ;;  %2255 = vmatprep.subr.bf16.mxu1 %v6778_v40  ;;  %v6811_v38 = vld [vmem:[#allocation2 + $0xe4] ss:$16 sps:$4 sm:$0xff]   ;;  %v6814_v40 = vld [vmem:[#allocation2 + $0xec] ss:$16 sps:$4 sm:$0xff]  }
  0xde   : > { %1390 = vmatprep.mubr.bf16.mxu0 %v646_v5  ;;  %1496 = vmatprep.mubr.bf16.mxu1 %v646_v5  ;;  %v6832_v5 = vld [vmem:[#allocation2 + $0x14c] ss:$16 sps:$4 sm:$0xff]  }
  0xe0   : > { %2150 = vmatpush1.bf16.msra.mxu0 %v6773_v43  ;;  %2256 = vmatpush1.bf16.msra.mxu1 %v6776_v45  ;;  %v6812_v43 = vld [vmem:[#allocation2 + $0xe8] ss:$16 sps:$4 sm:$0xff]   ;;  %v6817_v45 = vld [vmem:[#allocation2 + $0x104] ss:$16 sps:$4 sm:$0xff]  }
  0xe1   : > { %2151 = vmatprep.subr.bf16.mxu0 %v6781_v50  ;;  %2257 = vmatprep.subr.bf16.mxu1 %v6784_v51  ;;  %v6818_v50 = vld [vmem:[#allocation2 + $0x108] ss:$16 sps:$4 sm:$0xff]   ;;  %v6823_v51 = vld [vmem:[#allocation2 + $0x124] ss:$16 sps:$4 sm:$0xff]  }
  0xe3   : > { %1391 = vmatmul.mubr.bf16.gmra.mrb[4].mxu0 %v638_v13  ;;  %1497 = vmatmul.mubr.bf16.gmra.mrb[4].mxu1 %v638_v13  ;;  %v6838_v13 = vld [vmem:[#allocation2 + $0x16c] ss:$16 sps:$4 sm:$0xff]  }
  0xe4   : > { %2152 = vmatpush1.bf16.msra.mxu0 %v6779_v32  ;;  %2258 = vmatpush1.bf16.msra.mxu1 %v6782_v0  ;;  %v6824_v32 = vld [vmem:[#allocation2 + $0x128] ss:$16 sps:$4 sm:$0xff]   ;;  %v6829_v0 = vld [vmem:[#allocation2 + $0x144] ss:$16 sps:$4 sm:$0xff]  }
  0xe5   : > { %2153 = vmatprep.subr.bf16.mxu0 %v6787_v6  ;;  %2259 = vmatprep.subr.bf16.mxu1 %v6790_v7  ;;  %v6827_v6 = vld [vmem:[#allocation2 + $0x140] ss:$16 sps:$4 sm:$0xff]   ;;  %v6830_v7 = vld [vmem:[#allocation2 + $0x148] ss:$16 sps:$4 sm:$0xff]  }
  0xe6   : > { %2179 = vmatprep.mubr.bf16.mxu0 %v7847_v53  ;;  %2285 = vmatprep.mubr.bf16.mxu1 %v7847_v53 }
  0xe8   : > { %2154 = vmatpush1.bf16.msra.mxu0 %v6785_v14  ;;  %2260 = vmatpush1.bf16.msra.mxu1 %v6788_v15  ;;  %v6833_v14 = vld [vmem:[#allocation2 + $0x160] ss:$16 sps:$4 sm:$0xff]   ;;  %v6836_v15 = vld [vmem:[#allocation2 + $0x168] ss:$16 sps:$4 sm:$0xff]  }
  0xe9   : > { %2155 = vmatprep.subr.bf16.mxu0 %v6793_v19  ;;  %2261 = vmatprep.subr.bf16.mxu1 %v6796_v22  ;;  %v6841_v19 = vld [vmem:[#allocation2 + $0x184] ss:$16 sps:$4 sm:$0xff]   ;;  %v6844_v22 = vld [vmem:[#allocation2 + $0x18c] ss:$16 sps:$4 sm:$0xff]  }
  0xec   : > { %2156 = vmatpush1.bf16.msra.mxu0 %v6791_v26  ;;  %2262 = vmatpush1.bf16.msra.mxu1 %v6794_v27  ;;  %v6839_v26 = vld [vmem:[#allocation2 + $0x180] ss:$16 sps:$4 sm:$0xff]   ;;  %v6842_v27 = vld [vmem:[#allocation2 + $0x188] ss:$16 sps:$4 sm:$0xff]  }
  0xed   : > { %2157 = vmatprep.subr.bf16.mxu0 %v6799_v29  ;;  %2263 = vmatprep.subr.bf16.mxu1 %v6802_v30  ;;  %v6847_v29 = vld [vmem:[#allocation2 + $0x1a4] ss:$16 sps:$4 sm:$0xff]   ;;  %v6850_v30 = vld [vmem:[#allocation2 + $0x1ac] ss:$16 sps:$4 sm:$0xff]  }
  0xf0   : > { %2158 = vmatpush1.bf16.msra.mxu0 %v6797_v31  ;;  %2264 = vmatpush1.bf16.msra.mxu1 %v6800_v33  ;;  %v6845_v31 = vld [vmem:[#allocation2 + $0x1a0] ss:$16 sps:$4 sm:$0xff]   ;;  %v6848_v33 = vld [vmem:[#allocation2 + $0x1a8] ss:$16 sps:$4 sm:$0xff]  }
  0xf1   : > { %2159 = vmatprep.subr.bf16.mxu0 %v6805_v34  ;;  %2265 = vmatprep.subr.bf16.mxu1 %v6808_v35  ;;  %v6853_v34 = vld [vmem:[#allocation2 + $0x1c4] ss:$16 sps:$4 sm:$0xff]   ;;  %v6856_v35 = vld [vmem:[#allocation2 + $0x1cc] ss:$16 sps:$4 sm:$0xff]  }
  0xf4   : > { %2160 = vmatpush1.bf16.msra.mxu0 %v6803_v36  ;;  %2266 = vmatpush1.bf16.msra.mxu1 %v6806_v37  ;;  %v6851_v36 = vld [vmem:[#allocation2 + $0x1c0] ss:$16 sps:$4 sm:$0xff]   ;;  %v6854_v37 = vld [vmem:[#allocation2 + $0x1c8] ss:$16 sps:$4 sm:$0xff]  }
  0xf5   : > { %2161 = vmatprep.subr.bf16.mxu0 %v6811_v38  ;;  %2267 = vmatprep.subr.bf16.mxu1 %v6814_v40  ;;  %v6859_v38 = vld [vmem:[#allocation2 + $0x1e4] ss:$16 sps:$4 sm:$0xff]   ;;  %v6862_v40 = vld [vmem:[#allocation2 + $0x1ec] ss:$16 sps:$4 sm:$0xff]  }
  0xf8   : > { %2162 = vmatpush1.bf16.msra.mxu0 %v6809_v41  ;;  %2268 = vmatpush1.bf16.msra.mxu1 %v6812_v43  ;;  %v6857_v41 = vld [vmem:[#allocation2 + $0x1e0] ss:$16 sps:$4 sm:$0xff]   ;;  %v6860_v43 = vld [vmem:[#allocation2 + $0x1e8] ss:$16 sps:$4 sm:$0xff]  }
  0xf9   : > { %2163 = vmatprep.subr.bf16.mxu0 %v6817_v45  ;;  %2269 = vmatprep.subr.bf16.mxu1 %v6820_v46  ;;  %v6865_v45 = vld [vmem:[#allocation2 + $0x204] ss:$16 sps:$4 sm:$0xff]   ;;  %v6868_v46 = vld [vmem:[#allocation2 + $0x20c] ss:$16 sps:$4 sm:$0xff]  }
  0xfc   : > { %2164 = vmatpush1.bf16.msra.mxu0 %v6815_v49  ;;  %2270 = vmatpush1.bf16.msra.mxu1 %v6818_v50  ;;  %v6863_v49 = vld [vmem:[#allocation2 + $0x200] ss:$16 sps:$4 sm:$0xff]   ;;  %v6866_v50 = vld [vmem:[#allocation2 + $0x208] ss:$16 sps:$4 sm:$0xff]  }
  0xfd   : > { %2165 = vmatprep.subr.bf16.mxu0 %v6823_v51  ;;  %2271 = vmatprep.subr.bf16.mxu1 %v6826_v56  ;;  %v6871_v51 = vld [vmem:[#allocation2 + $0x224] ss:$16 sps:$4 sm:$0xff]   ;;  %v6874_v56 = vld [vmem:[#allocation2 + $0x22c] ss:$16 sps:$4 sm:$0xff]  }
 0x100   : > { %2166 = vmatpush1.bf16.msra.mxu0 %v6821_v61  ;;  %2272 = vmatpush1.bf16.msra.mxu1 %v6824_v32  ;;  %v6869_v61 = vld [vmem:[#allocation2 + $0x220] ss:$16 sps:$4 sm:$0xff]   ;;  %v6872_v32 = vld [vmem:[#allocation2 + $0x228] ss:$16 sps:$4 sm:$0xff]  }
 0x101   : > { %2167 = vmatprep.subr.bf16.mxu0 %v6829_v0  ;;  %2273 = vmatprep.subr.bf16.mxu1 %v6832_v5  ;;  %v6877_v0 = vld [vmem:[#allocation2 + $0x244] ss:$16 sps:$4 sm:$0xff]   ;;  %v6880_v5 = vld [vmem:[#allocation2 + $0x24c] ss:$16 sps:$4 sm:$0xff]  }
 0x104   : > { %2168 = vmatpush1.bf16.msra.mxu0 %v6827_v6  ;;  %2274 = vmatpush1.bf16.msra.mxu1 %v6830_v7  ;;  %v6875_v6 = vld [vmem:[#allocation2 + $0x240] ss:$16 sps:$4 sm:$0xff]   ;;  %v6878_v7 = vld [vmem:[#allocation2 + $0x248] ss:$16 sps:$4 sm:$0xff]  }
 0x105   : > { %2169 = vmatprep.subr.bf16.mxu0 %v6835_v2  ;;  %2275 = vmatprep.subr.bf16.mxu1 %v6838_v13  ;;  %v6883_v2 = vld [vmem:[#allocation2 + $0x264] ss:$16 sps:$4 sm:$0xff]   ;;  %v6886_v13 = vld [vmem:[#allocation2 + $0x26c] ss:$16 sps:$4 sm:$0xff]  }
 0x108   : > { %2170 = vmatpush1.bf16.msra.mxu0 %v6833_v14  ;;  %2276 = vmatpush1.bf16.msra.mxu1 %v6836_v15  ;;  %v6881_v14 = vld [vmem:[#allocation2 + $0x260] ss:$16 sps:$4 sm:$0xff]   ;;  %v6884_v15 = vld [vmem:[#allocation2 + $0x268] ss:$16 sps:$4 sm:$0xff]  }
 0x109   : > { %2171 = vmatprep.subr.bf16.mxu0 %v6841_v19  ;;  %2277 = vmatprep.subr.bf16.mxu1 %v6844_v22  ;;  %v6889_v19 = vld [vmem:[#allocation2 + $0x284] ss:$16 sps:$4 sm:$0xff]   ;;  %v6892_v22 = vld [vmem:[#allocation2 + $0x28c] ss:$16 sps:$4 sm:$0xff]  }
 0x10c   : > { %2172 = vmatpush1.bf16.msra.mxu0 %v6839_v26  ;;  %2278 = vmatpush1.bf16.msra.mxu1 %v6842_v27  ;;  %v6887_v26 = vld [vmem:[#allocation2 + $0x280] ss:$16 sps:$4 sm:$0xff]   ;;  %v6890_v27 = vld [vmem:[#allocation2 + $0x288] ss:$16 sps:$4 sm:$0xff]  }
 0x10d   : > { %2173 = vmatprep.subr.bf16.mxu0 %v6847_v29  ;;  %2279 = vmatprep.subr.bf16.mxu1 %v6850_v30  ;;  %v6895_v29 = vld [vmem:[#allocation2 + $0x2a4] ss:$16 sps:$4 sm:$0xff]   ;;  %v6898_v30 = vld [vmem:[#allocation2 + $0x2ac] ss:$16 sps:$4 sm:$0xff]  }
 0x110   : > { %2174 = vmatpush1.bf16.msra.mxu0 %v6845_v31  ;;  %2280 = vmatpush1.bf16.msra.mxu1 %v6848_v33  ;;  %v6893_v31 = vld [vmem:[#allocation2 + $0x2a0] ss:$16 sps:$4 sm:$0xff]   ;;  %v6896_v33 = vld [vmem:[#allocation2 + $0x2a8] ss:$16 sps:$4 sm:$0xff]  }
 0x111   : > { %2175 = vmatprep.subr.bf16.mxu0 %v6853_v34  ;;  %2281 = vmatprep.subr.bf16.mxu1 %v6856_v35  ;;  %v6901_v34 = vld [vmem:[#allocation2 + $0x2c4] ss:$16 sps:$4 sm:$0xff]   ;;  %v6904_v35 = vld [vmem:[#allocation2 + $0x2cc] ss:$16 sps:$4 sm:$0xff]  }
 0x114   : > { %2176 = vmatpush1.bf16.msra.mxu0 %v6851_v36  ;;  %2282 = vmatpush1.bf16.msra.mxu1 %v6854_v37  ;;  %v6899_v36 = vld [vmem:[#allocation2 + $0x2c0] ss:$16 sps:$4 sm:$0xff]   ;;  %v6902_v37 = vld [vmem:[#allocation2 + $0x2c8] ss:$16 sps:$4 sm:$0xff]  }
 0x115   : > { %2177 = vmatprep.subr.bf16.mxu0 %v6859_v38  ;;  %2283 = vmatprep.subr.bf16.mxu1 %v6862_v40  ;;  %v6907_v38 = vld [vmem:[#allocation2 + $0x2e4] ss:$16 sps:$4 sm:$0xff]   ;;  %v6910_v40 = vld [vmem:[#allocation2 + $0x2ec] ss:$16 sps:$4 sm:$0xff]  }
 0x118   : > { %2178 = vmatpush1.bf16.msra.mxu0 %v6857_v41  ;;  %2284 = vmatpush1.bf16.msra.mxu1 %v6860_v43  ;;  %v6905_v41 = vld [vmem:[#allocation2 + $0x2e0] ss:$16 sps:$4 sm:$0xff]   ;;  %v6908_v43 = vld [vmem:[#allocation2 + $0x2e8] ss:$16 sps:$4 sm:$0xff]  }
 0x119   : > { %2200 = vmatprep.subr.bf16.mxu0 %v6865_v45  ;;  %2306 = vmatprep.subr.bf16.mxu1 %v6868_v46  ;;  %v6913_v45 = vld [vmem:[#allocation2 + $0x304] ss:$16 sps:$4 sm:$0xff]   ;;  %v6916_v46 = vld [vmem:[#allocation2 + $0x30c] ss:$16 sps:$4 sm:$0xff]  }
 0x11b   : > { %2180 = vmatmul.mubr.bf16.vlgmr.msra.gmra.mrb[0].mxu0 %v7862_v3  ;;  %2286 = vmatmul.mubr.bf16.vlgmr.msra.gmra.mrb[0].mxu1 %v7862_v3 }
 0x11c   : > { %2201 = vmatpush1.bf16.msra.mxu0 %v6863_v49  ;;  %2307 = vmatpush1.bf16.msra.mxu1 %v6866_v50  ;;  %v6911_v49 = vld [vmem:[#allocation2 + $0x300] ss:$16 sps:$4 sm:$0xff]   ;;  %v6914_v50 = vld [vmem:[#allocation2 + $0x308] ss:$16 sps:$4 sm:$0xff]  }
 0x11d   : > { %2202 = vmatprep.subr.bf16.mxu0 %v6871_v51  ;;  %2308 = vmatprep.subr.bf16.mxu1 %v6874_v56  ;;  %v6919_v51 = vld [vmem:[#allocation2 + $0x324] ss:$16 sps:$4 sm:$0xff]   ;;  %v6922_v56 = vld [vmem:[#allocation2 + $0x32c] ss:$16 sps:$4 sm:$0xff]  }
 0x11e   : > { %2189 = vmatprep.mubr.bf16.mxu0 %v7849_v54  ;;  %2295 = vmatprep.mubr.bf16.mxu1 %v7849_v54 }
 0x120   : > { %2203 = vmatpush1.bf16.msra.mxu0 %v6869_v61  ;;  %2309 = vmatpush1.bf16.msra.mxu1 %v6872_v32  ;;  %v6917_v61 = vld [vmem:[#allocation2 + $0x320] ss:$16 sps:$4 sm:$0xff]   ;;  %v6920_v32 = vld [vmem:[#allocation2 + $0x328] ss:$16 sps:$4 sm:$0xff]  }
 0x121   : > { %2204 = vmatprep.subr.bf16.mxu0 %v6877_v0  ;;  %2310 = vmatprep.subr.bf16.mxu1 %v6880_v5  ;;  %v6925_v0 = vld [vmem:[#allocation2 + $0x344] ss:$16 sps:$4 sm:$0xff]   ;;  %v6928_v5 = vld [vmem:[#allocation2 + $0x34c] ss:$16 sps:$4 sm:$0xff]  }
 0x123   : > { %2190 = vmatmul.mubr.bf16.gmra.mrb[4].mxu0 %v7870_v10  ;;  %2296 = vmatmul.mubr.bf16.gmra.mrb[4].mxu1 %v7870_v10 }
 0x124   : > { %2205 = vmatpush1.bf16.msra.mxu0 %v6875_v6  ;;  %2311 = vmatpush1.bf16.msra.mxu1 %v6878_v7  ;;  %v6923_v6 = vld [vmem:[#allocation2 + $0x340] ss:$16 sps:$4 sm:$0xff]   ;;  %v6926_v7 = vld [vmem:[#allocation2 + $0x348] ss:$16 sps:$4 sm:$0xff]  }
 0x125   : > { %2206 = vmatprep.subr.bf16.mxu0 %v6883_v2  ;;  %2312 = vmatprep.subr.bf16.mxu1 %v6886_v13  ;;  %v6931_v2 = vld [vmem:[#allocation2 + $0x364] ss:$16 sps:$4 sm:$0xff]   ;;  %v6934_v13 = vld [vmem:[#allocation2 + $0x36c] ss:$16 sps:$4 sm:$0xff]  }
 0x126   : > { %2232 = vmatprep.mubr.bf16.mxu0 %v7908_v17  ;;  %2338 = vmatprep.mubr.bf16.mxu1 %v7908_v17 }
 0x128   : > { %2207 = vmatpush1.bf16.msra.mxu0 %v6881_v14  ;;  %2313 = vmatpush1.bf16.msra.mxu1 %v6884_v15  ;;  %v6929_v14 = vld [vmem:[#allocation2 + $0x360] ss:$16 sps:$4 sm:$0xff]   ;;  %v6932_v15 = vld [vmem:[#allocation2 + $0x368] ss:$16 sps:$4 sm:$0xff]  }
 0x129   : > { %2208 = vmatprep.subr.bf16.mxu0 %v6889_v19  ;;  %2314 = vmatprep.subr.bf16.mxu1 %v6892_v22  ;;  %v6937_v19 = vld [vmem:[#allocation2 + $0x384] ss:$16 sps:$4 sm:$0xff]   ;;  %v6940_v22 = vld [vmem:[#allocation2 + $0x38c] ss:$16 sps:$4 sm:$0xff]  }
 0x12c   : > { %2209 = vmatpush1.bf16.msra.mxu0 %v6887_v26  ;;  %2315 = vmatpush1.bf16.msra.mxu1 %v6890_v27  ;;  %v6935_v26 = vld [vmem:[#allocation2 + $0x380] ss:$16 sps:$4 sm:$0xff]   ;;  %v6938_v27 = vld [vmem:[#allocation2 + $0x388] ss:$16 sps:$4 sm:$0xff]  }
 0x12d   : > { %2210 = vmatprep.subr.bf16.mxu0 %v6895_v29  ;;  %2316 = vmatprep.subr.bf16.mxu1 %v6898_v30  ;;  %v6943_v29 = vld [vmem:[#allocation2 + $0x3a4] ss:$16 sps:$4 sm:$0xff]   ;;  %v6946_v30 = vld [vmem:[#allocation2 + $0x3ac] ss:$16 sps:$4 sm:$0xff]  }
 0x130   : > { %2211 = vmatpush1.bf16.msra.mxu0 %v6893_v31  ;;  %2317 = vmatpush1.bf16.msra.mxu1 %v6896_v33  ;;  %v6941_v31 = vld [vmem:[#allocation2 + $0x3a0] ss:$16 sps:$4 sm:$0xff]   ;;  %v6944_v33 = vld [vmem:[#allocation2 + $0x3a8] ss:$16 sps:$4 sm:$0xff]  }
 0x131   : > { %2212 = vmatprep.subr.bf16.mxu0 %v6901_v34  ;;  %2318 = vmatprep.subr.bf16.mxu1 %v6904_v35  ;;  %v6949_v34 = vld [vmem:[#allocation2 + $0x3c4] ss:$16 sps:$4 sm:$0xff]   ;;  %v6952_v35 = vld [vmem:[#allocation2 + $0x3cc] ss:$16 sps:$4 sm:$0xff]  }
 0x134   : > { %2213 = vmatpush1.bf16.msra.mxu0 %v6899_v36  ;;  %2319 = vmatpush1.bf16.msra.mxu1 %v6902_v37  ;;  %v6947_v36 = vld [vmem:[#allocation2 + $0x3c0] ss:$16 sps:$4 sm:$0xff]   ;;  %v6950_v37 = vld [vmem:[#allocation2 + $0x3c8] ss:$16 sps:$4 sm:$0xff]  }
 0x135   : > { %2214 = vmatprep.subr.bf16.mxu0 %v6907_v38  ;;  %2320 = vmatprep.subr.bf16.mxu1 %v6910_v40  ;;  %v6955_v38 = vld [vmem:[#allocation2 + $0x3e4] ss:$16 sps:$4 sm:$0xff]   ;;  %v6958_v40 = vld [vmem:[#allocation2 + $0x3ec] ss:$16 sps:$4 sm:$0xff]  }
 0x138   : > { %2215 = vmatpush1.bf16.msra.mxu0 %v6905_v41  ;;  %2321 = vmatpush1.bf16.msra.mxu1 %v6908_v43  ;;  %v6953_v41 = vld [vmem:[#allocation2 + $0x3e0] ss:$16 sps:$4 sm:$0xff]   ;;  %v6956_v43 = vld [vmem:[#allocation2 + $0x3e8] ss:$16 sps:$4 sm:$0xff]  }
 0x139   : > { %2216 = vmatprep.subr.bf16.mxu0 %v6913_v45  ;;  %2322 = vmatprep.subr.bf16.mxu1 %v6916_v46  ;;  %v6961_v45 = vld [vmem:[#allocation2 + $0x804] ss:$16 sps:$4 sm:$0xff]   ;;  %v6964_v46 = vld [vmem:[#allocation2 + $0x80c] ss:$16 sps:$4 sm:$0xff]  }
 0x13c   : > { %2217 = vmatpush1.bf16.msra.mxu0 %v6911_v49  ;;  %2323 = vmatpush1.bf16.msra.mxu1 %v6914_v50  ;;  %v6959_v49 = vld [vmem:[#allocation2 + $0x800] ss:$16 sps:$4 sm:$0xff]   ;;  %v6962_v50 = vld [vmem:[#allocation2 + $0x808] ss:$16 sps:$4 sm:$0xff]  }
 0x13d   : > { %2218 = vmatprep.subr.bf16.mxu0 %v6919_v51  ;;  %2324 = vmatprep.subr.bf16.mxu1 %v6922_v56  ;;  %v6967_v51 = vld [vmem:[#allocation2 + $0x824] ss:$16 sps:$4 sm:$0xff]   ;;  %v6970_v56 = vld [vmem:[#allocation2 + $0x82c] ss:$16 sps:$4 sm:$0xff]  }
 0x140   : > { %2219 = vmatpush1.bf16.msra.mxu0 %v6917_v61  ;;  %2325 = vmatpush1.bf16.msra.mxu1 %v6920_v32  ;;  %v6965_v61 = vld [vmem:[#allocation2 + $0x820] ss:$16 sps:$4 sm:$0xff]   ;;  %v6968_v32 = vld [vmem:[#allocation2 + $0x828] ss:$16 sps:$4 sm:$0xff]  }
 0x141   : > { %2220 = vmatprep.subr.bf16.mxu0 %v6925_v0  ;;  %2326 = vmatprep.subr.bf16.mxu1 %v6928_v5  ;;  %v6973_v0 = vld [vmem:[#allocation2 + $0x844] ss:$16 sps:$4 sm:$0xff]   ;;  %v6976_v5 = vld [vmem:[#allocation2 + $0x84c] ss:$16 sps:$4 sm:$0xff]  }
 0x144   : > { %2221 = vmatpush1.bf16.msra.mxu0 %v6923_v6  ;;  %2327 = vmatpush1.bf16.msra.mxu1 %v6926_v7  ;;  %v2504_v6 = vrot.slane %v7847_v53, 1  ;;  %v2505_v7 = vrot.slane %v7849_v54, 1 }
 0x145   : > { %2222 = vmatprep.subr.bf16.mxu0 %v6931_v2  ;;  %2328 = vmatprep.subr.bf16.mxu1 %v6934_v13  ;;  %v6971_v2 = vld [vmem:[#allocation2 + $0x840] ss:$16 sps:$4 sm:$0xff]   ;;  %v6974_v13 = vld [vmem:[#allocation2 + $0x848] ss:$16 sps:$4 sm:$0xff]  }
 0x148   : > { %2223 = vmatpush1.bf16.msra.mxu0 %v6929_v14  ;;  %2329 = vmatpush1.bf16.msra.mxu1 %v6932_v15  ;;  %v6979_v14 = vld [vmem:[#allocation2 + $0x864] ss:$16 sps:$4 sm:$0xff]   ;;  %v6982_v15 = vld [vmem:[#allocation2 + $0x86c] ss:$16 sps:$4 sm:$0xff]  }
 0x149   : > { %2224 = vmatprep.subr.bf16.mxu0 %v6937_v19  ;;  %2330 = vmatprep.subr.bf16.mxu1 %v6940_v22  ;;  %v2506_v19 = vsel %vm2500_vm1, %v2504_v6, %v2505_v7  ;;  %v6977_v22 = vld [vmem:[#allocation2 + $0x860] ss:$16 sps:$4 sm:$0xff]   ;;  %v7016_v6 = vld [vmem:[#allocation2 + $0x928] ss:$16 sps:$4 sm:$0xff]  }
 0x14c   : > { %2225 = vmatpush1.bf16.msra.mxu0 %v6935_v26  ;;  %2331 = vmatpush1.bf16.msra.mxu1 %v6938_v27  ;;  %v6980_v26 = vld [vmem:[#allocation2 + $0x868] ss:$16 sps:$4 sm:$0xff]   ;;  %v6985_v27 = vld [vmem:[#allocation2 + $0x884] ss:$16 sps:$4 sm:$0xff]  }
 0x14d   : > { %2226 = vmatprep.subr.bf16.mxu0 %v6943_v29  ;;  %2332 = vmatprep.subr.bf16.mxu1 %v6946_v30  ;;  %v6988_v29 = vld [vmem:[#allocation2 + $0x88c] ss:$16 sps:$4 sm:$0xff]   ;;  %v6983_v30 = vld [vmem:[#allocation2 + $0x880] ss:$16 sps:$4 sm:$0xff]  }
 0x150   : > { %2227 = vmatpush1.bf16.msra.mxu0 %v6941_v31  ;;  %2333 = vmatpush1.bf16.msra.mxu1 %v6944_v33  ;;  %v6986_v31 = vld [vmem:[#allocation2 + $0x888] ss:$16 sps:$4 sm:$0xff]   ;;  %v6991_v33 = vld [vmem:[#allocation2 + $0x8a4] ss:$16 sps:$4 sm:$0xff]  }
 0x151   : > { %2228 = vmatprep.subr.bf16.mxu0 %v6949_v34  ;;  %2334 = vmatprep.subr.bf16.mxu1 %v6952_v35  ;;  %v6994_v34 = vld [vmem:[#allocation2 + $0x8ac] ss:$16 sps:$4 sm:$0xff]   ;;  %v6989_v35 = vld [vmem:[#allocation2 + $0x8a0] ss:$16 sps:$4 sm:$0xff]  }
 0x154   : > { %2229 = vmatpush1.bf16.msra.mxu0 %v6947_v36  ;;  %2335 = vmatpush1.bf16.msra.mxu1 %v6950_v37  ;;  %v6992_v36 = vld [vmem:[#allocation2 + $0x8a8] ss:$16 sps:$4 sm:$0xff]   ;;  %v6997_v37 = vld [vmem:[#allocation2 + $0x8c4] ss:$16 sps:$4 sm:$0xff]  }
 0x155   : > { %2230 = vmatprep.subr.bf16.mxu0 %v6955_v38  ;;  %2336 = vmatprep.subr.bf16.mxu1 %v6958_v40  ;;  %v7000_v38 = vld [vmem:[#allocation2 + $0x8cc] ss:$16 sps:$4 sm:$0xff]   ;;  %v6995_v40 = vld [vmem:[#allocation2 + $0x8c0] ss:$16 sps:$4 sm:$0xff]  }
 0x158   : > { %2231 = vmatpush1.bf16.msra.mxu0 %v6953_v41  ;;  %2337 = vmatpush1.bf16.msra.mxu1 %v6956_v43  ;;  %v6998_v41 = vld [vmem:[#allocation2 + $0x8c8] ss:$16 sps:$4 sm:$0xff]   ;;  %v7003_v43 = vld [vmem:[#allocation2 + $0x8e4] ss:$16 sps:$4 sm:$0xff]  }
 0x159   : > { %3169 = vmatprep.subr.bf16.mxu0 %v6961_v45  ;;  %3275 = vmatprep.subr.bf16.mxu1 %v6964_v46  ;;  %v7006_v45 = vld [vmem:[#allocation2 + $0x8ec] ss:$16 sps:$4 sm:$0xff]   ;;  %v7001_v46 = vld [vmem:[#allocation2 + $0x8e0] ss:$16 sps:$4 sm:$0xff]  }
 0x15b   : > { %2233 = vmatmul.mubr.bf16.vlgmr.msra.gmra.mrb[0].mxu0 %v7931_v1  ;;  %2339 = vmatmul.mubr.bf16.vlgmr.msra.gmra.mrb[0].mxu1 %v7931_v1 }
 0x15c   : > { %3170 = vmatpush1.bf16.msra.mxu0 %v6959_v49  ;;  %3276 = vmatpush1.bf16.msra.mxu1 %v6962_v50  ;;  %v7004_v49 = vld [vmem:[#allocation2 + $0x8e8] ss:$16 sps:$4 sm:$0xff]   ;;  %v7009_v50 = vld [vmem:[#allocation2 + $0x904] ss:$16 sps:$4 sm:$0xff]  }
 0x15d   : > { %3171 = vmatprep.subr.bf16.mxu0 %v6967_v51  ;;  %3277 = vmatprep.subr.bf16.mxu1 %v6970_v56  ;;  %v7012_v51 = vld [vmem:[#allocation2 + $0x90c] ss:$16 sps:$4 sm:$0xff]   ;;  %v7007_v56 = vld [vmem:[#allocation2 + $0x900] ss:$16 sps:$4 sm:$0xff]  }
 0x15e   : > { %2242 = vmatprep.mubr.bf16.mxu0 %v7912_v21  ;;  %2348 = vmatprep.mubr.bf16.mxu1 %v7912_v21 }
 0x160   : > { %3172 = vmatpush1.bf16.msra.mxu0 %v6965_v61  ;;  %3278 = vmatpush1.bf16.msra.mxu1 %v6968_v32  ;;  %v7010_v61 = vld [vmem:[#allocation2 + $0x908] ss:$16 sps:$4 sm:$0xff]   ;;  %v7015_v32 = vld [vmem:[#allocation2 + $0x924] ss:$16 sps:$4 sm:$0xff]  }
 0x161   : > { %3173 = vmatprep.subr.bf16.mxu0 %v6973_v0  ;;  %3279 = vmatprep.subr.bf16.mxu1 %v6976_v5  ;;  %v7018_v0 = vld [vmem:[#allocation2 + $0x92c] ss:$16 sps:$4 sm:$0xff]   ;;  %v7013_v5 = vld [vmem:[#allocation2 + $0x920] ss:$16 sps:$4 sm:$0xff]  }
 0x163   : > { %2243 = vmatmul.mubr.bf16.gmra.mrb[4].mxu0 %v7934_v9  ;;  %2349 = vmatmul.mubr.bf16.gmra.mrb[4].mxu1 %v7934_v9 }
 0x164   : > { %3174 = vmatpush1.bf16.msra.mxu0 %v6971_v2  ;;  %3280 = vmatpush1.bf16.msra.mxu1 %v6974_v13  ;;  %v7021_v2 = vld [vmem:[#allocation2 + $0x944] ss:$16 sps:$4 sm:$0xff]   ;;  %v7024_v13 = vld [vmem:[#allocation2 + $0x94c] ss:$16 sps:$4 sm:$0xff]  }
 0x165   : > { %3175 = vmatprep.subr.bf16.mxu0 %v6979_v14  ;;  %3281 = vmatprep.subr.bf16.mxu1 %v6982_v15  ;;  %v7019_v14 = vld [vmem:[#allocation2 + $0x940] ss:$16 sps:$4 sm:$0xff]   ;;  %v7022_v15 = vld [vmem:[#allocation2 + $0x948] ss:$16 sps:$4 sm:$0xff]  }
 0x166   : > { %3201 = vmatprep.mubr.bf16.mxu0 %v2506_v19  ;;  %3307 = vmatprep.mubr.bf16.mxu1 %v2506_v19  ;;  %v7027_v19 = vld [vmem:[#allocation2 + $0x964] ss:$16 sps:$4 sm:$0xff]  }
 0x168   : > { %3176 = vmatpush1.bf16.msra.mxu0 %v6977_v22  ;;  %3282 = vmatpush1.bf16.msra.mxu1 %v6980_v26  ;;  %v7030_v22 = vld [vmem:[#allocation2 + $0x96c] ss:$16 sps:$4 sm:$0xff]   ;;  %v7025_v26 = vld [vmem:[#allocation2 + $0x960] ss:$16 sps:$4 sm:$0xff]  }
 0x169   : > { %3177 = vmatprep.subr.bf16.mxu0 %v6985_v27  ;;  %3283 = vmatprep.subr.bf16.mxu1 %v6988_v29  ;;  %v7028_v27 = vld [vmem:[#allocation2 + $0x968] ss:$16 sps:$4 sm:$0xff]   ;;  %v7033_v29 = vld [vmem:[#allocation2 + $0x984] ss:$16 sps:$4 sm:$0xff]  }
 0x16c   : > { %3178 = vmatpush1.bf16.msra.mxu0 %v6983_v30  ;;  %3284 = vmatpush1.bf16.msra.mxu1 %v6986_v31  ;;  %v7036_v30 = vld [vmem:[#allocation2 + $0x98c] ss:$16 sps:$4 sm:$0xff]   ;;  %v7031_v31 = vld [vmem:[#allocation2 + $0x980] ss:$16 sps:$4 sm:$0xff]  }
 0x16d   : > { %3179 = vmatprep.subr.bf16.mxu0 %v6991_v33  ;;  %3285 = vmatprep.subr.bf16.mxu1 %v6994_v34  ;;  %v7034_v33 = vld [vmem:[#allocation2 + $0x988] ss:$16 sps:$4 sm:$0xff]   ;;  %v7039_v34 = vld [vmem:[#allocation2 + $0x9a4] ss:$16 sps:$4 sm:$0xff]  }
 0x170   : > { %3180 = vmatpush1.bf16.msra.mxu0 %v6989_v35  ;;  %3286 = vmatpush1.bf16.msra.mxu1 %v6992_v36  ;;  %v7042_v35 = vld [vmem:[#allocation2 + $0x9ac] ss:$16 sps:$4 sm:$0xff]   ;;  %v7037_v36 = vld [vmem:[#allocation2 + $0x9a0] ss:$16 sps:$4 sm:$0xff]  }
 0x171   : > { %3181 = vmatprep.subr.bf16.mxu0 %v6997_v37  ;;  %3287 = vmatprep.subr.bf16.mxu1 %v7000_v38  ;;  %v7040_v37 = vld [vmem:[#allocation2 + $0x9a8] ss:$16 sps:$4 sm:$0xff]   ;;  %v7045_v38 = vld [vmem:[#allocation2 + $0x9c4] ss:$16 sps:$4 sm:$0xff]  }
 0x174   : > { %3182 = vmatpush1.bf16.msra.mxu0 %v6995_v40  ;;  %3288 = vmatpush1.bf16.msra.mxu1 %v6998_v41  ;;  %v7048_v40 = vld [vmem:[#allocation2 + $0x9cc] ss:$16 sps:$4 sm:$0xff]   ;;  %v7043_v41 = vld [vmem:[#allocation2 + $0x9c0] ss:$16 sps:$4 sm:$0xff]  }
 0x175   : > { %3183 = vmatprep.subr.bf16.mxu0 %v7003_v43  ;;  %3289 = vmatprep.subr.bf16.mxu1 %v7006_v45  ;;  %v7046_v43 = vld [vmem:[#allocation2 + $0x9c8] ss:$16 sps:$4 sm:$0xff]   ;;  %v7051_v45 = vld [vmem:[#allocation2 + $0x9e4] ss:$16 sps:$4 sm:$0xff]  }
 0x178   : > { %3184 = vmatpush1.bf16.msra.mxu0 %v7001_v46  ;;  %3290 = vmatpush1.bf16.msra.mxu1 %v7004_v49  ;;  %v7054_v46 = vld [vmem:[#allocation2 + $0x9ec] ss:$16 sps:$4 sm:$0xff]   ;;  %v3527_v49 = vrot.slane %v568_v16, 1  ;;  %v2515_v16 = vrot.slane %v7887_v55, 1 }
 0x179   : > { %3185 = vmatprep.subr.bf16.mxu0 %v7009_v50  ;;  %3291 = vmatprep.subr.bf16.mxu1 %v7012_v51  ;;  %v3531_v50 = vrot.slane %v575_v18, 2  ;;  %v2501_v51 = vrot.slane %v7862_v3, 1  ;;  %v3528_v18 = vrot.slane %v570_v11, 2 }
 0x17a   : > { %v2516_v11 = vsel %vm2500_vm1, %v2505_v7, %v2515_v16  ;;  %v2511_v7 = vrot.slane %v7912_v21, 1  ;;  %v7091_v16 = vld [vmem:[#allocation2 + $0xac0] ss:$16 sps:$4 sm:$0xff]  }
 0x17c   : > { %3186 = vmatpush1.bf16.msra.mxu0 %v7007_v56  ;;  %3292 = vmatpush1.bf16.msra.mxu1 %v7010_v61  ;;  %v7049_v56 = vld [vmem:[#allocation2 + $0x9e0] ss:$16 sps:$4 sm:$0xff]   ;;  %v7052_v61 = vld [vmem:[#allocation2 + $0x9e8] ss:$16 sps:$4 sm:$0xff]  }
 0x17d   : > { %3187 = vmatprep.subr.bf16.mxu0 %v7015_v32  ;;  %3293 = vmatprep.subr.bf16.mxu1 %v7018_v0  ;;  %v2502_v32 = vrot.slane %v7870_v10, 1  ;;  %v3530_v0 = vrot.slane %v615_v60, 1  ;;  %v7066_v60 = vld [vmem:[#allocation2 + $0xa2c] ss:$16 sps:$4 sm:$0xff]  }
 0x180   : > { %3188 = vmatpush1.bf16.msra.mxu0 %v7013_v5  ;;  %3294 = vmatpush1.bf16.msra.mxu1 %v7016_v6  ;;  %v7057_v5 = vld [vmem:[#allocation2 + $0xa04] ss:$16 sps:$4 sm:$0xff]   ;;  %v7060_v6 = vld [vmem:[#allocation2 + $0xa0c] ss:$16 sps:$4 sm:$0xff]  }
 0x181   : > { %3189 = vmatprep.subr.bf16.mxu0 %v7021_v2  ;;  %3295 = vmatprep.subr.bf16.mxu1 %v7024_v13  ;;  %v7055_v2 = vld [vmem:[#allocation2 + $0xa00] ss:$16 sps:$4 sm:$0xff]   ;;  %v7058_v13 = vld [vmem:[#allocation2 + $0xa08] ss:$16 sps:$4 sm:$0xff]  }
 0x184   : > { %3190 = vmatpush1.bf16.msra.mxu0 %v7019_v14  ;;  %3296 = vmatpush1.bf16.msra.mxu1 %v7022_v15  ;;  %v2503_v14 = vsel %vm2500_vm1, %v2501_v51, %v2502_v32  ;;  %v7063_v15 = vld [vmem:[#allocation2 + $0xa24] ss:$16 sps:$4 sm:$0xff]   ;;  %v7082_v51 = vld [vmem:[#allocation2 + $0xa88] ss:$16 sps:$4 sm:$0xff]  }
 0x185   : > { %3191 = vmatprep.subr.bf16.mxu0 %v7027_v19  ;;  %3297 = vmatprep.subr.bf16.mxu1 %v7030_v22  ;;  %v3529_v19 = vor.u32 %v3528_v18, %v3527_v49  ;;  %v8000_v22 = vor.u32 %v3531_v50, %v3530_v0  ;;  %v7084_v49 = vld [vmem:[#allocation2 + $0xa8c] ss:$16 sps:$4 sm:$0xff]   ;;  %v7079_v50 = vld [vmem:[#allocation2 + $0xa80] ss:$16 sps:$4 sm:$0xff]   ;;  %v7088_v0 = vld [vmem:[#allocation2 + $0xaa8] ss:$16 sps:$4 sm:$0xff]  }
 0x186   : > { %v7094_v18 = vld [vmem:[#allocation2 + $0xac8] ss:$16 sps:$4 sm:$0xff]  }
 0x188   : > { %3192 = vmatpush1.bf16.msra.mxu0 %v7025_v26  ;;  %3298 = vmatpush1.bf16.msra.mxu1 %v7028_v27  ;;  %v8007_v26 = vsel %vm3526_vm2, %v3529_v19, %v8000_v22  ;;  %v7061_v27 = vld [vmem:[#allocation2 + $0xa20] ss:$16 sps:$4 sm:$0xff]   ;;  %v7108_v19 = vld [vmem:[#allocation2 + $0xb0c] ss:$16 sps:$4 sm:$0xff]  }
 0x189   : > { %3193 = vmatprep.subr.bf16.mxu0 %v7033_v29  ;;  %3299 = vmatprep.subr.bf16.mxu1 %v7036_v30  ;;  %v7064_v29 = vld [vmem:[#allocation2 + $0xa28] ss:$16 sps:$4 sm:$0xff]   ;;  %v2513_v30 = vrot.slane %v7895_v4, 1 }
 0x18c   : > { %3194 = vmatpush1.bf16.msra.mxu0 %v7031_v31  ;;  %3300 = vmatpush1.bf16.msra.mxu1 %v7034_v33  ;;  %v7069_v31 = vld [vmem:[#allocation2 + $0xa44] ss:$16 sps:$4 sm:$0xff]   ;;  %v7072_v33 = vld [vmem:[#allocation2 + $0xa4c] ss:$16 sps:$4 sm:$0xff]  }
 0x18d   : > { %3195 = vmatprep.subr.bf16.mxu0 %v7039_v34  ;;  %3301 = vmatprep.subr.bf16.mxu1 %v7042_v35  ;;  %v2510_v34 = vrot.slane %v7908_v17, 1  ;;  %v7067_v35 = vld [vmem:[#allocation2 + $0xa40] ss:$16 sps:$4 sm:$0xff]  }
 0x190   : > { %3196 = vmatpush1.bf16.msra.mxu0 %v7037_v36  ;;  %3302 = vmatpush1.bf16.msra.mxu1 %v7040_v37  ;;  %v7070_v36 = vld [vmem:[#allocation2 + $0xa48] ss:$16 sps:$4 sm:$0xff]   ;;  %v2514_v37 = vsel %vm2500_vm1, %v2502_v32, %v2513_v30  ;;  %v7085_v32 = vld [vmem:[#allocation2 + $0xaa0] ss:$16 sps:$4 sm:$0xff]   ;;  %v7114_v30 = vld [vmem:[#allocation2 + $0xb2c] ss:$16 sps:$4 sm:$0xff]  }
 0x191   : > { %3197 = vmatprep.subr.bf16.mxu0 %v7045_v38  ;;  %3303 = vmatprep.subr.bf16.mxu1 %v7048_v40  ;;  %v7075_v38 = vld [vmem:[#allocation2 + $0xa64] ss:$16 sps:$4 sm:$0xff]   ;;  %v7078_v40 = vld [vmem:[#allocation2 + $0xa6c] ss:$16 sps:$4 sm:$0xff]  }
 0x194   : > { %3198 = vmatpush1.bf16.msra.mxu0 %v7043_v41  ;;  %3304 = vmatpush1.bf16.msra.mxu1 %v7046_v43  ;;  %v2512_v41 = vsel %vm2500_vm1, %v2510_v34, %v2511_v7  ;;  %v7073_v43 = vld [vmem:[#allocation2 + $0xa60] ss:$16 sps:$4 sm:$0xff]   ;;  %v7117_v34 = vld [vmem:[#allocation2 + $0xb44] ss:$16 sps:$4 sm:$0xff]  }
 0x195   : > { %3199 = vmatprep.subr.bf16.mxu0 %v7051_v45  ;;  %3305 = vmatprep.subr.bf16.mxu1 %v7054_v46  ;;  %v7076_v45 = vld [vmem:[#allocation2 + $0xa68] ss:$16 sps:$4 sm:$0xff]   ;;  %v7081_v46 = vld [vmem:[#allocation2 + $0xa84] ss:$16 sps:$4 sm:$0xff]  }
 0x198   : > { %3200 = vmatpush1.bf16.msra.mxu0 %v7049_v56  ;;  %3306 = vmatpush1.bf16.msra.mxu1 %v7052_v61  ;;  %v7087_v56 = vld [vmem:[#allocation2 + $0xaa4] ss:$16 sps:$4 sm:$0xff]   ;;  %v7090_v61 = vld [vmem:[#allocation2 + $0xaac] ss:$16 sps:$4 sm:$0xff]  }
 0x199   : > { %3222 = vmatprep.subr.bf16.mxu0 %v7057_v5  ;;  %3328 = vmatprep.subr.bf16.mxu1 %v7060_v6  ;;  %v7093_v5 = vld [vmem:[#allocation2 + $0xac4] ss:$16 sps:$4 sm:$0xff]   ;;  %v7096_v6 = vld [vmem:[#allocation2 + $0xacc] ss:$16 sps:$4 sm:$0xff]  }
 0x19b   : > { %3202 = vmatmul.mubr.bf16.vlgmr.msra.gmra.mrb[0].mxu0 %v2503_v14  ;;  %3308 = vmatmul.mubr.bf16.vlgmr.msra.gmra.mrb[0].mxu1 %v2503_v14  ;;  %v7097_v14 = vld [vmem:[#allocation2 + $0xae0] ss:$16 sps:$4 sm:$0xff]  }
 0x19c   : > { %3223 = vmatpush1.bf16.msra.mxu0 %v7055_v2  ;;  %3329 = vmatpush1.bf16.msra.mxu1 %v7058_v13  ;;  %v7099_v2 = vld [vmem:[#allocation2 + $0xae4] ss:$16 sps:$4 sm:$0xff]   ;;  %v7102_v13 = vld [vmem:[#allocation2 + $0xaec] ss:$16 sps:$4 sm:$0xff]  }
 0x19d   : > { %3224 = vmatprep.subr.bf16.mxu0 %v7063_v15  ;;  %3330 = vmatprep.subr.bf16.mxu1 %v7066_v60  ;;  %v7100_v15 = vld [vmem:[#allocation2 + $0xae8] ss:$16 sps:$4 sm:$0xff]   ;;  %v7105_v60 = vld [vmem:[#allocation2 + $0xb04] ss:$16 sps:$4 sm:$0xff]  }
 0x19e   : > { %3211 = vmatprep.mubr.bf16.mxu0 %v2516_v11  ;;  %3317 = vmatprep.mubr.bf16.mxu1 %v2516_v11  ;;  %v7103_v11 = vld [vmem:[#allocation2 + $0xb00] ss:$16 sps:$4 sm:$0xff]  }
 0x1a0   : > { %3225 = vmatpush1.bf16.msra.mxu0 %v7061_v27  ;;  %3331 = vmatpush1.bf16.msra.mxu1 %v7064_v29  ;;  %v7106_v27 = vld [vmem:[#allocation2 + $0xb08] ss:$16 sps:$4 sm:$0xff]   ;;  %v7111_v29 = vld [vmem:[#allocation2 + $0xb24] ss:$16 sps:$4 sm:$0xff]  }
 0x1a1   : > { %3226 = vmatprep.subr.bf16.mxu0 %v7069_v31  ;;  %3332 = vmatprep.subr.bf16.mxu1 %v7072_v33  ;;  %v7109_v31 = vld [vmem:[#allocation2 + $0xb20] ss:$16 sps:$4 sm:$0xff]   ;;  %v7112_v33 = vld [vmem:[#allocation2 + $0xb28] ss:$16 sps:$4 sm:$0xff]  }
 0x1a3   : > { %3212 = vmatmul.mubr.bf16.gmra.mrb[4].mxu0 %v2514_v37  ;;  %3318 = vmatmul.mubr.bf16.gmra.mrb[4].mxu1 %v2514_v37  ;;  %v7118_v37 = vld [vmem:[#allocation2 + $0xb48] ss:$16 sps:$4 sm:$0xff]  }
 0x1a4   : > { %3227 = vmatpush1.bf16.msra.mxu0 %v7067_v35  ;;  %3333 = vmatpush1.bf16.msra.mxu1 %v7070_v36  ;;  %v7120_v35 = vld [vmem:[#allocation2 + $0xb4c] ss:$16 sps:$4 sm:$0xff]   ;;  %v7115_v36 = vld [vmem:[#allocation2 + $0xb40] ss:$16 sps:$4 sm:$0xff]  }
 0x1a5   : > { %3228 = vmatprep.subr.bf16.mxu0 %v7075_v38  ;;  %3334 = vmatprep.subr.bf16.mxu1 %v7078_v40  ;;  %v7123_v38 = vld [vmem:[#allocation2 + $0xb64] ss:$16 sps:$4 sm:$0xff]   ;;  %v7126_v40 = vld [vmem:[#allocation2 + $0xb6c] ss:$16 sps:$4 sm:$0xff]  }
 0x1a6   : > { %3254 = vmatprep.mubr.bf16.mxu0 %v2512_v41  ;;  %3360 = vmatprep.mubr.bf16.mxu1 %v2512_v41  ;;  %v7121_v41 = vld [vmem:[#allocation2 + $0xb60] ss:$16 sps:$4 sm:$0xff]  }
 0x1a8   : > { %3229 = vmatpush1.bf16.msra.mxu0 %v7073_v43  ;;  %3335 = vmatpush1.bf16.msra.mxu1 %v7076_v45  ;;  %v7124_v43 = vld [vmem:[#allocation2 + $0xb68] ss:$16 sps:$4 sm:$0xff]   ;;  %v7129_v45 = vld [vmem:[#allocation2 + $0xb84] ss:$16 sps:$4 sm:$0xff]  }
 0x1a9   : > { %3230 = vmatprep.subr.bf16.mxu0 %v7081_v46  ;;  %3336 = vmatprep.subr.bf16.mxu1 %v7084_v49  ;;  %v7132_v46 = vld [vmem:[#allocation2 + $0xb8c] ss:$16 sps:$4 sm:$0xff]   ;;  %v7127_v49 = vld [vmem:[#allocation2 + $0xb80] ss:$16 sps:$4 sm:$0xff]  }
 0x1ac   : > { %3231 = vmatpush1.bf16.msra.mxu0 %v7079_v50  ;;  %3337 = vmatpush1.bf16.msra.mxu1 %v7082_v51  ;;  %v7130_v50 = vld [vmem:[#allocation2 + $0xb88] ss:$16 sps:$4 sm:$0xff]   ;;  %v7135_v51 = vld [vmem:[#allocation2 + $0xba4] ss:$16 sps:$4 sm:$0xff]  }
 0x1ad   : > { %3232 = vmatprep.subr.bf16.mxu0 %v7087_v56  ;;  %3338 = vmatprep.subr.bf16.mxu1 %v7090_v61  ;;  %v7138_v56 = vld [vmem:[#allocation2 + $0xbac] ss:$16 sps:$4 sm:$0xff]   ;;  %v7133_v61 = vld [vmem:[#allocation2 + $0xba0] ss:$16 sps:$4 sm:$0xff]  }
 0x1b0   : > { %3233 = vmatpush1.bf16.msra.mxu0 %v7085_v32  ;;  %3339 = vmatpush1.bf16.msra.mxu1 %v7088_v0  ;;  %v7136_v32 = vld [vmem:[#allocation2 + $0xba8] ss:$16 sps:$4 sm:$0xff]   ;;  %v7141_v0 = vld [vmem:[#allocation2 + $0xbc4] ss:$16 sps:$4 sm:$0xff]  }
 0x1b1   : > { %3234 = vmatprep.subr.bf16.mxu0 %v7093_v5  ;;  %3340 = vmatprep.subr.bf16.mxu1 %v7096_v6  ;;  %v7144_v5 = vld [vmem:[#allocation2 + $0xbcc] ss:$16 sps:$4 sm:$0xff]   ;;  %v7139_v6 = vld [vmem:[#allocation2 + $0xbc0] ss:$16 sps:$4 sm:$0xff]  }
 0x1b4   : > { %3235 = vmatpush1.bf16.msra.mxu0 %v7091_v16  ;;  %3341 = vmatpush1.bf16.msra.mxu1 %v7094_v18  ;;  %v7142_v16 = vld [vmem:[#allocation2 + $0xbc8] ss:$16 sps:$4 sm:$0xff]   ;;  %v7147_v18 = vld [vmem:[#allocation2 + $0xbe4] ss:$16 sps:$4 sm:$0xff]  }
 0x1b5   : > { %3236 = vmatprep.subr.bf16.mxu0 %v7099_v2  ;;  %3342 = vmatprep.subr.bf16.mxu1 %v7102_v13  ;;  %v7150_v2 = vld [vmem:[#allocation2 + $0xbec] ss:$16 sps:$4 sm:$0xff]   ;;  %v2507_v13 = vrot.slane %v7931_v1, 1 }
 0x1b8   : > { %3237 = vmatpush1.bf16.msra.mxu0 %v7097_v14  ;;  %3343 = vmatpush1.bf16.msra.mxu1 %v7100_v15  ;;  %v7145_v14 = vld [vmem:[#allocation2 + $0xbe0] ss:$16 sps:$4 sm:$0xff]   ;;  %v7148_v15 = vld [vmem:[#allocation2 + $0xbe8] ss:$16 sps:$4 sm:$0xff]  }
 0x1b9   : > { %3238 = vmatprep.subr.bf16.mxu0 %v7105_v60  ;;  %3344 = vmatprep.subr.bf16.mxu1 %v7108_v19  ;;  %v2508_v60 = vrot.slane %v7934_v9, 1  ;;  %v7153_v19 = vld [vmem:[#allocation2 + $0xc04] ss:$16 sps:$4 sm:$0xff]  }
 0x1bc   : > { %3239 = vmatpush1.bf16.msra.mxu0 %v7103_v11  ;;  %3345 = vmatpush1.bf16.msra.mxu1 %v7106_v27  ;;  %v7156_v11 = vld [vmem:[#allocation2 + $0xc0c] ss:$16 sps:$4 sm:$0xff]   ;;  %v2519_v27 = vrot.slane %v7948_v42, 1 }
 0x1bd   : > { %3240 = vmatprep.subr.bf16.mxu0 %v7111_v29  ;;  %3346 = vmatprep.subr.bf16.mxu1 %v7114_v30  ;;  %v7151_v29 = vld [vmem:[#allocation2 + $0xc00] ss:$16 sps:$4 sm:$0xff]   ;;  %v7154_v30 = vld [vmem:[#allocation2 + $0xc08] ss:$16 sps:$4 sm:$0xff]  }
 0x1c0   : > { %3241 = vmatpush1.bf16.msra.mxu0 %v7109_v31  ;;  %3347 = vmatpush1.bf16.msra.mxu1 %v7112_v33  ;;  %v2509_v31 = vsel %vm2500_vm1, %v2507_v13, %v2508_v60  ;;  %v7159_v33 = vld [vmem:[#allocation2 + $0xc24] ss:$16 sps:$4 sm:$0xff]   ;;  %v7181_v13 = vld [vmem:[#allocation2 + $0xca0] ss:$16 sps:$4 sm:$0xff]  }
 0x1c1   : > { %3242 = vmatprep.subr.bf16.mxu0 %v7117_v34  ;;  %3348 = vmatprep.subr.bf16.mxu1 %v7120_v35  ;;  %v7162_v34 = vld [vmem:[#allocation2 + $0xc2c] ss:$16 sps:$4 sm:$0xff]   ;;  %v3534_v35 = vrot.slane %v580_v57, 1  ;;  %v2517_v57 = vrot.slane %v7956_v52, 1 }
 0x1c4   : > { %3243 = vmatpush1.bf16.msra.mxu0 %v7115_v36  ;;  %3349 = vmatpush1.bf16.msra.mxu1 %v7118_v37  ;;  %v2520_v36 = vsel %vm2500_vm1, %v2511_v7, %v2519_v27  ;;  %v3535_v37 = vrot.slane %v582_v58, 2  ;;  %v7195_v27 = vld [vmem:[#allocation2 + $0xce4] ss:$16 sps:$4 sm:$0xff]  }
 0x1c5   : > { %3244 = vmatprep.subr.bf16.mxu0 %v7123_v38  ;;  %3350 = vmatprep.subr.bf16.mxu1 %v7126_v40  ;;  %v3537_v38 = vrot.slane %v623_v48, 1  ;;  %v3538_v40 = vrot.slane %v587_v59, 2  ;;  %v7163_v48 = vld [vmem:[#allocation2 + $0xc40] ss:$16 sps:$4 sm:$0xff]   ;;  %v2518_v59 = vsel %vm2500_vm1, %v2508_v60, %v2517_v57  ;;  %v7192_v60 = vld [vmem:[#allocation2 + $0xccc] ss:$16 sps:$4 sm:$0xff]  }
 0x1c6   : > { %v3536_v7 = vor.u32 %v3535_v37, %v3534_v35  ;;  %v7199_v35 = vld [vmem:[#allocation2 + $0xd00] ss:$16 sps:$4 sm:$0xff]   ;;  %v7207_v37 = vld [vmem:[#allocation2 + $0xd24] ss:$16 sps:$4 sm:$0xff]   ;;  %v7216_v57 = vld [vmem:[#allocation2 + $0xd4c] ss:$16 sps:$4 sm:$0xff]  }
 0x1c7   : > { %v8032_v58 = vor.u32 %v3538_v40, %v3537_v38  ;;  %v7210_v38 = vld [vmem:[#allocation2 + $0xd2c] ss:$16 sps:$4 sm:$0xff]   ;;  %v7205_v40 = vld [vmem:[#allocation2 + $0xd20] ss:$16 sps:$4 sm:$0xff]  }
 0x1c8   : > { %3245 = vmatpush1.bf16.msra.mxu0 %v7121_v41  ;;  %3351 = vmatpush1.bf16.msra.mxu1 %v7124_v43  ;;  %v7157_v41 = vld [vmem:[#allocation2 + $0xc20] ss:$16 sps:$4 sm:$0xff]   ;;  %v7160_v43 = vld [vmem:[#allocation2 + $0xc28] ss:$16 sps:$4 sm:$0xff]  }
 0x1c9   : > { %3246 = vmatprep.subr.bf16.mxu0 %v7129_v45  ;;  %3352 = vmatprep.subr.bf16.mxu1 %v7132_v46  ;;  %v7165_v45 = vld [vmem:[#allocation2 + $0xc44] ss:$16 sps:$4 sm:$0xff]   ;;  %v7168_v46 = vld [vmem:[#allocation2 + $0xc4c] ss:$16 sps:$4 sm:$0xff]  }
 0x1cc   : > { %3247 = vmatpush1.bf16.msra.mxu0 %v7127_v49  ;;  %3353 = vmatpush1.bf16.msra.mxu1 %v7130_v50  ;;  %v7166_v49 = vld [vmem:[#allocation2 + $0xc48] ss:$16 sps:$4 sm:$0xff]   ;;  %v7171_v50 = vld [vmem:[#allocation2 + $0xc64] ss:$16 sps:$4 sm:$0xff]  }
 0x1cd   : > { %3248 = vmatprep.subr.bf16.mxu0 %v7135_v51  ;;  %3354 = vmatprep.subr.bf16.mxu1 %v7138_v56  ;;  %v7174_v51 = vld [vmem:[#allocation2 + $0xc6c] ss:$16 sps:$4 sm:$0xff]   ;;  %v3540_v56 = vsel %vm3526_vm2, %v3536_v7, %v8032_v58  ;;  %v7219_v7 = vld [vmem:[#allocation2 + $0xd64] ss:$16 sps:$4 sm:$0xff]  }
 0x1d0   : > { %3249 = vmatpush1.bf16.msra.mxu0 %v7133_v61  ;;  %3355 = vmatpush1.bf16.msra.mxu1 %v7136_v32  ;;  %v7169_v61 = vld [vmem:[#allocation2 + $0xc60] ss:$16 sps:$4 sm:$0xff]   ;;  %v7172_v32 = vld [vmem:[#allocation2 + $0xc68] ss:$16 sps:$4 sm:$0xff]  }
 0x1d1   : > { %3250 = vmatprep.subr.bf16.mxu0 %v7141_v0  ;;  %3356 = vmatprep.subr.bf16.mxu1 %v7144_v5  ;;  %v7177_v0 = vld [vmem:[#allocation2 + $0xc84] ss:$16 sps:$4 sm:$0xff]   ;;  %v7180_v5 = vld [vmem:[#allocation2 + $0xc8c] ss:$16 sps:$4 sm:$0xff]  }
 0x1d4   : > { %3251 = vmatpush1.bf16.msra.mxu0 %v7139_v6  ;;  %3357 = vmatpush1.bf16.msra.mxu1 %v7142_v16  ;;  %v7175_v6 = vld [vmem:[#allocation2 + $0xc80] ss:$16 sps:$4 sm:$0xff]   ;;  %v7178_v16 = vld [vmem:[#allocation2 + $0xc88] ss:$16 sps:$4 sm:$0xff]  }
 0x1d5   : > { %3252 = vmatprep.subr.bf16.mxu0 %v7147_v18  ;;  %3358 = vmatprep.subr.bf16.mxu1 %v7150_v2  ;;  %v7183_v18 = vld [vmem:[#allocation2 + $0xca4] ss:$16 sps:$4 sm:$0xff]   ;;  %v7186_v2 = vld [vmem:[#allocation2 + $0xcac] ss:$16 sps:$4 sm:$0xff]  }
 0x1d8   : > { %3253 = vmatpush1.bf16.msra.mxu0 %v7145_v14  ;;  %3359 = vmatpush1.bf16.msra.mxu1 %v7148_v15  ;;  %v7184_v14 = vld [vmem:[#allocation2 + $0xca8] ss:$16 sps:$4 sm:$0xff]   ;;  %v7189_v15 = vld [vmem:[#allocation2 + $0xcc4] ss:$16 sps:$4 sm:$0xff]  }
 0x1d9   : > { %4227 = vmatprep.subr.bf16.mxu0 %v7153_v19  ;;  %4333 = vmatprep.subr.bf16.mxu1 %v7156_v11  ;;  %v7187_v19 = vld [vmem:[#allocation2 + $0xcc0] ss:$16 sps:$4 sm:$0xff]   ;;  %v7190_v11 = vld [vmem:[#allocation2 + $0xcc8] ss:$16 sps:$4 sm:$0xff]  }
 0x1db   : > { %3255 = vmatmul.mubr.bf16.vlgmr.msra.gmra.mrb[0].mxu0 %v2509_v31  ;;  %3361 = vmatmul.mubr.bf16.vlgmr.msra.gmra.mrb[0].mxu1 %v2509_v31  ;;  %v7196_v31 = vld [vmem:[#allocation2 + $0xce8] ss:$16 sps:$4 sm:$0xff]  }
 0x1dc   : > { %4228 = vmatpush1.bf16.msra.mxu0 %v7151_v29  ;;  %4334 = vmatpush1.bf16.msra.mxu1 %v7154_v30  ;;  %v7198_v29 = vld [vmem:[#allocation2 + $0xcec] ss:$16 sps:$4 sm:$0xff]   ;;  %v7193_v30 = vld [vmem:[#allocation2 + $0xce0] ss:$16 sps:$4 sm:$0xff]  }
 0x1dd   : > { %4229 = vmatprep.subr.bf16.mxu0 %v7159_v33  ;;  %4335 = vmatprep.subr.bf16.mxu1 %v7162_v34  ;;  %v7201_v33 = vld [vmem:[#allocation2 + $0xd04] ss:$16 sps:$4 sm:$0xff]   ;;  %v7204_v34 = vld [vmem:[#allocation2 + $0xd0c] ss:$16 sps:$4 sm:$0xff]  }
 0x1de   : > { %3264 = vmatprep.mubr.bf16.mxu0 %v2520_v36  ;;  %3370 = vmatprep.mubr.bf16.mxu1 %v2520_v36  ;;  %v7202_v36 = vld [vmem:[#allocation2 + $0xd08] ss:$16 sps:$4 sm:$0xff]  }
 0x1e0   : > { %4230 = vmatpush1.bf16.msra.mxu0 %v7157_v41  ;;  %4336 = vmatpush1.bf16.msra.mxu1 %v7160_v43  ;;  %v7208_v41 = vld [vmem:[#allocation2 + $0xd28] ss:$16 sps:$4 sm:$0xff]   ;;  %v7213_v43 = vld [vmem:[#allocation2 + $0xd44] ss:$16 sps:$4 sm:$0xff]  }
 0x1e1   : > { %4231 = vmatprep.subr.bf16.mxu0 %v7165_v45  ;;  %4337 = vmatprep.subr.bf16.mxu1 %v7168_v46  ;;  %v7211_v45 = vld [vmem:[#allocation2 + $0xd40] ss:$16 sps:$4 sm:$0xff]   ;;  %v7214_v46 = vld [vmem:[#allocation2 + $0xd48] ss:$16 sps:$4 sm:$0xff]  }
 0x1e3   : > { %3265 = vmatmul.mubr.bf16.gmra.mrb[4].mxu0 %v2518_v59  ;;  %3371 = vmatmul.mubr.bf16.gmra.mrb[4].mxu1 %v2518_v59  ;;  %v7220_v59 = vld [vmem:[#allocation2 + $0xd68] ss:$16 sps:$4 sm:$0xff]  }
 0x1e4   : > { %4232 = vmatpush1.bf16.msra.mxu0 %v7163_v48  ;;  %4338 = vmatpush1.bf16.msra.mxu1 %v7166_v49  ;;  %v7222_v48 = vld [vmem:[#allocation2 + $0xd6c] ss:$16 sps:$4 sm:$0xff]   ;;  %v7217_v49 = vld [vmem:[#allocation2 + $0xd60] ss:$16 sps:$4 sm:$0xff]  }
 0x1e5   : > { %4233 = vmatprep.subr.bf16.mxu0 %v7171_v50  ;;  %4339 = vmatprep.subr.bf16.mxu1 %v7174_v51  ;;  %v7225_v50 = vld [vmem:[#allocation2 + $0xd84] ss:$16 sps:$4 sm:$0xff]   ;;  %v7228_v51 = vld [vmem:[#allocation2 + $0xd8c] ss:$16 sps:$4 sm:$0xff]  }
 0x1e6   : > { %4259 = vmatprep.mubr.bf16.mxu0 %v3540_v56  ;;  %4365 = vmatprep.mubr.bf16.mxu1 %v3540_v56  ;;  %v7223_v56 = vld [vmem:[#allocation2 + $0xd80] ss:$16 sps:$4 sm:$0xff]  }
 0x1e8   : > { %4234 = vmatpush1.bf16.msra.mxu0 %v7169_v61  ;;  %4340 = vmatpush1.bf16.msra.mxu1 %v7172_v32  ;;  %v7226_v61 = vld [vmem:[#allocation2 + $0xd88] ss:$16 sps:$4 sm:$0xff]   ;;  %v7231_v32 = vld [vmem:[#allocation2 + $0xda4] ss:$16 sps:$4 sm:$0xff]  }
 0x1e9   : > { %4235 = vmatprep.subr.bf16.mxu0 %v7177_v0  ;;  %4341 = vmatprep.subr.bf16.mxu1 %v7180_v5  ;;  %v7234_v0 = vld [vmem:[#allocation2 + $0xdac] ss:$16 sps:$4 sm:$0xff]   ;;  %v7229_v5 = vld [vmem:[#allocation2 + $0xda0] ss:$16 sps:$4 sm:$0xff]  }
 0x1ec   : > { %4236 = vmatpush1.bf16.msra.mxu0 %v7175_v6  ;;  %4342 = vmatpush1.bf16.msra.mxu1 %v7178_v16  ;;  %v7232_v6 = vld [vmem:[#allocation2 + $0xda8] ss:$16 sps:$4 sm:$0xff]   ;;  %v7237_v16 = vld [vmem:[#allocation2 + $0xdc4] ss:$16 sps:$4 sm:$0xff]  }
 0x1ed   : > { %4237 = vmatprep.subr.bf16.mxu0 %v7183_v18  ;;  %4343 = vmatprep.subr.bf16.mxu1 %v7186_v2  ;;  %v7240_v18 = vld [vmem:[#allocation2 + $0xdcc] ss:$16 sps:$4 sm:$0xff]   ;;  %v3561_v2 = vshrl.u32 %v7887_v55, 16 }
 0x1f0   : > { %4238 = vmatpush1.bf16.msra.mxu0 %v7181_v13  ;;  %4344 = vmatpush1.bf16.msra.mxu1 %v7184_v14  ;;  %v7235_v13 = vld [vmem:[#allocation2 + $0xdc0] ss:$16 sps:$4 sm:$0xff]   ;;  %v7238_v14 = vld [vmem:[#allocation2 + $0xdc8] ss:$16 sps:$4 sm:$0xff]  }
 0x1f1   : > { %4239 = vmatprep.subr.bf16.mxu0 %v7189_v15  ;;  %4345 = vmatprep.subr.bf16.mxu1 %v7192_v60  ;;  %v7243_v15 = vld [vmem:[#allocation2 + $0xde4] ss:$16 sps:$4 sm:$0xff]   ;;  %v7246_v60 = vld [vmem:[#allocation2 + $0xdec] ss:$16 sps:$4 sm:$0xff]  }
 0x1f4   : > { %4240 = vmatpush1.bf16.msra.mxu0 %v7187_v19  ;;  %4346 = vmatpush1.bf16.msra.mxu1 %v7190_v11  ;;  %v3563_v19 = vrot.slane %v3561_v2, 1  ;;  %v3564_v11 = vrot.slane %v627_v62, 2  ;;  %v7255_v62 = vld [vmem:[#allocation2 + $0xe24] ss:$16 sps:$4 sm:$0xff]   ;;  %v7280_v2 = vld [vmem:[#allocation2 + $0xea8] ss:$16 sps:$4 sm:$0xff]  }
 0x1f5   : > { %4241 = vmatprep.subr.bf16.mxu0 %v7195_v27  ;;  %4347 = vmatprep.subr.bf16.mxu1 %v7198_v29  ;;  %v7241_v27 = vld [vmem:[#allocation2 + $0xde0] ss:$16 sps:$4 sm:$0xff]   ;;  %v7244_v29 = vld [vmem:[#allocation2 + $0xde8] ss:$16 sps:$4 sm:$0xff]  }
 0x1f8   : > { %4242 = vmatpush1.bf16.msra.mxu0 %v7193_v30  ;;  %4348 = vmatpush1.bf16.msra.mxu1 %v7196_v31  ;;  %v3555_v30 = vshrl.u32 %v7895_v4, 16  ;;  %v7249_v31 = vld [vmem:[#allocation2 + $0xe04] ss:$16 sps:$4 sm:$0xff]  }
 0x1f9   : > { %4243 = vmatprep.subr.bf16.mxu0 %v7201_v33  ;;  %4349 = vmatprep.subr.bf16.mxu1 %v7204_v34  ;;  %v7252_v33 = vld [vmem:[#allocation2 + $0xe0c] ss:$16 sps:$4 sm:$0xff]   ;;  %v3565_v34 = vor.u32 %v3564_v11, %v3563_v19  ;;  %v7291_v19 = vld [vmem:[#allocation2 + $0xee4] ss:$16 sps:$4 sm:$0xff]  }
 0x1fa   : > { %v7294_v11 = vld [vmem:[#allocation2 + $0xeec] ss:$16 sps:$4 sm:$0xff]  }
 0x1fc   : > { %4244 = vmatpush1.bf16.msra.mxu0 %v7199_v35  ;;  %4350 = vmatpush1.bf16.msra.mxu1 %v7202_v36  ;;  %v7247_v35 = vld [vmem:[#allocation2 + $0xe00] ss:$16 sps:$4 sm:$0xff]   ;;  %v7250_v36 = vld [vmem:[#allocation2 + $0xe08] ss:$16 sps:$4 sm:$0xff]  }
 0x1fd   : > { %4245 = vmatprep.subr.bf16.mxu0 %v7207_v37  ;;  %4351 = vmatprep.subr.bf16.mxu1 %v7210_v38  ;;  %v3557_v37 = vrot.slane %v3555_v30, 1  ;;  %v3558_v38 = vrot.slane %v619_v8, 2  ;;  %v3551_v8 = vrot.slane %v639_v39, 1  ;;  %v7262_v39 = vld [vmem:[#allocation2 + $0xe48] ss:$16 sps:$4 sm:$0xff]  }
 0x1fe   : > { %v7297_v30 = vld [vmem:[#allocation2 + $0xf04] ss:$16 sps:$4 sm:$0xff]  }
 0x200   : > { %4246 = vmatpush1.bf16.msra.mxu0 %v7205_v40  ;;  %4352 = vmatpush1.bf16.msra.mxu1 %v7208_v41  ;;  %v7258_v40 = vld [vmem:[#allocation2 + $0xe2c] ss:$16 sps:$4 sm:$0xff]   ;;  %v3566_v41 = vsel %vm3526_vm2, %v8032_v58, %v3565_v34  ;;  %v7256_v58 = vld [vmem:[#allocation2 + $0xe28] ss:$16 sps:$4 sm:$0xff]  }
 0x201   : > { %4247 = vmatprep.subr.bf16.mxu0 %v7213_v43  ;;  %4353 = vmatprep.subr.bf16.mxu1 %v7216_v57  ;;  %v3548_v43 = vrot.slane %v604_v23, 1  ;;  %v3549_v57 = vrot.slane %v606_v24, 2  ;;  %v7259_v24 = vld [vmem:[#allocation2 + $0xe40] ss:$16 sps:$4 sm:$0xff]   ;;  %v7298_v34 = vld [vmem:[#allocation2 + $0xf08] ss:$16 sps:$4 sm:$0xff]  }
 0x203   : > { %v3550_v23 = vor.u32 %v3549_v57, %v3548_v43  ;;  %v7310_v43 = vld [vmem:[#allocation2 + $0xf48] ss:$16 sps:$4 sm:$0xff]   ;;  %v7315_v57 = vld [vmem:[#allocation2 + $0xf64] ss:$16 sps:$4 sm:$0xff]  }
 0x204   : > { %4248 = vmatpush1.bf16.msra.mxu0 %v7211_v45  ;;  %4354 = vmatpush1.bf16.msra.mxu1 %v7214_v46  ;;  %v3552_v45 = vrot.slane %v611_v28, 2  ;;  %v7253_v46 = vld [vmem:[#allocation2 + $0xe20] ss:$16 sps:$4 sm:$0xff]  }
 0x205   : > { %4249 = vmatprep.subr.bf16.mxu0 %v7219_v7  ;;  %4355 = vmatprep.subr.bf16.mxu1 %v7222_v48  ;;  %v3559_v7 = vor.u32 %v3558_v38, %v3557_v37  ;;  %v7264_v48 = vld [vmem:[#allocation2 + $0xe4c] ss:$16 sps:$4 sm:$0xff]   ;;  %v7301_v37 = vld [vmem:[#allocation2 + $0xf20] ss:$16 sps:$4 sm:$0xff]   ;;  %v7304_v38 = vld [vmem:[#allocation2 + $0xf28] ss:$16 sps:$4 sm:$0xff]  }
 0x207   : > { %v3560_v28 = vsel %vm3526_vm2, %v8000_v22, %v3559_v7  ;;  %v7271_v22 = vld [vmem:[#allocation2 + $0xe80] ss:$16 sps:$4 sm:$0xff]   ;;  %v7324_v7 = vld [vmem:[#allocation2 + $0xf8c] ss:$16 sps:$4 sm:$0xff]  }
 0x208   : > { %4250 = vmatpush1.bf16.msra.mxu0 %v7217_v49  ;;  %4356 = vmatpush1.bf16.msra.mxu1 %v7220_v59  ;;  %v8055_v49 = vor.u32 %v3552_v45, %v3551_v8  ;;  %v7267_v59 = vld [vmem:[#allocation2 + $0xe64] ss:$16 sps:$4 sm:$0xff]   ;;  %v7318_v8 = vld [vmem:[#allocation2 + $0xf6c] ss:$16 sps:$4 sm:$0xff]   ;;  %v7313_v45 = vld [vmem:[#allocation2 + $0xf60] ss:$16 sps:$4 sm:$0xff]  }
 0x209   : > { %4251 = vmatprep.subr.bf16.mxu0 %v7225_v50  ;;  %4357 = vmatprep.subr.bf16.mxu1 %v7228_v51  ;;  %v7270_v50 = vld [vmem:[#allocation2 + $0xe6c] ss:$16 sps:$4 sm:$0xff]  }
 0x20a   : > { %v3554_v51 = vsel %vm3526_vm2, %v3550_v23, %v8055_v49  ;;  %v7327_v23 = vld [vmem:[#allocation2 + $0xfa4] ss:$16 sps:$4 sm:$0xff]  }
 0x20c   : > { %4252 = vmatpush1.bf16.msra.mxu0 %v7223_v56  ;;  %4358 = vmatpush1.bf16.msra.mxu1 %v7226_v61  ;;  %v7265_v56 = vld [vmem:[#allocation2 + $0xe60] ss:$16 sps:$4 sm:$0xff]   ;;  %v7268_v61 = vld [vmem:[#allocation2 + $0xe68] ss:$16 sps:$4 sm:$0xff]  }
 0x20d   : > { %4253 = vmatprep.subr.bf16.mxu0 %v7231_v32  ;;  %4359 = vmatprep.subr.bf16.mxu1 %v7234_v0  ;;  %v7273_v32 = vld [vmem:[#allocation2 + $0xe84] ss:$16 sps:$4 sm:$0xff]   ;;  %v7276_v0 = vld [vmem:[#allocation2 + $0xe8c] ss:$16 sps:$4 sm:$0xff]  }
 0x210   : > { %4254 = vmatpush1.bf16.msra.mxu0 %v7229_v5  ;;  %4360 = vmatpush1.bf16.msra.mxu1 %v7232_v6  ;;  %v7274_v5 = vld [vmem:[#allocation2 + $0xe88] ss:$16 sps:$4 sm:$0xff]   ;;  %v7279_v6 = vld [vmem:[#allocation2 + $0xea4] ss:$16 sps:$4 sm:$0xff]  }
 0x211   : > { %4255 = vmatprep.subr.bf16.mxu0 %v7237_v16  ;;  %4361 = vmatprep.subr.bf16.mxu1 %v7240_v18  ;;  %v7282_v16 = vld [vmem:[#allocation2 + $0xeac] ss:$16 sps:$4 sm:$0xff]   ;;  %v7277_v18 = vld [vmem:[#allocation2 + $0xea0] ss:$16 sps:$4 sm:$0xff]  }
 0x214   : > { %4256 = vmatpush1.bf16.msra.mxu0 %v7235_v13  ;;  %4362 = vmatpush1.bf16.msra.mxu1 %v7238_v14  ;;  %v7285_v13 = vld [vmem:[#allocation2 + $0xec4] ss:$16 sps:$4 sm:$0xff]   ;;  %v7288_v14 = vld [vmem:[#allocation2 + $0xecc] ss:$16 sps:$4 sm:$0xff]  }
 0x215   : > { %4257 = vmatprep.subr.bf16.mxu0 %v7243_v15  ;;  %4363 = vmatprep.subr.bf16.mxu1 %v7246_v60  ;;  %v7283_v15 = vld [vmem:[#allocation2 + $0xec0] ss:$16 sps:$4 sm:$0xff]   ;;  %v7286_v60 = vld [vmem:[#allocation2 + $0xec8] ss:$16 sps:$4 sm:$0xff]  }
 0x218   : > { %4258 = vmatpush1.bf16.msra.mxu0 %v7241_v27  ;;  %4364 = vmatpush1.bf16.msra.mxu1 %v7244_v29  ;;  %v7289_v27 = vld [vmem:[#allocation2 + $0xee0] ss:$16 sps:$4 sm:$0xff]   ;;  %v7292_v29 = vld [vmem:[#allocation2 + $0xee8] ss:$16 sps:$4 sm:$0xff]  }
 0x219   : > { %4280 = vmatprep.subr.bf16.mxu0 %v7249_v31  ;;  %4386 = vmatprep.subr.bf16.mxu1 %v7252_v33  ;;  %v7300_v31 = vld [vmem:[#allocation2 + $0xf0c] ss:$16 sps:$4 sm:$0xff]   ;;  %v7295_v33 = vld [vmem:[#allocation2 + $0xf00] ss:$16 sps:$4 sm:$0xff]  }
 0x21b   : > { %4260 = vmatmul.mubr.bf16.vlgmr.msra.gmra.mrb[0].mxu0 %v8007_v26  ;;  %4366 = vmatmul.mubr.bf16.vlgmr.msra.gmra.mrb[0].mxu1 %v8007_v26  ;;  %v7261_v26 = vld [vmem:[#allocation2 + $0xe44] ss:$16 sps:$4 sm:$0xff]  }
 0x21c   : > { %4281 = vmatpush1.bf16.msra.mxu0 %v7247_v35  ;;  %4387 = vmatpush1.bf16.msra.mxu1 %v7250_v36  ;;  %v7303_v35 = vld [vmem:[#allocation2 + $0xf24] ss:$16 sps:$4 sm:$0xff]   ;;  %v7306_v36 = vld [vmem:[#allocation2 + $0xf2c] ss:$16 sps:$4 sm:$0xff]  }
 0x21d   : > { %4282 = vmatprep.subr.bf16.mxu0 %v7255_v62  ;;  %4388 = vmatprep.subr.bf16.mxu1 %v7258_v40  ;;  %v7309_v62 = vld [vmem:[#allocation2 + $0xf44] ss:$16 sps:$4 sm:$0xff]   ;;  %v7312_v40 = vld [vmem:[#allocation2 + $0xf4c] ss:$16 sps:$4 sm:$0xff]  }
 0x21e   : > { %4269 = vmatprep.mubr.bf16.mxu0 %v3566_v41  ;;  %4375 = vmatprep.mubr.bf16.mxu1 %v3566_v41  ;;  %v7307_v41 = vld [vmem:[#allocation2 + $0xf40] ss:$16 sps:$4 sm:$0xff]  }
 0x220   : > { %4283 = vmatpush1.bf16.msra.mxu0 %v7253_v46  ;;  %4389 = vmatpush1.bf16.msra.mxu1 %v7256_v58  ;;  %v7316_v46 = vld [vmem:[#allocation2 + $0xf68] ss:$16 sps:$4 sm:$0xff]   ;;  %v7321_v58 = vld [vmem:[#allocation2 + $0xf84] ss:$16 sps:$4 sm:$0xff]  }
 0x221   : > { %4284 = vmatprep.subr.bf16.mxu0 %v7261_v26  ;;  %4390 = vmatprep.subr.bf16.mxu1 %v7264_v48  ;;  %v7319_v26 = vld [vmem:[#allocation2 + $0xf80] ss:$16 sps:$4 sm:$0xff]   ;;  %v7322_v48 = vld [vmem:[#allocation2 + $0xf88] ss:$16 sps:$4 sm:$0xff]  }
 0x223   : > { %4270 = vmatmul.mubr.bf16.gmra.mrb[4].mxu0 %v3560_v28  ;;  %4376 = vmatmul.mubr.bf16.gmra.mrb[4].mxu1 %v3560_v28  ;;  %v7328_v28 = vld [vmem:[#allocation2 + $0xfa8] ss:$16 sps:$4 sm:$0xff]  }
 0x224   : > { %4285 = vmatpush1.bf16.msra.mxu0 %v7259_v24  ;;  %4391 = vmatpush1.bf16.msra.mxu1 %v7262_v39  ;;  %v7330_v24 = vld [vmem:[#allocation2 + $0xfac] ss:$16 sps:$4 sm:$0xff]   ;;  %v7325_v39 = vld [vmem:[#allocation2 + $0xfa0] ss:$16 sps:$4 sm:$0xff]  }
 0x225   : > { %4286 = vmatprep.subr.bf16.mxu0 %v7267_v59  ;;  %4392 = vmatprep.subr.bf16.mxu1 %v7270_v50  ;;  %v7333_v59 = vld [vmem:[#allocation2 + $0xfc4] ss:$16 sps:$4 sm:$0xff]   ;;  %v7336_v50 = vld [vmem:[#allocation2 + $0xfcc] ss:$16 sps:$4 sm:$0xff]  }
 0x226   : > { %4312 = vmatprep.mubr.bf16.mxu0 %v3554_v51  ;;  %4418 = vmatprep.mubr.bf16.mxu1 %v3554_v51  ;;  %v7331_v51 = vld [vmem:[#allocation2 + $0xfc0] ss:$16 sps:$4 sm:$0xff]  }
 0x228   : > { %4287 = vmatpush1.bf16.msra.mxu0 %v7265_v56  ;;  %4393 = vmatpush1.bf16.msra.mxu1 %v7268_v61  ;;  %v3573_v56 = vshrl.u32 %v7948_v42, 16  ;;  %v3544_v61 = vrot.slane %v631_v44, 1  ;;  %v3576_v44 = vrot.slane %v643_v47, 2 }
 0x229   : > { %4288 = vmatprep.subr.bf16.mxu0 %v7273_v32  ;;  %4394 = vmatprep.subr.bf16.mxu1 %v7276_v0  ;;  %v7334_v32 = vld [vmem:[#allocation2 + $0xfc8] ss:$16 sps:$4 sm:$0xff]   ;;  %v3541_v0 = vrot.slane %v592_v20, 1 }
 0x22c   : > { %4289 = vmatpush1.bf16.msra.mxu0 %v7271_v22  ;;  %4395 = vmatpush1.bf16.msra.mxu1 %v7274_v5  ;;  %v3542_v22 = vrot.slane %v594_v12, 2  ;;  %v3545_v5 = vrot.slane %v599_v25, 2  ;;  %v7345_v12 = vld [vmem:[#allocation2 + $0x1004] ss:$16 sps:$4 sm:$0xff]   ;;  %v7348_v25 = vld [vmem:[#allocation2 + $0x100c] ss:$16 sps:$4 sm:$0xff]  }
 0x22d   : > { %4290 = vmatprep.subr.bf16.mxu0 %v7279_v6  ;;  %4396 = vmatprep.subr.bf16.mxu1 %v7282_v16  ;;  %v7339_v6 = vld [vmem:[#allocation2 + $0xfe4] ss:$16 sps:$4 sm:$0xff]   ;;  %v7342_v16 = vld [vmem:[#allocation2 + $0xfec] ss:$16 sps:$4 sm:$0xff]  }
 0x22e   : > { %v3546_v20 = vor.u32 %v3545_v5, %v3544_v61  ;;  %v7390_v61 = vld [vmem:[#allocation2 + $0x10ec] ss:$16 sps:$4 sm:$0xff]  }
 0x22f   : > { %v7396_v5 = vld [vmem:[#allocation2 + $0x110c] ss:$16 sps:$4 sm:$0xff]  }
 0x230   : > { %4291 = vmatpush1.bf16.msra.mxu0 %v7277_v18  ;;  %4397 = vmatpush1.bf16.msra.mxu1 %v7280_v2  ;;  %v3575_v18 = vrot.slane %v3573_v56, 1  ;;  %v7337_v2 = vld [vmem:[#allocation2 + $0xfe0] ss:$16 sps:$4 sm:$0xff]   ;;  %v7387_v56 = vld [vmem:[#allocation2 + $0x10e4] ss:$16 sps:$4 sm:$0xff]  }
 0x231   : > { %4292 = vmatprep.subr.bf16.mxu0 %v7285_v13  ;;  %4398 = vmatprep.subr.bf16.mxu1 %v7288_v14  ;;  %v7340_v13 = vld [vmem:[#allocation2 + $0xfe8] ss:$16 sps:$4 sm:$0xff]   ;;  %v3543_v14 = vor.u32 %v3542_v22, %v3541_v0  ;;  %v7393_v22 = vld [vmem:[#allocation2 + $0x1104] ss:$16 sps:$4 sm:$0xff]  }
 0x232   : > { %v7388_v0 = vld [vmem:[#allocation2 + $0x10e8] ss:$16 sps:$4 sm:$0xff]  }
 0x234   : > { %4293 = vmatpush1.bf16.msra.mxu0 %v7283_v15  ;;  %4399 = vmatpush1.bf16.msra.mxu1 %v7286_v60  ;;  %v3567_v15 = vshrl.u32 %v7956_v52, 16  ;;  %v3577_v60 = vor.u32 %v3576_v44, %v3575_v18  ;;  %v7399_v18 = vld [vmem:[#allocation2 + $0x1124] ss:$16 sps:$4 sm:$0xff]   ;;  %v7402_v44 = vld [vmem:[#allocation2 + $0x112c] ss:$16 sps:$4 sm:$0xff]  }
 0x235   : > { %4294 = vmatprep.subr.bf16.mxu0 %v7291_v19  ;;  %4400 = vmatprep.subr.bf16.mxu1 %v7294_v11  ;;  %v7343_v19 = vld [vmem:[#allocation2 + $0x1000] ss:$16 sps:$4 sm:$0xff]   ;;  %v7346_v11 = vld [vmem:[#allocation2 + $0x1008] ss:$16 sps:$4 sm:$0xff]  }
 0x236   : > { %v3569_v47 = vrot.slane %v3567_v15, 1  ;;  %v7403_v15 = vld [vmem:[#allocation2 + $0x1140] ss:$16 sps:$4 sm:$0xff]  }
 0x238   : > { %4295 = vmatpush1.bf16.msra.mxu0 %v7289_v27  ;;  %4401 = vmatpush1.bf16.msra.mxu1 %v7292_v29  ;;  %v3547_v27 = vsel %vm3526_vm2, %v3543_v14, %v3546_v20  ;;  %v3570_v29 = vrot.slane %v635_v63, 2  ;;  %v4588_v63 = vrot.slane %v7847_v53, 2  ;;  %v7361_v53 = vld [vmem:[#allocation2 + $0x1060] ss:$16 sps:$4 sm:$0xff]   ;;  %v7405_v14 = vld [vmem:[#allocation2 + $0x1144] ss:$16 sps:$4 sm:$0xff]  }
 0x239   : > { %4296 = vmatprep.subr.bf16.mxu0 %v7297_v30  ;;  %4402 = vmatprep.subr.bf16.mxu1 %v7300_v31  ;;  %v7351_v30 = vld [vmem:[#allocation2 + $0x1024] ss:$16 sps:$4 sm:$0xff]   ;;  %v7354_v31 = vld [vmem:[#allocation2 + $0x102c] ss:$16 sps:$4 sm:$0xff]  }
 0x23c   : > { %4297 = vmatpush1.bf16.msra.mxu0 %v7295_v33  ;;  %4403 = vmatpush1.bf16.msra.mxu1 %v7298_v34  ;;  %v3578_v33 = vsel %vm3526_vm2, %v8055_v49, %v3577_v60  ;;  %v7349_v34 = vld [vmem:[#allocation2 + $0x1020] ss:$16 sps:$4 sm:$0xff]   ;;  %v7414_v60 = vld [vmem:[#allocation2 + $0x116c] ss:$16 sps:$4 sm:$0xff]  }
 0x23d   : > { %4298 = vmatprep.subr.bf16.mxu0 %v7303_v35  ;;  %4404 = vmatprep.subr.bf16.mxu1 %v7306_v36  ;;  %v7352_v35 = vld [vmem:[#allocation2 + $0x1028] ss:$16 sps:$4 sm:$0xff]   ;;  %v3571_v36 = vor.u32 %v3570_v29, %v3569_v47  ;;  %v7420_v47 = vld [vmem:[#allocation2 + $0x118c] ss:$16 sps:$4 sm:$0xff]   ;;  %v7415_v29 = vld [vmem:[#allocation2 + $0x1180] ss:$16 sps:$4 sm:$0xff]  }
 0x23f   : > { %v3572_v49 = vsel %vm3526_vm2, %v3546_v20, %v3571_v36  ;;  %v7408_v20 = vld [vmem:[#allocation2 + $0x114c] ss:$16 sps:$4 sm:$0xff]   ;;  %v7429_v36 = vld [vmem:[#allocation2 + $0x11c4] ss:$16 sps:$4 sm:$0xff]  }
 0x240   : > { %4299 = vmatpush1.bf16.msra.mxu0 %v7301_v37  ;;  %4405 = vmatpush1.bf16.msra.mxu1 %v7304_v38  ;;  %v7357_v37 = vld [vmem:[#allocation2 + $0x1044] ss:$16 sps:$4 sm:$0xff]   ;;  %v7360_v38 = vld [vmem:[#allocation2 + $0x104c] ss:$16 sps:$4 sm:$0xff]  }
 0x241   : > { %4300 = vmatprep.subr.bf16.mxu0 %v7309_v62  ;;  %4406 = vmatprep.subr.bf16.mxu1 %v7312_v40  ;;  %v4589_v62 = vrot.slane %v7849_v54, 2  ;;  %v7355_v40 = vld [vmem:[#allocation2 + $0x1040] ss:$16 sps:$4 sm:$0xff]  }
 0x242   : > { %v7451_v54 = vld [vmem:[#allocation2 + $0x1240] ss:$16 sps:$4 sm:$0xff]  }
 0x244   : > { %4301 = vmatpush1.bf16.msra.mxu0 %v7307_v41  ;;  %4407 = vmatpush1.bf16.msra.mxu1 %v7310_v43  ;;  %v7358_v41 = vld [vmem:[#allocation2 + $0x1048] ss:$16 sps:$4 sm:$0xff]   ;;  %v7363_v43 = vld [vmem:[#allocation2 + $0x1064] ss:$16 sps:$4 sm:$0xff]  }
 0x245   : > { %4302 = vmatprep.subr.bf16.mxu0 %v7315_v57  ;;  %4408 = vmatprep.subr.bf16.mxu1 %v7318_v8  ;;  %v7366_v57 = vld [vmem:[#allocation2 + $0x106c] ss:$16 sps:$4 sm:$0xff]   ;;  %v4590_v8 = vsel %vm4584_vm3, %v4588_v63, %v4589_v62  ;;  %v7430_v63 = vld [vmem:[#allocation2 + $0x11c8] ss:$16 sps:$4 sm:$0xff]  }
 0x248   : > { %4303 = vmatpush1.bf16.msra.mxu0 %v7313_v45  ;;  %4409 = vmatpush1.bf16.msra.mxu1 %v7316_v46  ;;  %v7364_v45 = vld [vmem:[#allocation2 + $0x1068] ss:$16 sps:$4 sm:$0xff]   ;;  %v7369_v46 = vld [vmem:[#allocation2 + $0x1084] ss:$16 sps:$4 sm:$0xff]  }
 0x249   : > { %4304 = vmatprep.subr.bf16.mxu0 %v7321_v58  ;;  %4410 = vmatprep.subr.bf16.mxu1 %v7324_v7  ;;  %v7372_v58 = vld [vmem:[#allocation2 + $0x108c] ss:$16 sps:$4 sm:$0xff]   ;;  %v7367_v7 = vld [vmem:[#allocation2 + $0x1080] ss:$16 sps:$4 sm:$0xff]  }
 0x24c   : > { %4305 = vmatpush1.bf16.msra.mxu0 %v7319_v26  ;;  %4411 = vmatpush1.bf16.msra.mxu1 %v7322_v48  ;;  %v7370_v26 = vld [vmem:[#allocation2 + $0x1088] ss:$16 sps:$4 sm:$0xff]   ;;  %v7375_v48 = vld [vmem:[#allocation2 + $0x10a4] ss:$16 sps:$4 sm:$0xff]  }
 0x24d   : > { %4306 = vmatprep.subr.bf16.mxu0 %v7327_v23  ;;  %4412 = vmatprep.subr.bf16.mxu1 %v7330_v24  ;;  %v7378_v23 = vld [vmem:[#allocation2 + $0x10ac] ss:$16 sps:$4 sm:$0xff]   ;;  %v7373_v24 = vld [vmem:[#allocation2 + $0x10a0] ss:$16 sps:$4 sm:$0xff]  }
 0x250   : > { %4307 = vmatpush1.bf16.msra.mxu0 %v7325_v39  ;;  %4413 = vmatpush1.bf16.msra.mxu1 %v7328_v28  ;;  %v7376_v39 = vld [vmem:[#allocation2 + $0x10a8] ss:$16 sps:$4 sm:$0xff]   ;;  %v7381_v28 = vld [vmem:[#allocation2 + $0x10c4] ss:$16 sps:$4 sm:$0xff]  }
 0x251   : > { %4308 = vmatprep.subr.bf16.mxu0 %v7333_v59  ;;  %4414 = vmatprep.subr.bf16.mxu1 %v7336_v50  ;;  %v7384_v59 = vld [vmem:[#allocation2 + $0x10cc] ss:$16 sps:$4 sm:$0xff]   ;;  %v7379_v50 = vld [vmem:[#allocation2 + $0x10c0] ss:$16 sps:$4 sm:$0xff]  }
 0x254   : > { %4309 = vmatpush1.bf16.msra.mxu0 %v7331_v51  ;;  %4415 = vmatpush1.bf16.msra.mxu1 %v7334_v32  ;;  %v7382_v51 = vld [vmem:[#allocation2 + $0x10c8] ss:$16 sps:$4 sm:$0xff]   ;;  %v7385_v32 = vld [vmem:[#allocation2 + $0x10e0] ss:$16 sps:$4 sm:$0xff]  }
 0x255   : > { %4310 = vmatprep.subr.bf16.mxu0 %v7339_v6  ;;  %4416 = vmatprep.subr.bf16.mxu1 %v7342_v16  ;;  %v7391_v6 = vld [vmem:[#allocation2 + $0x1100] ss:$16 sps:$4 sm:$0xff]   ;;  %v7394_v16 = vld [vmem:[#allocation2 + $0x1108] ss:$16 sps:$4 sm:$0xff]  }
 0x258   : > { %4311 = vmatpush1.bf16.msra.mxu0 %v7337_v2  ;;  %4417 = vmatpush1.bf16.msra.mxu1 %v7340_v13  ;;  %v7397_v2 = vld [vmem:[#allocation2 + $0x1120] ss:$16 sps:$4 sm:$0xff]   ;;  %v7400_v13 = vld [vmem:[#allocation2 + $0x1128] ss:$16 sps:$4 sm:$0xff]  }
 0x259   : > { %5253 = vmatprep.subr.bf16.mxu0 %v7345_v12  ;;  %5359 = vmatprep.subr.bf16.mxu1 %v7348_v25  ;;  %v7406_v12 = vld [vmem:[#allocation2 + $0x1148] ss:$16 sps:$4 sm:$0xff]   ;;  %v7411_v25 = vld [vmem:[#allocation2 + $0x1164] ss:$16 sps:$4 sm:$0xff]  }
 0x25b   : > { %4313 = vmatmul.mubr.bf16.vlgmr.msra.gmra.mrb[0].mxu0 %v3547_v27  ;;  %4419 = vmatmul.mubr.bf16.vlgmr.msra.gmra.mrb[0].mxu1 %v3547_v27  ;;  %v7417_v27 = vld [vmem:[#allocation2 + $0x1184] ss:$16 sps:$4 sm:$0xff]  }
 0x25c   : > { %5254 = vmatpush1.bf16.msra.mxu0 %v7343_v19  ;;  %5360 = vmatpush1.bf16.msra.mxu1 %v7346_v11  ;;  %v7409_v19 = vld [vmem:[#allocation2 + $0x1160] ss:$16 sps:$4 sm:$0xff]   ;;  %v7412_v11 = vld [vmem:[#allocation2 + $0x1168] ss:$16 sps:$4 sm:$0xff]  }
 0x25d   : > { %5255 = vmatprep.subr.bf16.mxu0 %v7351_v30  ;;  %5361 = vmatprep.subr.bf16.mxu1 %v7354_v31  ;;  %v7418_v30 = vld [vmem:[#allocation2 + $0x1188] ss:$16 sps:$4 sm:$0xff]   ;;  %v7423_v31 = vld [vmem:[#allocation2 + $0x11a4] ss:$16 sps:$4 sm:$0xff]  }
 0x25e   : > { %4322 = vmatprep.mubr.bf16.mxu0 %v3578_v33  ;;  %4428 = vmatprep.mubr.bf16.mxu1 %v3578_v33  ;;  %v7426_v33 = vld [vmem:[#allocation2 + $0x11ac] ss:$16 sps:$4 sm:$0xff]  }
 0x260   : > { %5256 = vmatpush1.bf16.msra.mxu0 %v7349_v34  ;;  %5362 = vmatpush1.bf16.msra.mxu1 %v7352_v35  ;;  %v7421_v34 = vld [vmem:[#allocation2 + $0x11a0] ss:$16 sps:$4 sm:$0xff]   ;;  %v7424_v35 = vld [vmem:[#allocation2 + $0x11a8] ss:$16 sps:$4 sm:$0xff]  }
 0x261   : > { %5257 = vmatprep.subr.bf16.mxu0 %v7357_v37  ;;  %5363 = vmatprep.subr.bf16.mxu1 %v7360_v38  ;;  %v7432_v37 = vld [vmem:[#allocation2 + $0x11cc] ss:$16 sps:$4 sm:$0xff]   ;;  %v7427_v38 = vld [vmem:[#allocation2 + $0x11c0] ss:$16 sps:$4 sm:$0xff]  }
 0x263   : > { %4323 = vmatmul.mubr.bf16.gmra.mrb[4].mxu0 %v3572_v49  ;;  %4429 = vmatmul.mubr.bf16.gmra.mrb[4].mxu1 %v3572_v49  ;;  %v7433_v49 = vld [vmem:[#allocation2 + $0x11e0] ss:$16 sps:$4 sm:$0xff]  }
 0x264   : > { %5258 = vmatpush1.bf16.msra.mxu0 %v7355_v40  ;;  %5364 = vmatpush1.bf16.msra.mxu1 %v7358_v41  ;;  %v7435_v40 = vld [vmem:[#allocation2 + $0x11e4] ss:$16 sps:$4 sm:$0xff]   ;;  %v7438_v41 = vld [vmem:[#allocation2 + $0x11ec] ss:$16 sps:$4 sm:$0xff]  }
 0x265   : > { %5259 = vmatprep.subr.bf16.mxu0 %v7363_v43  ;;  %5365 = vmatprep.subr.bf16.mxu1 %v7366_v57  ;;  %v7436_v43 = vld [vmem:[#allocation2 + $0x11e8] ss:$16 sps:$4 sm:$0xff]   ;;  %v4585_v57 = vrot.slane %v7862_v3, 2 }
 0x266   : > { %5285 = vmatprep.mubr.bf16.mxu0 %v4590_v8  ;;  %5391 = vmatprep.mubr.bf16.mxu1 %v4590_v8  ;;  %v4586_v8 = vrot.slane %v7870_v10, 2  ;;  %v7445_v10 = vld [vmem:[#allocation2 + $0x1220] ss:$16 sps:$4 sm:$0xff]  }
 0x268   : > { %5260 = vmatpush1.bf16.msra.mxu0 %v7361_v53  ;;  %5366 = vmatpush1.bf16.msra.mxu1 %v7364_v45  ;;  %v7441_v53 = vld [vmem:[#allocation2 + $0x1204] ss:$16 sps:$4 sm:$0xff]   ;;  %v7444_v45 = vld [vmem:[#allocation2 + $0x120c] ss:$16 sps:$4 sm:$0xff]  }
 0x269   : > { %5261 = vmatprep.subr.bf16.mxu0 %v7369_v46  ;;  %5367 = vmatprep.subr.bf16.mxu1 %v7372_v58  ;;  %v4599_v46 = vrot.slane %v7887_v55, 2  ;;  %v7439_v58 = vld [vmem:[#allocation2 + $0x1200] ss:$16 sps:$4 sm:$0xff]   ;;  %v7448_v55 = vld [vmem:[#allocation2 + $0x1228] ss:$16 sps:$4 sm:$0xff]  }
 0x26b   : > { %v4600_v3 = vsel %vm4584_vm3, %v4589_v62, %v4599_v46  ;;  %v7454_v62 = vld [vmem:[#allocation2 + $0x1248] ss:$16 sps:$4 sm:$0xff]   ;;  %v7522_v46 = vld [vmem:[#allocation2 + $0x13ac] ss:$16 sps:$4 sm:$0xff]  }
 0x26c   : > { %5262 = vmatpush1.bf16.msra.mxu0 %v7367_v7  ;;  %5368 = vmatpush1.bf16.msra.mxu1 %v7370_v26  ;;  %v7442_v7 = vld [vmem:[#allocation2 + $0x1208] ss:$16 sps:$4 sm:$0xff]   ;;  %v4587_v26 = vsel %vm4584_vm3, %v4585_v57, %v4586_v8  ;;  %v7516_v57 = vld [vmem:[#allocation2 + $0x138c] ss:$16 sps:$4 sm:$0xff]  }
 0x26d   : > { %5263 = vmatprep.subr.bf16.mxu0 %v7375_v48  ;;  %5369 = vmatprep.subr.bf16.mxu1 %v7378_v23  ;;  %v7447_v48 = vld [vmem:[#allocation2 + $0x1224] ss:$16 sps:$4 sm:$0xff]   ;;  %v7450_v23 = vld [vmem:[#allocation2 + $0x122c] ss:$16 sps:$4 sm:$0xff]  }
 0x270   : > { %5264 = vmatpush1.bf16.msra.mxu0 %v7373_v24  ;;  %5370 = vmatpush1.bf16.msra.mxu1 %v7376_v39  ;;  %v4597_v24 = vrot.slane %v7895_v4, 2  ;;  %v7453_v39 = vld [vmem:[#allocation2 + $0x1244] ss:$16 sps:$4 sm:$0xff]   ;;  %v7462_v4 = vld [vmem:[#allocation2 + $0x126c] ss:$16 sps:$4 sm:$0xff]  }
 0x271   : > { %5265 = vmatprep.subr.bf16.mxu0 %v7381_v28  ;;  %5371 = vmatprep.subr.bf16.mxu1 %v7384_v59  ;;  %v7456_v28 = vld [vmem:[#allocation2 + $0x124c] ss:$16 sps:$4 sm:$0xff]   ;;  %v4594_v59 = vrot.slane %v7908_v17, 2  ;;  %v7457_v17 = vld [vmem:[#allocation2 + $0x1260] ss:$16 sps:$4 sm:$0xff]  }
 0x274   : > { %5266 = vmatpush1.bf16.msra.mxu0 %v7379_v50  ;;  %5372 = vmatpush1.bf16.msra.mxu1 %v7382_v51  ;;  %v4595_v50 = vrot.slane %v7912_v21, 2  ;;  %v4598_v51 = vsel %vm4584_vm3, %v4586_v8, %v4597_v24  ;;  %v7511_v8 = vld [vmem:[#allocation2 + $0x1380] ss:$16 sps:$4 sm:$0xff]   ;;  %v5519_v21 = vld [vmem:[#allocation6] sm:$0xf] }
 0x275   : > { %5267 = vmatprep.subr.bf16.mxu0 %v7387_v56  ;;  %5373 = vmatprep.subr.bf16.mxu1 %v7390_v61  ;;  %v7459_v56 = vld [vmem:[#allocation2 + $0x1264] ss:$16 sps:$4 sm:$0xff]   ;;  %v7529_v24 = vld [vmem:[#allocation2 + $0x13e0] ss:$16 sps:$4 sm:$0xff]  }
 0x276   : > { %v4596_v61 = vsel %vm4584_vm3, %v4594_v59, %v4595_v50  ;;  %v4592_v59 = vrot.slane %v7934_v9, 2 }
 0x278   : > { %5268 = vmatpush1.bf16.msra.mxu0 %v7385_v32  ;;  %5374 = vmatpush1.bf16.msra.mxu1 %v7388_v0  ;;  %v7460_v32 = vld [vmem:[#allocation2 + $0x1268] ss:$16 sps:$4 sm:$0xff]   ;;  %v7465_v0 = vld [vmem:[#allocation2 + $0x1284] ss:$16 sps:$4 sm:$0xff]  }
 0x279   : > { %5269 = vmatprep.subr.bf16.mxu0 %v7393_v22  ;;  %5375 = vmatprep.subr.bf16.mxu1 %v7396_v5  ;;  %v7468_v22 = vld [vmem:[#allocation2 + $0x128c] ss:$16 sps:$4 sm:$0xff]   ;;  %v7463_v5 = vld [vmem:[#allocation2 + $0x1280] ss:$16 sps:$4 sm:$0xff]  }
 0x27c   : > { %5270 = vmatpush1.bf16.msra.mxu0 %v7391_v6  ;;  %5376 = vmatpush1.bf16.msra.mxu1 %v7394_v16  ;;  %v7466_v6 = vld [vmem:[#allocation2 + $0x1288] ss:$16 sps:$4 sm:$0xff]   ;;  %v7471_v16 = vld [vmem:[#allocation2 + $0x12a4] ss:$16 sps:$4 sm:$0xff]  }
 0x27d   : > { %5271 = vmatprep.subr.bf16.mxu0 %v7399_v18  ;;  %5377 = vmatprep.subr.bf16.mxu1 %v7402_v44  ;;  %v7474_v18 = vld [vmem:[#allocation2 + $0x12ac] ss:$16 sps:$4 sm:$0xff]   ;;  %v7469_v44 = vld [vmem:[#allocation2 + $0x12a0] ss:$16 sps:$4 sm:$0xff]  }
 0x280   : > { %5272 = vmatpush1.bf16.msra.mxu0 %v7397_v2  ;;  %5378 = vmatpush1.bf16.msra.mxu1 %v7400_v13  ;;  %v7472_v2 = vld [vmem:[#allocation2 + $0x12a8] ss:$16 sps:$4 sm:$0xff]   ;;  %v7477_v13 = vld [vmem:[#allocation2 + $0x12c4] ss:$16 sps:$4 sm:$0xff]  }
 0x281   : > { %5273 = vmatprep.subr.bf16.mxu0 %v7405_v14  ;;  %5379 = vmatprep.subr.bf16.mxu1 %v7408_v20  ;;  %v7480_v14 = vld [vmem:[#allocation2 + $0x12cc] ss:$16 sps:$4 sm:$0xff]   ;;  %v7475_v20 = vld [vmem:[#allocation2 + $0x12c0] ss:$16 sps:$4 sm:$0xff]  }
 0x284   : > { %5274 = vmatpush1.bf16.msra.mxu0 %v7403_v15  ;;  %5380 = vmatpush1.bf16.msra.mxu1 %v7406_v12  ;;  %v7478_v15 = vld [vmem:[#allocation2 + $0x12c8] ss:$16 sps:$4 sm:$0xff]   ;;  %v7483_v12 = vld [vmem:[#allocation2 + $0x12e4] ss:$16 sps:$4 sm:$0xff]  }
 0x285   : > { %5275 = vmatprep.subr.bf16.mxu0 %v7411_v25  ;;  %5381 = vmatprep.subr.bf16.mxu1 %v7414_v60  ;;  %v7486_v25 = vld [vmem:[#allocation2 + $0x12ec] ss:$16 sps:$4 sm:$0xff]   ;;  %v7481_v60 = vld [vmem:[#allocation2 + $0x12e0] ss:$16 sps:$4 sm:$0xff]  }
 0x288   : > { %5276 = vmatpush1.bf16.msra.mxu0 %v7409_v19  ;;  %5382 = vmatpush1.bf16.msra.mxu1 %v7412_v11  ;;  %v7484_v19 = vld [vmem:[#allocation2 + $0x12e8] ss:$16 sps:$4 sm:$0xff]   ;;  %v7489_v11 = vld [vmem:[#allocation2 + $0x1304] ss:$16 sps:$4 sm:$0xff]  }
 0x289   : > { %5277 = vmatprep.subr.bf16.mxu0 %v7417_v27  ;;  %5383 = vmatprep.subr.bf16.mxu1 %v7420_v47  ;;  %v7492_v27 = vld [vmem:[#allocation2 + $0x130c] ss:$16 sps:$4 sm:$0xff]   ;;  %v7487_v47 = vld [vmem:[#allocation2 + $0x1300] ss:$16 sps:$4 sm:$0xff]  }
 0x28c   : > { %5278 = vmatpush1.bf16.msra.mxu0 %v7415_v29  ;;  %5384 = vmatpush1.bf16.msra.mxu1 %v7418_v30  ;;  %v7490_v29 = vld [vmem:[#allocation2 + $0x1308] ss:$16 sps:$4 sm:$0xff]   ;;  %v7495_v30 = vld [vmem:[#allocation2 + $0x1324] ss:$16 sps:$4 sm:$0xff]  }
 0x28d   : > { %5279 = vmatprep.subr.bf16.mxu0 %v7423_v31  ;;  %5385 = vmatprep.subr.bf16.mxu1 %v7426_v33  ;;  %v7498_v31 = vld [vmem:[#allocation2 + $0x132c] ss:$16 sps:$4 sm:$0xff]   ;;  %v7493_v33 = vld [vmem:[#allocation2 + $0x1320] ss:$16 sps:$4 sm:$0xff]  }
 0x290   : > { %5280 = vmatpush1.bf16.msra.mxu0 %v7421_v34  ;;  %5386 = vmatpush1.bf16.msra.mxu1 %v7424_v35  ;;  %v7496_v34 = vld [vmem:[#allocation2 + $0x1328] ss:$16 sps:$4 sm:$0xff]   ;;  %v7501_v35 = vld [vmem:[#allocation2 + $0x1344] ss:$16 sps:$4 sm:$0xff]  }
 0x291   : > { %5281 = vmatprep.subr.bf16.mxu0 %v7429_v36  ;;  %5387 = vmatprep.subr.bf16.mxu1 %v7432_v37  ;;  %v7504_v36 = vld [vmem:[#allocation2 + $0x134c] ss:$16 sps:$4 sm:$0xff]   ;;  %v7499_v37 = vld [vmem:[#allocation2 + $0x1340] ss:$16 sps:$4 sm:$0xff]  }
 0x294   : > { %5282 = vmatpush1.bf16.msra.mxu0 %v7427_v38  ;;  %5388 = vmatpush1.bf16.msra.mxu1 %v7430_v63  ;;  %v7502_v38 = vld [vmem:[#allocation2 + $0x1348] ss:$16 sps:$4 sm:$0xff]   ;;  %v7507_v63 = vld [vmem:[#allocation2 + $0x1364] ss:$16 sps:$4 sm:$0xff]  }
 0x295   : > { %5283 = vmatprep.subr.bf16.mxu0 %v7435_v40  ;;  %5389 = vmatprep.subr.bf16.mxu1 %v7438_v41  ;;  %v7510_v40 = vld [vmem:[#allocation2 + $0x136c] ss:$16 sps:$4 sm:$0xff]   ;;  %v7505_v41 = vld [vmem:[#allocation2 + $0x1360] ss:$16 sps:$4 sm:$0xff]  }
 0x298   : > { %5284 = vmatpush1.bf16.msra.mxu0 %v7433_v49  ;;  %5390 = vmatpush1.bf16.msra.mxu1 %v7436_v43  ;;  %v7508_v49 = vld [vmem:[#allocation2 + $0x1368] ss:$16 sps:$4 sm:$0xff]   ;;  %v7513_v43 = vld [vmem:[#allocation2 + $0x1384] ss:$16 sps:$4 sm:$0xff]  }
 0x299   : > { %5306 = vmatprep.subr.bf16.mxu0 %v7441_v53  ;;  %5412 = vmatprep.subr.bf16.mxu1 %v7444_v45  ;;  %v7514_v53 = vld [vmem:[#allocation2 + $0x1388] ss:$16 sps:$4 sm:$0xff]   ;;  %v7519_v45 = vld [vmem:[#allocation2 + $0x13a4] ss:$16 sps:$4 sm:$0xff]  }
 0x29b   : > { %5286 = vmatmul.mubr.bf16.vlgmr.msra.gmra.mrb[0].mxu0 %v4587_v26  ;;  %5392 = vmatmul.mubr.bf16.vlgmr.msra.gmra.mrb[0].mxu1 %v4587_v26  ;;  %v7525_v26 = vld [vmem:[#allocation2 + $0x13c4] ss:$16 sps:$4 sm:$0xff]  }
 0x29c   : > { %5307 = vmatpush1.bf16.msra.mxu0 %v7439_v58  ;;  %5413 = vmatpush1.bf16.msra.mxu1 %v7442_v7  ;;  %v7517_v58 = vld [vmem:[#allocation2 + $0x13a0] ss:$16 sps:$4 sm:$0xff]   ;;  %v7520_v7 = vld [vmem:[#allocation2 + $0x13a8] ss:$16 sps:$4 sm:$0xff]  }
 0x29d   : > { %5308 = vmatprep.subr.bf16.mxu0 %v7447_v48  ;;  %5414 = vmatprep.subr.bf16.mxu1 %v7450_v23  ;;  %v7528_v48 = vld [vmem:[#allocation2 + $0x13cc] ss:$16 sps:$4 sm:$0xff]   ;;  %v7523_v23 = vld [vmem:[#allocation2 + $0x13c0] ss:$16 sps:$4 sm:$0xff]  }
 0x29e   : > { %5295 = vmatprep.mubr.bf16.mxu0 %v4600_v3  ;;  %5401 = vmatprep.mubr.bf16.mxu1 %v4600_v3  ;;  %v7526_v3 = vld [vmem:[#allocation2 + $0x13c8] ss:$16 sps:$4 sm:$0xff]  }
 0x2a0   : > { %5309 = vmatpush1.bf16.msra.mxu0 %v7445_v10  ;;  %5415 = vmatpush1.bf16.msra.mxu1 %v7448_v55  ;;  %v7531_v10 = vld [vmem:[#allocation2 + $0x13e4] ss:$16 sps:$4 sm:$0xff]   ;;  %v7534_v55 = vld [vmem:[#allocation2 + $0x13ec] ss:$16 sps:$4 sm:$0xff]  }
 0x2a1   : > { %5310 = vmatprep.subr.bf16.mxu0 %v7453_v39  ;;  %5416 = vmatprep.subr.bf16.mxu1 %v7456_v28  ;;  %v7532_v39 = vld [vmem:[#allocation2 + $0x13e8] ss:$16 sps:$4 sm:$0xff]   ;;  %v4591_v28 = vrot.slane %v7931_v1, 2  ;;  %v4601_v1 = vrot.slane %v7956_v52, 2 }
 0x2a3   : > { %5296 = vmatmul.mubr.bf16.gmra.mrb[4].mxu0 %v4598_v51  ;;  %5402 = vmatmul.mubr.bf16.gmra.mrb[4].mxu1 %v4598_v51  ;;  %v4602_v9 = vsel %vm4584_vm3, %v4592_v59, %v4601_v1 }
 0x2a4   : > { %5311 = vmatpush1.bf16.msra.mxu0 %v7451_v54  ;;  %5417 = vmatpush1.bf16.msra.mxu1 %v7454_v62  ;;  %v4603_v54 = vrot.slane %v7948_v42, 2  ;;  %v4593_v62 = vsel %vm4584_vm3, %v4591_v28, %v4592_v59 }
 0x2a5   : > { %5312 = vmatprep.subr.bf16.mxu0 %v7459_v56  ;;  %5418 = vmatprep.subr.bf16.mxu1 %v7462_v4  ;;  %v5483_v56 = vlaneseq }
 0x2a6   : > { %5338 = vmatprep.mubr.bf16.mxu0 %v4596_v61  ;;  %5444 = vmatprep.mubr.bf16.mxu1 %v4596_v61  ;;  %v4604_v51 = vsel %vm4584_vm3, %v4595_v50, %v4603_v54 }
 0x2a7   : > { %v5484_v42 = vshrl.u32 %v5483_v56, 7 }
 0x2a8   : > { %5313 = vmatpush1.bf16.msra.mxu0 %v7457_v17  ;;  %5419 = vmatpush1.bf16.msra.mxu1 %v7460_v32  ;;  %v5481_v17 = vld [vmem:[#allocation4] sm:$0xf] }
 0x2a9   : > { %5314 = vmatprep.subr.bf16.mxu0 %v7465_v0  ;;  %5420 = vmatprep.subr.bf16.mxu1 %v7468_v22  ;;  %v5485_v4 = vsub.s32 0, %v5484_v42  ;;  %v5493_v61 = vsub.s32 2, %v5484_v42  ;;  %v5489_v32 = vsub.s32 1, %v5484_v42  ;;  %v5497_v0 = vsub.s32 3, %v5484_v42 }
 0x2ab   : > { %v5486_v22 = vrot.slane %v5481_v17, %v5485_v4  ;;  %v5494_v50 = vrot.slane %v5481_v17, %v5493_v61 }
 0x2ac   : > { %5315 = vmatpush1.bf16.msra.mxu0 %v7463_v5  ;;  %5421 = vmatpush1.bf16.msra.mxu1 %v7466_v6  ;;  %v5490_v5 = vrot.slane %v5481_v17, %v5489_v32  ;;  %v5498_v6 = vrot.slane %v5481_v17, %v5497_v0 }
 0x2ad   : > { %5316 = vmatprep.subr.bf16.mxu0 %v7471_v16  ;;  %5422 = vmatprep.subr.bf16.mxu1 %v7474_v18  ;;  %v5524_v16 = vrot.slane %v5519_v21, %v5485_v4  ;;  %v5532_v18 = vrot.slane %v5519_v21, %v5493_v61 }
 0x2b0   : > { %5317 = vmatpush1.bf16.msra.mxu0 %v7469_v44  ;;  %5423 = vmatpush1.bf16.msra.mxu1 %v7472_v2  ;;  %v5528_v2 = vrot.slane %v5519_v21, %v5489_v32 }
 0x2b1   : > { %5318 = vmatprep.subr.bf16.mxu0 %v7477_v13  ;;  %5424 = vmatprep.subr.bf16.mxu1 %v7480_v14  ;;  %v8107_v13 = vrot.slane %v5519_v21, %v5497_v0 }
 0x2b4   : > { %5319 = vmatpush1.bf16.msra.mxu0 %v7475_v20  ;;  %5425 = vmatpush1.bf16.msra.mxu1 %v7478_v15 }
 0x2b5   : > { %5320 = vmatprep.subr.bf16.mxu0 %v7483_v12  ;;  %5426 = vmatprep.subr.bf16.mxu1 %v7486_v25 }
 0x2b8   : > { %5321 = vmatpush1.bf16.msra.mxu0 %v7481_v60  ;;  %5427 = vmatpush1.bf16.msra.mxu1 %v7484_v19 }
 0x2b9   : > { %5322 = vmatprep.subr.bf16.mxu0 %v7489_v11  ;;  %5428 = vmatprep.subr.bf16.mxu1 %v7492_v27 }
 0x2bc   : > { %5323 = vmatpush1.bf16.msra.mxu0 %v7487_v47  ;;  %5429 = vmatpush1.bf16.msra.mxu1 %v7490_v29 }
 0x2bd   : > { %5324 = vmatprep.subr.bf16.mxu0 %v7495_v30  ;;  %5430 = vmatprep.subr.bf16.mxu1 %v7498_v31 }
 0x2c0   : > { %5325 = vmatpush1.bf16.msra.mxu0 %v7493_v33  ;;  %5431 = vmatpush1.bf16.msra.mxu1 %v7496_v34 }
 0x2c1   : > { %5326 = vmatprep.subr.bf16.mxu0 %v7501_v35  ;;  %5432 = vmatprep.subr.bf16.mxu1 %v7504_v36 }
 0x2c4   : > { %5327 = vmatpush1.bf16.msra.mxu0 %v7499_v37  ;;  %5433 = vmatpush1.bf16.msra.mxu1 %v7502_v38 }
 0x2c5   : > { %5328 = vmatprep.subr.bf16.mxu0 %v7507_v63  ;;  %5434 = vmatprep.subr.bf16.mxu1 %v7510_v40 }
 0x2c8   : > { %5329 = vmatpush1.bf16.msra.mxu0 %v7505_v41  ;;  %5435 = vmatpush1.bf16.msra.mxu1 %v7508_v49 }
 0x2c9   : > { %5330 = vmatprep.subr.bf16.mxu0 %v7513_v43  ;;  %5436 = vmatprep.subr.bf16.mxu1 %v7516_v57 }
 0x2cc   : > { %5331 = vmatpush1.bf16.msra.mxu0 %v7511_v8  ;;  %5437 = vmatpush1.bf16.msra.mxu1 %v7514_v53 }
 0x2cd   : > { %5332 = vmatprep.subr.bf16.mxu0 %v7519_v45  ;;  %5438 = vmatprep.subr.bf16.mxu1 %v7522_v46 }
 0x2d0   : > { %5333 = vmatpush1.bf16.msra.mxu0 %v7517_v58  ;;  %5439 = vmatpush1.bf16.msra.mxu1 %v7520_v7 }
 0x2d1   : > { %5334 = vmatprep.subr.bf16.mxu0 %v7525_v26  ;;  %5440 = vmatprep.subr.bf16.mxu1 %v7528_v48 }
 0x2d4   : > { %5335 = vmatpush1.bf16.msra.mxu0 %v7523_v23  ;;  %5441 = vmatpush1.bf16.msra.mxu1 %v7526_v3 }
 0x2d5   : > { %5336 = vmatprep.subr.bf16.mxu0 %v7531_v10  ;;  %5442 = vmatprep.subr.bf16.mxu1 %v7534_v55 }
 0x2d8   : > { %5337 = vmatpush1.bf16.msra.mxu0 %v7529_v24  ;;  %5443 = vmatpush1.bf16.msra.mxu1 %v7532_v39 }
 0x2db   : > { %5339 = vmatmul.mubr.bf16.vlgmr.msra.gmra.mrb[0].mxu0 %v4593_v62  ;;  %5445 = vmatmul.mubr.bf16.vlgmr.msra.gmra.mrb[0].mxu1 %v4593_v62 }
 0x2dc   : > { %5348 = vmatprep.mubr.bf16.mxu0 %v4604_v51  ;;  %5454 = vmatprep.mubr.bf16.mxu1 %v4604_v51 }
 0x2e3   : > { %5349 = vmatmul.mubr.bf16.gmra.mrb[4].mxu0 %v4602_v9  ;;  %5455 = vmatmul.mubr.bf16.gmra.mrb[4].mxu1 %v4602_v9 }
 0x3ae   : > { %v5340_v44 = vpop.f32.mrb[0].mxu0  ;;  %v5446_v52 = vpop.f32.mrb[0].mxu1 }
 0x3af   : > { %v5503_v14 = vmul.f32 %v5486_v22, %v5340_v44  ;;  %v5505_v20 = vmul.f32 %v5494_v50, %v5446_v52  ;;  %v5342_v15 = vpop.f32.mrb[1].mxu0  ;;  %v5448_v12 = vpop.f32.mrb[1].mxu1 }
 0x3b0   : > { %v5504_v25 = vmul.f32 %v5490_v5, %v5342_v15  ;;  %v5506_v60 = vmul.f32 %v5498_v6, %v5448_v12  ;;  %v5344_v19 = vpop.f32.mrb[2].mxu0  ;;  %v5450_v11 = vpop.f32.mrb[2].mxu1 }
 0x3b1   : > { %v5541_v27 = vadd.f32 %v5524_v16, %v5503_v14  ;;  %v5543_v47 = vadd.f32 %v5532_v18, %v5505_v20  ;;  %v5507_v29 = vmul.f32 %v5486_v22, %v5344_v19  ;;  %v5509_v30 = vmul.f32 %v5494_v50, %v5450_v11  ;;  %v5346_v31 = vpop.f32.mrb[3].mxu0  ;;  %v5452_v33 = vpop.f32.mrb[3].mxu1 }
 0x3b2   : > { %v5542_v34 = vadd.f32 %v5528_v2, %v5504_v25  ;;  %v5544_v35 = vadd.f32 %v8107_v13, %v5506_v60  ;;  %v5508_v36 = vmul.f32 %v5490_v5, %v5346_v31  ;;  %v5510_v37 = vmul.f32 %v5498_v6, %v5452_v33 }
 0x3b3   : > { %7535 = vtanh.f32 %v5541_v27  ;;  %v5545_v38 = vadd.f32 %v5524_v16, %v5507_v29  ;;  %v5547_v63 = vadd.f32 %v5532_v18, %v5509_v30 }
 0x3b4   : > { %7537 = vtanh.f32 %v5543_v47  ;;  %v5546_v40 = vadd.f32 %v5528_v2, %v5508_v36  ;;  %v5548_v41 = vadd.f32 %v8107_v13, %v5510_v37 }
 0x3b5   : > { %7539 = vtanh.f32 %v5542_v34 }
 0x3b6   : > { %7541 = vtanh.f32 %v5544_v35  ;;  %v5350_v49 = vpop.f32.mrb[4].mxu0  ;;  %v5456_v43 = vpop.f32.mrb[4].mxu1 }
 0x3b7   : > { %7543 = vtanh.f32 %v5545_v38  ;;  %v5511_v57 = vmul.f32 %v5486_v22, %v5350_v49  ;;  %v5513_v8 = vmul.f32 %v5494_v50, %v5456_v43  ;;  %v5352_v53 = vpop.f32.mrb[5].mxu0  ;;  %v5458_v45 = vpop.f32.mrb[5].mxu1 }
 0x3b8   : > { %7545 = vtanh.f32 %v5547_v63  ;;  %v5512_v46 = vmul.f32 %v5490_v5, %v5352_v53  ;;  %v5514_v58 = vmul.f32 %v5498_v6, %v5458_v45  ;;  %v5354_v7 = vpop.f32.mrb[6].mxu0  ;;  %v5460_v26 = vpop.f32.mrb[6].mxu1 }
 0x3b9   : > { %7547 = vtanh.f32 %v5546_v40  ;;  %v5549_v48 = vadd.f32 %v5524_v16, %v5511_v57  ;;  %v5551_v23 = vadd.f32 %v5532_v18, %v5513_v8  ;;  %v5515_v3 = vmul.f32 %v5486_v22, %v5354_v7  ;;  %v5356_v10 = vpop.f32.mrb[7].mxu0  ;;  %v5462_v55 = vpop.f32.mrb[7].mxu1 }
 0x3ba   : > { %7549 = vtanh.f32 %v5548_v41  ;;  %v5550_v24 = vadd.f32 %v5528_v2, %v5512_v46  ;;  %v5552_v39 = vadd.f32 %v8107_v13, %v5514_v58  ;;  %v5517_v28 = vmul.f32 %v5494_v50, %v5460_v26 }
 0x3bb   : > { %7551 = vtanh.f32 %v5549_v48  ;;  %v5553_v59 = vadd.f32 %v5524_v16, %v5515_v3  ;;  %v5516_v54 = vmul.f32 %v5490_v5, %v5356_v10  ;;  %v5518_v62 = vmul.f32 %v5498_v6, %v5462_v55 }
 0x3bc   : > { %7553 = vtanh.f32 %v5551_v23  ;;  %v5555_v51 = vadd.f32 %v5532_v18, %v5517_v28 }
 0x3bd   : > { %v7536_v1 = vpop.eup %7535  ;;  %7555 = vtanh.f32 %v5550_v24  ;;  %v5554_v9 = vadd.f32 %v5528_v2, %v5516_v54  ;;  %v5556_v42 = vadd.f32 %v8107_v13, %v5518_v62 }
 0x3be   : > { %v7538_v56 = vpop.eup %7537  ;;  %5573 = vst [vmem:[%s8116_s15] sm:$0xff] %v7536_v1  ;;  %7557 = vtanh.f32 %v5552_v39 }
 0x3bf   : > { %v7540_v4 = vpop.eup %7539  ;;  %5575 = vst [vmem:[%s8116_s15 + $0x10] sm:$0xff] %v7538_v56  ;;  %7559 = vtanh.f32 %v5553_v59 }
 0x3c0   : > { %v7542_v61 = vpop.eup %7541  ;;  %5574 = vst [vmem:[%s8116_s15 + $0x8] sm:$0xff] %v7540_v4  ;;  %7561 = vtanh.f32 %v5555_v51 }
 0x3c1   : > { %v7544_v17 = vpop.eup %7543  ;;  %5576 = vst [vmem:[%s8116_s15 + $0x18] sm:$0xff] %v7542_v61  ;;  %7563 = vtanh.f32 %v5554_v9 }
 0x3c2   : > { %v7546_v32 = vpop.eup %7545  ;;  %5577 = vst [vmem:[%s8116_s15 + $0x20] sm:$0xff] %v7544_v17  ;;  %7565 = vtanh.f32 %v5556_v42 }
 0x3c3   : > { %v7548_v0 = vpop.eup %7547  ;;  %5579 = vst [vmem:[%s8116_s15 + $0x30] sm:$0xff] %v7546_v32 }
 0x3c4   : > { %v7550_v21 = vpop.eup %7549  ;;  %5578 = vst [vmem:[%s8116_s15 + $0x28] sm:$0xff] %v7548_v0 }
 0x3c5   : > { %v7552_v22 = vpop.eup %7551  ;;  %5580 = vst [vmem:[%s8116_s15 + $0x38] sm:$0xff] %v7550_v21 }
 0x3c6   : > { %v7554_v50 = vpop.eup %7553  ;;  %5581 = vst [vmem:[%s8116_s15 + $0x40] sm:$0xff] %v7552_v22 }
 0x3c7   : > { %v7556_v5 = vpop.eup %7555  ;;  %5583 = vst [vmem:[%s8116_s15 + $0x50] sm:$0xff] %v7554_v50 }
 0x3c8   : > { %v7558_v6 = vpop.eup %7557  ;;  %5582 = vst [vmem:[%s8116_s15 + $0x48] sm:$0xff] %v7556_v5 }
 0x3c9   : > { %v7560_v16 = vpop.eup %7559  ;;  %5584 = vst [vmem:[%s8116_s15 + $0x58] sm:$0xff] %v7558_v6 }
 0x3ca   : > { %v7562_v18 = vpop.eup %7561  ;;  %5585 = vst [vmem:[%s8116_s15 + $0x60] sm:$0xff] %v7560_v16 }
 0x3cb   : > { %v7564_v44 = vpop.eup %7563  ;;  %5587 = vst [vmem:[%s8116_s15 + $0x70] sm:$0xff] %v7562_v18 }
 0x3cc   : > { %v7566_v52 = vpop.eup %7565  ;;  %5586 = vst [vmem:[%s8116_s15 + $0x68] sm:$0xff] %v7564_v44 }
 0x3cd   : > { %5588 = vst [vmem:[%s8116_s15 + $0x78] sm:$0xff] %v7566_v52 }
 0x3ce PF: > { %s16_s17 = sadd.s32 1, %s7681_s17   ;;  %s8160_s15 = smov %s7677_s16 }
 0x3cf   : > { %p13_p8 = scmp.ge.s32.totalorder %s16_s17, 4   ;;  %s8161_s16 = smov %s8163_s23 }
 0x3d1   :  { %15 = sbr.rel (!%p13_p8) target bundleno = 3 (0x3), region = 83 }
 0x3d8   :  { %5621 = vsyncpa [#allocation3], 1 }
 0x3d9   :  { %5623 = vsyncpa [#allocation3 + $0x1], 1 }
 0x3da   :  { %5624 = vsyncpa [#allocation5], 1 }

</bundles_post_ra>
